<compile_context>
chip_gen: v7x
topology: tpu7x:2x2x1
jax: 0.10.0
libtpu: 0.0.40
codegen_flags: <defaults>
</compile_context>

<pallas_src>
import functools

import jax
import jax.numpy as jnp
from jax.experimental import pallas as pl
from jax.experimental.pallas import tpu as pltpu

# Fixed layer geometry (PyTorch module with 28x28 inputs).
_C1, _C2, _K = 20, 50, 5
_H1 = 24            # conv1 output spatial
_P1, _P1W = 12, 16  # after pool1 (W padded to 16 so in-kernel reshapes are tile-aligned)
_H2 = 8             # conv2 output spatial
_P2 = 4             # after pool2
_FC1, _NCLS = 500, 10
_CPAD, _FPAD = 128, 512  # lane-dense paddings


def _fused_net_kernel(a1_ref, w1_ref, b1_ref, w2_ref, b2_ref,
                      wf1_ref, bf1_ref, wf2_ref, bf2_ref,
                      out_ref, h1s_ref, y2s_ref, *, batch):
    B = batch

    # ---- stage 1: conv1 (single im2col matmul, bf16 operands) + sigmoid ----
    y1 = jnp.dot(a1_ref[...], w1_ref[...], preferred_element_type=jnp.float32)
    y1 = y1 + b1_ref[...]
    y1 = pl.reciprocal(1.0 + jnp.exp(-y1), approx=True)          # sigmoid via EUP

    # ---- stage 2: 2x2/2 max-pool. rows of y1 are ordered (quadrant, b, ph, pw) ----
    chunk = B * _P1 * _P1W
    h1 = jnp.maximum(jnp.maximum(y1[0 * chunk:1 * chunk], y1[1 * chunk:2 * chunk]),
                     jnp.maximum(y1[2 * chunk:3 * chunk], y1[3 * chunk:4 * chunk]))
    h1s_ref[...] = h1.reshape(B, _P1, _P1W, _CPAD)               # VMEM-resident

    # ---- stage 3: conv2 = 25 shifted 1x1-conv matmuls over VMEM activations ----
    acc2 = jnp.zeros((B * _H2 * _H2, _CPAD), jnp.float32)
    for di in range(_K):
        for dj in range(_K):
            patch = h1s_ref[:, di:di + _H2, dj:dj + _H2, :]      # (B, 8, 8, 128)
            lhs = patch.reshape(B * _H2 * _H2, _CPAD).astype(jnp.bfloat16)
            acc2 = acc2 + jnp.dot(lhs, w2_ref[di * _K + dj],
                                  preferred_element_type=jnp.float32)
    y2 = jnp.tanh(acc2 + b2_ref[...])
    y2s_ref[...] = y2.reshape(B, _H2, _H2, _CPAD)

    # ---- stage 4: pool2 fused into fc1 (+ relu) ----
    acc1 = jnp.zeros((B, _FPAD), jnp.float32)
    for p in range(_P2):
        for q in range(_P2):
            h2 = jnp.maximum(
                jnp.maximum(y2s_ref[:, 2 * p, 2 * q, :], y2s_ref[:, 2 * p, 2 * q + 1, :]),
                jnp.maximum(y2s_ref[:, 2 * p + 1, 2 * q, :], y2s_ref[:, 2 * p + 1, 2 * q + 1, :]))
            acc1 = acc1 + jnp.dot(h2.astype(jnp.bfloat16), wf1_ref[p * _P2 + q],
                                  preferred_element_type=jnp.float32)
    f1 = jnp.maximum(acc1 + bf1_ref[...], 0.0)                   # relu

    # ---- stage 5: fc2 + log_softmax masked over the padded lanes ----
    logits = jnp.dot(f1.astype(jnp.bfloat16), wf2_ref[...],
                     preferred_element_type=jnp.float32) + bf2_ref[...]
    lane = jax.lax.broadcasted_iota(jnp.int32, (B, _CPAD), 1)
    valid = lane < _NCLS
    logits = jnp.where(valid, logits, -1e30)
    m = jnp.max(logits, axis=-1, keepdims=True)
    e = jnp.where(valid, jnp.exp(logits - m), 0.0)
    lse = jnp.log(jnp.sum(e, axis=-1, keepdims=True))
    out_ref[...] = logits - m - lse


def _pack_params(params):
    """Zero-pad / transpose the PyTorch-layout weights into MXU-friendly slabs."""
    w1 = params["conv1_w"].reshape(_C1, _K * _K).T                       # (25, 20)
    w1p = jnp.zeros((_CPAD, _CPAD), jnp.float32).at[:_K * _K, :_C1].set(w1)
    b1p = jnp.zeros((1, _CPAD), jnp.float32).at[0, :_C1].set(params["conv1_b"])

    w2 = jnp.transpose(params["conv2_w"].reshape(_C2, _C1, _K * _K), (2, 1, 0))  # (25,20,50)
    w2p = jnp.zeros((_K * _K, _CPAD, _CPAD), jnp.float32).at[:, :_C1, :_C2].set(w2)
    b2p = jnp.zeros((1, _CPAD), jnp.float32).at[0, :_C2].set(params["conv2_b"])

    wf1 = jnp.transpose(params["fc1_w"].reshape(_C2, _P2 * _P2, _FC1), (1, 0, 2))  # (16,50,500)
    wf1p = jnp.zeros((_P2 * _P2, _CPAD, _FPAD), jnp.float32).at[:, :_C2, :_FC1].set(wf1)
    bf1p = jnp.zeros((1, _FPAD), jnp.float32).at[0, :_FC1].set(params["fc1_b"])

    wf2p = jnp.zeros((_FPAD, _CPAD), jnp.float32).at[:_FC1, :_NCLS].set(params["fc2_w"])
    bf2p = jnp.zeros((1, _CPAD), jnp.float32).at[0, :_NCLS].set(params["fc2_b"])

    bf16 = jnp.bfloat16
    return (w1p.astype(bf16), b1p, w2p.astype(bf16), b2p,
            wf1p.astype(bf16), bf1p, wf2p.astype(bf16), bf2p)


def _build_conv1_lhs(x):
    """im2col for conv1 (raw 28x28 input only), rows ordered (pool-quadrant, b, ph, pw)
    so the 2x2 max-pool becomes a max over 4 contiguous row chunks inside the kernel."""
    B = x.shape[0]
    xs = x[:, 0]                                                          # (B, 28, 28)
    patches = jnp.stack(
        [xs[:, di:di + _H1, dj:dj + _H1] for di in range(_K) for dj in range(_K)],
        axis=-1)                                                          # (B, 24, 24, 25)
    quads = jnp.stack(
        [patches[:, u::2, v::2, :] for u in (0, 1) for v in (0, 1)], axis=0)  # (4,B,12,12,25)
    quads = jnp.pad(quads, ((0, 0), (0, 0), (0, 0),
                            (0, _P1W - _P1), (0, _CPAD - _K * _K)))       # (4,B,12,16,128)
    return quads.reshape(4 * B * _P1 * _P1W, _CPAD).astype(jnp.bfloat16)


def _full_spec(shape):
    if len(shape) == 2:
        return pl.BlockSpec(shape, lambda i: (0, 0))
    return pl.BlockSpec(shape, lambda i: (0, 0, 0))


@jax.jit
def net_forward(params, x):
    """x: (B, 1, 28, 28) float32 -> (B, 10) log-probabilities."""
    B, C, H, W = x.shape
    assert (C, H, W) == (1, 28, 28), "Net expects (B, 1, 28, 28) inputs"

    a1 = _build_conv1_lhs(x)                                              # (4*B*192, 128) bf16
    w1p, b1p, w2p, b2p, wf1p, bf1p, wf2p, bf2p = _pack_params(params)
    inputs = (a1, w1p, b1p, w2p, b2p, wf1p, bf1p, wf2p, bf2p)

    r1 = a1.shape[0]
    flops = 2 * (r1 * _CPAD * _CPAD
                 + _K * _K * B * _H2 * _H2 * _CPAD * _CPAD
                 + _P2 * _P2 * B * _CPAD * _FPAD
                 + B * _FPAD * _CPAD)
    transcendentals = r1 * _CPAD + B * _H2 * _H2 * _CPAD + B * _CPAD
    bytes_accessed = sum(int(a.size) * a.dtype.itemsize for a in inputs) + B * _CPAD * 4

    out = pl.pallas_call(
        functools.partial(_fused_net_kernel, batch=B),
        out_shape=jax.ShapeDtypeStruct((B, _CPAD), jnp.float32),
        grid=(1,),
        in_specs=[_full_spec(a.shape) for a in inputs],
        out_specs=pl.BlockSpec((B, _CPAD), lambda i: (0, 0)),
        scratch_shapes=[
            pltpu.VMEM((B, _P1, _P1W, _CPAD), jnp.float32),   # pooled conv1 activations
            pltpu.VMEM((B, _H2, _H2, _CPAD), jnp.float32),    # conv2 activations (pre-pool)
        ],
        compiler_params=pltpu.CompilerParams(
            dimension_semantics=("arbitrary",),
            vmem_limit_bytes=32 * 1024 * 1024),
        cost_estimate=pl.CostEstimate(flops=flops,
                                      transcendentals=transcendentals,
                                      bytes_accessed=bytes_accessed),
    )(*inputs)
    return out[:, :_NCLS]


def init_params(key):
    ks = jax.random.split(key, 8)
    scale = 0.05
    return {
        "conv1_w": scale * jax.random.normal(ks[0], (20, 1, 5, 5), jnp.float32),
        "conv1_b": scale * jax.random.normal(ks[1], (20,), jnp.float32),
        "conv2_w": scale * jax.random.normal(ks[2], (50, 20, 5, 5), jnp.float32),
        "conv2_b": scale * jax.random.normal(ks[3], (50,), jnp.float32),
        "fc1_w": scale * jax.random.normal(ks[4], (4 * 4 * 50, 500), jnp.float32),
        "fc1_b": scale * jax.random.normal(ks[5], (500,), jnp.float32),
        "fc2_w": scale * jax.random.normal(ks[6], (500, 10), jnp.float32),
        "fc2_b": scale * jax.random.normal(ks[7], (10,), jnp.float32),
    }


def _reference_forward(params, x):
    """Pure-JAX (XLA) reference used only for a correctness check."""
    y = jax.lax.conv_general_dilated(x, params["conv1_w"], (1, 1), "VALID",
                                     dimension_numbers=("NCHW", "OIHW", "NCHW"))
    y = jax.nn.sigmoid(y + params["conv1_b"][None, :, None, None])
    y = jax.lax.reduce_window(y, -jnp.inf, jax.lax.max, (1, 1, 2, 2), (1, 1, 2, 2), "VALID")
    y = jax.lax.conv_general_dilated(y, params["conv2_w"], (1, 1), "VALID",
                                     dimension_numbers=("NCHW", "OIHW", "NCHW"))
    y = jnp.tanh(y + params["conv2_b"][None, :, None, None])
    y = jax.lax.reduce_window(y, -jnp.inf, jax.lax.max, (1, 1, 2, 2), (1, 1, 2, 2), "VALID")
    y = y.reshape(y.shape[0], -1)
    y = jnp.maximum(y @ params["fc1_w"] + params["fc1_b"], 0.0)
    y = y @ params["fc2_w"] + params["fc2_b"]
    return jax.nn.log_softmax(y, axis=-1)


if __name__ == "__main__":
    key = jax.random.PRNGKey(0)
    k_params, k_x = jax.random.split(key)
    params = init_params(k_params)
    x = jax.random.normal(k_x, (2, 1, 28, 28), jnp.float32)

    out = jax.block_until_ready(net_forward(params, x))

    assert out.shape == (2, 10)
    assert bool(jnp.all(jnp.isfinite(out)))
    # log_softmax rows should exponentiate-and-sum to 1
    assert bool(jnp.allclose(jnp.sum(jnp.exp(out), axis=1), 1.0, atol=1e-4))
    # agree with the f32 XLA reference (loose tol: bf16 matmul operands in the kernel)
    ref = _reference_forward(params, x)
    assert bool(jnp.allclose(out, ref, atol=7e-2)), float(jnp.max(jnp.abs(out - ref)))
    print("KERNEL_OK")
</pallas_src>

<mosaic_0001>
module attributes {stable_mosaic.version = 11 : i64} {
  func.func @_fused_net_kernel(%arg0: i32, %arg1: memref<1536x128xbf16, #tpu.memory_space<vmem>>, %arg2: memref<128x128xbf16, #tpu.memory_space<vmem>>, %arg3: memref<1x128xf32, #tpu.memory_space<vmem>>, %arg4: memref<25x128x128xbf16, #tpu.memory_space<vmem>>, %arg5: memref<1x128xf32, #tpu.memory_space<vmem>>, %arg6: memref<16x128x512xbf16, #tpu.memory_space<vmem>>, %arg7: memref<1x512xf32, #tpu.memory_space<vmem>>, %arg8: memref<512x128xbf16, #tpu.memory_space<vmem>>, %arg9: memref<1x128xf32, #tpu.memory_space<vmem>>, %arg10: memref<2x128xf32, #tpu.memory_space<vmem>>, %arg11: memref<2x12x16x128xf32, #tpu.memory_space<vmem>>, %arg12: memref<2x8x8x128xf32, #tpu.memory_space<vmem>>) attributes {dimension_semantics = [#tpu.dimension_semantics<arbitrary>], iteration_bounds = array<i64: 1>, scalar_prefetch = 0 : i64, scratch_operands = 2 : i64, tpu.core_type = #tpu.core_type<tc>, window_params = [{pipeline_mode = #tpu.pipeline_mode<synchronous>, transform_indices = @transform_0, window_bounds = array<i64: 1536, 128>}, {pipeline_mode = #tpu.pipeline_mode<synchronous>, transform_indices = @transform_1, window_bounds = array<i64: 128, 128>}, {pipeline_mode = #tpu.pipeline_mode<synchronous>, transform_indices = @transform_2, window_bounds = array<i64: 1, 128>}, {pipeline_mode = #tpu.pipeline_mode<synchronous>, transform_indices = @transform_3, window_bounds = array<i64: 25, 128, 128>}, {pipeline_mode = #tpu.pipeline_mode<synchronous>, transform_indices = @transform_4, window_bounds = array<i64: 1, 128>}, {pipeline_mode = #tpu.pipeline_mode<synchronous>, transform_indices = @transform_5, window_bounds = array<i64: 16, 128, 512>}, {pipeline_mode = #tpu.pipeline_mode<synchronous>, transform_indices = @transform_6, window_bounds = array<i64: 1, 512>}, {pipeline_mode = #tpu.pipeline_mode<synchronous>, transform_indices = @transform_7, window_bounds = array<i64: 512, 128>}, {pipeline_mode = #tpu.pipeline_mode<synchronous>, transform_indices = @transform_8, window_bounds = array<i64: 1, 128>}, {pipeline_mode = #tpu.pipeline_mode<synchronous>, transform_indices = @transform_9, window_bounds = array<i64: 2, 128>}]} {
    %c0 = arith.constant 0 : index
    %c0_0 = arith.constant 0 : index
    %0 = vector.load %arg1[%c0, %c0_0] : memref<1536x128xbf16, #tpu.memory_space<vmem>>, vector<1536x128xbf16>
    %c0_1 = arith.constant 0 : index
    %c0_2 = arith.constant 0 : index
    %1 = vector.load %arg2[%c0_1, %c0_2] : memref<128x128xbf16, #tpu.memory_space<vmem>>, vector<128x128xbf16>
    %cst = arith.constant dense<0.000000e+00> : vector<1536x128xf32>
    %2 = tpu.matmul %0, %1, %cst {dimension_numbers = #tpu.dot_dimension_numbers<[1], [0], [0], [1], [0, 0, 1, 1], [], []>} : vector<1536x128xbf16>, vector<128x128xbf16>, vector<1536x128xf32> -> vector<1536x128xf32>
    %c0_3 = arith.constant 0 : index
    %c0_4 = arith.constant 0 : index
    %3 = vector.load %arg3[%c0_3, %c0_4] : memref<1x128xf32, #tpu.memory_space<vmem>>, vector<1x128xf32>
    %4 = vector.broadcast %3 : vector<1x128xf32> to vector<1536x128xf32>
    %5 = arith.addf %2, %4 : vector<1536x128xf32>
    %cst_5 = arith.constant 0.000000e+00 : f32
    %6 = vector.broadcast %cst_5 : f32 to vector<1536x128xf32>
    %7 = arith.subf %6, %5 : vector<1536x128xf32>
    %8 = math.exp %7 : vector<1536x128xf32>
    %cst_6 = arith.constant 1.000000e+00 : f32
    %9 = vector.broadcast %cst_6 : f32 to vector<1536x128xf32>
    %10 = arith.addf %9, %8 : vector<1536x128xf32>
    %11 = tpu.reciprocal %10 {approx = true} : vector<1536x128xf32> -> vector<1536x128xf32>
    %12 = vector.extract_strided_slice %11 {offsets = [0, 0], sizes = [384, 128], strides = [1, 1]} : vector<1536x128xf32> to vector<384x128xf32>
    %13 = vector.extract_strided_slice %11 {offsets = [384, 0], sizes = [384, 128], strides = [1, 1]} : vector<1536x128xf32> to vector<384x128xf32>
    %14 = arith.maximumf %12, %13 : vector<384x128xf32>
    %15 = vector.extract_strided_slice %11 {offsets = [768, 0], sizes = [384, 128], strides = [1, 1]} : vector<1536x128xf32> to vector<384x128xf32>
    %16 = vector.extract_strided_slice %11 {offsets = [1152, 0], sizes = [384, 128], strides = [1, 1]} : vector<1536x128xf32> to vector<384x128xf32>
    %17 = arith.maximumf %15, %16 : vector<384x128xf32>
    %18 = arith.maximumf %14, %17 : vector<384x128xf32>
    %19 = vector.shape_cast %18 : vector<384x128xf32> to vector<2x12x16x128xf32>
    %c0_7 = arith.constant 0 : index
    %c0_8 = arith.constant 0 : index
    %c0_9 = arith.constant 0 : index
    %c0_10 = arith.constant 0 : index
    %20 = vector.load %arg11[%c0_7, %c0_8, %c0_9, %c0_10] : memref<2x12x16x128xf32, #tpu.memory_space<vmem>>, vector<2x12x16x128xf32>
    tpu.vector_store %arg11[%c0_7, %c0_8, %c0_9, %c0_10], %19 {strides = array<i32>} : memref<2x12x16x128xf32, #tpu.memory_space<vmem>>, vector<2x12x16x128xf32>,
    %cst_11 = arith.constant 0.000000e+00 : f32
    %21 = vector.broadcast %cst_11 : f32 to vector<128x128xf32>
    %c0_12 = arith.constant 0 : index
    %c0_13 = arith.constant 0 : index
    %c0_14 = arith.constant 0 : index
    %c0_15 = arith.constant 0 : index
    %22 = vector.load %arg11[%c0_12, %c0_13, %c0_14, %c0_15] : memref<2x12x16x128xf32, #tpu.memory_space<vmem>>, vector<2x8x8x128xf32>
    %23 = vector.shape_cast %22 : vector<2x8x8x128xf32> to vector<128x128xf32>
    %24 = arith.truncf %23 : vector<128x128xf32> to vector<128x128xbf16>
    %c0_16 = arith.constant 0 : index
    %c0_17 = arith.constant 0 : index
    %c0_18 = arith.constant 0 : index
    %25 = vector.load %arg4[%c0_16, %c0_17, %c0_18] : memref<25x128x128xbf16, #tpu.memory_space<vmem>>, vector<1x128x128xbf16>
    %26 = vector.shape_cast %25 : vector<1x128x128xbf16> to vector<128x128xbf16>
    %cst_19 = arith.constant dense<0.000000e+00> : vector<128x128xf32>
    %27 = tpu.matmul %24, %26, %cst_19 {dimension_numbers = #tpu.dot_dimension_numbers<[1], [0], [0], [1], [0, 0, 1, 1], [], []>} : vector<128x128xbf16>, vector<128x128xbf16>, vector<128x128xf32> -> vector<128x128xf32>
    %28 = arith.addf %21, %27 : vector<128x128xf32>
    %c0_20 = arith.constant 0 : index
    %c0_21 = arith.constant 0 : index
    %c1 = arith.constant 1 : index
    %c0_22 = arith.constant 0 : index
    %29 = vector.load %arg11[%c0_20, %c0_21, %c1, %c0_22] : memref<2x12x16x128xf32, #tpu.memory_space<vmem>>, vector<2x8x8x128xf32>
    %30 = vector.shape_cast %29 : vector<2x8x8x128xf32> to vector<128x128xf32>
    %31 = arith.truncf %30 : vector<128x128xf32> to vector<128x128xbf16>
    %c1_23 = arith.constant 1 : index
    %c0_24 = arith.constant 0 : index
    %c0_25 = arith.constant 0 : index
    %32 = vector.load %arg4[%c1_23, %c0_24, %c0_25] : memref<25x128x128xbf16, #tpu.memory_space<vmem>>, vector<1x128x128xbf16>
    %33 = vector.shape_cast %32 : vector<1x128x128xbf16> to vector<128x128xbf16>
    %cst_26 = arith.constant dense<0.000000e+00> : vector<128x128xf32>
    %34 = tpu.matmul %31, %33, %cst_26 {dimension_numbers = #tpu.dot_dimension_numbers<[1], [0], [0], [1], [0, 0, 1, 1], [], []>} : vector<128x128xbf16>, vector<128x128xbf16>, vector<128x128xf32> -> vector<128x128xf32>
    %35 = arith.addf %28, %34 : vector<128x128xf32>
    %c0_27 = arith.constant 0 : index
    %c0_28 = arith.constant 0 : index
    %c2 = arith.constant 2 : index
    %c0_29 = arith.constant 0 : index
    %36 = vector.load %arg11[%c0_27, %c0_28, %c2, %c0_29] : memref<2x12x16x128xf32, #tpu.memory_space<vmem>>, vector<2x8x8x128xf32>
    %37 = vector.shape_cast %36 : vector<2x8x8x128xf32> to vector<128x128xf32>
    %38 = arith.truncf %37 : vector<128x128xf32> to vector<128x128xbf16>
    %c2_30 = arith.constant 2 : index
    %c0_31 = arith.constant 0 : index
    %c0_32 = arith.constant 0 : index
    %39 = vector.load %arg4[%c2_30, %c0_31, %c0_32] : memref<25x128x128xbf16, #tpu.memory_space<vmem>>, vector<1x128x128xbf16>
    %40 = vector.shape_cast %39 : vector<1x128x128xbf16> to vector<128x128xbf16>
    %cst_33 = arith.constant dense<0.000000e+00> : vector<128x128xf32>
    %41 = tpu.matmul %38, %40, %cst_33 {dimension_numbers = #tpu.dot_dimension_numbers<[1], [0], [0], [1], [0, 0, 1, 1], [], []>} : vector<128x128xbf16>, vector<128x128xbf16>, vector<128x128xf32> -> vector<128x128xf32>
    %42 = arith.addf %35, %41 : vector<128x128xf32>
    %c0_34 = arith.constant 0 : index
    %c0_35 = arith.constant 0 : index
    %c3 = arith.constant 3 : index
    %c0_36 = arith.constant 0 : index
    %43 = vector.load %arg11[%c0_34, %c0_35, %c3, %c0_36] : memref<2x12x16x128xf32, #tpu.memory_space<vmem>>, vector<2x8x8x128xf32>
    %44 = vector.shape_cast %43 : vector<2x8x8x128xf32> to vector<128x128xf32>
    %45 = arith.truncf %44 : vector<128x128xf32> to vector<128x128xbf16>
    %c3_37 = arith.constant 3 : index
    %c0_38 = arith.constant 0 : index
    %c0_39 = arith.constant 0 : index
    %46 = vector.load %arg4[%c3_37, %c0_38, %c0_39] : memref<25x128x128xbf16, #tpu.memory_space<vmem>>, vector<1x128x128xbf16>
    %47 = vector.shape_cast %46 : vector<1x128x128xbf16> to vector<128x128xbf16>
    %cst_40 = arith.constant dense<0.000000e+00> : vector<128x128xf32>
    %48 = tpu.matmul %45, %47, %cst_40 {dimension_numbers = #tpu.dot_dimension_numbers<[1], [0], [0], [1], [0, 0, 1, 1], [], []>} : vector<128x128xbf16>, vector<128x128xbf16>, vector<128x128xf32> -> vector<128x128xf32>
    %49 = arith.addf %42, %48 : vector<128x128xf32>
    %c0_41 = arith.constant 0 : index
    %c0_42 = arith.constant 0 : index
    %c4 = arith.constant 4 : index
    %c0_43 = arith.constant 0 : index
    %50 = vector.load %arg11[%c0_41, %c0_42, %c4, %c0_43] : memref<2x12x16x128xf32, #tpu.memory_space<vmem>>, vector<2x8x8x128xf32>
    %51 = vector.shape_cast %50 : vector<2x8x8x128xf32> to vector<128x128xf32>
    %52 = arith.truncf %51 : vector<128x128xf32> to vector<128x128xbf16>
    %c4_44 = arith.constant 4 : index
    %c0_45 = arith.constant 0 : index
    %c0_46 = arith.constant 0 : index
    %53 = vector.load %arg4[%c4_44, %c0_45, %c0_46] : memref<25x128x128xbf16, #tpu.memory_space<vmem>>, vector<1x128x128xbf16>
    %54 = vector.shape_cast %53 : vector<1x128x128xbf16> to vector<128x128xbf16>
    %cst_47 = arith.constant dense<0.000000e+00> : vector<128x128xf32>
    %55 = tpu.matmul %52, %54, %cst_47 {dimension_numbers = #tpu.dot_dimension_numbers<[1], [0], [0], [1], [0, 0, 1, 1], [], []>} : vector<128x128xbf16>, vector<128x128xbf16>, vector<128x128xf32> -> vector<128x128xf32>
    %56 = arith.addf %49, %55 : vector<128x128xf32>
    %c0_48 = arith.constant 0 : index
    %c1_49 = arith.constant 1 : index
    %c0_50 = arith.constant 0 : index
    %c0_51 = arith.constant 0 : index
    %57 = vector.load %arg11[%c0_48, %c1_49, %c0_50, %c0_51] : memref<2x12x16x128xf32, #tpu.memory_space<vmem>>, vector<2x8x8x128xf32>
    %58 = vector.shape_cast %57 : vector<2x8x8x128xf32> to vector<128x128xf32>
    %59 = arith.truncf %58 : vector<128x128xf32> to vector<128x128xbf16>
    %c5 = arith.constant 5 : index
    %c0_52 = arith.constant 0 : index
    %c0_53 = arith.constant 0 : index
    %60 = vector.load %arg4[%c5, %c0_52, %c0_53] : memref<25x128x128xbf16, #tpu.memory_space<vmem>>, vector<1x128x128xbf16>
    %61 = vector.shape_cast %60 : vector<1x128x128xbf16> to vector<128x128xbf16>
    %cst_54 = arith.constant dense<0.000000e+00> : vector<128x128xf32>
    %62 = tpu.matmul %59, %61, %cst_54 {dimension_numbers = #tpu.dot_dimension_numbers<[1], [0], [0], [1], [0, 0, 1, 1], [], []>} : vector<128x128xbf16>, vector<128x128xbf16>, vector<128x128xf32> -> vector<128x128xf32>
    %63 = arith.addf %56, %62 : vector<128x128xf32>
    %c0_55 = arith.constant 0 : index
    %c1_56 = arith.constant 1 : index
    %c1_57 = arith.constant 1 : index
    %c0_58 = arith.constant 0 : index
    %64 = vector.load %arg11[%c0_55, %c1_56, %c1_57, %c0_58] : memref<2x12x16x128xf32, #tpu.memory_space<vmem>>, vector<2x8x8x128xf32>
    %65 = vector.shape_cast %64 : vector<2x8x8x128xf32> to vector<128x128xf32>
    %66 = arith.truncf %65 : vector<128x128xf32> to vector<128x128xbf16>
    %c6 = arith.constant 6 : index
    %c0_59 = arith.constant 0 : index
    %c0_60 = arith.constant 0 : index
    %67 = vector.load %arg4[%c6, %c0_59, %c0_60] : memref<25x128x128xbf16, #tpu.memory_space<vmem>>, vector<1x128x128xbf16>
    %68 = vector.shape_cast %67 : vector<1x128x128xbf16> to vector<128x128xbf16>
    %cst_61 = arith.constant dense<0.000000e+00> : vector<128x128xf32>
    %69 = tpu.matmul %66, %68, %cst_61 {dimension_numbers = #tpu.dot_dimension_numbers<[1], [0], [0], [1], [0, 0, 1, 1], [], []>} : vector<128x128xbf16>, vector<128x128xbf16>, vector<128x128xf32> -> vector<128x128xf32>
    %70 = arith.addf %63, %69 : vector<128x128xf32>
    %c0_62 = arith.constant 0 : index
    %c1_63 = arith.constant 1 : index
    %c2_64 = arith.constant 2 : index
    %c0_65 = arith.constant 0 : index
    %71 = vector.load %arg11[%c0_62, %c1_63, %c2_64, %c0_65] : memref<2x12x16x128xf32, #tpu.memory_space<vmem>>, vector<2x8x8x128xf32>
    %72 = vector.shape_cast %71 : vector<2x8x8x128xf32> to vector<128x128xf32>
    %73 = arith.truncf %72 : vector<128x128xf32> to vector<128x128xbf16>
    %c7 = arith.constant 7 : index
    %c0_66 = arith.constant 0 : index
    %c0_67 = arith.constant 0 : index
    %74 = vector.load %arg4[%c7, %c0_66, %c0_67] : memref<25x128x128xbf16, #tpu.memory_space<vmem>>, vector<1x128x128xbf16>
    %75 = vector.shape_cast %74 : vector<1x128x128xbf16> to vector<128x128xbf16>
    %cst_68 = arith.constant dense<0.000000e+00> : vector<128x128xf32>
    %76 = tpu.matmul %73, %75, %cst_68 {dimension_numbers = #tpu.dot_dimension_numbers<[1], [0], [0], [1], [0, 0, 1, 1], [], []>} : vector<128x128xbf16>, vector<128x128xbf16>, vector<128x128xf32> -> vector<128x128xf32>
    %77 = arith.addf %70, %76 : vector<128x128xf32>
    %c0_69 = arith.constant 0 : index
    %c1_70 = arith.constant 1 : index
    %c3_71 = arith.constant 3 : index
    %c0_72 = arith.constant 0 : index
    %78 = vector.load %arg11[%c0_69, %c1_70, %c3_71, %c0_72] : memref<2x12x16x128xf32, #tpu.memory_space<vmem>>, vector<2x8x8x128xf32>
    %79 = vector.shape_cast %78 : vector<2x8x8x128xf32> to vector<128x128xf32>
    %80 = arith.truncf %79 : vector<128x128xf32> to vector<128x128xbf16>
    %c8 = arith.constant 8 : index
    %c0_73 = arith.constant 0 : index
    %c0_74 = arith.constant 0 : index
    %81 = vector.load %arg4[%c8, %c0_73, %c0_74] : memref<25x128x128xbf16, #tpu.memory_space<vmem>>, vector<1x128x128xbf16>
    %82 = vector.shape_cast %81 : vector<1x128x128xbf16> to vector<128x128xbf16>
    %cst_75 = arith.constant dense<0.000000e+00> : vector<128x128xf32>
    %83 = tpu.matmul %80, %82, %cst_75 {dimension_numbers = #tpu.dot_dimension_numbers<[1], [0], [0], [1], [0, 0, 1, 1], [], []>} : vector<128x128xbf16>, vector<128x128xbf16>, vector<128x128xf32> -> vector<128x128xf32>
    %84 = arith.addf %77, %83 : vector<128x128xf32>
    %c0_76 = arith.constant 0 : index
    %c1_77 = arith.constant 1 : index
    %c4_78 = arith.constant 4 : index
    %c0_79 = arith.constant 0 : index
    %85 = vector.load %arg11[%c0_76, %c1_77, %c4_78, %c0_79] : memref<2x12x16x128xf32, #tpu.memory_space<vmem>>, vector<2x8x8x128xf32>
    %86 = vector.shape_cast %85 : vector<2x8x8x128xf32> to vector<128x128xf32>
    %87 = arith.truncf %86 : vector<128x128xf32> to vector<128x128xbf16>
    %c9 = arith.constant 9 : index
    %c0_80 = arith.constant 0 : index
    %c0_81 = arith.constant 0 : index
    %88 = vector.load %arg4[%c9, %c0_80, %c0_81] : memref<25x128x128xbf16, #tpu.memory_space<vmem>>, vector<1x128x128xbf16>
    %89 = vector.shape_cast %88 : vector<1x128x128xbf16> to vector<128x128xbf16>
    %cst_82 = arith.constant dense<0.000000e+00> : vector<128x128xf32>
    %90 = tpu.matmul %87, %89, %cst_82 {dimension_numbers = #tpu.dot_dimension_numbers<[1], [0], [0], [1], [0, 0, 1, 1], [], []>} : vector<128x128xbf16>, vector<128x128xbf16>, vector<128x128xf32> -> vector<128x128xf32>
    %91 = arith.addf %84, %90 : vector<128x128xf32>
    %c0_83 = arith.constant 0 : index
    %c2_84 = arith.constant 2 : index
    %c0_85 = arith.constant 0 : index
    %c0_86 = arith.constant 0 : index
    %92 = vector.load %arg11[%c0_83, %c2_84, %c0_85, %c0_86] : memref<2x12x16x128xf32, #tpu.memory_space<vmem>>, vector<2x8x8x128xf32>
    %93 = vector.shape_cast %92 : vector<2x8x8x128xf32> to vector<128x128xf32>
    %94 = arith.truncf %93 : vector<128x128xf32> to vector<128x128xbf16>
    %c10 = arith.constant 10 : index
    %c0_87 = arith.constant 0 : index
    %c0_88 = arith.constant 0 : index
    %95 = vector.load %arg4[%c10, %c0_87, %c0_88] : memref<25x128x128xbf16, #tpu.memory_space<vmem>>, vector<1x128x128xbf16>
    %96 = vector.shape_cast %95 : vector<1x128x128xbf16> to vector<128x128xbf16>
    %cst_89 = arith.constant dense<0.000000e+00> : vector<128x128xf32>
    %97 = tpu.matmul %94, %96, %cst_89 {dimension_numbers = #tpu.dot_dimension_numbers<[1], [0], [0], [1], [0, 0, 1, 1], [], []>} : vector<128x128xbf16>, vector<128x128xbf16>, vector<128x128xf32> -> vector<128x128xf32>
    %98 = arith.addf %91, %97 : vector<128x128xf32>
    %c0_90 = arith.constant 0 : index
    %c2_91 = arith.constant 2 : index
    %c1_92 = arith.constant 1 : index
    %c0_93 = arith.constant 0 : index
    %99 = vector.load %arg11[%c0_90, %c2_91, %c1_92, %c0_93] : memref<2x12x16x128xf32, #tpu.memory_space<vmem>>, vector<2x8x8x128xf32>
    %100 = vector.shape_cast %99 : vector<2x8x8x128xf32> to vector<128x128xf32>
    %101 = arith.truncf %100 : vector<128x128xf32> to vector<128x128xbf16>
    %c11 = arith.constant 11 : index
    %c0_94 = arith.constant 0 : index
    %c0_95 = arith.constant 0 : index
    %102 = vector.load %arg4[%c11, %c0_94, %c0_95] : memref<25x128x128xbf16, #tpu.memory_space<vmem>>, vector<1x128x128xbf16>
    %103 = vector.shape_cast %102 : vector<1x128x128xbf16> to vector<128x128xbf16>
    %cst_96 = arith.constant dense<0.000000e+00> : vector<128x128xf32>
    %104 = tpu.matmul %101, %103, %cst_96 {dimension_numbers = #tpu.dot_dimension_numbers<[1], [0], [0], [1], [0, 0, 1, 1], [], []>} : vector<128x128xbf16>, vector<128x128xbf16>, vector<128x128xf32> -> vector<128x128xf32>
    %105 = arith.addf %98, %104 : vector<128x128xf32>
    %c0_97 = arith.constant 0 : index
    %c2_98 = arith.constant 2 : index
    %c2_99 = arith.constant 2 : index
    %c0_100 = arith.constant 0 : index
    %106 = vector.load %arg11[%c0_97, %c2_98, %c2_99, %c0_100] : memref<2x12x16x128xf32, #tpu.memory_space<vmem>>, vector<2x8x8x128xf32>
    %107 = vector.shape_cast %106 : vector<2x8x8x128xf32> to vector<128x128xf32>
    %108 = arith.truncf %107 : vector<128x128xf32> to vector<128x128xbf16>
    %c12 = arith.constant 12 : index
    %c0_101 = arith.constant 0 : index
    %c0_102 = arith.constant 0 : index
    %109 = vector.load %arg4[%c12, %c0_101, %c0_102] : memref<25x128x128xbf16, #tpu.memory_space<vmem>>, vector<1x128x128xbf16>
    %110 = vector.shape_cast %109 : vector<1x128x128xbf16> to vector<128x128xbf16>
    %cst_103 = arith.constant dense<0.000000e+00> : vector<128x128xf32>
    %111 = tpu.matmul %108, %110, %cst_103 {dimension_numbers = #tpu.dot_dimension_numbers<[1], [0], [0], [1], [0, 0, 1, 1], [], []>} : vector<128x128xbf16>, vector<128x128xbf16>, vector<128x128xf32> -> vector<128x128xf32>
    %112 = arith.addf %105, %111 : vector<128x128xf32>
    %c0_104 = arith.constant 0 : index
    %c2_105 = arith.constant 2 : index
    %c3_106 = arith.constant 3 : index
    %c0_107 = arith.constant 0 : index
    %113 = vector.load %arg11[%c0_104, %c2_105, %c3_106, %c0_107] : memref<2x12x16x128xf32, #tpu.memory_space<vmem>>, vector<2x8x8x128xf32>
    %114 = vector.shape_cast %113 : vector<2x8x8x128xf32> to vector<128x128xf32>
    %115 = arith.truncf %114 : vector<128x128xf32> to vector<128x128xbf16>
    %c13 = arith.constant 13 : index
    %c0_108 = arith.constant 0 : index
    %c0_109 = arith.constant 0 : index
    %116 = vector.load %arg4[%c13, %c0_108, %c0_109] : memref<25x128x128xbf16, #tpu.memory_space<vmem>>, vector<1x128x128xbf16>
    %117 = vector.shape_cast %116 : vector<1x128x128xbf16> to vector<128x128xbf16>
    %cst_110 = arith.constant dense<0.000000e+00> : vector<128x128xf32>
    %118 = tpu.matmul %115, %117, %cst_110 {dimension_numbers = #tpu.dot_dimension_numbers<[1], [0], [0], [1], [0, 0, 1, 1], [], []>} : vector<128x128xbf16>, vector<128x128xbf16>, vector<128x128xf32> -> vector<128x128xf32>
    %119 = arith.addf %112, %118 : vector<128x128xf32>
    %c0_111 = arith.constant 0 : index
    %c2_112 = arith.constant 2 : index
    %c4_113 = arith.constant 4 : index
    %c0_114 = arith.constant 0 : index
    %120 = vector.load %arg11[%c0_111, %c2_112, %c4_113, %c0_114] : memref<2x12x16x128xf32, #tpu.memory_space<vmem>>, vector<2x8x8x128xf32>
    %121 = vector.shape_cast %120 : vector<2x8x8x128xf32> to vector<128x128xf32>
    %122 = arith.truncf %121 : vector<128x128xf32> to vector<128x128xbf16>
    %c14 = arith.constant 14 : index
    %c0_115 = arith.constant 0 : index
    %c0_116 = arith.constant 0 : index
    %123 = vector.load %arg4[%c14, %c0_115, %c0_116] : memref<25x128x128xbf16, #tpu.memory_space<vmem>>, vector<1x128x128xbf16>
    %124 = vector.shape_cast %123 : vector<1x128x128xbf16> to vector<128x128xbf16>
    %cst_117 = arith.constant dense<0.000000e+00> : vector<128x128xf32>
    %125 = tpu.matmul %122, %124, %cst_117 {dimension_numbers = #tpu.dot_dimension_numbers<[1], [0], [0], [1], [0, 0, 1, 1], [], []>} : vector<128x128xbf16>, vector<128x128xbf16>, vector<128x128xf32> -> vector<128x128xf32>
    %126 = arith.addf %119, %125 : vector<128x128xf32>
    %c0_118 = arith.constant 0 : index
    %c3_119 = arith.constant 3 : index
    %c0_120 = arith.constant 0 : index
    %c0_121 = arith.constant 0 : index
    %127 = vector.load %arg11[%c0_118, %c3_119, %c0_120, %c0_121] : memref<2x12x16x128xf32, #tpu.memory_space<vmem>>, vector<2x8x8x128xf32>
    %128 = vector.shape_cast %127 : vector<2x8x8x128xf32> to vector<128x128xf32>
    %129 = arith.truncf %128 : vector<128x128xf32> to vector<128x128xbf16>
    %c15 = arith.constant 15 : index
    %c0_122 = arith.constant 0 : index
    %c0_123 = arith.constant 0 : index
    %130 = vector.load %arg4[%c15, %c0_122, %c0_123] : memref<25x128x128xbf16, #tpu.memory_space<vmem>>, vector<1x128x128xbf16>
    %131 = vector.shape_cast %130 : vector<1x128x128xbf16> to vector<128x128xbf16>
    %cst_124 = arith.constant dense<0.000000e+00> : vector<128x128xf32>
    %132 = tpu.matmul %129, %131, %cst_124 {dimension_numbers = #tpu.dot_dimension_numbers<[1], [0], [0], [1], [0, 0, 1, 1], [], []>} : vector<128x128xbf16>, vector<128x128xbf16>, vector<128x128xf32> -> vector<128x128xf32>
    %133 = arith.addf %126, %132 : vector<128x128xf32>
    %c0_125 = arith.constant 0 : index
    %c3_126 = arith.constant 3 : index
    %c1_127 = arith.constant 1 : index
    %c0_128 = arith.constant 0 : index
    %134 = vector.load %arg11[%c0_125, %c3_126, %c1_127, %c0_128] : memref<2x12x16x128xf32, #tpu.memory_space<vmem>>, vector<2x8x8x128xf32>
    %135 = vector.shape_cast %134 : vector<2x8x8x128xf32> to vector<128x128xf32>
    %136 = arith.truncf %135 : vector<128x128xf32> to vector<128x128xbf16>
    %c16 = arith.constant 16 : index
    %c0_129 = arith.constant 0 : index
    %c0_130 = arith.constant 0 : index
    %137 = vector.load %arg4[%c16, %c0_129, %c0_130] : memref<25x128x128xbf16, #tpu.memory_space<vmem>>, vector<1x128x128xbf16>
    %138 = vector.shape_cast %137 : vector<1x128x128xbf16> to vector<128x128xbf16>
    %cst_131 = arith.constant dense<0.000000e+00> : vector<128x128xf32>
    %139 = tpu.matmul %136, %138, %cst_131 {dimension_numbers = #tpu.dot_dimension_numbers<[1], [0], [0], [1], [0, 0, 1, 1], [], []>} : vector<128x128xbf16>, vector<128x128xbf16>, vector<128x128xf32> -> vector<128x128xf32>
    %140 = arith.addf %133, %139 : vector<128x128xf32>
    %c0_132 = arith.constant 0 : index
    %c3_133 = arith.constant 3 : index
    %c2_134 = arith.constant 2 : index
    %c0_135 = arith.constant 0 : index
    %141 = vector.load %arg11[%c0_132, %c3_133, %c2_134, %c0_135] : memref<2x12x16x128xf32, #tpu.memory_space<vmem>>, vector<2x8x8x128xf32>
    %142 = vector.shape_cast %141 : vector<2x8x8x128xf32> to vector<128x128xf32>
    %143 = arith.truncf %142 : vector<128x128xf32> to vector<128x128xbf16>
    %c17 = arith.constant 17 : index
    %c0_136 = arith.constant 0 : index
    %c0_137 = arith.constant 0 : index
    %144 = vector.load %arg4[%c17, %c0_136, %c0_137] : memref<25x128x128xbf16, #tpu.memory_space<vmem>>, vector<1x128x128xbf16>
    %145 = vector.shape_cast %144 : vector<1x128x128xbf16> to vector<128x128xbf16>
    %cst_138 = arith.constant dense<0.000000e+00> : vector<128x128xf32>
    %146 = tpu.matmul %143, %145, %cst_138 {dimension_numbers = #tpu.dot_dimension_numbers<[1], [0], [0], [1], [0, 0, 1, 1], [], []>} : vector<128x128xbf16>, vector<128x128xbf16>, vector<128x128xf32> -> vector<128x128xf32>
    %147 = arith.addf %140, %146 : vector<128x128xf32>
    %c0_139 = arith.constant 0 : index
    %c3_140 = arith.constant 3 : index
    %c3_141 = arith.constant 3 : index
    %c0_142 = arith.constant 0 : index
    %148 = vector.load %arg11[%c0_139, %c3_140, %c3_141, %c0_142] : memref<2x12x16x128xf32, #tpu.memory_space<vmem>>, vector<2x8x8x128xf32>
    %149 = vector.shape_cast %148 : vector<2x8x8x128xf32> to vector<128x128xf32>
    %150 = arith.truncf %149 : vector<128x128xf32> to vector<128x128xbf16>
    %c18 = arith.constant 18 : index
    %c0_143 = arith.constant 0 : index
    %c0_144 = arith.constant 0 : index
    %151 = vector.load %arg4[%c18, %c0_143, %c0_144] : memref<25x128x128xbf16, #tpu.memory_space<vmem>>, vector<1x128x128xbf16>
    %152 = vector.shape_cast %151 : vector<1x128x128xbf16> to vector<128x128xbf16>
    %cst_145 = arith.constant dense<0.000000e+00> : vector<128x128xf32>
    %153 = tpu.matmul %150, %152, %cst_145 {dimension_numbers = #tpu.dot_dimension_numbers<[1], [0], [0], [1], [0, 0, 1, 1], [], []>} : vector<128x128xbf16>, vector<128x128xbf16>, vector<128x128xf32> -> vector<128x128xf32>
    %154 = arith.addf %147, %153 : vector<128x128xf32>
    %c0_146 = arith.constant 0 : index
    %c3_147 = arith.constant 3 : index
    %c4_148 = arith.constant 4 : index
    %c0_149 = arith.constant 0 : index
    %155 = vector.load %arg11[%c0_146, %c3_147, %c4_148, %c0_149] : memref<2x12x16x128xf32, #tpu.memory_space<vmem>>, vector<2x8x8x128xf32>
    %156 = vector.shape_cast %155 : vector<2x8x8x128xf32> to vector<128x128xf32>
    %157 = arith.truncf %156 : vector<128x128xf32> to vector<128x128xbf16>
    %c19 = arith.constant 19 : index
    %c0_150 = arith.constant 0 : index
    %c0_151 = arith.constant 0 : index
    %158 = vector.load %arg4[%c19, %c0_150, %c0_151] : memref<25x128x128xbf16, #tpu.memory_space<vmem>>, vector<1x128x128xbf16>
    %159 = vector.shape_cast %158 : vector<1x128x128xbf16> to vector<128x128xbf16>
    %cst_152 = arith.constant dense<0.000000e+00> : vector<128x128xf32>
    %160 = tpu.matmul %157, %159, %cst_152 {dimension_numbers = #tpu.dot_dimension_numbers<[1], [0], [0], [1], [0, 0, 1, 1], [], []>} : vector<128x128xbf16>, vector<128x128xbf16>, vector<128x128xf32> -> vector<128x128xf32>
    %161 = arith.addf %154, %160 : vector<128x128xf32>
    %c0_153 = arith.constant 0 : index
    %c4_154 = arith.constant 4 : index
    %c0_155 = arith.constant 0 : index
    %c0_156 = arith.constant 0 : index
    %162 = vector.load %arg11[%c0_153, %c4_154, %c0_155, %c0_156] : memref<2x12x16x128xf32, #tpu.memory_space<vmem>>, vector<2x8x8x128xf32>
    %163 = vector.shape_cast %162 : vector<2x8x8x128xf32> to vector<128x128xf32>
    %164 = arith.truncf %163 : vector<128x128xf32> to vector<128x128xbf16>
    %c20 = arith.constant 20 : index
    %c0_157 = arith.constant 0 : index
    %c0_158 = arith.constant 0 : index
    %165 = vector.load %arg4[%c20, %c0_157, %c0_158] : memref<25x128x128xbf16, #tpu.memory_space<vmem>>, vector<1x128x128xbf16>
    %166 = vector.shape_cast %165 : vector<1x128x128xbf16> to vector<128x128xbf16>
    %cst_159 = arith.constant dense<0.000000e+00> : vector<128x128xf32>
    %167 = tpu.matmul %164, %166, %cst_159 {dimension_numbers = #tpu.dot_dimension_numbers<[1], [0], [0], [1], [0, 0, 1, 1], [], []>} : vector<128x128xbf16>, vector<128x128xbf16>, vector<128x128xf32> -> vector<128x128xf32>
    %168 = arith.addf %161, %167 : vector<128x128xf32>
    %c0_160 = arith.constant 0 : index
    %c4_161 = arith.constant 4 : index
    %c1_162 = arith.constant 1 : index
    %c0_163 = arith.constant 0 : index
    %169 = vector.load %arg11[%c0_160, %c4_161, %c1_162, %c0_163] : memref<2x12x16x128xf32, #tpu.memory_space<vmem>>, vector<2x8x8x128xf32>
    %170 = vector.shape_cast %169 : vector<2x8x8x128xf32> to vector<128x128xf32>
    %171 = arith.truncf %170 : vector<128x128xf32> to vector<128x128xbf16>
    %c21 = arith.constant 21 : index
    %c0_164 = arith.constant 0 : index
    %c0_165 = arith.constant 0 : index
    %172 = vector.load %arg4[%c21, %c0_164, %c0_165] : memref<25x128x128xbf16, #tpu.memory_space<vmem>>, vector<1x128x128xbf16>
    %173 = vector.shape_cast %172 : vector<1x128x128xbf16> to vector<128x128xbf16>
    %cst_166 = arith.constant dense<0.000000e+00> : vector<128x128xf32>
    %174 = tpu.matmul %171, %173, %cst_166 {dimension_numbers = #tpu.dot_dimension_numbers<[1], [0], [0], [1], [0, 0, 1, 1], [], []>} : vector<128x128xbf16>, vector<128x128xbf16>, vector<128x128xf32> -> vector<128x128xf32>
    %175 = arith.addf %168, %174 : vector<128x128xf32>
    %c0_167 = arith.constant 0 : index
    %c4_168 = arith.constant 4 : index
    %c2_169 = arith.constant 2 : index
    %c0_170 = arith.constant 0 : index
    %176 = vector.load %arg11[%c0_167, %c4_168, %c2_169, %c0_170] : memref<2x12x16x128xf32, #tpu.memory_space<vmem>>, vector<2x8x8x128xf32>
    %177 = vector.shape_cast %176 : vector<2x8x8x128xf32> to vector<128x128xf32>
    %178 = arith.truncf %177 : vector<128x128xf32> to vector<128x128xbf16>
    %c22 = arith.constant 22 : index
    %c0_171 = arith.constant 0 : index
    %c0_172 = arith.constant 0 : index
    %179 = vector.load %arg4[%c22, %c0_171, %c0_172] : memref<25x128x128xbf16, #tpu.memory_space<vmem>>, vector<1x128x128xbf16>
    %180 = vector.shape_cast %179 : vector<1x128x128xbf16> to vector<128x128xbf16>
    %cst_173 = arith.constant dense<0.000000e+00> : vector<128x128xf32>
    %181 = tpu.matmul %178, %180, %cst_173 {dimension_numbers = #tpu.dot_dimension_numbers<[1], [0], [0], [1], [0, 0, 1, 1], [], []>} : vector<128x128xbf16>, vector<128x128xbf16>, vector<128x128xf32> -> vector<128x128xf32>
    %182 = arith.addf %175, %181 : vector<128x128xf32>
    %c0_174 = arith.constant 0 : index
    %c4_175 = arith.constant 4 : index
    %c3_176 = arith.constant 3 : index
    %c0_177 = arith.constant 0 : index
    %183 = vector.load %arg11[%c0_174, %c4_175, %c3_176, %c0_177] : memref<2x12x16x128xf32, #tpu.memory_space<vmem>>, vector<2x8x8x128xf32>
    %184 = vector.shape_cast %183 : vector<2x8x8x128xf32> to vector<128x128xf32>
    %185 = arith.truncf %184 : vector<128x128xf32> to vector<128x128xbf16>
    %c23 = arith.constant 23 : index
    %c0_178 = arith.constant 0 : index
    %c0_179 = arith.constant 0 : index
    %186 = vector.load %arg4[%c23, %c0_178, %c0_179] : memref<25x128x128xbf16, #tpu.memory_space<vmem>>, vector<1x128x128xbf16>
    %187 = vector.shape_cast %186 : vector<1x128x128xbf16> to vector<128x128xbf16>
    %cst_180 = arith.constant dense<0.000000e+00> : vector<128x128xf32>
    %188 = tpu.matmul %185, %187, %cst_180 {dimension_numbers = #tpu.dot_dimension_numbers<[1], [0], [0], [1], [0, 0, 1, 1], [], []>} : vector<128x128xbf16>, vector<128x128xbf16>, vector<128x128xf32> -> vector<128x128xf32>
    %189 = arith.addf %182, %188 : vector<128x128xf32>
    %c0_181 = arith.constant 0 : index
    %c4_182 = arith.constant 4 : index
    %c4_183 = arith.constant 4 : index
    %c0_184 = arith.constant 0 : index
    %190 = vector.load %arg11[%c0_181, %c4_182, %c4_183, %c0_184] : memref<2x12x16x128xf32, #tpu.memory_space<vmem>>, vector<2x8x8x128xf32>
    %191 = vector.shape_cast %190 : vector<2x8x8x128xf32> to vector<128x128xf32>
    %192 = arith.truncf %191 : vector<128x128xf32> to vector<128x128xbf16>
    %c24 = arith.constant 24 : index
    %c0_185 = arith.constant 0 : index
    %c0_186 = arith.constant 0 : index
    %193 = vector.load %arg4[%c24, %c0_185, %c0_186] : memref<25x128x128xbf16, #tpu.memory_space<vmem>>, vector<1x128x128xbf16>
    %194 = vector.shape_cast %193 : vector<1x128x128xbf16> to vector<128x128xbf16>
    %cst_187 = arith.constant dense<0.000000e+00> : vector<128x128xf32>
    %195 = tpu.matmul %192, %194, %cst_187 {dimension_numbers = #tpu.dot_dimension_numbers<[1], [0], [0], [1], [0, 0, 1, 1], [], []>} : vector<128x128xbf16>, vector<128x128xbf16>, vector<128x128xf32> -> vector<128x128xf32>
    %196 = arith.addf %189, %195 : vector<128x128xf32>
    %c0_188 = arith.constant 0 : index
    %c0_189 = arith.constant 0 : index
    %197 = vector.load %arg5[%c0_188, %c0_189] : memref<1x128xf32, #tpu.memory_space<vmem>>, vector<1x128xf32>
    %198 = vector.broadcast %197 : vector<1x128xf32> to vector<128x128xf32>
    %199 = arith.addf %196, %198 : vector<128x128xf32>
    %200 = math.tanh %199 : vector<128x128xf32>
    %201 = vector.shape_cast %200 : vector<128x128xf32> to vector<2x8x8x128xf32>
    %c0_190 = arith.constant 0 : index
    %c0_191 = arith.constant 0 : index
    %c0_192 = arith.constant 0 : index
    %c0_193 = arith.constant 0 : index
    %202 = vector.load %arg12[%c0_190, %c0_191, %c0_192, %c0_193] : memref<2x8x8x128xf32, #tpu.memory_space<vmem>>, vector<2x8x8x128xf32>
    tpu.vector_store %arg12[%c0_190, %c0_191, %c0_192, %c0_193], %201 {strides = array<i32>} : memref<2x8x8x128xf32, #tpu.memory_space<vmem>>, vector<2x8x8x128xf32>,
    %cst_194 = arith.constant 0.000000e+00 : f32
    %203 = vector.broadcast %cst_194 : f32 to vector<2x512xf32>
    %c0_195 = arith.constant 0 : index
    %c0_196 = arith.constant 0 : index
    %c0_197 = arith.constant 0 : index
    %c0_198 = arith.constant 0 : index
    %204 = vector.load %arg12[%c0_195, %c0_196, %c0_197, %c0_198] : memref<2x8x8x128xf32, #tpu.memory_space<vmem>>, vector<2x1x1x128xf32>
    %205 = vector.shape_cast %204 : vector<2x1x1x128xf32> to vector<2x128xf32>
    %c0_199 = arith.constant 0 : index
    %c0_200 = arith.constant 0 : index
    %c1_201 = arith.constant 1 : index
    %c0_202 = arith.constant 0 : index
    %206 = vector.load %arg12[%c0_199, %c0_200, %c1_201, %c0_202] : memref<2x8x8x128xf32, #tpu.memory_space<vmem>>, vector<2x1x1x128xf32>
    %207 = vector.shape_cast %206 : vector<2x1x1x128xf32> to vector<2x128xf32>
    %208 = arith.maximumf %205, %207 : vector<2x128xf32>
    %c0_203 = arith.constant 0 : index
    %c1_204 = arith.constant 1 : index
    %c0_205 = arith.constant 0 : index
    %c0_206 = arith.constant 0 : index
    %209 = vector.load %arg12[%c0_203, %c1_204, %c0_205, %c0_206] : memref<2x8x8x128xf32, #tpu.memory_space<vmem>>, vector<2x1x1x128xf32>
    %210 = vector.shape_cast %209 : vector<2x1x1x128xf32> to vector<2x128xf32>
    %c0_207 = arith.constant 0 : index
    %c1_208 = arith.constant 1 : index
    %c1_209 = arith.constant 1 : index
    %c0_210 = arith.constant 0 : index
    %211 = vector.load %arg12[%c0_207, %c1_208, %c1_209, %c0_210] : memref<2x8x8x128xf32, #tpu.memory_space<vmem>>, vector<2x1x1x128xf32>
    %212 = vector.shape_cast %211 : vector<2x1x1x128xf32> to vector<2x128xf32>
    %213 = arith.maximumf %210, %212 : vector<2x128xf32>
    %214 = arith.maximumf %208, %213 : vector<2x128xf32>
    %215 = arith.truncf %214 : vector<2x128xf32> to vector<2x128xbf16>
    %c0_211 = arith.constant 0 : index
    %c0_212 = arith.constant 0 : index
    %c0_213 = arith.constant 0 : index
    %216 = vector.load %arg6[%c0_211, %c0_212, %c0_213] : memref<16x128x512xbf16, #tpu.memory_space<vmem>>, vector<1x128x512xbf16>
    %217 = vector.shape_cast %216 : vector<1x128x512xbf16> to vector<128x512xbf16>
    %cst_214 = arith.constant dense<0.000000e+00> : vector<2x512xf32>
    %218 = tpu.matmul %215, %217, %cst_214 {dimension_numbers = #tpu.dot_dimension_numbers<[1], [0], [0], [1], [0, 0, 1, 1], [], []>} : vector<2x128xbf16>, vector<128x512xbf16>, vector<2x512xf32> -> vector<2x512xf32>
    %219 = arith.addf %203, %218 : vector<2x512xf32>
    %c0_215 = arith.constant 0 : index
    %c0_216 = arith.constant 0 : index
    %c2_217 = arith.constant 2 : index
    %c0_218 = arith.constant 0 : index
    %220 = vector.load %arg12[%c0_215, %c0_216, %c2_217, %c0_218] : memref<2x8x8x128xf32, #tpu.memory_space<vmem>>, vector<2x1x1x128xf32>
    %221 = vector.shape_cast %220 : vector<2x1x1x128xf32> to vector<2x128xf32>
    %c0_219 = arith.constant 0 : index
    %c0_220 = arith.constant 0 : index
    %c3_221 = arith.constant 3 : index
    %c0_222 = arith.constant 0 : index
    %222 = vector.load %arg12[%c0_219, %c0_220, %c3_221, %c0_222] : memref<2x8x8x128xf32, #tpu.memory_space<vmem>>, vector<2x1x1x128xf32>
    %223 = vector.shape_cast %222 : vector<2x1x1x128xf32> to vector<2x128xf32>
    %224 = arith.maximumf %221, %223 : vector<2x128xf32>
    %c0_223 = arith.constant 0 : index
    %c1_224 = arith.constant 1 : index
    %c2_225 = arith.constant 2 : index
    %c0_226 = arith.constant 0 : index
    %225 = vector.load %arg12[%c0_223, %c1_224, %c2_225, %c0_226] : memref<2x8x8x128xf32, #tpu.memory_space<vmem>>, vector<2x1x1x128xf32>
    %226 = vector.shape_cast %225 : vector<2x1x1x128xf32> to vector<2x128xf32>
    %c0_227 = arith.constant 0 : index
    %c1_228 = arith.constant 1 : index
    %c3_229 = arith.constant 3 : index
    %c0_230 = arith.constant 0 : index
    %227 = vector.load %arg12[%c0_227, %c1_228, %c3_229, %c0_230] : memref<2x8x8x128xf32, #tpu.memory_space<vmem>>, vector<2x1x1x128xf32>
    %228 = vector.shape_cast %227 : vector<2x1x1x128xf32> to vector<2x128xf32>
    %229 = arith.maximumf %226, %228 : vector<2x128xf32>
    %230 = arith.maximumf %224, %229 : vector<2x128xf32>
    %231 = arith.truncf %230 : vector<2x128xf32> to vector<2x128xbf16>
    %c1_231 = arith.constant 1 : index
    %c0_232 = arith.constant 0 : index
    %c0_233 = arith.constant 0 : index
    %232 = vector.load %arg6[%c1_231, %c0_232, %c0_233] : memref<16x128x512xbf16, #tpu.memory_space<vmem>>, vector<1x128x512xbf16>
    %233 = vector.shape_cast %232 : vector<1x128x512xbf16> to vector<128x512xbf16>
    %cst_234 = arith.constant dense<0.000000e+00> : vector<2x512xf32>
    %234 = tpu.matmul %231, %233, %cst_234 {dimension_numbers = #tpu.dot_dimension_numbers<[1], [0], [0], [1], [0, 0, 1, 1], [], []>} : vector<2x128xbf16>, vector<128x512xbf16>, vector<2x512xf32> -> vector<2x512xf32>
    %235 = arith.addf %219, %234 : vector<2x512xf32>
    %c0_235 = arith.constant 0 : index
    %c0_236 = arith.constant 0 : index
    %c4_237 = arith.constant 4 : index
    %c0_238 = arith.constant 0 : index
    %236 = vector.load %arg12[%c0_235, %c0_236, %c4_237, %c0_238] : memref<2x8x8x128xf32, #tpu.memory_space<vmem>>, vector<2x1x1x128xf32>
    %237 = vector.shape_cast %236 : vector<2x1x1x128xf32> to vector<2x128xf32>
    %c0_239 = arith.constant 0 : index
    %c0_240 = arith.constant 0 : index
    %c5_241 = arith.constant 5 : index
    %c0_242 = arith.constant 0 : index
    %238 = vector.load %arg12[%c0_239, %c0_240, %c5_241, %c0_242] : memref<2x8x8x128xf32, #tpu.memory_space<vmem>>, vector<2x1x1x128xf32>
    %239 = vector.shape_cast %238 : vector<2x1x1x128xf32> to vector<2x128xf32>
    %240 = arith.maximumf %237, %239 : vector<2x128xf32>
    %c0_243 = arith.constant 0 : index
    %c1_244 = arith.constant 1 : index
    %c4_245 = arith.constant 4 : index
    %c0_246 = arith.constant 0 : index
    %241 = vector.load %arg12[%c0_243, %c1_244, %c4_245, %c0_246] : memref<2x8x8x128xf32, #tpu.memory_space<vmem>>, vector<2x1x1x128xf32>
    %242 = vector.shape_cast %241 : vector<2x1x1x128xf32> to vector<2x128xf32>
    %c0_247 = arith.constant 0 : index
    %c1_248 = arith.constant 1 : index
    %c5_249 = arith.constant 5 : index
    %c0_250 = arith.constant 0 : index
    %243 = vector.load %arg12[%c0_247, %c1_248, %c5_249, %c0_250] : memref<2x8x8x128xf32, #tpu.memory_space<vmem>>, vector<2x1x1x128xf32>
    %244 = vector.shape_cast %243 : vector<2x1x1x128xf32> to vector<2x128xf32>
    %245 = arith.maximumf %242, %244 : vector<2x128xf32>
    %246 = arith.maximumf %240, %245 : vector<2x128xf32>
    %247 = arith.truncf %246 : vector<2x128xf32> to vector<2x128xbf16>
    %c2_251 = arith.constant 2 : index
    %c0_252 = arith.constant 0 : index
    %c0_253 = arith.constant 0 : index
    %248 = vector.load %arg6[%c2_251, %c0_252, %c0_253] : memref<16x128x512xbf16, #tpu.memory_space<vmem>>, vector<1x128x512xbf16>
    %249 = vector.shape_cast %248 : vector<1x128x512xbf16> to vector<128x512xbf16>
    %cst_254 = arith.constant dense<0.000000e+00> : vector<2x512xf32>
    %250 = tpu.matmul %247, %249, %cst_254 {dimension_numbers = #tpu.dot_dimension_numbers<[1], [0], [0], [1], [0, 0, 1, 1], [], []>} : vector<2x128xbf16>, vector<128x512xbf16>, vector<2x512xf32> -> vector<2x512xf32>
    %251 = arith.addf %235, %250 : vector<2x512xf32>
    %c0_255 = arith.constant 0 : index
    %c0_256 = arith.constant 0 : index
    %c6_257 = arith.constant 6 : index
    %c0_258 = arith.constant 0 : index
    %252 = vector.load %arg12[%c0_255, %c0_256, %c6_257, %c0_258] : memref<2x8x8x128xf32, #tpu.memory_space<vmem>>, vector<2x1x1x128xf32>
    %253 = vector.shape_cast %252 : vector<2x1x1x128xf32> to vector<2x128xf32>
    %c0_259 = arith.constant 0 : index
    %c0_260 = arith.constant 0 : index
    %c7_261 = arith.constant 7 : index
    %c0_262 = arith.constant 0 : index
    %254 = vector.load %arg12[%c0_259, %c0_260, %c7_261, %c0_262] : memref<2x8x8x128xf32, #tpu.memory_space<vmem>>, vector<2x1x1x128xf32>
    %255 = vector.shape_cast %254 : vector<2x1x1x128xf32> to vector<2x128xf32>
    %256 = arith.maximumf %253, %255 : vector<2x128xf32>
    %c0_263 = arith.constant 0 : index
    %c1_264 = arith.constant 1 : index
    %c6_265 = arith.constant 6 : index
    %c0_266 = arith.constant 0 : index
    %257 = vector.load %arg12[%c0_263, %c1_264, %c6_265, %c0_266] : memref<2x8x8x128xf32, #tpu.memory_space<vmem>>, vector<2x1x1x128xf32>
    %258 = vector.shape_cast %257 : vector<2x1x1x128xf32> to vector<2x128xf32>
    %c0_267 = arith.constant 0 : index
    %c1_268 = arith.constant 1 : index
    %c7_269 = arith.constant 7 : index
    %c0_270 = arith.constant 0 : index
    %259 = vector.load %arg12[%c0_267, %c1_268, %c7_269, %c0_270] : memref<2x8x8x128xf32, #tpu.memory_space<vmem>>, vector<2x1x1x128xf32>
    %260 = vector.shape_cast %259 : vector<2x1x1x128xf32> to vector<2x128xf32>
    %261 = arith.maximumf %258, %260 : vector<2x128xf32>
    %262 = arith.maximumf %256, %261 : vector<2x128xf32>
    %263 = arith.truncf %262 : vector<2x128xf32> to vector<2x128xbf16>
    %c3_271 = arith.constant 3 : index
    %c0_272 = arith.constant 0 : index
    %c0_273 = arith.constant 0 : index
    %264 = vector.load %arg6[%c3_271, %c0_272, %c0_273] : memref<16x128x512xbf16, #tpu.memory_space<vmem>>, vector<1x128x512xbf16>
    %265 = vector.shape_cast %264 : vector<1x128x512xbf16> to vector<128x512xbf16>
    %cst_274 = arith.constant dense<0.000000e+00> : vector<2x512xf32>
    %266 = tpu.matmul %263, %265, %cst_274 {dimension_numbers = #tpu.dot_dimension_numbers<[1], [0], [0], [1], [0, 0, 1, 1], [], []>} : vector<2x128xbf16>, vector<128x512xbf16>, vector<2x512xf32> -> vector<2x512xf32>
    %267 = arith.addf %251, %266 : vector<2x512xf32>
    %c0_275 = arith.constant 0 : index
    %c2_276 = arith.constant 2 : index
    %c0_277 = arith.constant 0 : index
    %c0_278 = arith.constant 0 : index
    %268 = vector.load %arg12[%c0_275, %c2_276, %c0_277, %c0_278] : memref<2x8x8x128xf32, #tpu.memory_space<vmem>>, vector<2x1x1x128xf32>
    %269 = vector.shape_cast %268 : vector<2x1x1x128xf32> to vector<2x128xf32>
    %c0_279 = arith.constant 0 : index
    %c2_280 = arith.constant 2 : index
    %c1_281 = arith.constant 1 : index
    %c0_282 = arith.constant 0 : index
    %270 = vector.load %arg12[%c0_279, %c2_280, %c1_281, %c0_282] : memref<2x8x8x128xf32, #tpu.memory_space<vmem>>, vector<2x1x1x128xf32>
    %271 = vector.shape_cast %270 : vector<2x1x1x128xf32> to vector<2x128xf32>
    %272 = arith.maximumf %269, %271 : vector<2x128xf32>
    %c0_283 = arith.constant 0 : index
    %c3_284 = arith.constant 3 : index
    %c0_285 = arith.constant 0 : index
    %c0_286 = arith.constant 0 : index
    %273 = vector.load %arg12[%c0_283, %c3_284, %c0_285, %c0_286] : memref<2x8x8x128xf32, #tpu.memory_space<vmem>>, vector<2x1x1x128xf32>
    %274 = vector.shape_cast %273 : vector<2x1x1x128xf32> to vector<2x128xf32>
    %c0_287 = arith.constant 0 : index
    %c3_288 = arith.constant 3 : index
    %c1_289 = arith.constant 1 : index
    %c0_290 = arith.constant 0 : index
    %275 = vector.load %arg12[%c0_287, %c3_288, %c1_289, %c0_290] : memref<2x8x8x128xf32, #tpu.memory_space<vmem>>, vector<2x1x1x128xf32>
    %276 = vector.shape_cast %275 : vector<2x1x1x128xf32> to vector<2x128xf32>
    %277 = arith.maximumf %274, %276 : vector<2x128xf32>
    %278 = arith.maximumf %272, %277 : vector<2x128xf32>
    %279 = arith.truncf %278 : vector<2x128xf32> to vector<2x128xbf16>
    %c4_291 = arith.constant 4 : index
    %c0_292 = arith.constant 0 : index
    %c0_293 = arith.constant 0 : index
    %280 = vector.load %arg6[%c4_291, %c0_292, %c0_293] : memref<16x128x512xbf16, #tpu.memory_space<vmem>>, vector<1x128x512xbf16>
    %281 = vector.shape_cast %280 : vector<1x128x512xbf16> to vector<128x512xbf16>
    %cst_294 = arith.constant dense<0.000000e+00> : vector<2x512xf32>
    %282 = tpu.matmul %279, %281, %cst_294 {dimension_numbers = #tpu.dot_dimension_numbers<[1], [0], [0], [1], [0, 0, 1, 1], [], []>} : vector<2x128xbf16>, vector<128x512xbf16>, vector<2x512xf32> -> vector<2x512xf32>
    %283 = arith.addf %267, %282 : vector<2x512xf32>
    %c0_295 = arith.constant 0 : index
    %c2_296 = arith.constant 2 : index
    %c2_297 = arith.constant 2 : index
    %c0_298 = arith.constant 0 : index
    %284 = vector.load %arg12[%c0_295, %c2_296, %c2_297, %c0_298] : memref<2x8x8x128xf32, #tpu.memory_space<vmem>>, vector<2x1x1x128xf32>
    %285 = vector.shape_cast %284 : vector<2x1x1x128xf32> to vector<2x128xf32>
    %c0_299 = arith.constant 0 : index
    %c2_300 = arith.constant 2 : index
    %c3_301 = arith.constant 3 : index
    %c0_302 = arith.constant 0 : index
    %286 = vector.load %arg12[%c0_299, %c2_300, %c3_301, %c0_302] : memref<2x8x8x128xf32, #tpu.memory_space<vmem>>, vector<2x1x1x128xf32>
    %287 = vector.shape_cast %286 : vector<2x1x1x128xf32> to vector<2x128xf32>
    %288 = arith.maximumf %285, %287 : vector<2x128xf32>
    %c0_303 = arith.constant 0 : index
    %c3_304 = arith.constant 3 : index
    %c2_305 = arith.constant 2 : index
    %c0_306 = arith.constant 0 : index
    %289 = vector.load %arg12[%c0_303, %c3_304, %c2_305, %c0_306] : memref<2x8x8x128xf32, #tpu.memory_space<vmem>>, vector<2x1x1x128xf32>
    %290 = vector.shape_cast %289 : vector<2x1x1x128xf32> to vector<2x128xf32>
    %c0_307 = arith.constant 0 : index
    %c3_308 = arith.constant 3 : index
    %c3_309 = arith.constant 3 : index
    %c0_310 = arith.constant 0 : index
    %291 = vector.load %arg12[%c0_307, %c3_308, %c3_309, %c0_310] : memref<2x8x8x128xf32, #tpu.memory_space<vmem>>, vector<2x1x1x128xf32>
    %292 = vector.shape_cast %291 : vector<2x1x1x128xf32> to vector<2x128xf32>
    %293 = arith.maximumf %290, %292 : vector<2x128xf32>
    %294 = arith.maximumf %288, %293 : vector<2x128xf32>
    %295 = arith.truncf %294 : vector<2x128xf32> to vector<2x128xbf16>
    %c5_311 = arith.constant 5 : index
    %c0_312 = arith.constant 0 : index
    %c0_313 = arith.constant 0 : index
    %296 = vector.load %arg6[%c5_311, %c0_312, %c0_313] : memref<16x128x512xbf16, #tpu.memory_space<vmem>>, vector<1x128x512xbf16>
    %297 = vector.shape_cast %296 : vector<1x128x512xbf16> to vector<128x512xbf16>
    %cst_314 = arith.constant dense<0.000000e+00> : vector<2x512xf32>
    %298 = tpu.matmul %295, %297, %cst_314 {dimension_numbers = #tpu.dot_dimension_numbers<[1], [0], [0], [1], [0, 0, 1, 1], [], []>} : vector<2x128xbf16>, vector<128x512xbf16>, vector<2x512xf32> -> vector<2x512xf32>
    %299 = arith.addf %283, %298 : vector<2x512xf32>
    %c0_315 = arith.constant 0 : index
    %c2_316 = arith.constant 2 : index
    %c4_317 = arith.constant 4 : index
    %c0_318 = arith.constant 0 : index
    %300 = vector.load %arg12[%c0_315, %c2_316, %c4_317, %c0_318] : memref<2x8x8x128xf32, #tpu.memory_space<vmem>>, vector<2x1x1x128xf32>
    %301 = vector.shape_cast %300 : vector<2x1x1x128xf32> to vector<2x128xf32>
    %c0_319 = arith.constant 0 : index
    %c2_320 = arith.constant 2 : index
    %c5_321 = arith.constant 5 : index
    %c0_322 = arith.constant 0 : index
    %302 = vector.load %arg12[%c0_319, %c2_320, %c5_321, %c0_322] : memref<2x8x8x128xf32, #tpu.memory_space<vmem>>, vector<2x1x1x128xf32>
    %303 = vector.shape_cast %302 : vector<2x1x1x128xf32> to vector<2x128xf32>
    %304 = arith.maximumf %301, %303 : vector<2x128xf32>
    %c0_323 = arith.constant 0 : index
    %c3_324 = arith.constant 3 : index
    %c4_325 = arith.constant 4 : index
    %c0_326 = arith.constant 0 : index
    %305 = vector.load %arg12[%c0_323, %c3_324, %c4_325, %c0_326] : memref<2x8x8x128xf32, #tpu.memory_space<vmem>>, vector<2x1x1x128xf32>
    %306 = vector.shape_cast %305 : vector<2x1x1x128xf32> to vector<2x128xf32>
    %c0_327 = arith.constant 0 : index
    %c3_328 = arith.constant 3 : index
    %c5_329 = arith.constant 5 : index
    %c0_330 = arith.constant 0 : index
    %307 = vector.load %arg12[%c0_327, %c3_328, %c5_329, %c0_330] : memref<2x8x8x128xf32, #tpu.memory_space<vmem>>, vector<2x1x1x128xf32>
    %308 = vector.shape_cast %307 : vector<2x1x1x128xf32> to vector<2x128xf32>
    %309 = arith.maximumf %306, %308 : vector<2x128xf32>
    %310 = arith.maximumf %304, %309 : vector<2x128xf32>
    %311 = arith.truncf %310 : vector<2x128xf32> to vector<2x128xbf16>
    %c6_331 = arith.constant 6 : index
    %c0_332 = arith.constant 0 : index
    %c0_333 = arith.constant 0 : index
    %312 = vector.load %arg6[%c6_331, %c0_332, %c0_333] : memref<16x128x512xbf16, #tpu.memory_space<vmem>>, vector<1x128x512xbf16>
    %313 = vector.shape_cast %312 : vector<1x128x512xbf16> to vector<128x512xbf16>
    %cst_334 = arith.constant dense<0.000000e+00> : vector<2x512xf32>
    %314 = tpu.matmul %311, %313, %cst_334 {dimension_numbers = #tpu.dot_dimension_numbers<[1], [0], [0], [1], [0, 0, 1, 1], [], []>} : vector<2x128xbf16>, vector<128x512xbf16>, vector<2x512xf32> -> vector<2x512xf32>
    %315 = arith.addf %299, %314 : vector<2x512xf32>
    %c0_335 = arith.constant 0 : index
    %c2_336 = arith.constant 2 : index
    %c6_337 = arith.constant 6 : index
    %c0_338 = arith.constant 0 : index
    %316 = vector.load %arg12[%c0_335, %c2_336, %c6_337, %c0_338] : memref<2x8x8x128xf32, #tpu.memory_space<vmem>>, vector<2x1x1x128xf32>
    %317 = vector.shape_cast %316 : vector<2x1x1x128xf32> to vector<2x128xf32>
    %c0_339 = arith.constant 0 : index
    %c2_340 = arith.constant 2 : index
    %c7_341 = arith.constant 7 : index
    %c0_342 = arith.constant 0 : index
    %318 = vector.load %arg12[%c0_339, %c2_340, %c7_341, %c0_342] : memref<2x8x8x128xf32, #tpu.memory_space<vmem>>, vector<2x1x1x128xf32>
    %319 = vector.shape_cast %318 : vector<2x1x1x128xf32> to vector<2x128xf32>
    %320 = arith.maximumf %317, %319 : vector<2x128xf32>
    %c0_343 = arith.constant 0 : index
    %c3_344 = arith.constant 3 : index
    %c6_345 = arith.constant 6 : index
    %c0_346 = arith.constant 0 : index
    %321 = vector.load %arg12[%c0_343, %c3_344, %c6_345, %c0_346] : memref<2x8x8x128xf32, #tpu.memory_space<vmem>>, vector<2x1x1x128xf32>
    %322 = vector.shape_cast %321 : vector<2x1x1x128xf32> to vector<2x128xf32>
    %c0_347 = arith.constant 0 : index
    %c3_348 = arith.constant 3 : index
    %c7_349 = arith.constant 7 : index
    %c0_350 = arith.constant 0 : index
    %323 = vector.load %arg12[%c0_347, %c3_348, %c7_349, %c0_350] : memref<2x8x8x128xf32, #tpu.memory_space<vmem>>, vector<2x1x1x128xf32>
    %324 = vector.shape_cast %323 : vector<2x1x1x128xf32> to vector<2x128xf32>
    %325 = arith.maximumf %322, %324 : vector<2x128xf32>
    %326 = arith.maximumf %320, %325 : vector<2x128xf32>
    %327 = arith.truncf %326 : vector<2x128xf32> to vector<2x128xbf16>
    %c7_351 = arith.constant 7 : index
    %c0_352 = arith.constant 0 : index
    %c0_353 = arith.constant 0 : index
    %328 = vector.load %arg6[%c7_351, %c0_352, %c0_353] : memref<16x128x512xbf16, #tpu.memory_space<vmem>>, vector<1x128x512xbf16>
    %329 = vector.shape_cast %328 : vector<1x128x512xbf16> to vector<128x512xbf16>
    %cst_354 = arith.constant dense<0.000000e+00> : vector<2x512xf32>
    %330 = tpu.matmul %327, %329, %cst_354 {dimension_numbers = #tpu.dot_dimension_numbers<[1], [0], [0], [1], [0, 0, 1, 1], [], []>} : vector<2x128xbf16>, vector<128x512xbf16>, vector<2x512xf32> -> vector<2x512xf32>
    %331 = arith.addf %315, %330 : vector<2x512xf32>
    %c0_355 = arith.constant 0 : index
    %c4_356 = arith.constant 4 : index
    %c0_357 = arith.constant 0 : index
    %c0_358 = arith.constant 0 : index
    %332 = vector.load %arg12[%c0_355, %c4_356, %c0_357, %c0_358] : memref<2x8x8x128xf32, #tpu.memory_space<vmem>>, vector<2x1x1x128xf32>
    %333 = vector.shape_cast %332 : vector<2x1x1x128xf32> to vector<2x128xf32>
    %c0_359 = arith.constant 0 : index
    %c4_360 = arith.constant 4 : index
    %c1_361 = arith.constant 1 : index
    %c0_362 = arith.constant 0 : index
    %334 = vector.load %arg12[%c0_359, %c4_360, %c1_361, %c0_362] : memref<2x8x8x128xf32, #tpu.memory_space<vmem>>, vector<2x1x1x128xf32>
    %335 = vector.shape_cast %334 : vector<2x1x1x128xf32> to vector<2x128xf32>
    %336 = arith.maximumf %333, %335 : vector<2x128xf32>
    %c0_363 = arith.constant 0 : index
    %c5_364 = arith.constant 5 : index
    %c0_365 = arith.constant 0 : index
    %c0_366 = arith.constant 0 : index
    %337 = vector.load %arg12[%c0_363, %c5_364, %c0_365, %c0_366] : memref<2x8x8x128xf32, #tpu.memory_space<vmem>>, vector<2x1x1x128xf32>
    %338 = vector.shape_cast %337 : vector<2x1x1x128xf32> to vector<2x128xf32>
    %c0_367 = arith.constant 0 : index
    %c5_368 = arith.constant 5 : index
    %c1_369 = arith.constant 1 : index
    %c0_370 = arith.constant 0 : index
    %339 = vector.load %arg12[%c0_367, %c5_368, %c1_369, %c0_370] : memref<2x8x8x128xf32, #tpu.memory_space<vmem>>, vector<2x1x1x128xf32>
    %340 = vector.shape_cast %339 : vector<2x1x1x128xf32> to vector<2x128xf32>
    %341 = arith.maximumf %338, %340 : vector<2x128xf32>
    %342 = arith.maximumf %336, %341 : vector<2x128xf32>
    %343 = arith.truncf %342 : vector<2x128xf32> to vector<2x128xbf16>
    %c8_371 = arith.constant 8 : index
    %c0_372 = arith.constant 0 : index
    %c0_373 = arith.constant 0 : index
    %344 = vector.load %arg6[%c8_371, %c0_372, %c0_373] : memref<16x128x512xbf16, #tpu.memory_space<vmem>>, vector<1x128x512xbf16>
    %345 = vector.shape_cast %344 : vector<1x128x512xbf16> to vector<128x512xbf16>
    %cst_374 = arith.constant dense<0.000000e+00> : vector<2x512xf32>
    %346 = tpu.matmul %343, %345, %cst_374 {dimension_numbers = #tpu.dot_dimension_numbers<[1], [0], [0], [1], [0, 0, 1, 1], [], []>} : vector<2x128xbf16>, vector<128x512xbf16>, vector<2x512xf32> -> vector<2x512xf32>
    %347 = arith.addf %331, %346 : vector<2x512xf32>
    %c0_375 = arith.constant 0 : index
    %c4_376 = arith.constant 4 : index
    %c2_377 = arith.constant 2 : index
    %c0_378 = arith.constant 0 : index
    %348 = vector.load %arg12[%c0_375, %c4_376, %c2_377, %c0_378] : memref<2x8x8x128xf32, #tpu.memory_space<vmem>>, vector<2x1x1x128xf32>
    %349 = vector.shape_cast %348 : vector<2x1x1x128xf32> to vector<2x128xf32>
    %c0_379 = arith.constant 0 : index
    %c4_380 = arith.constant 4 : index
    %c3_381 = arith.constant 3 : index
    %c0_382 = arith.constant 0 : index
    %350 = vector.load %arg12[%c0_379, %c4_380, %c3_381, %c0_382] : memref<2x8x8x128xf32, #tpu.memory_space<vmem>>, vector<2x1x1x128xf32>
    %351 = vector.shape_cast %350 : vector<2x1x1x128xf32> to vector<2x128xf32>
    %352 = arith.maximumf %349, %351 : vector<2x128xf32>
    %c0_383 = arith.constant 0 : index
    %c5_384 = arith.constant 5 : index
    %c2_385 = arith.constant 2 : index
    %c0_386 = arith.constant 0 : index
    %353 = vector.load %arg12[%c0_383, %c5_384, %c2_385, %c0_386] : memref<2x8x8x128xf32, #tpu.memory_space<vmem>>, vector<2x1x1x128xf32>
    %354 = vector.shape_cast %353 : vector<2x1x1x128xf32> to vector<2x128xf32>
    %c0_387 = arith.constant 0 : index
    %c5_388 = arith.constant 5 : index
    %c3_389 = arith.constant 3 : index
    %c0_390 = arith.constant 0 : index
    %355 = vector.load %arg12[%c0_387, %c5_388, %c3_389, %c0_390] : memref<2x8x8x128xf32, #tpu.memory_space<vmem>>, vector<2x1x1x128xf32>
    %356 = vector.shape_cast %355 : vector<2x1x1x128xf32> to vector<2x128xf32>
    %357 = arith.maximumf %354, %356 : vector<2x128xf32>
    %358 = arith.maximumf %352, %357 : vector<2x128xf32>
    %359 = arith.truncf %358 : vector<2x128xf32> to vector<2x128xbf16>
    %c9_391 = arith.constant 9 : index
    %c0_392 = arith.constant 0 : index
    %c0_393 = arith.constant 0 : index
    %360 = vector.load %arg6[%c9_391, %c0_392, %c0_393] : memref<16x128x512xbf16, #tpu.memory_space<vmem>>, vector<1x128x512xbf16>
    %361 = vector.shape_cast %360 : vector<1x128x512xbf16> to vector<128x512xbf16>
    %cst_394 = arith.constant dense<0.000000e+00> : vector<2x512xf32>
    %362 = tpu.matmul %359, %361, %cst_394 {dimension_numbers = #tpu.dot_dimension_numbers<[1], [0], [0], [1], [0, 0, 1, 1], [], []>} : vector<2x128xbf16>, vector<128x512xbf16>, vector<2x512xf32> -> vector<2x512xf32>
    %363 = arith.addf %347, %362 : vector<2x512xf32>
    %c0_395 = arith.constant 0 : index
    %c4_396 = arith.constant 4 : index
    %c4_397 = arith.constant 4 : index
    %c0_398 = arith.constant 0 : index
    %364 = vector.load %arg12[%c0_395, %c4_396, %c4_397, %c0_398] : memref<2x8x8x128xf32, #tpu.memory_space<vmem>>, vector<2x1x1x128xf32>
    %365 = vector.shape_cast %364 : vector<2x1x1x128xf32> to vector<2x128xf32>
    %c0_399 = arith.constant 0 : index
    %c4_400 = arith.constant 4 : index
    %c5_401 = arith.constant 5 : index
    %c0_402 = arith.constant 0 : index
    %366 = vector.load %arg12[%c0_399, %c4_400, %c5_401, %c0_402] : memref<2x8x8x128xf32, #tpu.memory_space<vmem>>, vector<2x1x1x128xf32>
    %367 = vector.shape_cast %366 : vector<2x1x1x128xf32> to vector<2x128xf32>
    %368 = arith.maximumf %365, %367 : vector<2x128xf32>
    %c0_403 = arith.constant 0 : index
    %c5_404 = arith.constant 5 : index
    %c4_405 = arith.constant 4 : index
    %c0_406 = arith.constant 0 : index
    %369 = vector.load %arg12[%c0_403, %c5_404, %c4_405, %c0_406] : memref<2x8x8x128xf32, #tpu.memory_space<vmem>>, vector<2x1x1x128xf32>
    %370 = vector.shape_cast %369 : vector<2x1x1x128xf32> to vector<2x128xf32>
    %c0_407 = arith.constant 0 : index
    %c5_408 = arith.constant 5 : index
    %c5_409 = arith.constant 5 : index
    %c0_410 = arith.constant 0 : index
    %371 = vector.load %arg12[%c0_407, %c5_408, %c5_409, %c0_410] : memref<2x8x8x128xf32, #tpu.memory_space<vmem>>, vector<2x1x1x128xf32>
    %372 = vector.shape_cast %371 : vector<2x1x1x128xf32> to vector<2x128xf32>
    %373 = arith.maximumf %370, %372 : vector<2x128xf32>
    %374 = arith.maximumf %368, %373 : vector<2x128xf32>
    %375 = arith.truncf %374 : vector<2x128xf32> to vector<2x128xbf16>
    %c10_411 = arith.constant 10 : index
    %c0_412 = arith.constant 0 : index
    %c0_413 = arith.constant 0 : index
    %376 = vector.load %arg6[%c10_411, %c0_412, %c0_413] : memref<16x128x512xbf16, #tpu.memory_space<vmem>>, vector<1x128x512xbf16>
    %377 = vector.shape_cast %376 : vector<1x128x512xbf16> to vector<128x512xbf16>
    %cst_414 = arith.constant dense<0.000000e+00> : vector<2x512xf32>
    %378 = tpu.matmul %375, %377, %cst_414 {dimension_numbers = #tpu.dot_dimension_numbers<[1], [0], [0], [1], [0, 0, 1, 1], [], []>} : vector<2x128xbf16>, vector<128x512xbf16>, vector<2x512xf32> -> vector<2x512xf32>
    %379 = arith.addf %363, %378 : vector<2x512xf32>
    %c0_415 = arith.constant 0 : index
    %c4_416 = arith.constant 4 : index
    %c6_417 = arith.constant 6 : index
    %c0_418 = arith.constant 0 : index
    %380 = vector.load %arg12[%c0_415, %c4_416, %c6_417, %c0_418] : memref<2x8x8x128xf32, #tpu.memory_space<vmem>>, vector<2x1x1x128xf32>
    %381 = vector.shape_cast %380 : vector<2x1x1x128xf32> to vector<2x128xf32>
    %c0_419 = arith.constant 0 : index
    %c4_420 = arith.constant 4 : index
    %c7_421 = arith.constant 7 : index
    %c0_422 = arith.constant 0 : index
    %382 = vector.load %arg12[%c0_419, %c4_420, %c7_421, %c0_422] : memref<2x8x8x128xf32, #tpu.memory_space<vmem>>, vector<2x1x1x128xf32>
    %383 = vector.shape_cast %382 : vector<2x1x1x128xf32> to vector<2x128xf32>
    %384 = arith.maximumf %381, %383 : vector<2x128xf32>
    %c0_423 = arith.constant 0 : index
    %c5_424 = arith.constant 5 : index
    %c6_425 = arith.constant 6 : index
    %c0_426 = arith.constant 0 : index
    %385 = vector.load %arg12[%c0_423, %c5_424, %c6_425, %c0_426] : memref<2x8x8x128xf32, #tpu.memory_space<vmem>>, vector<2x1x1x128xf32>
    %386 = vector.shape_cast %385 : vector<2x1x1x128xf32> to vector<2x128xf32>
    %c0_427 = arith.constant 0 : index
    %c5_428 = arith.constant 5 : index
    %c7_429 = arith.constant 7 : index
    %c0_430 = arith.constant 0 : index
    %387 = vector.load %arg12[%c0_427, %c5_428, %c7_429, %c0_430] : memref<2x8x8x128xf32, #tpu.memory_space<vmem>>, vector<2x1x1x128xf32>
    %388 = vector.shape_cast %387 : vector<2x1x1x128xf32> to vector<2x128xf32>
    %389 = arith.maximumf %386, %388 : vector<2x128xf32>
    %390 = arith.maximumf %384, %389 : vector<2x128xf32>
    %391 = arith.truncf %390 : vector<2x128xf32> to vector<2x128xbf16>
    %c11_431 = arith.constant 11 : index
    %c0_432 = arith.constant 0 : index
    %c0_433 = arith.constant 0 : index
    %392 = vector.load %arg6[%c11_431, %c0_432, %c0_433] : memref<16x128x512xbf16, #tpu.memory_space<vmem>>, vector<1x128x512xbf16>
    %393 = vector.shape_cast %392 : vector<1x128x512xbf16> to vector<128x512xbf16>
    %cst_434 = arith.constant dense<0.000000e+00> : vector<2x512xf32>
    %394 = tpu.matmul %391, %393, %cst_434 {dimension_numbers = #tpu.dot_dimension_numbers<[1], [0], [0], [1], [0, 0, 1, 1], [], []>} : vector<2x128xbf16>, vector<128x512xbf16>, vector<2x512xf32> -> vector<2x512xf32>
    %395 = arith.addf %379, %394 : vector<2x512xf32>
    %c0_435 = arith.constant 0 : index
    %c6_436 = arith.constant 6 : index
    %c0_437 = arith.constant 0 : index
    %c0_438 = arith.constant 0 : index
    %396 = vector.load %arg12[%c0_435, %c6_436, %c0_437, %c0_438] : memref<2x8x8x128xf32, #tpu.memory_space<vmem>>, vector<2x1x1x128xf32>
    %397 = vector.shape_cast %396 : vector<2x1x1x128xf32> to vector<2x128xf32>
    %c0_439 = arith.constant 0 : index
    %c6_440 = arith.constant 6 : index
    %c1_441 = arith.constant 1 : index
    %c0_442 = arith.constant 0 : index
    %398 = vector.load %arg12[%c0_439, %c6_440, %c1_441, %c0_442] : memref<2x8x8x128xf32, #tpu.memory_space<vmem>>, vector<2x1x1x128xf32>
    %399 = vector.shape_cast %398 : vector<2x1x1x128xf32> to vector<2x128xf32>
    %400 = arith.maximumf %397, %399 : vector<2x128xf32>
    %c0_443 = arith.constant 0 : index
    %c7_444 = arith.constant 7 : index
    %c0_445 = arith.constant 0 : index
    %c0_446 = arith.constant 0 : index
    %401 = vector.load %arg12[%c0_443, %c7_444, %c0_445, %c0_446] : memref<2x8x8x128xf32, #tpu.memory_space<vmem>>, vector<2x1x1x128xf32>
    %402 = vector.shape_cast %401 : vector<2x1x1x128xf32> to vector<2x128xf32>
    %c0_447 = arith.constant 0 : index
    %c7_448 = arith.constant 7 : index
    %c1_449 = arith.constant 1 : index
    %c0_450 = arith.constant 0 : index
    %403 = vector.load %arg12[%c0_447, %c7_448, %c1_449, %c0_450] : memref<2x8x8x128xf32, #tpu.memory_space<vmem>>, vector<2x1x1x128xf32>
    %404 = vector.shape_cast %403 : vector<2x1x1x128xf32> to vector<2x128xf32>
    %405 = arith.maximumf %402, %404 : vector<2x128xf32>
    %406 = arith.maximumf %400, %405 : vector<2x128xf32>
    %407 = arith.truncf %406 : vector<2x128xf32> to vector<2x128xbf16>
    %c12_451 = arith.constant 12 : index
    %c0_452 = arith.constant 0 : index
    %c0_453 = arith.constant 0 : index
    %408 = vector.load %arg6[%c12_451, %c0_452, %c0_453] : memref<16x128x512xbf16, #tpu.memory_space<vmem>>, vector<1x128x512xbf16>
    %409 = vector.shape_cast %408 : vector<1x128x512xbf16> to vector<128x512xbf16>
    %cst_454 = arith.constant dense<0.000000e+00> : vector<2x512xf32>
    %410 = tpu.matmul %407, %409, %cst_454 {dimension_numbers = #tpu.dot_dimension_numbers<[1], [0], [0], [1], [0, 0, 1, 1], [], []>} : vector<2x128xbf16>, vector<128x512xbf16>, vector<2x512xf32> -> vector<2x512xf32>
    %411 = arith.addf %395, %410 : vector<2x512xf32>
    %c0_455 = arith.constant 0 : index
    %c6_456 = arith.constant 6 : index
    %c2_457 = arith.constant 2 : index
    %c0_458 = arith.constant 0 : index
    %412 = vector.load %arg12[%c0_455, %c6_456, %c2_457, %c0_458] : memref<2x8x8x128xf32, #tpu.memory_space<vmem>>, vector<2x1x1x128xf32>
    %413 = vector.shape_cast %412 : vector<2x1x1x128xf32> to vector<2x128xf32>
    %c0_459 = arith.constant 0 : index
    %c6_460 = arith.constant 6 : index
    %c3_461 = arith.constant 3 : index
    %c0_462 = arith.constant 0 : index
    %414 = vector.load %arg12[%c0_459, %c6_460, %c3_461, %c0_462] : memref<2x8x8x128xf32, #tpu.memory_space<vmem>>, vector<2x1x1x128xf32>
    %415 = vector.shape_cast %414 : vector<2x1x1x128xf32> to vector<2x128xf32>
    %416 = arith.maximumf %413, %415 : vector<2x128xf32>
    %c0_463 = arith.constant 0 : index
    %c7_464 = arith.constant 7 : index
    %c2_465 = arith.constant 2 : index
    %c0_466 = arith.constant 0 : index
    %417 = vector.load %arg12[%c0_463, %c7_464, %c2_465, %c0_466] : memref<2x8x8x128xf32, #tpu.memory_space<vmem>>, vector<2x1x1x128xf32>
    %418 = vector.shape_cast %417 : vector<2x1x1x128xf32> to vector<2x128xf32>
    %c0_467 = arith.constant 0 : index
    %c7_468 = arith.constant 7 : index
    %c3_469 = arith.constant 3 : index
    %c0_470 = arith.constant 0 : index
    %419 = vector.load %arg12[%c0_467, %c7_468, %c3_469, %c0_470] : memref<2x8x8x128xf32, #tpu.memory_space<vmem>>, vector<2x1x1x128xf32>
    %420 = vector.shape_cast %419 : vector<2x1x1x128xf32> to vector<2x128xf32>
    %421 = arith.maximumf %418, %420 : vector<2x128xf32>
    %422 = arith.maximumf %416, %421 : vector<2x128xf32>
    %423 = arith.truncf %422 : vector<2x128xf32> to vector<2x128xbf16>
    %c13_471 = arith.constant 13 : index
    %c0_472 = arith.constant 0 : index
    %c0_473 = arith.constant 0 : index
    %424 = vector.load %arg6[%c13_471, %c0_472, %c0_473] : memref<16x128x512xbf16, #tpu.memory_space<vmem>>, vector<1x128x512xbf16>
    %425 = vector.shape_cast %424 : vector<1x128x512xbf16> to vector<128x512xbf16>
    %cst_474 = arith.constant dense<0.000000e+00> : vector<2x512xf32>
    %426 = tpu.matmul %423, %425, %cst_474 {dimension_numbers = #tpu.dot_dimension_numbers<[1], [0], [0], [1], [0, 0, 1, 1], [], []>} : vector<2x128xbf16>, vector<128x512xbf16>, vector<2x512xf32> -> vector<2x512xf32>
    %427 = arith.addf %411, %426 : vector<2x512xf32>
    %c0_475 = arith.constant 0 : index
    %c6_476 = arith.constant 6 : index
    %c4_477 = arith.constant 4 : index
    %c0_478 = arith.constant 0 : index
    %428 = vector.load %arg12[%c0_475, %c6_476, %c4_477, %c0_478] : memref<2x8x8x128xf32, #tpu.memory_space<vmem>>, vector<2x1x1x128xf32>
    %429 = vector.shape_cast %428 : vector<2x1x1x128xf32> to vector<2x128xf32>
    %c0_479 = arith.constant 0 : index
    %c6_480 = arith.constant 6 : index
    %c5_481 = arith.constant 5 : index
    %c0_482 = arith.constant 0 : index
    %430 = vector.load %arg12[%c0_479, %c6_480, %c5_481, %c0_482] : memref<2x8x8x128xf32, #tpu.memory_space<vmem>>, vector<2x1x1x128xf32>
    %431 = vector.shape_cast %430 : vector<2x1x1x128xf32> to vector<2x128xf32>
    %432 = arith.maximumf %429, %431 : vector<2x128xf32>
    %c0_483 = arith.constant 0 : index
    %c7_484 = arith.constant 7 : index
    %c4_485 = arith.constant 4 : index
    %c0_486 = arith.constant 0 : index
    %433 = vector.load %arg12[%c0_483, %c7_484, %c4_485, %c0_486] : memref<2x8x8x128xf32, #tpu.memory_space<vmem>>, vector<2x1x1x128xf32>
    %434 = vector.shape_cast %433 : vector<2x1x1x128xf32> to vector<2x128xf32>
    %c0_487 = arith.constant 0 : index
    %c7_488 = arith.constant 7 : index
    %c5_489 = arith.constant 5 : index
    %c0_490 = arith.constant 0 : index
    %435 = vector.load %arg12[%c0_487, %c7_488, %c5_489, %c0_490] : memref<2x8x8x128xf32, #tpu.memory_space<vmem>>, vector<2x1x1x128xf32>
    %436 = vector.shape_cast %435 : vector<2x1x1x128xf32> to vector<2x128xf32>
    %437 = arith.maximumf %434, %436 : vector<2x128xf32>
    %438 = arith.maximumf %432, %437 : vector<2x128xf32>
    %439 = arith.truncf %438 : vector<2x128xf32> to vector<2x128xbf16>
    %c14_491 = arith.constant 14 : index
    %c0_492 = arith.constant 0 : index
    %c0_493 = arith.constant 0 : index
    %440 = vector.load %arg6[%c14_491, %c0_492, %c0_493] : memref<16x128x512xbf16, #tpu.memory_space<vmem>>, vector<1x128x512xbf16>
    %441 = vector.shape_cast %440 : vector<1x128x512xbf16> to vector<128x512xbf16>
    %cst_494 = arith.constant dense<0.000000e+00> : vector<2x512xf32>
    %442 = tpu.matmul %439, %441, %cst_494 {dimension_numbers = #tpu.dot_dimension_numbers<[1], [0], [0], [1], [0, 0, 1, 1], [], []>} : vector<2x128xbf16>, vector<128x512xbf16>, vector<2x512xf32> -> vector<2x512xf32>
    %443 = arith.addf %427, %442 : vector<2x512xf32>
    %c0_495 = arith.constant 0 : index
    %c6_496 = arith.constant 6 : index
    %c6_497 = arith.constant 6 : index
    %c0_498 = arith.constant 0 : index
    %444 = vector.load %arg12[%c0_495, %c6_496, %c6_497, %c0_498] : memref<2x8x8x128xf32, #tpu.memory_space<vmem>>, vector<2x1x1x128xf32>
    %445 = vector.shape_cast %444 : vector<2x1x1x128xf32> to vector<2x128xf32>
    %c0_499 = arith.constant 0 : index
    %c6_500 = arith.constant 6 : index
    %c7_501 = arith.constant 7 : index
    %c0_502 = arith.constant 0 : index
    %446 = vector.load %arg12[%c0_499, %c6_500, %c7_501, %c0_502] : memref<2x8x8x128xf32, #tpu.memory_space<vmem>>, vector<2x1x1x128xf32>
    %447 = vector.shape_cast %446 : vector<2x1x1x128xf32> to vector<2x128xf32>
    %448 = arith.maximumf %445, %447 : vector<2x128xf32>
    %c0_503 = arith.constant 0 : index
    %c7_504 = arith.constant 7 : index
    %c6_505 = arith.constant 6 : index
    %c0_506 = arith.constant 0 : index
    %449 = vector.load %arg12[%c0_503, %c7_504, %c6_505, %c0_506] : memref<2x8x8x128xf32, #tpu.memory_space<vmem>>, vector<2x1x1x128xf32>
    %450 = vector.shape_cast %449 : vector<2x1x1x128xf32> to vector<2x128xf32>
    %c0_507 = arith.constant 0 : index
    %c7_508 = arith.constant 7 : index
    %c7_509 = arith.constant 7 : index
    %c0_510 = arith.constant 0 : index
    %451 = vector.load %arg12[%c0_507, %c7_508, %c7_509, %c0_510] : memref<2x8x8x128xf32, #tpu.memory_space<vmem>>, vector<2x1x1x128xf32>
    %452 = vector.shape_cast %451 : vector<2x1x1x128xf32> to vector<2x128xf32>
    %453 = arith.maximumf %450, %452 : vector<2x128xf32>
    %454 = arith.maximumf %448, %453 : vector<2x128xf32>
    %455 = arith.truncf %454 : vector<2x128xf32> to vector<2x128xbf16>
    %c15_511 = arith.constant 15 : index
    %c0_512 = arith.constant 0 : index
    %c0_513 = arith.constant 0 : index
    %456 = vector.load %arg6[%c15_511, %c0_512, %c0_513] : memref<16x128x512xbf16, #tpu.memory_space<vmem>>, vector<1x128x512xbf16>
    %457 = vector.shape_cast %456 : vector<1x128x512xbf16> to vector<128x512xbf16>
    %cst_514 = arith.constant dense<0.000000e+00> : vector<2x512xf32>
    %458 = tpu.matmul %455, %457, %cst_514 {dimension_numbers = #tpu.dot_dimension_numbers<[1], [0], [0], [1], [0, 0, 1, 1], [], []>} : vector<2x128xbf16>, vector<128x512xbf16>, vector<2x512xf32> -> vector<2x512xf32>
    %459 = arith.addf %443, %458 : vector<2x512xf32>
    %c0_515 = arith.constant 0 : index
    %c0_516 = arith.constant 0 : index
    %460 = vector.load %arg7[%c0_515, %c0_516] : memref<1x512xf32, #tpu.memory_space<vmem>>, vector<1x512xf32>
    %461 = vector.broadcast %460 : vector<1x512xf32> to vector<2x512xf32>
    %462 = arith.addf %459, %461 : vector<2x512xf32>
    %cst_517 = arith.constant 0.000000e+00 : f32
    %463 = vector.broadcast %cst_517 : f32 to vector<2x512xf32>
    %464 = arith.maximumf %462, %463 : vector<2x512xf32>
    %465 = arith.truncf %464 : vector<2x512xf32> to vector<2x512xbf16>
    %c0_518 = arith.constant 0 : index
    %c0_519 = arith.constant 0 : index
    %466 = vector.load %arg8[%c0_518, %c0_519] : memref<512x128xbf16, #tpu.memory_space<vmem>>, vector<512x128xbf16>
    %cst_520 = arith.constant dense<0.000000e+00> : vector<2x128xf32>
    %467 = tpu.matmul %465, %466, %cst_520 {dimension_numbers = #tpu.dot_dimension_numbers<[1], [0], [0], [1], [0, 0, 1, 1], [], []>} : vector<2x512xbf16>, vector<512x128xbf16>, vector<2x128xf32> -> vector<2x128xf32>
    %c0_521 = arith.constant 0 : index
    %c0_522 = arith.constant 0 : index
    %468 = vector.load %arg9[%c0_521, %c0_522] : memref<1x128xf32, #tpu.memory_space<vmem>>, vector<1x128xf32>
    %469 = vector.broadcast %468 : vector<1x128xf32> to vector<2x128xf32>
    %470 = arith.addf %467, %469 : vector<2x128xf32>
    %471 = tpu.iota {dimensions = array<i32: 1>} : vector<2x128xi32>
    %c10_i32 = arith.constant 10 : i32
    %472 = vector.broadcast %c10_i32 : i32 to vector<2x128xi32>
    %473 = arith.cmpi slt, %471, %472 : vector<2x128xi32>
    %cst_523 = arith.constant -1.000000e+30 : f32
    %474 = vector.broadcast %cst_523 : f32 to vector<2x128xf32>
    %475 = arith.select %473, %470, %474 : vector<2x128xi1>, vector<2x128xf32>
    %cst_524 = arith.constant dense<0xFF800000> : vector<2xf32>
    %476 = vector.multi_reduction <maximumf>, %475, %cst_524 [1] : vector<2x128xf32> to vector<2xf32>
    %477 = vector.shape_cast %476 : vector<2xf32> to vector<2x1xf32>
    %478 = vector.broadcast %477 : vector<2x1xf32> to vector<2x128xf32>
    %479 = arith.subf %475, %478 : vector<2x128xf32>
    %480 = math.exp %479 : vector<2x128xf32>
    %cst_525 = arith.constant 0.000000e+00 : f32
    %481 = vector.broadcast %cst_525 : f32 to vector<2x128xf32>
    %482 = arith.select %473, %480, %481 : vector<2x128xi1>, vector<2x128xf32>
    %cst_526 = arith.constant dense<0.000000e+00> : vector<2xf32>
    %483 = vector.multi_reduction <add>, %482, %cst_526 [1] : vector<2x128xf32> to vector<2xf32>
    %484 = vector.shape_cast %483 : vector<2xf32> to vector<2x1xf32>
    %485 = math.log %484 : vector<2x1xf32>
    %486 = vector.broadcast %477 : vector<2x1xf32> to vector<2x128xf32>
    %487 = arith.subf %475, %486 : vector<2x128xf32>
    %488 = vector.broadcast %485 : vector<2x1xf32> to vector<2x128xf32>
    %489 = arith.subf %487, %488 : vector<2x128xf32>
    %c0_527 = arith.constant 0 : index
    %c0_528 = arith.constant 0 : index
    %490 = vector.load %arg10[%c0_527, %c0_528] : memref<2x128xf32, #tpu.memory_space<vmem>>, vector<2x128xf32>
    tpu.vector_store %arg10[%c0_527, %c0_528], %489 {strides = array<i32>} : memref<2x128xf32, #tpu.memory_space<vmem>>, vector<2x128xf32>,
    return
  }
  func.func @transform_0(%arg0: i32) -> (i32, i32) {
    %c0_i32 = arith.constant 0 : i32
    %c0_i32_0 = arith.constant 0 : i32
    %c0_i32_1 = arith.constant 0 : i32
    return %c0_i32, %c0_i32_0 : i32, i32
  }
  func.func @transform_1(%arg0: i32) -> (i32, i32) {
    %c0_i32 = arith.constant 0 : i32
    %c0_i32_0 = arith.constant 0 : i32
    %c0_i32_1 = arith.constant 0 : i32
    return %c0_i32, %c0_i32_0 : i32, i32
  }
  func.func @transform_2(%arg0: i32) -> (i32, i32) {
    %c0_i32 = arith.constant 0 : i32
    %c0_i32_0 = arith.constant 0 : i32
    %c0_i32_1 = arith.constant 0 : i32
    return %c0_i32, %c0_i32_0 : i32, i32
  }
  func.func @transform_3(%arg0: i32) -> (i32, i32, i32) {
    %c0_i32 = arith.constant 0 : i32
    %c0_i32_0 = arith.constant 0 : i32
    %c0_i32_1 = arith.constant 0 : i32
    %c0_i32_2 = arith.constant 0 : i32
    return %c0_i32, %c0_i32_0, %c0_i32_1 : i32, i32, i32
  }
  func.func @transform_4(%arg0: i32) -> (i32, i32) {
    %c0_i32 = arith.constant 0 : i32
    %c0_i32_0 = arith.constant 0 : i32
    %c0_i32_1 = arith.constant 0 : i32
    return %c0_i32, %c0_i32_0 : i32, i32
  }
  func.func @transform_5(%arg0: i32) -> (i32, i32, i32) {
    %c0_i32 = arith.constant 0 : i32
    %c0_i32_0 = arith.constant 0 : i32
    %c0_i32_1 = arith.constant 0 : i32
    %c0_i32_2 = arith.constant 0 : i32
    return %c0_i32, %c0_i32_0, %c0_i32_1 : i32, i32, i32
  }
  func.func @transform_6(%arg0: i32) -> (i32, i32) {
    %c0_i32 = arith.constant 0 : i32
    %c0_i32_0 = arith.constant 0 : i32
    %c0_i32_1 = arith.constant 0 : i32
    return %c0_i32, %c0_i32_0 : i32, i32
  }
  func.func @transform_7(%arg0: i32) -> (i32, i32) {
    %c0_i32 = arith.constant 0 : i32
    %c0_i32_0 = arith.constant 0 : i32
    %c0_i32_1 = arith.constant 0 : i32
    return %c0_i32, %c0_i32_0 : i32, i32
  }
  func.func @transform_8(%arg0: i32) -> (i32, i32) {
    %c0_i32 = arith.constant 0 : i32
    %c0_i32_0 = arith.constant 0 : i32
    %c0_i32_1 = arith.constant 0 : i32
    return %c0_i32, %c0_i32_0 : i32, i32
  }
  func.func @transform_9(%arg0: i32) -> (i32, i32) {
    %c0_i32 = arith.constant 0 : i32
    %c0_i32_0 = arith.constant 0 : i32
    %c0_i32_1 = arith.constant 0 : i32
    return %c0_i32, %c0_i32_0 : i32, i32
  }
}

</mosaic_0001>

<bundles_post_ra>
// kernel: net_forward.1
= control target key start
LH: loop header
LB: loop body
LE: loop exit
PB: predicated region body
PF: predicated region fallthrough
CT: control target
= control target key end

     0   :  { %s23237_s0 = inlined_call_operand.vmem [shape: bf16[1536,128], index: 0, kind: input, shape index: {}]   ;;  %s23238_s1 = inlined_call_operand.vmem [shape: bf16[128,128], index: 1, kind: input, shape index: {}]   ;;  %s23239_s2 = inlined_call_operand.vmem [shape: f32[1,128], index: 2, kind: input, shape index: {}]   ;;  %s23240_s3 = inlined_call_operand.vmem [shape: bf16[25,128,128], index: 3, kind: input, shape index: {}]   ;;  %s23241_s4 = inlined_call_operand.vmem [shape: f32[1,128], index: 4, kind: input, shape index: {}]   ;;  %s23242_s5 = inlined_call_operand.vmem [shape: bf16[16,128,512], index: 5, kind: input, shape index: {}]   ;;  %s23243_s6 = inlined_call_operand.vmem [shape: f32[1,512], index: 6, kind: input, shape index: {}]   ;;  %s23244_s7 = inlined_call_operand.vmem [shape: bf16[512,128], index: 7, kind: input, shape index: {}]   ;;  %s23245_s8 = inlined_call_operand.vmem [shape: f32[1,128], index: 8, kind: input, shape index: {}]   ;;  %s23246_s9 = inlined_call_operand.hbm [shape: f32[2,128], index: 9, kind: output, shape index: {}]  }
   0x1   :  { %v16816_v0 = vld [vmem:[%s23238_s1] sm:$0xff]   ;;  %v16817_v1 = vld [vmem:[%s23238_s1 + $0x8] sm:$0xff]   ;;  %v16818_v2 = vld [vmem:[%s23238_s1 + $0x10] sm:$0xff]  }
   0x2   :  { %15422 = vmatprep.subr.bf16.mxu0 %v16816_v0  ;;  %v16819_v3 = vld [vmem:[%s23238_s1 + $0x18] sm:$0xff]   ;;  %v16824_v4 = vld [vmem:[%s23237_s0] sm:$0xff]   ;;  %v16821_v6 = vld [vmem:[%s23238_s1 + $0x28] sm:$0xff]  }
   0x3   :  { %15423 = vmatpush3.bf16.msra.mxu0 %v16816_v0  ;;  %15438 = vmatprep.mubr.bf16.mxu0 %v16824_v4  ;;  %v16820_v5 = vld [vmem:[%s23238_s1 + $0x20] sm:$0xff]   ;;  %v16822_v7 = vld [vmem:[%s23238_s1 + $0x30] sm:$0xff]   ;;  %v16823_v8 = vld [vmem:[%s23238_s1 + $0x38] sm:$0xff]  }
   0x4   :  { %15424 = vmatprep.subr.bf16.mxu0 %v16817_v1  ;;  %v16825_v9 = vld [vmem:[%s23237_s0 + $0x8] sm:$0xff]   ;;  %v16826_v10 = vld [vmem:[%s23237_s0 + $0x10] sm:$0xff]   ;;  %v16827_v11 = vld [vmem:[%s23237_s0 + $0x18] sm:$0xff]  }
   0x5   :  { %v16828_v12 = vld [vmem:[%s23237_s0 + $0x20] sm:$0xff]   ;;  %v16829_v13 = vld [vmem:[%s23237_s0 + $0x28] sm:$0xff]   ;;  %v16830_v14 = vld [vmem:[%s23237_s0 + $0x30] sm:$0xff]  }
   0x6   :  { %v16831_v15 = vld [vmem:[%s23237_s0 + $0x38] sm:$0xff]   ;;  %v16832_v16 = vld [vmem:[%s23237_s0 + $0x40] sm:$0xff]   ;;  %v16833_v17 = vld [vmem:[%s23237_s0 + $0x48] sm:$0xff]  }
   0x7   :  { %15425 = vmatpush3.bf16.msra.mxu0 %v16817_v1  ;;  %v16834_v18 = vld [vmem:[%s23237_s0 + $0x50] sm:$0xff]   ;;  %v16835_v19 = vld [vmem:[%s23237_s0 + $0x58] sm:$0xff]   ;;  %v16836_v20 = vld [vmem:[%s23237_s0 + $0x60] sm:$0xff]  }
   0x8   :  { %15426 = vmatprep.subr.bf16.mxu0 %v16818_v2  ;;  %v16837_v21 = vld [vmem:[%s23237_s0 + $0x68] sm:$0xff]   ;;  %v16838_v22 = vld [vmem:[%s23237_s0 + $0x70] sm:$0xff]   ;;  %v16839_v23 = vld [vmem:[%s23237_s0 + $0x78] sm:$0xff]  }
   0x9   :  { %v16840_v24 = vld [vmem:[%s23237_s0 + $0x80] sm:$0xff]   ;;  %v16841_v25 = vld [vmem:[%s23237_s0 + $0x88] sm:$0xff]   ;;  %v16842_v26 = vld [vmem:[%s23237_s0 + $0x90] sm:$0xff]  }
   0xa   :  { %v16843_v27 = vld [vmem:[%s23237_s0 + $0x98] sm:$0xff]   ;;  %v16844_v28 = vld [vmem:[%s23237_s0 + $0xa0] sm:$0xff]   ;;  %v16845_v29 = vld [vmem:[%s23237_s0 + $0xa8] sm:$0xff]  }
   0xb   :  { %15427 = vmatpush3.bf16.msra.mxu0 %v16818_v2  ;;  %v16846_v30 = vld [vmem:[%s23237_s0 + $0xb0] sm:$0xff]   ;;  %v16847_v31 = vld [vmem:[%s23237_s0 + $0xb8] sm:$0xff]   ;;  %v16848_v32 = vld [vmem:[%s23237_s0 + $0xc0] sm:$0xff]  }
   0xc   :  { %15428 = vmatprep.subr.bf16.mxu0 %v16819_v3  ;;  %v16849_v33 = vld [vmem:[%s23237_s0 + $0xc8] sm:$0xff]   ;;  %v16850_v34 = vld [vmem:[%s23237_s0 + $0xd0] sm:$0xff]   ;;  %v16851_v35 = vld [vmem:[%s23237_s0 + $0xd8] sm:$0xff]  }
   0xd   :  { %v16852_v36 = vld [vmem:[%s23237_s0 + $0xe0] sm:$0xff]   ;;  %v16853_v37 = vld [vmem:[%s23237_s0 + $0xe8] sm:$0xff]   ;;  %v16854_v38 = vld [vmem:[%s23237_s0 + $0xf0] sm:$0xff]  }
   0xe   :  { %v16855_v39 = vld [vmem:[%s23237_s0 + $0xf8] sm:$0xff]   ;;  %v16856_v40 = vld [vmem:[%s23237_s0 + $0x100] sm:$0xff]   ;;  %v16857_v41 = vld [vmem:[%s23237_s0 + $0x108] sm:$0xff]  }
   0xf   :  { %15429 = vmatpush3.bf16.msra.mxu0 %v16819_v3  ;;  %v16858_v42 = vld [vmem:[%s23237_s0 + $0x110] sm:$0xff]   ;;  %v16859_v43 = vld [vmem:[%s23237_s0 + $0x118] sm:$0xff]   ;;  %v16860_v44 = vld [vmem:[%s23237_s0 + $0x120] sm:$0xff]  }
  0x10   :  { %15430 = vmatprep.subr.bf16.mxu0 %v16820_v5  ;;  %v16861_v45 = vld [vmem:[%s23237_s0 + $0x128] sm:$0xff]   ;;  %v16862_v46 = vld [vmem:[%s23237_s0 + $0x130] sm:$0xff]   ;;  %v16863_v47 = vld [vmem:[%s23237_s0 + $0x138] sm:$0xff]  }
  0x11   :  { %v16864_v48 = vld [vmem:[%s23237_s0 + $0x140] sm:$0xff]   ;;  %v16865_v49 = vld [vmem:[%s23237_s0 + $0x148] sm:$0xff]   ;;  %v16866_v50 = vld [vmem:[%s23237_s0 + $0x150] sm:$0xff]  }
  0x12   :  { %v16867_v51 = vld [vmem:[%s23237_s0 + $0x158] sm:$0xff]   ;;  %v16868_v52 = vld [vmem:[%s23237_s0 + $0x160] sm:$0xff]   ;;  %v16869_v53 = vld [vmem:[%s23237_s0 + $0x168] sm:$0xff]  }
  0x13   :  { %15431 = vmatpush3.bf16.msra.mxu0 %v16820_v5  ;;  %v16870_v54 = vld [vmem:[%s23237_s0 + $0x170] sm:$0xff]   ;;  %v16871_v55 = vld [vmem:[%s23237_s0 + $0x178] sm:$0xff]   ;;  %v16872_v56 = vld [vmem:[%s23237_s0 + $0x180] sm:$0xff]  }
  0x14   :  { %15432 = vmatprep.subr.bf16.mxu0 %v16821_v6  ;;  %v16873_v57 = vld [vmem:[%s23237_s0 + $0x188] sm:$0xff]   ;;  %v16874_v58 = vld [vmem:[%s23237_s0 + $0x190] sm:$0xff]   ;;  %v16875_v59 = vld [vmem:[%s23237_s0 + $0x198] sm:$0xff]  }
  0x15   :  { %v16876_v60 = vld [vmem:[%s23237_s0 + $0x1a0] sm:$0xff]   ;;  %v16877_v61 = vld [vmem:[%s23237_s0 + $0x1a8] sm:$0xff]   ;;  %v16878_v62 = vld [vmem:[%s23237_s0 + $0x1b0] sm:$0xff]  }
  0x16   :  { %v19018_v63 = vld [vmem:[%s23239_s2] ss:$0 sm:$0xff]  ;;  %v16879_v1 = vld [vmem:[%s23237_s0 + $0x1b8] sm:$0xff]  }
  0x17   :  { %15433 = vmatpush3.bf16.msra.mxu0 %v16821_v6  ;;  %v16880_v4 = vld [vmem:[%s23237_s0 + $0x1c0] sm:$0xff]  }
  0x18   :  { %15434 = vmatprep.subr.bf16.mxu0 %v16822_v7 }
  0x1b   :  { %15435 = vmatpush3.bf16.msra.mxu0 %v16822_v7 }
  0x1c   :  { %15436 = vmatprep.subr.bf16.mxu0 %v16823_v8 }
  0x1f   :  { %15437 = vmatpush3.bf16.msra.mxu0 %v16823_v8 }
  0x22   :  { %15439 = vmatmul.mubr.bf16.vlgmr.msra.gmra.mrb[0].mxu0 %v16825_v9 }
  0x23   :  { %15442 = vmatprep.mubr.bf16.mxu0 %v16826_v10 }
  0x2a   :  { %15443 = vmatmul.mubr.bf16.gmra.mrb[4].mxu0 %v16827_v11 }
  0x2b   :  { %15446 = vmatprep.mubr.bf16.mxu0 %v16828_v12 }
  0x32   :  { %15447 = vmatmul.mubr.bf16.gmra.mrb[8].mxu0 %v16829_v13 }
  0x33   :  { %15450 = vmatprep.mubr.bf16.mxu0 %v16830_v14 }
  0x3a   :  { %15451 = vmatmul.mubr.bf16.gmra.mrb[12].mxu0 %v16831_v15 }
  0x3b   :  { %15454 = vmatprep.mubr.bf16.mxu0 %v16832_v16 }
  0x42   :  { %15455 = vmatmul.mubr.bf16.gmra.mrb[16].mxu0 %v16833_v17 }
  0x43   :  { %15458 = vmatprep.mubr.bf16.mxu0 %v16834_v18  ;;  %v16881_v18 = vld [vmem:[%s23237_s0 + $0x1c8] sm:$0xff]  }
  0x4a   :  { %15459 = vmatmul.mubr.bf16.gmra.mrb[20].mxu0 %v16835_v19 }
  0x4b   :  { %15462 = vmatprep.mubr.bf16.mxu0 %v16836_v20 }
  0x52   :  { %15463 = vmatmul.mubr.bf16.gmra.mrb[24].mxu0 %v16837_v21 }
  0x53   :  { %15466 = vmatprep.mubr.bf16.mxu0 %v16838_v22  ;;  %v16882_v22 = vld [vmem:[%s23237_s0 + $0x1d0] sm:$0xff]  }
  0x5a   :  { %15467 = vmatmul.mubr.bf16.gmra.mrb[28].mxu0 %v16839_v23 }
  0x5b   :  { %15470 = vmatprep.mubr.bf16.mxu0 %v16840_v24 }
  0x62   :  { %15471 = vmatmul.mubr.bf16.gmra.mrb[32].mxu0 %v16841_v25 }
  0x63   :  { %15474 = vmatprep.mubr.bf16.mxu0 %v16842_v26 }
  0x6a   :  { %15475 = vmatmul.mubr.bf16.gmra.mrb[36].mxu0 %v16843_v27 }
  0x6b   :  { %15478 = vmatprep.mubr.bf16.mxu0 %v16844_v28 }
  0x72   :  { %15479 = vmatmul.mubr.bf16.gmra.mrb[40].mxu0 %v16845_v29 }
  0x73   :  { %15482 = vmatprep.mubr.bf16.mxu0 %v16846_v30 }
  0x7a   :  { %15483 = vmatmul.mubr.bf16.gmra.mrb[44].mxu0 %v16847_v31 }
  0x7b   :  { %15486 = vmatprep.mubr.bf16.mxu0 %v16848_v32 }
  0x82   :  { %15487 = vmatmul.mubr.bf16.gmra.mrb[48].mxu0 %v16849_v33 }
  0x83   :  { %15490 = vmatprep.mubr.bf16.mxu0 %v16850_v34 }
  0x8a   :  { %15491 = vmatmul.mubr.bf16.gmra.mrb[52].mxu0 %v16851_v35 }
  0x8b   :  { %15494 = vmatprep.mubr.bf16.mxu0 %v16852_v36 }
  0x92   :  { %15495 = vmatmul.mubr.bf16.gmra.mrb[56].mxu0 %v16853_v37 }
  0x93   :  { %15498 = vmatprep.mubr.bf16.mxu0 %v16854_v38 }
  0x9a   :  { %15499 = vmatmul.mubr.bf16.gmra.mrb[60].mxu0 %v16855_v39 }
  0x9b   :  { %15502 = vmatprep.mubr.bf16.mxu0 %v16856_v40  ;;  %v16883_v40 = vld [vmem:[%s23237_s0 + $0x1d8] sm:$0xff]  }
  0xa2   :  { %15503 = vmatmul.mubr.bf16.gmra.mrb[64].mxu0 %v16857_v41 }
  0xa3   :  { %15506 = vmatprep.mubr.bf16.mxu0 %v16858_v42 }
  0xaa   :  { %15507 = vmatmul.mubr.bf16.gmra.mrb[68].mxu0 %v16859_v43 }
  0xab   :  { %15510 = vmatprep.mubr.bf16.mxu0 %v16860_v44  ;;  %v16884_v44 = vld [vmem:[%s23237_s0 + $0x1e0] sm:$0xff]  }
  0xb2   :  { %15511 = vmatmul.mubr.bf16.gmra.mrb[72].mxu0 %v16861_v45 }
  0xb3   :  { %15514 = vmatprep.mubr.bf16.mxu0 %v16862_v46 }
  0xba   :  { %15515 = vmatmul.mubr.bf16.gmra.mrb[76].mxu0 %v16863_v47 }
  0xbb   :  { %15518 = vmatprep.mubr.bf16.mxu0 %v16864_v48 }
  0xc2   :  { %15519 = vmatmul.mubr.bf16.gmra.mrb[80].mxu0 %v16865_v49 }
  0xc3   :  { %15522 = vmatprep.mubr.bf16.mxu0 %v16866_v50 }
  0xca   :  { %15523 = vmatmul.mubr.bf16.gmra.mrb[84].mxu0 %v16867_v51 }
  0xcb   :  { %15526 = vmatprep.mubr.bf16.mxu0 %v16868_v52 }
  0xd2   :  { %15527 = vmatmul.mubr.bf16.gmra.mrb[88].mxu0 %v16869_v53 }
  0xd3   :  { %15530 = vmatprep.mubr.bf16.mxu0 %v16870_v54 }
  0xda   :  { %15531 = vmatmul.mubr.bf16.gmra.mrb[92].mxu0 %v16871_v55 }
  0xdb   :  { %15534 = vmatprep.mubr.bf16.mxu0 %v16872_v56 }
  0xe2   :  { %15535 = vmatmul.mubr.bf16.gmra.mrb[96].mxu0 %v16873_v57 }
  0xe3   :  { %15538 = vmatprep.mubr.bf16.mxu0 %v16874_v58 }
  0xea   :  { %15539 = vmatmul.mubr.bf16.gmra.mrb[100].mxu0 %v16875_v59 }
  0xeb   :  { %15542 = vmatprep.mubr.bf16.mxu0 %v16876_v60 }
  0xf2   :  { %15543 = vmatmul.mubr.bf16.gmra.mrb[104].mxu0 %v16877_v61 }
  0xf3   :  { %15546 = vmatprep.mubr.bf16.mxu0 %v16878_v62 }
  0xf5   :  { %v15440_v0 = vpop.f32.mrb[0].mxu0 }
  0xf6   :  { %v916_v2 = vadd.f32 %v15440_v0, %v19018_v63  ;;  %v907_v3 = vpop.f32.mrb[1].mxu0 }
  0xf7   :  { %v908_v5 = vadd.f32 %v19018_v63, %v907_v3  ;;  %v15441_v6 = vpop.f32.mrb[2].mxu0 }
  0xf8   :  { %v1676_v7 = vsub.f32 0.0, %v916_v2  ;;  %v919_v8 = vadd.f32 %v15441_v6, %v19018_v63  ;;  %v910_v9 = vpop.f32.mrb[3].mxu0  ;;  %v16885_v2 = vld [vmem:[%s23237_s0 + $0x1e8] sm:$0xff]  }
  0xf9   :  { %v1674_v10 = vsub.f32 0.0, %v908_v5  ;;  %v911_v11 = vadd.f32 %v19018_v63, %v910_v9 }
  0xfa   :  { %v1870_v12 = vmul.f32 1.442695, %v1676_v7  ;;  %v1677_v13 = vsub.f32 0.0, %v919_v8  ;;  %15547 = vmatmul.mubr.bf16.gmra.mrb[108].mxu0 %v16879_v1  ;;  %v16886_v7 = vld [vmem:[%s23237_s0 + $0x1f0] sm:$0xff]  }
  0xfb   :  { %v1866_v14 = vmul.f32 1.442695, %v1674_v10  ;;  %v1675_v15 = vsub.f32 0.0, %v911_v11  ;;  %15550 = vmatprep.mubr.bf16.mxu0 %v16880_v4 }
  0xfc   :  { %17920 = vpow2.f32 %v1870_v12  ;;  %v1872_v16 = vmul.f32 1.442695, %v1677_v13 }
  0xfd   :  { %17922 = vpow2.f32 %v1866_v14  ;;  %v15444_v17 = vpop.f32.mrb[4].mxu0  ;;  %v1868_v19 = vmul.f32 1.442695, %v1675_v15 }
  0xfe   :  { %v932_v20 = vadd.f32 %v15444_v17, %v19018_v63  ;;  %v923_v21 = vpop.f32.mrb[5].mxu0  ;;  %17924 = vpow2.f32 %v1872_v16 }
  0xff   :  { %v924_v23 = vadd.f32 %v19018_v63, %v923_v21  ;;  %v15445_v24 = vpop.f32.mrb[6].mxu0  ;;  %17926 = vpow2.f32 %v1868_v19 }
 0x100   :  { %v1680_v25 = vsub.f32 0.0, %v932_v20  ;;  %v935_v26 = vadd.f32 %v15445_v24, %v19018_v63  ;;  %v926_v27 = vpop.f32.mrb[7].mxu0 }
 0x101   :  { %v1678_v28 = vsub.f32 0.0, %v924_v23  ;;  %v927_v29 = vadd.f32 %v19018_v63, %v926_v27 }
 0x102   :  { %v1878_v30 = vmul.f32 1.442695, %v1680_v25  ;;  %v1681_v31 = vsub.f32 0.0, %v935_v26  ;;  %15551 = vmatmul.mubr.bf16.gmra.mrb[112].mxu0 %v16881_v18 }
 0x103   :  { %v1874_v32 = vmul.f32 1.442695, %v1678_v28  ;;  %v1679_v33 = vsub.f32 0.0, %v927_v29  ;;  %15554 = vmatprep.mubr.bf16.mxu0 %v16882_v22  ;;  %v16887_v28 = vld [vmem:[%s23237_s0 + $0x1f8] sm:$0xff]  }
 0x104   :  { %17928 = vpow2.f32 %v1878_v30  ;;  %v1880_v34 = vmul.f32 1.442695, %v1681_v31 }
 0x105   :  { %17930 = vpow2.f32 %v1874_v32  ;;  %v15448_v35 = vpop.f32.mrb[8].mxu0  ;;  %v1876_v37 = vmul.f32 1.442695, %v1679_v33  ;;  %v16888_v33 = vld [vmem:[%s23237_s0 + $0x200] sm:$0xff]  }
 0x106   :  { %v17921_v36 = vpop.eup %17920  ;;  %v948_v38 = vadd.f32 %v15448_v35, %v19018_v63  ;;  %v939_v39 = vpop.f32.mrb[9].mxu0  ;;  %17932 = vpow2.f32 %v1880_v34 }
 0x107   :  { %v17923_v41 = vpop.eup %17922  ;;  %v940_v42 = vadd.f32 %v19018_v63, %v939_v39  ;;  %v15449_v43 = vpop.f32.mrb[10].mxu0  ;;  %v2252_v45 = vadd.f32 1.0, %v17921_v36  ;;  %17934 = vpow2.f32 %v1876_v37 }
 0x108   :  { %v1684_v46 = vsub.f32 0.0, %v948_v38  ;;  %v951_v47 = vadd.f32 %v15449_v43, %v19018_v63  ;;  %v942_v48 = vpop.f32.mrb[11].mxu0  ;;  %v17925_v51 = vpop.eup %17924  ;;  %v2250_v52 = vadd.f32 1.0, %v17923_v41 }
 0x109   :  { %v1682_v49 = vsub.f32 0.0, %v940_v42  ;;  %v943_v50 = vadd.f32 %v19018_v63, %v942_v48  ;;  %v17927_v57 = vpop.eup %17926  ;;  %17936 = vrcp.f32 %v2252_v45  ;;  %v2253_v59 = vadd.f32 1.0, %v17925_v51 }
 0x10a   :  { %v1886_v53 = vmul.f32 1.442695, %v1684_v46  ;;  %v1685_v54 = vsub.f32 0.0, %v951_v47  ;;  %15555 = vmatmul.mubr.bf16.gmra.mrb[116].mxu0 %v16883_v40  ;;  %v2251_v4 = vadd.f32 1.0, %v17927_v57 }
 0x10b   :  { %v1882_v55 = vmul.f32 1.442695, %v1682_v49  ;;  %v1683_v56 = vsub.f32 0.0, %v943_v50  ;;  %15558 = vmatprep.mubr.bf16.mxu0 %v16884_v44 }
 0x10c   :  { %v1888_v58 = vmul.f32 1.442695, %v1685_v54  ;;  %17938 = vpow2.f32 %v1886_v53 }
 0x10d   :  { %v15452_v60 = vpop.f32.mrb[12].mxu0  ;;  %17940 = vpow2.f32 %v1882_v55  ;;  %v1884_v62 = vmul.f32 1.442695, %v1683_v56 }
 0x10e   :  { %v17929_v61 = vpop.eup %17928  ;;  %v964_v0 = vadd.f32 %v15452_v60, %v19018_v63  ;;  %v955_v1 = vpop.f32.mrb[13].mxu0  ;;  %17942 = vrcp.f32 %v2250_v52 }
 0x10f   :  { %v17931_v3 = vpop.eup %17930  ;;  %v956_v5 = vadd.f32 %v19018_v63, %v955_v1  ;;  %v15453_v6 = vpop.f32.mrb[14].mxu0  ;;  %v2256_v8 = vadd.f32 1.0, %v17929_v61  ;;  %17944 = vpow2.f32 %v1888_v58  ;;  %v16889_v58 = vld [vmem:[%s23237_s0 + $0x208] sm:$0xff]  }
 0x110   :  { %v1688_v9 = vsub.f32 0.0, %v964_v0  ;;  %v967_v10 = vadd.f32 %v15453_v6, %v19018_v63  ;;  %v958_v11 = vpop.f32.mrb[15].mxu0  ;;  %17946 = vrcp.f32 %v2253_v59  ;;  %v17933_v14 = vpop.eup %17932  ;;  %v2254_v15 = vadd.f32 1.0, %v17931_v3  ;;  %v16890_v0 = vld [vmem:[%s23237_s0 + $0x210] sm:$0xff]  }
 0x111   :  { %v1686_v12 = vsub.f32 0.0, %v956_v5  ;;  %v959_v13 = vadd.f32 %v19018_v63, %v958_v11  ;;  %17948 = vpow2.f32 %v1884_v62  ;;  %v17935_v20 = vpop.eup %17934  ;;  %v2257_v22 = vadd.f32 1.0, %v17933_v14 }
 0x112   :  { %v1894_v16 = vmul.f32 1.442695, %v1688_v9  ;;  %v1689_v17 = vsub.f32 0.0, %v967_v10  ;;  %15559 = vmatmul.mubr.bf16.gmra.mrb[120].mxu0 %v16885_v2  ;;  %17950 = vrcp.f32 %v2251_v4  ;;  %v2255_v30 = vadd.f32 1.0, %v17935_v20 }
 0x113   :  { %v1890_v18 = vmul.f32 1.442695, %v1686_v12  ;;  %v1687_v19 = vsub.f32 0.0, %v959_v13  ;;  %15562 = vmatprep.mubr.bf16.mxu0 %v16886_v7  ;;  %17952 = vrcp.f32 %v2256_v8  ;;  %v19060_v24 = vpop.eup %17936 }
 0x114   :  { %v1896_v21 = vmul.f32 1.442695, %v1689_v17  ;;  %17954 = vpow2.f32 %v1894_v16  ;;  %23417 = vst [vmem:[#allocation7_spill] sm:$0xff] %v19060_v24 }
 0x115   :  { %v15456_v23 = vpop.f32.mrb[16].mxu0  ;;  %17956 = vpow2.f32 %v1890_v18  ;;  %v1892_v25 = vmul.f32 1.442695, %v1687_v19  ;;  %v16891_v18 = vld [vmem:[%s23237_s0 + $0x218] sm:$0xff]  }
 0x116   :  { %v980_v26 = vadd.f32 %v15456_v23, %v19018_v63  ;;  %v971_v27 = vpop.f32.mrb[17].mxu0  ;;  %v17939_v29 = vpop.eup %17938  ;;  %17958 = vrcp.f32 %v2254_v15 }
 0x117   :  { %v972_v31 = vadd.f32 %v19018_v63, %v971_v27  ;;  %v15457_v32 = vpop.f32.mrb[18].mxu0  ;;  %v17941_v34 = vpop.eup %17940  ;;  %v2260_v35 = vadd.f32 1.0, %v17939_v29  ;;  %17960 = vpow2.f32 %v1896_v21 }
 0x118   :  { %v1692_v36 = vsub.f32 0.0, %v980_v26  ;;  %v983_v37 = vadd.f32 %v15457_v32, %v19018_v63  ;;  %v974_v38 = vpop.f32.mrb[19].mxu0  ;;  %v19071_v39 = vpop.eup %17942  ;;  %17962 = vrcp.f32 %v2257_v22  ;;  %v2258_v40 = vadd.f32 1.0, %v17941_v34  ;;  %v16892_v22 = vld [vmem:[%s23237_s0 + $0x220] sm:$0xff]  }
 0x119   :  { %v1690_v41 = vsub.f32 0.0, %v972_v31  ;;  %v975_v42 = vadd.f32 %v19018_v63, %v974_v38  ;;  %v17945_v43 = vpop.eup %17944  ;;  %17964 = vpow2.f32 %v1892_v25 }
 0x11a   :  { %v1902_v44 = vmul.f32 1.442695, %v1692_v36  ;;  %v1693_v45 = vsub.f32 0.0, %v983_v37  ;;  %15563 = vmatmul.mubr.bf16.gmra.mrb[124].mxu0 %v16887_v28  ;;  %v19074_v46 = vpop.eup %17946  ;;  %17966 = vrcp.f32 %v2255_v30  ;;  %v2261_v52 = vadd.f32 1.0, %v17945_v43 }
 0x11b   :  { %v1898_v47 = vmul.f32 1.442695, %v1690_v41  ;;  %v1691_v48 = vsub.f32 0.0, %v975_v42  ;;  %15566 = vmatprep.mubr.bf16.mxu0 %v16888_v33  ;;  %v17949_v49 = vpop.eup %17948  ;;  %17968 = vrcp.f32 %v2260_v35 }
 0x11c   :  { %v1904_v50 = vmul.f32 1.442695, %v1693_v45  ;;  %v19076_v51 = vpop.eup %17950  ;;  %17970 = vrcp.f32 %v2258_v40  ;;  %v2259_v60 = vadd.f32 1.0, %v17949_v49 }
 0x11d   :  { %v15460_v53 = vpop.f32.mrb[20].mxu0  ;;  %v19078_v54 = vpop.eup %17952  ;;  %17972 = vpow2.f32 %v1902_v44  ;;  %v1900_v55 = vmul.f32 1.442695, %v1691_v48 }
 0x11e   :  { %23418 = vst [vmem:[#allocation8_spill] sm:$0xff] %v19078_v54  ;;  %v996_v56 = vadd.f32 %v15460_v53, %v19018_v63  ;;  %v987_v57 = vpop.f32.mrb[21].mxu0  ;;  %v17955_v59 = vpop.eup %17954  ;;  %17974 = vpow2.f32 %v1898_v47 }
 0x11f   :  { %v988_v61 = vadd.f32 %v19018_v63, %v987_v57  ;;  %v15461_v62 = vpop.f32.mrb[22].mxu0  ;;  %v17957_v1 = vpop.eup %17956  ;;  %v2264_v2 = vadd.f32 1.0, %v17955_v59  ;;  %17976 = vpow2.f32 %v1904_v50  ;;  %v16894_v57 = vld [vmem:[%s23237_s0 + $0x230] sm:$0xff]  }
 0x120   :  { %v1696_v3 = vsub.f32 0.0, %v996_v56  ;;  %v999_v4 = vadd.f32 %v15461_v62, %v19018_v63  ;;  %v990_v5 = vpop.f32.mrb[23].mxu0  ;;  %v19089_v6 = vpop.eup %17958  ;;  %17978 = vrcp.f32 %v2261_v52  ;;  %v2262_v7 = vadd.f32 1.0, %v17957_v1  ;;  %v16893_v52 = vld [vmem:[%s23237_s0 + $0x228] sm:$0xff]  }
 0x121   :  { %23419 = vst [vmem:[#allocation9_spill] sm:$0xff] %v19089_v6  ;;  %v1694_v8 = vsub.f32 0.0, %v988_v61  ;;  %v991_v9 = vadd.f32 %v19018_v63, %v990_v5  ;;  %v17961_v10 = vpop.eup %17960  ;;  %17980 = vpow2.f32 %v1900_v55 }
 0x122   :  { %v1910_v11 = vmul.f32 1.442695, %v1696_v3  ;;  %v1697_v12 = vsub.f32 0.0, %v999_v4  ;;  %15567 = vmatmul.mubr.bf16.gmra.mrb[128].mxu0 %v16889_v58  ;;  %v19092_v13 = vpop.eup %17962  ;;  %17982 = vrcp.f32 %v2259_v60  ;;  %v2265_v20 = vadd.f32 1.0, %v17961_v10 }
 0x123   :  { %v1906_v14 = vmul.f32 1.442695, %v1694_v8  ;;  %v1695_v15 = vsub.f32 0.0, %v991_v9  ;;  %15570 = vmatprep.mubr.bf16.mxu0 %v16890_v0  ;;  %v17965_v16 = vpop.eup %17964  ;;  %17984 = vrcp.f32 %v2264_v2 }
 0x124   :  { %v1912_v17 = vmul.f32 1.442695, %v1697_v12  ;;  %v19097_v19 = vpop.eup %17966  ;;  %17986 = vrcp.f32 %v2262_v7  ;;  %v2263_v29 = vadd.f32 1.0, %v17965_v16 }
 0x125   :  { %v15464_v21 = vpop.f32.mrb[24].mxu0  ;;  %v19102_v23 = vpop.eup %17968  ;;  %17988 = vpow2.f32 %v1910_v11  ;;  %v1908_v25 = vmul.f32 1.442695, %v1695_v15 }
 0x126   :  { %23420 = vst [vmem:[#allocation10_spill] sm:$0xff] %v19102_v23  ;;  %v1012_v26 = vadd.f32 %v15464_v21, %v19018_v63  ;;  %v1003_v27 = vpop.f32.mrb[25].mxu0  ;;  %v19105_v28 = vpop.eup %17970  ;;  %17990 = vpow2.f32 %v1906_v14 }
 0x127   :  { %v1004_v30 = vadd.f32 %v19018_v63, %v1003_v27  ;;  %v15465_v31 = vpop.f32.mrb[26].mxu0  ;;  %v17973_v32 = vpop.eup %17972  ;;  %17992 = vpow2.f32 %v1912_v17 }
 0x128   :  { %v1700_v33 = vsub.f32 0.0, %v1012_v26  ;;  %v1015_v34 = vadd.f32 %v15465_v31, %v19018_v63  ;;  %v1006_v35 = vpop.f32.mrb[27].mxu0  ;;  %v17975_v36 = vpop.eup %17974  ;;  %17994 = vrcp.f32 %v2265_v20  ;;  %v2268_v37 = vadd.f32 1.0, %v17973_v32 }
 0x129   :  { %v1698_v38 = vsub.f32 0.0, %v1004_v30  ;;  %v1007_v40 = vadd.f32 %v19018_v63, %v1006_v35  ;;  %v17977_v41 = vpop.eup %17976  ;;  %v2266_v42 = vadd.f32 1.0, %v17975_v36  ;;  %17996 = vpow2.f32 %v1908_v25  ;;  %v16895_v25 = vld [vmem:[%s23237_s0 + $0x238] sm:$0xff]   ;;  %v16896_v30 = vld [vmem:[%s23237_s0 + $0x240] sm:$0xff]  }
 0x12a   :  { %v1701_v43 = vsub.f32 0.0, %v1015_v34  ;;  %15571 = vmatmul.mubr.bf16.gmra.mrb[132].mxu0 %v16891_v18  ;;  %v19110_v44 = vpop.eup %17978  ;;  %17998 = vrcp.f32 %v2263_v29  ;;  %v2269_v45 = vadd.f32 1.0, %v17977_v41  ;;  %v1918_v47 = vmul.f32 1.442695, %v1700_v33 }
 0x12b   :  { %v1699_v48 = vsub.f32 0.0, %v1007_v40  ;;  %15574 = vmatprep.mubr.bf16.mxu0 %v16892_v22  ;;  %v17981_v49 = vpop.eup %17980  ;;  %18000 = vrcp.f32 %v2268_v37  ;;  %v1914_v50 = vmul.f32 1.442695, %v1698_v38 }
 0x12c   :  { %v19115_v53 = vpop.eup %17982  ;;  %18002 = vrcp.f32 %v2266_v42  ;;  %v1920_v55 = vmul.f32 1.442695, %v1701_v43  ;;  %v2267_v0 = vadd.f32 1.0, %v17981_v49 }
 0x12d   :  { %v15468_v56 = vpop.f32.mrb[28].mxu0  ;;  %v19120_v58 = vpop.eup %17984  ;;  %18004 = vrcp.f32 %v2269_v45  ;;  %v1916_v59 = vmul.f32 1.442695, %v1699_v48 }
 0x12e   :  { %23421 = vst [vmem:[#allocation11_spill] sm:$0xff] %v19120_v58  ;;  %v1028_v60 = vadd.f32 %v15468_v56, %v19018_v63  ;;  %v1019_v61 = vpop.f32.mrb[29].mxu0  ;;  %v19123_v62 = vpop.eup %17986  ;;  %18006 = vpow2.f32 %v1918_v47 }
 0x12f   :  { %v1020_v1 = vadd.f32 %v19018_v63, %v1019_v61  ;;  %v15469_v2 = vpop.f32.mrb[30].mxu0  ;;  %v17989_v3 = vpop.eup %17988  ;;  %18008 = vpow2.f32 %v1914_v50 }
 0x130   :  { %v1704_v4 = vsub.f32 0.0, %v1028_v60  ;;  %v1031_v5 = vadd.f32 %v15469_v2, %v19018_v63  ;;  %v1022_v7 = vpop.f32.mrb[31].mxu0  ;;  %v17991_v8 = vpop.eup %17990  ;;  %v2272_v9 = vadd.f32 1.0, %v17989_v3  ;;  %18010 = vpow2.f32 %v1920_v55 }
 0x131   :  { %v1702_v10 = vsub.f32 0.0, %v1020_v1  ;;  %v1023_v11 = vadd.f32 %v19018_v63, %v1022_v7  ;;  %v17993_v12 = vpop.eup %17992  ;;  %v2270_v14 = vadd.f32 1.0, %v17991_v8  ;;  %18012 = vpow2.f32 %v1916_v59  ;;  %v19161_v8 = vld [vmem:[%s23239_s2] ss:$0 sm:$0xff] }
 0x132   :  { %v1705_v15 = vsub.f32 0.0, %v1031_v5  ;;  %15575 = vmatmul.mubr.bf16.gmra.mrb[136].mxu0 %v16893_v52  ;;  %v19128_v16 = vpop.eup %17994  ;;  %18014 = vrcp.f32 %v2267_v0  ;;  %v2273_v17 = vadd.f32 1.0, %v17993_v12  ;;  %v1926_v18 = vmul.f32 1.442695, %v1704_v4  ;;  %v16897_v0 = vld [vmem:[%s23237_s0 + $0x248] sm:$0xff]   ;;  %v16898_v4 = vld [vmem:[%s23237_s0 + $0x250] sm:$0xff]  }
 0x133   :  { %v1703_v20 = vsub.f32 0.0, %v1023_v11  ;;  %15578 = vmatprep.mubr.bf16.mxu0 %v16894_v57  ;;  %v17997_v21 = vpop.eup %17996  ;;  %18016 = vrcp.f32 %v2272_v9  ;;  %v1922_v22 = vmul.f32 1.442695, %v1702_v10 }
 0x134   :  { %v19133_v26 = vpop.eup %17998  ;;  %18018 = vrcp.f32 %v2270_v14  ;;  %v1928_v27 = vmul.f32 1.442695, %v1705_v15  ;;  %v2271_v36 = vadd.f32 1.0, %v17997_v21 }
 0x135   :  { %v15472_v29 = vpop.f32.mrb[32].mxu0  ;;  %v19138_v31 = vpop.eup %18000  ;;  %18020 = vrcp.f32 %v2273_v17  ;;  %v1924_v32 = vmul.f32 1.442695, %v1703_v20 }
 0x136   :  { %v1044_v33 = vadd.f32 %v15472_v29, %v19018_v63  ;;  %v1035_v34 = vpop.f32.mrb[33].mxu0  ;;  %v19141_v35 = vpop.eup %18002  ;;  %18022 = vpow2.f32 %v1926_v18 }
 0x137   :  { %23422 = vst [vmem:[#allocation12_spill] sm:$0xff] %v19141_v35  ;;  %v1036_v37 = vadd.f32 %v19018_v63, %v1035_v34  ;;  %v15473_v38 = vpop.f32.mrb[34].mxu0  ;;  %v19144_v40 = vpop.eup %18004  ;;  %18024 = vpow2.f32 %v1922_v22 }
 0x138   :  { %23423 = vst [vmem:[#allocation13_spill] sm:$0xff] %v19144_v40  ;;  %v1708_v41 = vsub.f32 0.0, %v1044_v33  ;;  %v1047_v42 = vadd.f32 %v15473_v38, %v19018_v63  ;;  %v1038_v43 = vpop.f32.mrb[35].mxu0  ;;  %v18007_v45 = vpop.eup %18006  ;;  %18026 = vpow2.f32 %v1928_v27 }
 0x139   :  { %v1706_v47 = vsub.f32 0.0, %v1036_v37  ;;  %v1039_v48 = vadd.f32 %v19018_v63, %v1038_v43  ;;  %v18009_v49 = vpop.eup %18008  ;;  %v2276_v50 = vadd.f32 1.0, %v18007_v45  ;;  %18028 = vpow2.f32 %v1924_v32 }
 0x13a   :  { %v1709_v52 = vsub.f32 0.0, %v1047_v42  ;;  %15579 = vmatmul.mubr.bf16.gmra.mrb[140].mxu0 %v16895_v25  ;;  %v18011_v55 = vpop.eup %18010  ;;  %18030 = vrcp.f32 %v2271_v36  ;;  %v2274_v56 = vadd.f32 1.0, %v18009_v49  ;;  %v1934_v61 = vmul.f32 1.442695, %v1708_v41  ;;  %v16899_v42 = vld [vmem:[%s23237_s0 + $0x258] sm:$0xff]   ;;  %v16900_v49 = vld [vmem:[%s23237_s0 + $0x260] sm:$0xff]  }
 0x13b   :  { %v1707_v57 = vsub.f32 0.0, %v1039_v48  ;;  %15582 = vmatprep.mubr.bf16.mxu0 %v16896_v30  ;;  %v18013_v59 = vpop.eup %18012  ;;  %18032 = vrcp.f32 %v2276_v50  ;;  %v2277_v60 = vadd.f32 1.0, %v18011_v55  ;;  %v1930_v2 = vmul.f32 1.442695, %v1706_v47 }
 0x13c   :  { %v19151_v1 = vpop.eup %18014  ;;  %18034 = vrcp.f32 %v2274_v56  ;;  %v2275_v63 = vadd.f32 1.0, %v18013_v59  ;;  %v1936_v7 = vmul.f32 1.442695, %v1709_v52 }
 0x13d   :  { %23424 = vst [vmem:[#allocation14_spill] sm:$0xff] %v19151_v1  ;;  %v15476_v3 = vpop.f32.mrb[36].mxu0  ;;  %v19156_v5 = vpop.eup %18016  ;;  %18036 = vrcp.f32 %v2277_v60  ;;  %v1932_v12 = vmul.f32 1.442695, %v1707_v57 }
 0x13e   :  { %23425 = vst [vmem:[#allocation15_spill] sm:$0xff] %v19156_v5  ;;  %v1060_v9 = vadd.f32 %v19161_v8, %v15476_v3  ;;  %v1051_v10 = vpop.f32.mrb[37].mxu0  ;;  %v19164_v11 = vpop.eup %18018  ;;  %18038 = vrcp.f32 %v2275_v63 }
 0x13f   :  { %23426 = vst [vmem:[#allocation16_spill] sm:$0xff] %v19164_v11  ;;  %v1052_v14 = vadd.f32 %v19161_v8, %v1051_v10  ;;  %v15477_v15 = vpop.f32.mrb[38].mxu0  ;;  %v19167_v17 = vpop.eup %18020  ;;  %18040 = vpow2.f32 %v1934_v61 }
 0x140   :  { %23427 = vst [vmem:[#allocation17_spill] sm:$0xff] %v19167_v17  ;;  %v1712_v18 = vsub.f32 0.0, %v1060_v9  ;;  %v1063_v20 = vadd.f32 %v19161_v8, %v15477_v15  ;;  %v1054_v21 = vpop.f32.mrb[39].mxu0  ;;  %v18023_v22 = vpop.eup %18022  ;;  %18042 = vpow2.f32 %v1930_v2 }
 0x141   :  { %v1710_v25 = vsub.f32 0.0, %v1052_v14  ;;  %v1055_v27 = vadd.f32 %v19161_v8, %v1054_v21  ;;  %v18025_v29 = vpop.eup %18024  ;;  %v2280_v30 = vadd.f32 1.0, %v18023_v22  ;;  %18044 = vpow2.f32 %v1936_v7 }
 0x142   :  { %v1713_v32 = vsub.f32 0.0, %v1063_v20  ;;  %15583 = vmatmul.mubr.bf16.gmra.mrb[144].mxu0 %v16897_v0  ;;  %v18027_v33 = vpop.eup %18026  ;;  %v2278_v34 = vadd.f32 1.0, %v18025_v29  ;;  %18046 = vpow2.f32 %v1932_v12  ;;  %v1942_v41 = vmul.f32 1.442695, %v1712_v18 }
 0x143   :  { %v1711_v36 = vsub.f32 0.0, %v1055_v27  ;;  %15586 = vmatprep.mubr.bf16.mxu0 %v16898_v4  ;;  %v18029_v37 = vpop.eup %18028  ;;  %18048 = vrcp.f32 %v2280_v30  ;;  %v2281_v38 = vadd.f32 1.0, %v18027_v33  ;;  %v1938_v47 = vmul.f32 1.442695, %v1710_v25  ;;  %v16901_v27 = vld [vmem:[%s23237_s0 + $0x268] sm:$0xff]  }
 0x144   :  { %v19174_v43 = vpop.eup %18030  ;;  %18050 = vrcp.f32 %v2278_v34  ;;  %v2279_v45 = vadd.f32 1.0, %v18029_v37  ;;  %v1944_v52 = vmul.f32 1.442695, %v1713_v32  ;;  %v16902_v34 = vld [vmem:[%s23237_s0 + $0x270] sm:$0xff]  }
 0x145   :  { %23428 = vst [vmem:[#allocation18_spill] sm:$0xff] %v19174_v43  ;;  %v15480_v48 = vpop.f32.mrb[40].mxu0  ;;  %v19179_v50 = vpop.eup %18032  ;;  %18052 = vrcp.f32 %v2281_v38  ;;  %v1940_v59 = vmul.f32 1.442695, %v1711_v36 }
 0x146   :  { %23429 = vst [vmem:[#allocation19_spill] sm:$0xff] %v19179_v50  ;;  %v1076_v55 = vadd.f32 %v19161_v8, %v15480_v48  ;;  %v1067_v56 = vpop.f32.mrb[41].mxu0  ;;  %v19182_v57 = vpop.eup %18034  ;;  %18054 = vrcp.f32 %v2279_v45 }
 0x147   :  { %23430 = vst [vmem:[#allocation20_spill] sm:$0xff] %v19182_v57  ;;  %v1068_v60 = vadd.f32 %v19161_v8, %v1067_v56  ;;  %v15481_v61 = vpop.f32.mrb[42].mxu0  ;;  %v19185_v0 = vpop.eup %18036  ;;  %18056 = vpow2.f32 %v1942_v41 }
 0x148   :  { %23431 = vst [vmem:[#allocation21_spill] sm:$0xff] %v19185_v0  ;;  %v1716_v63 = vsub.f32 0.0, %v1076_v55  ;;  %v1079_v2 = vadd.f32 %v19161_v8, %v15481_v61  ;;  %v1070_v3 = vpop.f32.mrb[43].mxu0  ;;  %v19188_v4 = vpop.eup %18038  ;;  %18058 = vpow2.f32 %v1938_v47 }
 0x149   :  { %23432 = vst [vmem:[#allocation22_spill] sm:$0xff] %v19188_v4  ;;  %v1714_v7 = vsub.f32 0.0, %v1068_v60  ;;  %v1071_v9 = vadd.f32 %v19161_v8, %v1070_v3  ;;  %v18041_v10 = vpop.eup %18040  ;;  %18060 = vpow2.f32 %v1944_v52 }
 0x14a   :  { %v1950_v12 = vmul.f32 1.442695, %v1716_v63  ;;  %v1717_v14 = vsub.f32 0.0, %v1079_v2  ;;  %15587 = vmatmul.mubr.bf16.gmra.mrb[148].mxu0 %v16899_v42  ;;  %v18043_v15 = vpop.eup %18042  ;;  %v2284_v18 = vadd.f32 1.0, %v18041_v10  ;;  %18062 = vpow2.f32 %v1940_v59 }
 0x14b   :  { %v1715_v20 = vsub.f32 0.0, %v1071_v9  ;;  %15590 = vmatprep.mubr.bf16.mxu0 %v16900_v49  ;;  %v18045_v21 = vpop.eup %18044  ;;  %v2282_v22 = vadd.f32 1.0, %v18043_v15  ;;  %v1946_v25 = vmul.f32 1.442695, %v1714_v7 }
 0x14c   :  { %18064 = vpow2.f32 %v1950_v12  ;;  %v18047_v29 = vpop.eup %18046  ;;  %v2285_v30 = vadd.f32 1.0, %v18045_v21  ;;  %v1952_v32 = vmul.f32 1.442695, %v1717_v14 }
 0x14d   :  { %18066 = vrcp.f32 %v2284_v18  ;;  %v15484_v33 = vpop.f32.mrb[44].mxu0  ;;  %v19197_v36 = vpop.eup %18048  ;;  %v2283_v37 = vadd.f32 1.0, %v18047_v29  ;;  %v1948_v45 = vmul.f32 1.442695, %v1715_v20  ;;  %v16903_v20 = vld [vmem:[%s23237_s0 + $0x278] sm:$0xff]  }
 0x14e   :  { %23433 = vst [vmem:[#allocation23_spill] sm:$0xff] %v19197_v36  ;;  %18068 = vrcp.f32 %v2282_v22  ;;  %v1092_v38 = vadd.f32 %v19161_v8, %v15484_v33  ;;  %v1083_v41 = vpop.f32.mrb[45].mxu0  ;;  %v19200_v42 = vpop.eup %18050 }
 0x14f   :  { %23434 = vst [vmem:[#allocation24_spill] sm:$0xff] %v19200_v42  ;;  %18070 = vrcp.f32 %v2285_v30  ;;  %v1084_v47 = vadd.f32 %v19161_v8, %v1083_v41  ;;  %v15485_v48 = vpop.f32.mrb[46].mxu0  ;;  %v19203_v49 = vpop.eup %18052 }
 0x150   :  { %23435 = vst [vmem:[#allocation25_spill] sm:$0xff] %v19203_v49  ;;  %18072 = vrcp.f32 %v2283_v37  ;;  %v1720_v52 = vsub.f32 0.0, %v1092_v38  ;;  %v1095_v55 = vadd.f32 %v19161_v8, %v15485_v48  ;;  %v1086_v56 = vpop.f32.mrb[47].mxu0  ;;  %v19206_v59 = vpop.eup %18054 }
 0x151   :  { %23436 = vst [vmem:[#allocation26_spill] sm:$0xff] %v19206_v59  ;;  %18074 = vpow2.f32 %v1946_v25  ;;  %v1718_v60 = vsub.f32 0.0, %v1084_v47  ;;  %v1087_v61 = vadd.f32 %v19161_v8, %v1086_v56  ;;  %v18057_v63 = vpop.eup %18056 }
 0x152   :  { %18076 = vpow2.f32 %v1952_v32  ;;  %v1958_v2 = vmul.f32 1.442695, %v1720_v52  ;;  %v1721_v3 = vsub.f32 0.0, %v1095_v55  ;;  %15591 = vmatmul.mubr.bf16.gmra.mrb[152].mxu0 %v16901_v27  ;;  %v18059_v7 = vpop.eup %18058  ;;  %v2288_v9 = vadd.f32 1.0, %v18057_v63  ;;  %v16904_v27 = vld [vmem:[%s23237_s0 + $0x280] sm:$0xff]  }
 0x153   :  { %18078 = vpow2.f32 %v1948_v45  ;;  %v1954_v10 = vmul.f32 1.442695, %v1718_v60  ;;  %v1719_v12 = vsub.f32 0.0, %v1087_v61  ;;  %15594 = vmatprep.mubr.bf16.mxu0 %v16902_v34  ;;  %v18061_v14 = vpop.eup %18060  ;;  %v2286_v15 = vadd.f32 1.0, %v18059_v7 }
 0x154   :  { %18080 = vpow2.f32 %v1958_v2  ;;  %v1960_v18 = vmul.f32 1.442695, %v1721_v3  ;;  %v18063_v21 = vpop.eup %18062  ;;  %v2289_v22 = vadd.f32 1.0, %v18061_v14 }
 0x155   :  { %18082 = vrcp.f32 %v2288_v9  ;;  %v1956_v25 = vmul.f32 1.442695, %v1719_v12  ;;  %v15488_v29 = vpop.f32.mrb[48].mxu0  ;;  %v2287_v32 = vadd.f32 1.0, %v18063_v21 }
 0x156   :  { %v18065_v30 = vpop.eup %18064  ;;  %18084 = vrcp.f32 %v2286_v15  ;;  %v1108_v33 = vadd.f32 %v19161_v8, %v15488_v29  ;;  %v1099_v34 = vpop.f32.mrb[49].mxu0 }
 0x157   :  { %v19216_v37 = vpop.eup %18066  ;;  %18086 = vrcp.f32 %v2289_v22  ;;  %v2292_v38 = vadd.f32 1.0, %v18065_v30  ;;  %v1100_v41 = vadd.f32 %v19161_v8, %v1099_v34  ;;  %v15489_v45 = vpop.f32.mrb[50].mxu0  ;;  %v16905_v22 = vld [vmem:[%s23237_s0 + $0x288] sm:$0xff]  }
 0x158   :  { %23437 = vst [vmem:[#allocation27_spill] sm:$0xff] %v19216_v37  ;;  %v19219_v47 = vpop.eup %18068  ;;  %18088 = vrcp.f32 %v2287_v32  ;;  %v1724_v48 = vsub.f32 0.0, %v1108_v33  ;;  %v1111_v52 = vadd.f32 %v19161_v8, %v15489_v45  ;;  %v1102_v55 = vpop.f32.mrb[51].mxu0 }
 0x159   :  { %23438 = vst [vmem:[#allocation28_spill] sm:$0xff] %v19219_v47  ;;  %v19222_v56 = vpop.eup %18070  ;;  %18090 = vrcp.f32 %v2292_v38  ;;  %v1722_v60 = vsub.f32 0.0, %v1100_v41  ;;  %v1103_v61 = vadd.f32 %v19161_v8, %v1102_v55 }
 0x15a   :  { %23439 = vst [vmem:[#allocation29_spill] sm:$0xff] %v19222_v56  ;;  %v19225_v63 = vpop.eup %18072  ;;  %18092 = vpow2.f32 %v1954_v10  ;;  %v1966_v2 = vmul.f32 1.442695, %v1724_v48  ;;  %v1725_v3 = vsub.f32 0.0, %v1111_v52  ;;  %15595 = vmatmul.mubr.bf16.gmra.mrb[156].mxu0 %v16903_v20 }
 0x15b   :  { %23440 = vst [vmem:[#allocation30_spill] sm:$0xff] %v19225_v63  ;;  %v18075_v7 = vpop.eup %18074  ;;  %18094 = vpow2.f32 %v1960_v18  ;;  %v1962_v9 = vmul.f32 1.442695, %v1722_v60  ;;  %v1723_v12 = vsub.f32 0.0, %v1103_v61  ;;  %15598 = vmatprep.mubr.bf16.mxu0 %v16904_v27  ;;  %v16906_v18 = vld [vmem:[%s23237_s0 + $0x290] sm:$0xff]  }
 0x15c   :  { %v18077_v14 = vpop.eup %18076  ;;  %v2290_v15 = vadd.f32 1.0, %v18075_v7  ;;  %18096 = vpow2.f32 %v1956_v25  ;;  %v1968_v21 = vmul.f32 1.442695, %v1725_v3 }
 0x15d   :  { %v18079_v29 = vpop.eup %18078  ;;  %v2293_v30 = vadd.f32 1.0, %v18077_v14  ;;  %18098 = vpow2.f32 %v1966_v2  ;;  %v1964_v10 = vmul.f32 1.442695, %v1723_v12  ;;  %v15492_v32 = vpop.f32.mrb[52].mxu0 }
 0x15e   :  { %v18081_v20 = vpop.eup %18080  ;;  %18100 = vrcp.f32 %v2290_v15  ;;  %v2291_v27 = vadd.f32 1.0, %v18079_v29  ;;  %v1124_v33 = vadd.f32 %v19161_v8, %v15492_v32  ;;  %v1115_v25 = vpop.f32.mrb[53].mxu0 }
 0x15f   :  { %v19234_v34 = vpop.eup %18082  ;;  %18102 = vrcp.f32 %v2293_v30  ;;  %v2296_v38 = vadd.f32 1.0, %v18081_v20  ;;  %v1116_v41 = vadd.f32 %v19161_v8, %v1115_v25  ;;  %v15493_v45 = vpop.f32.mrb[54].mxu0 }
 0x160   :  { %23441 = vst [vmem:[#allocation31_spill] sm:$0xff] %v19234_v34  ;;  %v19237_v48 = vpop.eup %18084  ;;  %18104 = vrcp.f32 %v2291_v27  ;;  %v1728_v52 = vsub.f32 0.0, %v1124_v33  ;;  %v1127_v55 = vadd.f32 %v19161_v8, %v15493_v45  ;;  %v1118_v60 = vpop.f32.mrb[55].mxu0  ;;  %v16907_v27 = vld [vmem:[%s23237_s0 + $0x298] sm:$0xff]  }
 0x161   :  { %23442 = vst [vmem:[#allocation32_spill] sm:$0xff] %v19237_v48  ;;  %v19240_v61 = vpop.eup %18086  ;;  %18106 = vrcp.f32 %v2296_v38  ;;  %v1726_v2 = vsub.f32 0.0, %v1116_v41  ;;  %v1119_v3 = vadd.f32 %v19161_v8, %v1118_v60 }
 0x162   :  { %23443 = vst [vmem:[#allocation33_spill] sm:$0xff] %v19240_v61  ;;  %v19243_v7 = vpop.eup %18088  ;;  %18108 = vpow2.f32 %v1962_v9  ;;  %v1974_v12 = vmul.f32 1.442695, %v1728_v52  ;;  %v1729_v14 = vsub.f32 0.0, %v1127_v55  ;;  %15599 = vmatmul.mubr.bf16.gmra.mrb[160].mxu0 %v16905_v22  ;;  %v16908_v22 = vld [vmem:[%s23237_s0 + $0x2a0] sm:$0xff]  }
 0x163   :  { %23444 = vst [vmem:[#allocation34_spill] sm:$0xff] %v19243_v7  ;;  %v19245_v15 = vpop.eup %18090  ;;  %18110 = vpow2.f32 %v1968_v21  ;;  %v1970_v29 = vmul.f32 1.442695, %v1726_v2  ;;  %v1727_v30 = vsub.f32 0.0, %v1119_v3  ;;  %15602 = vmatprep.mubr.bf16.mxu0 %v16906_v18 }
 0x164   :  { %23445 = vst [vmem:[#allocation35_spill] sm:$0xff] %v19245_v15  ;;  %v18093_v32 = vpop.eup %18092  ;;  %18112 = vpow2.f32 %v1964_v10  ;;  %v1976_v20 = vmul.f32 1.442695, %v1729_v14 }
 0x165   :  { %v18095_v33 = vpop.eup %18094  ;;  %v2294_v25 = vadd.f32 1.0, %v18093_v32  ;;  %18114 = vpow2.f32 %v1974_v12  ;;  %v1972_v9 = vmul.f32 1.442695, %v1727_v30  ;;  %v15496_v38 = vpop.f32.mrb[56].mxu0 }
 0x166   :  { %v18097_v21 = vpop.eup %18096  ;;  %v2297_v41 = vadd.f32 1.0, %v18095_v33  ;;  %18116 = vpow2.f32 %v1970_v29  ;;  %v1140_v18 = vadd.f32 %v19161_v8, %v15496_v38  ;;  %v1131_v10 = vpop.f32.mrb[57].mxu0 }
 0x167   :  { %v18099_v45 = vpop.eup %18098  ;;  %18118 = vrcp.f32 %v2294_v25  ;;  %v2295_v52 = vadd.f32 1.0, %v18097_v21  ;;  %v1132_v55 = vadd.f32 %v19161_v8, %v1131_v10  ;;  %v15497_v60 = vpop.f32.mrb[58].mxu0 }
 0x168   :  { %v19255_v2 = vpop.eup %18100  ;;  %18120 = vrcp.f32 %v2297_v41  ;;  %v2300_v3 = vadd.f32 1.0, %v18099_v45  ;;  %v1732_v12 = vsub.f32 0.0, %v1140_v18  ;;  %v1143_v14 = vadd.f32 %v19161_v8, %v15497_v60  ;;  %v1134_v30 = vpop.f32.mrb[59].mxu0 }
 0x169   :  { %23446 = vst [vmem:[#allocation36_spill] sm:$0xff] %v19255_v2  ;;  %v19258_v32 = vpop.eup %18102  ;;  %18122 = vrcp.f32 %v2295_v52  ;;  %v1730_v29 = vsub.f32 0.0, %v1132_v55  ;;  %v1135_v33 = vadd.f32 %v19161_v8, %v1134_v30  ;;  %v16909_v52 = vld [vmem:[%s23237_s0 + $0x2a8] sm:$0xff]  }
 0x16a   :  { %23447 = vst [vmem:[#allocation37_spill] sm:$0xff] %v19258_v32  ;;  %v19261_v38 = vpop.eup %18104  ;;  %18124 = vrcp.f32 %v2300_v3  ;;  %v1982_v25 = vmul.f32 1.442695, %v1732_v12  ;;  %v1733_v21 = vsub.f32 0.0, %v1143_v14  ;;  %15603 = vmatmul.mubr.bf16.gmra.mrb[164].mxu0 %v16907_v27  ;;  %v16910_v27 = vld [vmem:[%s23237_s0 + $0x2b0] sm:$0xff]  }
 0x16b   :  { %23448 = vst [vmem:[#allocation38_spill] sm:$0xff] %v19261_v38  ;;  %v19263_v10 = vpop.eup %18106  ;;  %18126 = vpow2.f32 %v1976_v20  ;;  %v1978_v41 = vmul.f32 1.442695, %v1730_v29  ;;  %v1731_v18 = vsub.f32 0.0, %v1135_v33  ;;  %15606 = vmatprep.mubr.bf16.mxu0 %v16908_v22 }
 0x16c   :  { %23449 = vst [vmem:[#allocation39_spill] sm:$0xff] %v19263_v10  ;;  %v18109_v45 = vpop.eup %18108  ;;  %18128 = vpow2.f32 %v1972_v9  ;;  %v1984_v60 = vmul.f32 1.442695, %v1733_v21 }
 0x16d   :  { %v18111_v55 = vpop.eup %18110  ;;  %v2298_v30 = vadd.f32 1.0, %v18109_v45  ;;  %18130 = vpow2.f32 %v1982_v25  ;;  %v1980_v3 = vmul.f32 1.442695, %v1731_v18  ;;  %v15500_v12 = vpop.f32.mrb[60].mxu0 }
 0x16e   :  { %v18113_v20 = vpop.eup %18112  ;;  %v2301_v14 = vadd.f32 1.0, %v18111_v55  ;;  %18132 = vpow2.f32 %v1978_v41  ;;  %v1156_v22 = vadd.f32 %v19161_v8, %v15500_v12  ;;  %v1147_v9 = vpop.f32.mrb[61].mxu0 }
 0x16f   :  { %v18115_v29 = vpop.eup %18114  ;;  %18134 = vrcp.f32 %v2298_v30  ;;  %v2299_v33 = vadd.f32 1.0, %v18113_v20  ;;  %v1148_v21 = vadd.f32 %v19161_v8, %v1147_v9  ;;  %v15501_v10 = vpop.f32.mrb[62].mxu0 }
 0x170   :  { %v18117_v45 = vpop.eup %18116  ;;  %18136 = vrcp.f32 %v2301_v14  ;;  %v2304_v25 = vadd.f32 1.0, %v18115_v29  ;;  %v1736_v18 = vsub.f32 0.0, %v1156_v22  ;;  %v1159_v38 = vadd.f32 %v19161_v8, %v15501_v10  ;;  %v1150_v32 = vpop.f32.mrb[63].mxu0 }
 0x171   :  { %v19274_v2 = vpop.eup %18118  ;;  %18138 = vrcp.f32 %v2299_v33  ;;  %v2302_v41 = vadd.f32 1.0, %v18117_v45  ;;  %v1734_v55 = vsub.f32 0.0, %v1148_v21  ;;  %v1151_v12 = vadd.f32 %v19161_v8, %v1150_v32  ;;  %v16911_v32 = vld [vmem:[%s23237_s0 + $0x2b8] sm:$0xff]   ;;  %v16912_v45 = vld [vmem:[%s23237_s0 + $0x2c0] sm:$0xff]  }
 0x172   :  { %23450 = vst [vmem:[#allocation40_spill] sm:$0xff] %v19274_v2  ;;  %v19277_v15 = vpop.eup %18120  ;;  %18140 = vrcp.f32 %v2304_v25  ;;  %v1990_v30 = vmul.f32 1.442695, %v1736_v18  ;;  %v1737_v20 = vsub.f32 0.0, %v1159_v38  ;;  %15607 = vmatmul.mubr.bf16.gmra.mrb[168].mxu0 %v16909_v52 }
 0x173   :  { %23451 = vst [vmem:[#allocation41_spill] sm:$0xff] %v19277_v15  ;;  %v19279_v9 = vpop.eup %18122  ;;  %18142 = vrcp.f32 %v2302_v41  ;;  %v1986_v14 = vmul.f32 1.442695, %v1734_v55  ;;  %v1735_v22 = vsub.f32 0.0, %v1151_v12  ;;  %15610 = vmatprep.mubr.bf16.mxu0 %v16910_v27 }
 0x174   :  { %23452 = vst [vmem:[#allocation42_spill] sm:$0xff] %v19279_v9  ;;  %v19281_v10 = vpop.eup %18124  ;;  %18144 = vpow2.f32 %v1984_v60  ;;  %v1992_v29 = vmul.f32 1.442695, %v1737_v20 }
 0x175   :  { %23453 = vst [vmem:[#allocation43_spill] sm:$0xff] %v19281_v10  ;;  %v18127_v33 = vpop.eup %18126  ;;  %18146 = vpow2.f32 %v1980_v3  ;;  %v1988_v38 = vmul.f32 1.442695, %v1735_v22  ;;  %v15504_v52 = vpop.f32.mrb[64].mxu0 }
 0x176   :  { %v18129_v27 = vpop.eup %18128  ;;  %v2305_v25 = vadd.f32 1.0, %v18127_v33  ;;  %18148 = vpow2.f32 %v1990_v30  ;;  %v1172_v60 = vadd.f32 %v19161_v8, %v15504_v52  ;;  %v1163_v18 = vpop.f32.mrb[65].mxu0 }
 0x177   :  { %v18131_v41 = vpop.eup %18130  ;;  %v2303_v55 = vadd.f32 1.0, %v18129_v27  ;;  %18150 = vpow2.f32 %v1986_v14  ;;  %v1164_v12 = vadd.f32 %v19161_v8, %v1163_v18  ;;  %v15505_v20 = vpop.f32.mrb[66].mxu0 }
 0x178   :  { %v18133_v21 = vpop.eup %18132  ;;  %18152 = vrcp.f32 %v2305_v25  ;;  %v2308_v3 = vadd.f32 1.0, %v18131_v41  ;;  %v1740_v22 = vsub.f32 0.0, %v1172_v60  ;;  %v1175_v10 = vadd.f32 %v19161_v8, %v15505_v20  ;;  %v1166_v24 = vpop.f32.mrb[67].mxu0 }
 0x179   :  { %v19294_v9 = vpop.eup %18134  ;;  %18154 = vrcp.f32 %v2303_v55  ;;  %v2306_v30 = vadd.f32 1.0, %v18133_v21  ;;  %v1738_v33 = vsub.f32 0.0, %v1164_v12  ;;  %v1167_v52 = vadd.f32 %v19161_v8, %v1166_v24 }
 0x17a   :  { %v19297_v15 = vpop.eup %18136  ;;  %18156 = vrcp.f32 %v2308_v3  ;;  %v1998_v27 = vmul.f32 1.442695, %v1740_v22  ;;  %v1741_v25 = vsub.f32 0.0, %v1175_v10  ;;  %15611 = vmatmul.mubr.bf16.gmra.mrb[172].mxu0 %v16911_v32  ;;  %v16913_v10 = vld [vmem:[%s23237_s0 + $0x2c8] sm:$0xff]  }
 0x17b   :  { %v19301_v60 = vpop.eup %18138  ;;  %18158 = vrcp.f32 %v2306_v30  ;;  %v1994_v41 = vmul.f32 1.442695, %v1738_v33  ;;  %v1739_v21 = vsub.f32 0.0, %v1167_v52  ;;  %15614 = vmatprep.mubr.bf16.mxu0 %v16912_v45  ;;  %v16914_v45 = vld [vmem:[%s23237_s0 + $0x2d0] sm:$0xff]  }
 0x17c   :  { %23454 = vst [vmem:[#allocation44_spill] sm:$0xff] %v19301_v60  ;;  %v19305_v55 = vpop.eup %18140  ;;  %18160 = vpow2.f32 %v1992_v29  ;;  %v2000_v12 = vmul.f32 1.442695, %v1741_v25 }
 0x17d   :  { %23455 = vst [vmem:[#allocation45_spill] sm:$0xff] %v19305_v55  ;;  %v19312_v32 = vpop.eup %18142  ;;  %18162 = vpow2.f32 %v1988_v38  ;;  %v15508_v3 = vpop.f32.mrb[68].mxu0  ;;  %v1996_v30 = vmul.f32 1.442695, %v1739_v21  ;;  %v19325_v38 = vld [vmem:[%s23239_s2] ss:$0 sm:$0xff] }
 0x17e   :  { %23456 = vst [vmem:[#allocation46_spill] sm:$0xff] %v19312_v32  ;;  %v18145_v22 = vpop.eup %18144  ;;  %18164 = vpow2.f32 %v1998_v27  ;;  %v1188_v33 = vadd.f32 %v19161_v8, %v15508_v3  ;;  %v1179_v52 = vpop.f32.mrb[69].mxu0 }
 0x17f   :  { %v18147_v25 = vpop.eup %18146  ;;  %v2309_v24 = vadd.f32 1.0, %v18145_v22  ;;  %18166 = vpow2.f32 %v1994_v41  ;;  %v1180_v20 = vadd.f32 %v19325_v38, %v1179_v52  ;;  %v15509_v18 = vpop.f32.mrb[70].mxu0 }
 0x180   :  { %v18149_v14 = vpop.eup %18148  ;;  %v2307_v55 = vadd.f32 1.0, %v18147_v25  ;;  %18168 = vpow2.f32 %v2000_v12  ;;  %v1744_v29 = vsub.f32 0.0, %v1188_v33  ;;  %v1191_v27 = vadd.f32 %v19325_v38, %v15509_v18  ;;  %v1182_v21 = vpop.f32.mrb[71].mxu0 }
 0x181   :  { %v18151_v8 = vpop.eup %18150  ;;  %18170 = vrcp.f32 %v2309_v24  ;;  %v2312_v3 = vadd.f32 1.0, %v18149_v14  ;;  %v1742_v22 = vsub.f32 0.0, %v1180_v20  ;;  %v1183_v41 = vadd.f32 %v19325_v38, %v1182_v21 }
 0x182   :  { %v19330_v32 = vpop.eup %18152  ;;  %18172 = vrcp.f32 %v2307_v55  ;;  %v2310_v6 = vadd.f32 1.0, %v18151_v8  ;;  %v2006_v54 = vmul.f32 1.442695, %v1744_v29  ;;  %v1745_v52 = vsub.f32 0.0, %v1191_v27  ;;  %15615 = vmatmul.mubr.bf16.gmra.mrb[176].mxu0 %v16913_v10  ;;  %v16915_v55 = vld [vmem:[%s23237_s0 + $0x2d8] sm:$0xff]  }
 0x183   :  { %v19332_v60 = vpop.eup %18154  ;;  %18174 = vrcp.f32 %v2312_v3  ;;  %v2002_v18 = vmul.f32 1.442695, %v1742_v22  ;;  %15618 = vmatprep.mubr.bf16.mxu0 %v16914_v45  ;;  %v16916_v45 = vld [vmem:[%s23237_s0 + $0x2e0] sm:$0xff]   ;;  %v1743_v27 = vsub.f32 0.0, %v1183_v41 }
 0x184   :  { %23457 = vst [vmem:[#allocation47_spill] sm:$0xff] %v19332_v60  ;;  %v19336_v24 = vpop.eup %18156  ;;  %18176 = vrcp.f32 %v2310_v6  ;;  %v2008_v20 = vmul.f32 1.442695, %v1745_v52 }
 0x185   :  { %23458 = vst [vmem:[#allocation48_spill] sm:$0xff] %v19336_v24  ;;  %v19343_v10 = vpop.eup %18158  ;;  %18178 = vpow2.f32 %v1996_v30  ;;  %v15512_v33 = vpop.f32.mrb[72].mxu0 }
 0x186   :  { %23459 = vst [vmem:[#allocation49_spill] sm:$0xff] %v19343_v10  ;;  %v18161_v25 = vpop.eup %18160  ;;  %18180 = vpow2.f32 %v2006_v54  ;;  %v1204_v21 = vadd.f32 %v19325_v38, %v15512_v33  ;;  %v1195_v8 = vpop.f32.mrb[73].mxu0 }
 0x187   :  { %v18163_v3 = vpop.eup %18162  ;;  %v2313_v22 = vadd.f32 1.0, %v18161_v25  ;;  %18182 = vpow2.f32 %v2002_v18  ;;  %v1196_v52 = vadd.f32 %v19325_v38, %v1195_v8  ;;  %v15513_v30 = vpop.f32.mrb[74].mxu0  ;;  %v2004_v18 = vmul.f32 1.442695, %v1743_v27 }
 0x188   :  { %v18165_v29 = vpop.eup %18164  ;;  %v2311_v14 = vadd.f32 1.0, %v18163_v3  ;;  %18184 = vpow2.f32 %v2008_v20  ;;  %v1748_v12 = vsub.f32 0.0, %v1204_v21  ;;  %v1207_v24 = vadd.f32 %v19325_v38, %v15513_v30  ;;  %v1198_v23 = vpop.f32.mrb[75].mxu0 }
 0x189   :  { %v18167_v60 = vpop.eup %18166  ;;  %18186 = vrcp.f32 %v2313_v22  ;;  %v2316_v54 = vadd.f32 1.0, %v18165_v29  ;;  %v1746_v41 = vsub.f32 0.0, %v1196_v52  ;;  %v1199_v33 = vadd.f32 %v19325_v38, %v1198_v23 }
 0x18a   :  { %v18169_v6 = vpop.eup %18168  ;;  %18188 = vrcp.f32 %v2311_v14  ;;  %v2314_v25 = vadd.f32 1.0, %v18167_v60  ;;  %v1749_v10 = vsub.f32 0.0, %v1207_v24  ;;  %15619 = vmatmul.mubr.bf16.gmra.mrb[180].mxu0 %v16915_v55  ;;  %v2014_v21 = vmul.f32 1.442695, %v1748_v12  ;;  %v16917_v60 = vld [vmem:[%s23237_s0 + $0x2e8] sm:$0xff]  }
 0x18b   :  { %v19356_v8 = vpop.eup %18170  ;;  %18190 = vrcp.f32 %v2316_v54  ;;  %v2317_v20 = vadd.f32 1.0, %v18169_v6  ;;  %v1747_v3 = vsub.f32 0.0, %v1199_v33  ;;  %15622 = vmatprep.mubr.bf16.mxu0 %v16916_v45  ;;  %v2010_v23 = vmul.f32 1.442695, %v1746_v41  ;;  %v16918_v45 = vld [vmem:[%s23237_s0 + $0x2f0] sm:$0xff]  }
 0x18c   :  { %v19358_v30 = vpop.eup %18172  ;;  %18192 = vrcp.f32 %v2314_v25  ;;  %v2016_v12 = vmul.f32 1.442695, %v1749_v10 }
 0x18d   :  { %23460 = vst [vmem:[#allocation50_spill] sm:$0xff] %v19358_v30  ;;  %v19365_v24 = vpop.eup %18174  ;;  %18194 = vrcp.f32 %v2317_v20  ;;  %v15516_v55 = vpop.f32.mrb[76].mxu0  ;;  %v2012_v22 = vmul.f32 1.442695, %v1747_v3 }
 0x18e   :  { %23461 = vst [vmem:[#allocation51_spill] sm:$0xff] %v19365_v24  ;;  %v19372_v6 = vpop.eup %18176  ;;  %18196 = vpow2.f32 %v2004_v18  ;;  %v1220_v52 = vadd.f32 %v19325_v38, %v15516_v55  ;;  %v1211_v54 = vpop.f32.mrb[77].mxu0 }
 0x18f   :  { %23462 = vst [vmem:[#allocation52_spill] sm:$0xff] %v19372_v6  ;;  %v18179_v41 = vpop.eup %18178  ;;  %18198 = vpow2.f32 %v2014_v21  ;;  %v1212_v10 = vadd.f32 %v19325_v38, %v1211_v54  ;;  %v15517_v25 = vpop.f32.mrb[78].mxu0 }
 0x190   :  { %v18181_v20 = vpop.eup %18180  ;;  %v2315_v14 = vadd.f32 1.0, %v18179_v41  ;;  %18200 = vpow2.f32 %v2010_v23  ;;  %v1752_v29 = vsub.f32 0.0, %v1220_v52  ;;  %v1223_v30 = vadd.f32 %v19325_v38, %v15517_v25  ;;  %v1214_v27 = vpop.f32.mrb[79].mxu0 }
 0x191   :  { %v18183_v18 = vpop.eup %18182  ;;  %v2320_v3 = vadd.f32 1.0, %v18181_v20  ;;  %18202 = vpow2.f32 %v2016_v12  ;;  %v1750_v55 = vsub.f32 0.0, %v1212_v10  ;;  %v1215_v24 = vadd.f32 %v19325_v38, %v1214_v27 }
 0x192   :  { %v18185_v58 = vpop.eup %18184  ;;  %18204 = vrcp.f32 %v2315_v14  ;;  %v2318_v33 = vadd.f32 1.0, %v18183_v18  ;;  %v2022_v21 = vmul.f32 1.442695, %v1752_v29  ;;  %v1753_v6 = vsub.f32 0.0, %v1223_v30  ;;  %15623 = vmatmul.mubr.bf16.gmra.mrb[184].mxu0 %v16917_v60  ;;  %v16919_v29 = vld [vmem:[%s23237_s0 + $0x2f8] sm:$0xff]  }
 0x193   :  { %v19382_v54 = vpop.eup %18186  ;;  %18206 = vrcp.f32 %v2320_v3  ;;  %v2321_v23 = vadd.f32 1.0, %v18185_v58  ;;  %v2018_v52 = vmul.f32 1.442695, %v1750_v55  ;;  %v1751_v41 = vsub.f32 0.0, %v1215_v24  ;;  %15626 = vmatprep.mubr.bf16.mxu0 %v16918_v45 }
 0x194   :  { %v19384_v25 = vpop.eup %18188  ;;  %18208 = vrcp.f32 %v2318_v33  ;;  %v2024_v27 = vmul.f32 1.442695, %v1753_v6 }
 0x195   :  { %v19391_v30 = vpop.eup %18190  ;;  %18210 = vrcp.f32 %v2321_v23  ;;  %v2020_v58 = vmul.f32 1.442695, %v1751_v41  ;;  %v15520_v24 = vpop.f32.mrb[80].mxu0 }
 0x196   :  { %23463 = vst [vmem:[#allocation53_spill] sm:$0xff] %v19391_v30  ;;  %v19395_v14 = vpop.eup %18192  ;;  %18212 = vpow2.f32 %v2012_v22  ;;  %v1236_v6 = vadd.f32 %v19325_v38, %v15520_v24  ;;  %v1227_v33 = vpop.f32.mrb[81].mxu0 }
 0x197   :  { %23464 = vst [vmem:[#allocation54_spill] sm:$0xff] %v19395_v14  ;;  %v19400_v10 = vpop.eup %18194  ;;  %18214 = vpow2.f32 %v2022_v21  ;;  %v1228_v18 = vadd.f32 %v19325_v38, %v1227_v33  ;;  %v15521_v3 = vpop.f32.mrb[82].mxu0 }
 0x198   :  { %23465 = vst [vmem:[#allocation55_spill] sm:$0xff] %v19400_v10  ;;  %v18197_v55 = vpop.eup %18196  ;;  %18216 = vpow2.f32 %v2018_v52  ;;  %v1756_v41 = vsub.f32 0.0, %v1236_v6  ;;  %v1239_v22 = vadd.f32 %v19325_v38, %v15521_v3  ;;  %v1230_v45 = vpop.f32.mrb[83].mxu0 }
 0x199   :  { %v18199_v24 = vpop.eup %18198  ;;  %v2319_v60 = vadd.f32 1.0, %v18197_v55  ;;  %18218 = vpow2.f32 %v2024_v27  ;;  %v1754_v12 = vsub.f32 0.0, %v1228_v18  ;;  %v1231_v30 = vadd.f32 %v19325_v38, %v1230_v45 }
 0x19a   :  { %v18201_v20 = vpop.eup %18200  ;;  %v2324_v21 = vadd.f32 1.0, %v18199_v24  ;;  %18220 = vpow2.f32 %v2020_v58  ;;  %v2030_v33 = vmul.f32 1.442695, %v1756_v41  ;;  %v1757_v14 = vsub.f32 0.0, %v1239_v22  ;;  %15627 = vmatmul.mubr.bf16.gmra.mrb[188].mxu0 %v16919_v29 }
 0x19b   :  { %v18203_v35 = vpop.eup %18202  ;;  %18222 = vrcp.f32 %v2319_v60  ;;  %v2322_v23 = vadd.f32 1.0, %v18201_v20  ;;  %v2026_v52 = vmul.f32 1.442695, %v1754_v12  ;;  %v1755_v6 = vsub.f32 0.0, %v1231_v30 }
 0x19c   :  { %v19409_v10 = vpop.eup %18204  ;;  %18224 = vrcp.f32 %v2324_v21  ;;  %v2325_v3 = vadd.f32 1.0, %v18203_v35  ;;  %v2032_v55 = vmul.f32 1.442695, %v1757_v14 }
 0x19d   :  { %23466 = vst [vmem:[#allocation56_spill] sm:$0xff] %v19409_v10  ;;  %v19411_v27 = vpop.eup %18206  ;;  %18226 = vrcp.f32 %v2322_v23  ;;  %v2028_v58 = vmul.f32 1.442695, %v1755_v6  ;;  %v15524_v18 = vpop.f32.mrb[84].mxu0 }
 0x19e   :  { %23467 = vst [vmem:[#allocation57_spill] sm:$0xff] %v19411_v27  ;;  %v19415_v41 = vpop.eup %18208  ;;  %18228 = vrcp.f32 %v2325_v3  ;;  %v1252_v12 = vadd.f32 %v19325_v38, %v15524_v18  ;;  %v1243_v30 = vpop.f32.mrb[85].mxu0 }
 0x19f   :  { %23468 = vst [vmem:[#allocation58_spill] sm:$0xff] %v19415_v41  ;;  %v19420_v60 = vpop.eup %18210  ;;  %18230 = vpow2.f32 %v2030_v33  ;;  %v1244_v14 = vadd.f32 %v19325_v38, %v1243_v30  ;;  %v15525_v20 = vpop.f32.mrb[86].mxu0 }
 0x1a0   :  { %23469 = vst [vmem:[#allocation59_spill] sm:$0xff] %v19420_v60  ;;  %v18213_v23 = vpop.eup %18212  ;;  %18232 = vpow2.f32 %v2026_v52  ;;  %v1760_v24 = vsub.f32 0.0, %v1252_v12  ;;  %v1255_v21 = vadd.f32 %v19325_v38, %v15525_v20  ;;  %v1246_v6 = vpop.f32.mrb[87].mxu0 }
 0x1a1   :  { %v18215_v3 = vpop.eup %18214  ;;  %v2323_v18 = vadd.f32 1.0, %v18213_v23  ;;  %18234 = vpow2.f32 %v2032_v55  ;;  %v1758_v29 = vsub.f32 0.0, %v1244_v14  ;;  %v1247_v45 = vadd.f32 %v19325_v38, %v1246_v6 }
 0x1a2   :  { %v18217_v35 = vpop.eup %18216  ;;  %v2328_v33 = vadd.f32 1.0, %v18215_v3  ;;  %18236 = vpow2.f32 %v2028_v58  ;;  %v1761_v30 = vsub.f32 0.0, %v1255_v21  ;;  %v2038_v27 = vmul.f32 1.442695, %v1760_v24 }
 0x1a3   :  { %v18219_v41 = vpop.eup %18218  ;;  %18238 = vrcp.f32 %v2323_v18  ;;  %v2326_v11 = vadd.f32 1.0, %v18217_v35  ;;  %v1759_v22 = vsub.f32 0.0, %v1247_v45  ;;  %v2034_v20 = vmul.f32 1.442695, %v1758_v29 }
 0x1a4   :  { %v18221_v52 = vpop.eup %18220  ;;  %18240 = vrcp.f32 %v2328_v33  ;;  %v2329_v12 = vadd.f32 1.0, %v18219_v41  ;;  %v2040_v14 = vmul.f32 1.442695, %v1761_v30 }
 0x1a5   :  { %v19429_v60 = vpop.eup %18222  ;;  %18242 = vrcp.f32 %v2326_v11  ;;  %v2327_v55 = vadd.f32 1.0, %v18221_v52  ;;  %v15528_v23 = vpop.f32.mrb[88].mxu0  ;;  %v2036_v29 = vmul.f32 1.442695, %v1759_v22 }
 0x1a6   :  { %23470 = vst [vmem:[#allocation60_spill] sm:$0xff] %v19429_v60  ;;  %v19431_v6 = vpop.eup %18224  ;;  %18244 = vrcp.f32 %v2329_v12  ;;  %v1268_v35 = vadd.f32 %v19325_v38, %v15528_v23  ;;  %v1259_v24 = vpop.f32.mrb[89].mxu0 }
 0x1a7   :  { %23471 = vst [vmem:[#allocation61_spill] sm:$0xff] %v19431_v6  ;;  %v19436_v45 = vpop.eup %18226  ;;  %18246 = vrcp.f32 %v2327_v55  ;;  %v1260_v11 = vadd.f32 %v19325_v38, %v1259_v24  ;;  %v15529_v21 = vpop.f32.mrb[90].mxu0 }
 0x1a8   :  { %23472 = vst [vmem:[#allocation62_spill] sm:$0xff] %v19436_v45  ;;  %v19441_v3 = vpop.eup %18228  ;;  %18248 = vpow2.f32 %v2038_v27  ;;  %v1764_v33 = vsub.f32 0.0, %v1268_v35  ;;  %v1271_v30 = vadd.f32 %v19325_v38, %v15529_v21  ;;  %v1262_v52 = vpop.f32.mrb[91].mxu0 }
 0x1a9   :  { %23473 = vst [vmem:[#allocation63_spill] sm:$0xff] %v19441_v3  ;;  %v18231_v12 = vpop.eup %18230  ;;  %18250 = vpow2.f32 %v2034_v20  ;;  %v1762_v55 = vsub.f32 0.0, %v1260_v11  ;;  %v1263_v22 = vadd.f32 %v19325_v38, %v1262_v52 }
 0x1aa   :  { %v18233_v24 = vpop.eup %18232  ;;  %v2332_v41 = vadd.f32 1.0, %v18231_v12  ;;  %18252 = vpow2.f32 %v2040_v14  ;;  %v1765_v58 = vsub.f32 0.0, %v1271_v30  ;;  %v2046_v18 = vmul.f32 1.442695, %v1764_v33 }
 0x1ab   :  { %v18235_v6 = vpop.eup %18234  ;;  %v2330_v50 = vadd.f32 1.0, %v18233_v24  ;;  %18254 = vpow2.f32 %v2036_v29  ;;  %v1763_v27 = vsub.f32 0.0, %v1263_v22  ;;  %v2042_v20 = vmul.f32 1.442695, %v1762_v55 }
 0x1ac   :  { %v18237_v35 = vpop.eup %18236  ;;  %18256 = vrcp.f32 %v2332_v41  ;;  %v2333_v21 = vadd.f32 1.0, %v18235_v6  ;;  %v2048_v30 = vmul.f32 1.442695, %v1765_v58 }
 0x1ad   :  { %v19449_v45 = vpop.eup %18238  ;;  %18258 = vrcp.f32 %v2330_v50  ;;  %v2331_v23 = vadd.f32 1.0, %v18237_v35  ;;  %v15532_v11 = vpop.f32.mrb[92].mxu0  ;;  %v2044_v50 = vmul.f32 1.442695, %v1763_v27 }
 0x1ae   :  { %23474 = vst [vmem:[#allocation64_spill] sm:$0xff] %v19449_v45  ;;  %v19451_v3 = vpop.eup %18240  ;;  %18260 = vrcp.f32 %v2333_v21  ;;  %v1284_v29 = vadd.f32 %v19325_v38, %v15532_v11  ;;  %v1275_v52 = vpop.f32.mrb[93].mxu0 }
 0x1af   :  { %23475 = vst [vmem:[#allocation65_spill] sm:$0xff] %v19451_v3  ;;  %v19456_v12 = vpop.eup %18242  ;;  %18262 = vrcp.f32 %v2331_v23  ;;  %v1276_v41 = vadd.f32 %v19325_v38, %v1275_v52  ;;  %v15533_v33 = vpop.f32.mrb[94].mxu0 }
 0x1b0   :  { %23476 = vst [vmem:[#allocation66_spill] sm:$0xff] %v19456_v12  ;;  %v19461_v55 = vpop.eup %18244  ;;  %18264 = vpow2.f32 %v2046_v18  ;;  %v1768_v58 = vsub.f32 0.0, %v1284_v29  ;;  %v1287_v24 = vadd.f32 %v19325_v38, %v15533_v33  ;;  %v1278_v35 = vpop.f32.mrb[95].mxu0  ;;  %v16920_v29 = vld [vmem:[%s23240_s3 + $0x40] sm:$0xff]  }
 0x1b1   :  { %23477 = vst [vmem:[#allocation67_spill] sm:$0xff] %v19461_v55  ;;  %v19466_v21 = vpop.eup %18246  ;;  %18266 = vpow2.f32 %v2042_v20  ;;  %v1766_v23 = vsub.f32 0.0, %v1276_v41  ;;  %v1279_v27 = vadd.f32 %v19325_v38, %v1278_v35  ;;  %15630 = vmatprep.subr.bf16.mxu1 %v16920_v29 }
 0x1b2   :  { %23478 = vst [vmem:[#allocation68_spill] sm:$0xff] %v19466_v21  ;;  %v18249_v52 = vpop.eup %18248  ;;  %18268 = vpow2.f32 %v2048_v30  ;;  %v2054_v22 = vmul.f32 1.442695, %v1768_v58  ;;  %v1769_v18 = vsub.f32 0.0, %v1287_v24  ;;  %15631 = vmatpush3.bf16.msra.mxu1 %v16920_v29 }
 0x1b3   :  { %v18251_v33 = vpop.eup %18250  ;;  %v2336_v14 = vadd.f32 1.0, %v18249_v52  ;;  %18270 = vpow2.f32 %v2044_v50  ;;  %v2050_v12 = vmul.f32 1.442695, %v1766_v23  ;;  %v1767_v11 = vsub.f32 0.0, %v1279_v27  ;;  %v16921_v23 = vld [vmem:[%s23240_s3 + $0x48] sm:$0xff]  }
 0x1b4   :  { %v18253_v20 = vpop.eup %18252  ;;  %v2334_v41 = vadd.f32 1.0, %v18251_v33  ;;  %18272 = vpow2.f32 %v2054_v22  ;;  %v2056_v35 = vmul.f32 1.442695, %v1769_v18  ;;  %15632 = vmatprep.subr.bf16.mxu1 %v16921_v23 }
 0x1b5   :  { %v18255_v55 = vpop.eup %18254  ;;  %18274 = vrcp.f32 %v2336_v14  ;;  %v2337_v6 = vadd.f32 1.0, %v18253_v20  ;;  %v2052_v30 = vmul.f32 1.442695, %v1767_v11  ;;  %v15536_v58 = vpop.f32.mrb[96].mxu0 }
 0x1b6   :  { %v19476_v24 = vpop.eup %18256  ;;  %18276 = vrcp.f32 %v2334_v41  ;;  %v2335_v21 = vadd.f32 1.0, %v18255_v55  ;;  %v1300_v52 = vadd.f32 %v19325_v38, %v15536_v58  ;;  %v1291_v50 = vpop.f32.mrb[97].mxu0  ;;  %15633 = vmatpush3.bf16.msra.mxu1 %v16921_v23 }
 0x1b7   :  { %23479 = vst [vmem:[#allocation69_spill] sm:$0xff] %v19476_v24  ;;  %v19482_v22 = vpop.eup %18258  ;;  %18278 = vrcp.f32 %v2337_v6  ;;  %v1292_v11 = vadd.f32 %v19325_v38, %v1291_v50  ;;  %v15537_v27 = vpop.f32.mrb[98].mxu0 }
 0x1b8   :  { %23480 = vst [vmem:[#allocation70_spill] sm:$0xff] %v19482_v22  ;;  %v19487_v18 = vpop.eup %18260  ;;  %18280 = vrcp.f32 %v2335_v21  ;;  %v1772_v29 = vsub.f32 0.0, %v1300_v52  ;;  %v1303_v33 = vadd.f32 %v19325_v38, %v15537_v27  ;;  %v1294_v20 = vpop.f32.mrb[99].mxu0  ;;  %v16922_v27 = vld [vmem:[%s23240_s3 + $0x50] sm:$0xff]  }
 0x1b9   :  { %23481 = vst [vmem:[#allocation71_spill] sm:$0xff] %v19487_v18  ;;  %v19492_v41 = vpop.eup %18262  ;;  %18282 = vpow2.f32 %v2050_v12  ;;  %v1770_v6 = vsub.f32 0.0, %v1292_v11  ;;  %v1295_v50 = vadd.f32 %v19325_v38, %v1294_v20  ;;  %15634 = vmatprep.subr.bf16.mxu1 %v16922_v27 }
 0x1ba   :  { %23482 = vst [vmem:[#allocation72_spill] sm:$0xff] %v19492_v41  ;;  %v18265_v14 = vpop.eup %18264  ;;  %18284 = vpow2.f32 %v2056_v35  ;;  %v2062_v21 = vmul.f32 1.442695, %v1772_v29  ;;  %v1773_v52 = vsub.f32 0.0, %v1303_v33  ;;  %15635 = vmatpush3.bf16.msra.mxu1 %v16922_v27 }
 0x1bb   :  { %v18267_v22 = vpop.eup %18266  ;;  %v2340_v47 = vadd.f32 1.0, %v18265_v14  ;;  %18286 = vpow2.f32 %v2052_v30  ;;  %v2058_v58 = vmul.f32 1.442695, %v1770_v6  ;;  %v1771_v12 = vsub.f32 0.0, %v1295_v50  ;;  %v16923_v30 = vld [vmem:[%s23240_s3 + $0x58] sm:$0xff]  }
 0x1bc   :  { %v18269_v11 = vpop.eup %18268  ;;  %v2338_v18 = vadd.f32 1.0, %v18267_v22  ;;  %18288 = vpow2.f32 %v2062_v21  ;;  %v2064_v23 = vmul.f32 1.442695, %v1773_v52  ;;  %15636 = vmatprep.subr.bf16.mxu1 %v16923_v30 }
 0x1bd   :  { %v18271_v20 = vpop.eup %18270  ;;  %18290 = vrcp.f32 %v2340_v47  ;;  %v2341_v55 = vadd.f32 1.0, %v18269_v11  ;;  %v2060_v35 = vmul.f32 1.442695, %v1771_v12  ;;  %v15540_v29 = vpop.f32.mrb[100].mxu0 }
 0x1be   :  { %v18273_v33 = vpop.eup %18272  ;;  %18292 = vrcp.f32 %v2338_v18  ;;  %v2339_v41 = vadd.f32 1.0, %v18271_v20  ;;  %v1316_v63 = vadd.f32 %v19325_v38, %v15540_v29  ;;  %v1307_v14 = vpop.f32.mrb[101].mxu0  ;;  %15637 = vmatpush3.bf16.msra.mxu1 %v16923_v30  ;;  %v19530_v30 = vld [vmem:[%s23239_s2] ss:$0 sm:$0xff] }
 0x1bf   :  { %v19506_v22 = vpop.eup %18274  ;;  %18294 = vrcp.f32 %v2341_v55  ;;  %v2344_v6 = vadd.f32 1.0, %v18273_v33  ;;  %v1308_v47 = vadd.f32 %v19325_v38, %v1307_v14  ;;  %v15541_v50 = vpop.f32.mrb[102].mxu0 }
 0x1c0   :  { %23483 = vst [vmem:[#allocation73_spill] sm:$0xff] %v19506_v22  ;;  %v19509_v21 = vpop.eup %18276  ;;  %18296 = vrcp.f32 %v2339_v41  ;;  %v1776_v52 = vsub.f32 0.0, %v1316_v63  ;;  %v1310_v27 = vpop.f32.mrb[103].mxu0  ;;  %v1319_v41 = vadd.f32 %v19325_v38, %v15541_v50  ;;  %v16924_v63 = vld [vmem:[%s23240_s3 + $0x60] sm:$0xff]  }
 0x1c1   :  { %23484 = vst [vmem:[#allocation74_spill] sm:$0xff] %v19509_v21  ;;  %v19513_v12 = vpop.eup %18278  ;;  %18298 = vrcp.f32 %v2344_v6  ;;  %v1774_v55 = vsub.f32 0.0, %v1308_v47  ;;  %v1311_v6 = vadd.f32 %v19530_v30, %v1310_v27  ;;  %15638 = vmatprep.subr.bf16.mxu1 %v16924_v63  ;;  %v16925_v27 = vld [vmem:[%s23240_s3 + $0x68] sm:$0xff]  }
 0x1c2   :  { %23485 = vst [vmem:[#allocation75_spill] sm:$0xff] %v19513_v12  ;;  %v19517_v20 = vpop.eup %18280  ;;  %18300 = vpow2.f32 %v2058_v58  ;;  %v2070_v33 = vmul.f32 1.442695, %v1776_v52  ;;  %15639 = vmatpush3.bf16.msra.mxu1 %v16924_v63  ;;  %v1777_v11 = vsub.f32 0.0, %v1319_v41 }
 0x1c3   :  { %23486 = vst [vmem:[#allocation76_spill] sm:$0xff] %v19517_v20  ;;  %v18283_v14 = vpop.eup %18282  ;;  %18302 = vpow2.f32 %v2064_v23  ;;  %v2066_v52 = vmul.f32 1.442695, %v1774_v55  ;;  %15640 = vmatprep.subr.bf16.mxu1 %v16925_v27 }
 0x1c4   :  { %v18285_v58 = vpop.eup %18284  ;;  %v2342_v47 = vadd.f32 1.0, %v18283_v14  ;;  %18304 = vpow2.f32 %v2060_v35  ;;  %v1775_v35 = vsub.f32 0.0, %v1311_v6  ;;  %v2072_v48 = vmul.f32 1.442695, %v1777_v11 }
 0x1c5   :  { %v18287_v38 = vpop.eup %18286  ;;  %v2345_v50 = vadd.f32 1.0, %v18285_v58  ;;  %18306 = vpow2.f32 %v2070_v33  ;;  %v15544_v29 = vpop.f32.mrb[104].mxu0 }
 0x1c6   :  { %v18289_v18 = vpop.eup %18288  ;;  %18308 = vrcp.f32 %v2342_v47  ;;  %v2343_v23 = vadd.f32 1.0, %v18287_v38  ;;  %v1332_v20 = vadd.f32 %v19530_v30, %v15544_v29  ;;  %v1323_v7 = vpop.f32.mrb[105].mxu0  ;;  %15641 = vmatpush3.bf16.msra.mxu1 %v16925_v27  ;;  %v2068_v61 = vmul.f32 1.442695, %v1775_v35 }
 0x1c7   :  { %v19537_v14 = vpop.eup %18290  ;;  %18310 = vrcp.f32 %v2345_v50  ;;  %v1324_v33 = vadd.f32 %v19530_v30, %v1323_v7  ;;  %v15545_v55 = vpop.f32.mrb[106].mxu0  ;;  %v2348_v21 = vadd.f32 1.0, %v18289_v18 }
 0x1c8   :  { %23487 = vst [vmem:[#allocation77_spill] sm:$0xff] %v19537_v14  ;;  %v19540_v58 = vpop.eup %18292  ;;  %18312 = vrcp.f32 %v2343_v23  ;;  %v1780_v41 = vsub.f32 0.0, %v1332_v20  ;;  %v1326_v29 = vpop.f32.mrb[107].mxu0  ;;  %v16926_v20 = vld [vmem:[%s23240_s3 + $0x70] sm:$0xff]   ;;  %v1335_v18 = vadd.f32 %v19530_v30, %v15545_v55 }
 0x1c9   :  { %23488 = vst [vmem:[#allocation78_spill] sm:$0xff] %v19540_v58  ;;  %v19544_v38 = vpop.eup %18294  ;;  %18314 = vpow2.f32 %v2066_v52  ;;  %v1778_v22 = vsub.f32 0.0, %v1324_v33  ;;  %v1327_v11 = vadd.f32 %v19530_v30, %v1326_v29  ;;  %15642 = vmatprep.subr.bf16.mxu1 %v16926_v20 }
 0x1ca   :  { %23490 = vst [vmem:[#allocation79_spill] sm:$0xff] %v19544_v38  ;;  %v19548_v6 = vpop.eup %18296  ;;  %v2078_v50 = vmul.f32 1.442695, %v1780_v41 }
 0x1cb   :  { %23492 = vst [vmem:[#allocation80_spill] sm:$0xff] %v19548_v6  ;;  %v19555_v23 = vpop.eup %18298 }
 0x1cc   :  { %23494 = vst [vmem:[#allocation81_spill] sm:$0xff] %v19555_v23  ;;  %v18301_v27 = vpop.eup %18300 }
 0x1cd   :  { %14 = vsyncpa [#allocation5], 0  ;;  %v18303_v52 = vpop.eup %18302  ;;  %18316 = vrcp.f32 %v2348_v21  ;;  %v15548_v33 = vpop.f32.mrb[108].mxu0  ;;  %15643 = vmatpush3.bf16.msra.mxu1 %v16926_v20  ;;  %v2074_v7 = vmul.f32 1.442695, %v1778_v22  ;;  %v16927_v55 = vld [vmem:[%s23240_s3 + $0x78] sm:$0xff]  }
 0x1ce   :  { %v18305_v38 = vpop.eup %18304  ;;  %18318 = vpow2.f32 %v2072_v48  ;;  %v1348_v35 = vadd.f32 %v19530_v30, %v15548_v33  ;;  %v1339_v14 = vpop.f32.mrb[109].mxu0  ;;  %v2346_v41 = vadd.f32 1.0, %v18301_v27  ;;  %v1781_v29 = vsub.f32 0.0, %v1335_v18  ;;  %15644 = vmatprep.subr.bf16.mxu1 %v16927_v55 }
 0x1cf   :  { %v18307_v12 = vpop.eup %18306  ;;  %18320 = vpow2.f32 %v2068_v61  ;;  %v1340_v23 = vadd.f32 %v19530_v30, %v1339_v14  ;;  %v15549_v58 = vpop.f32.mrb[110].mxu0  ;;  %v2349_v20 = vadd.f32 1.0, %v18303_v52  ;;  %v1779_v48 = vsub.f32 0.0, %v1327_v11 }
 0x1d0   :  { %v19568_v21 = vpop.eup %18308  ;;  %18322 = vpow2.f32 %v2078_v50  ;;  %v1351_v22 = vadd.f32 %v19530_v30, %v15549_v58  ;;  %v1342_v33 = vpop.f32.mrb[111].mxu0  ;;  %v2347_v27 = vadd.f32 1.0, %v18305_v38  ;;  %v1784_v61 = vsub.f32 0.0, %v1348_v35 }
 0x1d1   :  { %23497 = vst [vmem:[#allocation82_spill] sm:$0xff] %v19568_v21  ;;  %v19571_v6 = vpop.eup %18310  ;;  %v1343_v18 = vadd.f32 %v19530_v30, %v1342_v33  ;;  %15645 = vmatpush3.bf16.msra.mxu1 %v16927_v55  ;;  %v2352_v11 = vadd.f32 1.0, %v18307_v12  ;;  %18324 = vpow2.f32 %v2074_v7  ;;  %v1782_v58 = vsub.f32 0.0, %v1340_v23 }
 0x1d2   :  { %23498 = vst [vmem:[#allocation83_spill] sm:$0xff] %v19571_v6  ;;  %v19576_v14 = vpop.eup %18312  ;;  %18326 = vrcp.f32 %v2346_v41  ;;  %v2080_v56 = vmul.f32 1.442695, %v1781_v29  ;;  %v2076_v38 = vmul.f32 1.442695, %v1779_v48  ;;  %v1785_v35 = vsub.f32 0.0, %v1351_v22 }
 0x1d3   :  { %23499 = vst [vmem:[#allocation84_spill] sm:$0xff] %v19576_v14  ;;  %v18315_v24 = vpop.eup %18314  ;;  %18328 = vrcp.f32 %v2349_v20  ;;  %v2086_v33 = vmul.f32 1.442695, %v1784_v61  ;;  %v1783_v55 = vsub.f32 0.0, %v1343_v18  ;;  %v2082_v21 = vmul.f32 1.442695, %v1782_v58 }
 0x1d4   :  { %18330 = vrcp.f32 %v2347_v27  ;;  %v2350_v23 = vadd.f32 1.0, %v18315_v24  ;;  %v2088_v20 = vmul.f32 1.442695, %v1785_v35  ;;  %vm8005_vm0 = vcmask 1041409  }
 0x1d5   :  { %v15552_v47 = vpop.f32.mrb[112].mxu0  ;;  %18332 = vrcp.f32 %v2352_v11  ;;  %v2084_v18 = vmul.f32 1.442695, %v1783_v55  ;;  %vm13130_vm2 = vcmask 1041408  }
 0x1d6   :  { %v1364_v50 = vadd.f32 %v19530_v30, %v15552_v47  ;;  %v1355_v12 = vpop.f32.mrb[113].mxu0  ;;  %18334 = vpow2.f32 %v2080_v56 }
 0x1d7   :  { %v19583_v7 = vpop.eup %18316  ;;  %v1356_v41 = vadd.f32 %v19530_v30, %v1355_v12  ;;  %v15553_v29 = vpop.f32.mrb[114].mxu0  ;;  %18336 = vpow2.f32 %v2076_v38 }
 0x1d8   :  { %v18319_v34 = vpop.eup %18318  ;;  %v1788_v48 = vsub.f32 0.0, %v1364_v50  ;;  %v1367_v22 = vadd.f32 %v19530_v30, %v15553_v29  ;;  %v1358_v27 = vpop.f32.mrb[115].mxu0  ;;  %18338 = vpow2.f32 %v2086_v33 }
 0x1d9   :  { %v18321_v61 = vpop.eup %18320  ;;  %v1786_v11 = vsub.f32 0.0, %v1356_v41  ;;  %v1359_v47 = vadd.f32 %v19530_v30, %v1358_v27  ;;  %18340 = vpow2.f32 %v2082_v21  ;;  %v2353_v14 = vadd.f32 1.0, %v18319_v34 }
 0x1da   :  { %v18323_v58 = vpop.eup %18322  ;;  %v2094_v24 = vmul.f32 1.442695, %v1788_v48  ;;  %18342 = vrcp.f32 %v2350_v23  ;;  %v1789_v38 = vsub.f32 0.0, %v1367_v22  ;;  %v2351_v50 = vadd.f32 1.0, %v18321_v61 }
 0x1db   :  { %v2090_v56 = vmul.f32 1.442695, %v1786_v11  ;;  %v18325_v12 = vpop.eup %18324  ;;  %18344 = vpow2.f32 %v2088_v20  ;;  %v1787_v29 = vsub.f32 0.0, %v1359_v47  ;;  %v2356_v55 = vadd.f32 1.0, %v18323_v58 }
 0x1dc   :  { %v19588_v35 = vpop.eup %18326  ;;  %18346 = vpow2.f32 %v2084_v18  ;;  %v2354_v23 = vadd.f32 1.0, %v18325_v12  ;;  %v2096_v27 = vmul.f32 1.442695, %v1789_v38 }
 0x1dd   :  { %v15556_v63 = vpop.f32.mrb[116].mxu0  ;;  %v19590_v33 = vpop.eup %18328  ;;  %18348 = vpow2.f32 %v2094_v24  ;;  %v2092_v58 = vmul.f32 1.442695, %v1787_v29 }
 0x1de   :  { %v1380_v41 = vadd.f32 %v19530_v30, %v15556_v63  ;;  %v1371_v21 = vpop.f32.mrb[117].mxu0  ;;  %v19593_v48 = vpop.eup %18330  ;;  %18350 = vpow2.f32 %v2090_v56 }
 0x1df   :  { %v1372_v34 = vadd.f32 %v19530_v30, %v1371_v21  ;;  %v15557_v20 = vpop.f32.mrb[118].mxu0  ;;  %v19596_v22 = vpop.eup %18332  ;;  %18352 = vrcp.f32 %v2353_v14 }
 0x1e0   :  { %v1792_v61 = vsub.f32 0.0, %v1380_v41  ;;  %v1383_v18 = vadd.f32 %v19530_v30, %v15557_v20  ;;  %v1374_v11 = vpop.f32.mrb[119].mxu0  ;;  %v18335_v47 = vpop.eup %18334  ;;  %18354 = vrcp.f32 %v2351_v50 }
 0x1e1   :  { %v1790_v63 = vsub.f32 0.0, %v1372_v34  ;;  %v18337_v24 = vpop.eup %18336  ;;  %18356 = vrcp.f32 %v2356_v55  ;;  %v2357_v38 = vadd.f32 1.0, %v18335_v47  ;;  %v1375_v41 = vadd.f32 %v19530_v30, %v1374_v11 }
 0x1e2   :  { %v2102_v6 = vmul.f32 1.442695, %v1792_v61  ;;  %v1793_v12 = vsub.f32 0.0, %v1383_v18  ;;  %v18339_v56 = vpop.eup %18338  ;;  %18358 = vrcp.f32 %v2354_v23  ;;  %v2355_v29 = vadd.f32 1.0, %v18337_v24 }
 0x1e3   :  { %v2098_v21 = vmul.f32 1.442695, %v1790_v63  ;;  %v18341_v52 = vpop.eup %18340  ;;  %18360 = vpow2.f32 %v2096_v27  ;;  %v2360_v18 = vadd.f32 1.0, %v18339_v56  ;;  %v1791_v24 = vsub.f32 0.0, %v1375_v41 }
 0x1e4   :  { %v2104_v2 = vmul.f32 1.442695, %v1793_v12  ;;  %v19599_v14 = vpop.eup %18342  ;;  %18362 = vpow2.f32 %v2092_v58  ;;  %v2358_v12 = vadd.f32 1.0, %v18341_v52 }
 0x1e5   :  { %v15560_v20 = vpop.f32.mrb[120].mxu0  ;;  %v18345_v50 = vpop.eup %18344  ;;  %18364 = vpow2.f32 %v2102_v6 }
 0x1e6   :  { %v1396_v55 = vadd.f32 %v19530_v30, %v15560_v20  ;;  %v1387_v34 = vpop.f32.mrb[121].mxu0  ;;  %v18347_v61 = vpop.eup %18346  ;;  %18366 = vpow2.f32 %v2098_v21  ;;  %v2361_v37 = vadd.f32 1.0, %v18345_v50 }
 0x1e7   :  { %v1388_v23 = vadd.f32 %v19530_v30, %v1387_v34  ;;  %v15561_v27 = vpop.f32.mrb[122].mxu0  ;;  %v18349_v63 = vpop.eup %18348  ;;  %18368 = vpow2.f32 %v2104_v2  ;;  %v2359_v20 = vadd.f32 1.0, %v18347_v61 }
 0x1e8   :  { %v1399_v47 = vadd.f32 %v19530_v30, %v15561_v27  ;;  %v1390_v58 = vpop.f32.mrb[123].mxu0  ;;  %v18351_v11 = vpop.eup %18350  ;;  %18370 = vrcp.f32 %v2357_v38  ;;  %v1796_v59 = vsub.f32 0.0, %v1396_v55  ;;  %v2364_v21 = vadd.f32 1.0, %v18349_v63 }
 0x1e9   :  { %v19605_v6 = vpop.eup %18352  ;;  %18372 = vrcp.f32 %v2355_v29  ;;  %v1794_v34 = vsub.f32 0.0, %v1388_v23  ;;  %v2362_v2 = vadd.f32 1.0, %v18351_v11  ;;  %v2100_v38 = vmul.f32 1.442695, %v1791_v24 }
 0x1ea   :  { %v19607_v56 = vpop.eup %18354  ;;  %18374 = vrcp.f32 %v2360_v18  ;;  %v1797_v52 = vsub.f32 0.0, %v1399_v47  ;;  %v2110_v29 = vmul.f32 1.442695, %v1796_v59  ;;  %v1391_v55 = vadd.f32 %v19530_v30, %v1390_v58 }
 0x1eb   :  { %v19609_v49 = vpop.eup %18356  ;;  %18376 = vrcp.f32 %v2358_v12  ;;  %v2106_v18 = vmul.f32 1.442695, %v1794_v34 }
 0x1ec   :  { %v19611_v27 = vpop.eup %18358  ;;  %18378 = vrcp.f32 %v2361_v37  ;;  %v2112_v47 = vmul.f32 1.442695, %v1797_v52  ;;  %v1795_v36 = vsub.f32 0.0, %v1391_v55 }
 0x1ed   :  { %v15564_v41 = vpop.f32.mrb[124].mxu0  ;;  %v18361_v50 = vpop.eup %18360  ;;  %18380 = vrcp.f32 %v2359_v20 }
 0x1ee   :  { %v1403_v61 = vpop.f32.mrb[125].mxu0  ;;  %v18363_v42 = vpop.eup %18362  ;;  %18382 = vrcp.f32 %v2364_v21  ;;  %v1412_v23 = vadd.f32 %v19530_v30, %v15564_v41  ;;  %v2365_v3 = vadd.f32 1.0, %v18361_v50  ;;  %v2108_v55 = vmul.f32 1.442695, %v1795_v36 }
 0x1ef   :  { %v15565_v63 = vpop.f32.mrb[126].mxu0  ;;  %v18365_v12 = vpop.eup %18364  ;;  %18384 = vrcp.f32 %v2362_v2  ;;  %v1404_v11 = vadd.f32 %v19530_v30, %v1403_v61  ;;  %v2363_v58 = vadd.f32 1.0, %v18363_v42 }
 0x1f0   :  { %v1406_v37 = vpop.f32.mrb[127].mxu0  ;;  %v18367_v24 = vpop.eup %18366  ;;  %18386 = vpow2.f32 %v2100_v38  ;;  %v1415_v59 = vadd.f32 %v19530_v30, %v15565_v63  ;;  %v2368_v41 = vadd.f32 1.0, %v18365_v12  ;;  %v1800_v2 = vsub.f32 0.0, %v1412_v23 }
 0x1f1   :  { %v18369_v20 = vpop.eup %18368  ;;  %18388 = vpow2.f32 %v2110_v29  ;;  %v1407_v21 = vadd.f32 %v19530_v30, %v1406_v37  ;;  %v2366_v61 = vadd.f32 1.0, %v18367_v24  ;;  %v1798_v45 = vsub.f32 0.0, %v1404_v11 }
 0x1f2   :  { %v19618_v34 = vpop.eup %18370  ;;  %18390 = vpow2.f32 %v2106_v18  ;;  %v2369_v38 = vadd.f32 1.0, %v18369_v20  ;;  %v1801_v63 = vsub.f32 0.0, %v1415_v59  ;;  %v2118_v24 = vmul.f32 1.442695, %v1800_v2 }
 0x1f3   :  { %v19620_v52 = vpop.eup %18372  ;;  %18392 = vpow2.f32 %v2112_v47  ;;  %v1799_v37 = vsub.f32 0.0, %v1407_v21 }
 0x1f4   :  { %v19622_v50 = vpop.eup %18374  ;;  %18394 = vrcp.f32 %v2365_v3  ;;  %v2114_v3 = vmul.f32 1.442695, %v1798_v45  ;;  %v2120_v21 = vmul.f32 1.442695, %v1801_v63  ;;  %v19641_v45 = vld [vmem:[%s23240_s3] sm:$0xff]  }
 0x1f5   :  { %v15568_v42 = vpop.f32.mrb[128].mxu0  ;;  %v19624_v29 = vpop.eup %18376  ;;  %18396 = vrcp.f32 %v2363_v58  ;;  %v2116_v2 = vmul.f32 1.442695, %v1799_v37  ;;  %15662 = vmatprep.subr.bf16.mxu1 %v19641_v45 }
 0x1f6   :  { %v1428_v12 = vadd.f32 %v19530_v30, %v15568_v42  ;;  %v1419_v18 = vpop.f32.mrb[129].mxu0  ;;  %v19627_v23 = vpop.eup %18378  ;;  %18398 = vrcp.f32 %v2368_v41 }
 0x1f7   :  { %v1420_v47 = vadd.f32 %v19530_v30, %v1419_v18  ;;  %v15569_v11 = vpop.f32.mrb[130].mxu0  ;;  %v19630_v4 = vpop.eup %18380  ;;  %18400 = vrcp.f32 %v2366_v61 }
 0x1f8   :  { %v1804_v59 = vsub.f32 0.0, %v1428_v12  ;;  %v1431_v20 = vadd.f32 %v19530_v30, %v15569_v11  ;;  %v1422_v58 = vpop.f32.mrb[131].mxu0  ;;  %v19633_v36 = vpop.eup %18382  ;;  %18402 = vrcp.f32 %v2369_v38 }
 0x1f9   :  { %v1802_v42 = vsub.f32 0.0, %v1420_v47  ;;  %v1423_v0 = vadd.f32 %v19530_v30, %v1422_v58  ;;  %v19636_v41 = vpop.eup %18384  ;;  %18404 = vpow2.f32 %v2108_v55 }
 0x1fa   :  { %v1805_v18 = vsub.f32 0.0, %v1431_v20  ;;  %v18387_v61 = vpop.eup %18386  ;;  %18406 = vpow2.f32 %v2118_v24  ;;  %v2126_v12 = vmul.f32 1.442695, %v1804_v59 }
 0x1fb   :  { %v1803_v11 = vsub.f32 0.0, %v1423_v0  ;;  %v18389_v57 = vpop.eup %18388  ;;  %18408 = vpow2.f32 %v2114_v3  ;;  %v2122_v38 = vmul.f32 1.442695, %v1802_v42  ;;  %v2367_v24 = vadd.f32 1.0, %v18387_v61 }
 0x1fc   :  { %v18391_v63 = vpop.eup %18390  ;;  %18410 = vpow2.f32 %v2120_v21  ;;  %v2128_v47 = vmul.f32 1.442695, %v1805_v18  ;;  %v2372_v42 = vadd.f32 1.0, %v18389_v57 }
 0x1fd   :  { %v15572_v55 = vpop.f32.mrb[132].mxu0  ;;  %v18393_v37 = vpop.eup %18392  ;;  %18412 = vpow2.f32 %v2116_v2  ;;  %v2124_v20 = vmul.f32 1.442695, %v1803_v11  ;;  %v2370_v11 = vadd.f32 1.0, %v18391_v63 }
 0x1fe   :  { %v1444_v58 = vadd.f32 %v19530_v30, %v15572_v55  ;;  %v1435_v60 = vpop.f32.mrb[133].mxu0  ;;  %v19645_v43 = vpop.eup %18394  ;;  %18414 = vpow2.f32 %v2126_v12  ;;  %v2373_v12 = vadd.f32 1.0, %v18393_v37 }
 0x1ff   :  { %v1436_v0 = vadd.f32 %v19530_v30, %v1435_v60  ;;  %v15573_v3 = vpop.f32.mrb[134].mxu0  ;;  %v19648_v59 = vpop.eup %18396  ;;  %18416 = vpow2.f32 %v2122_v38 }
 0x200   :  { %23502 = vst [vmem:[#allocation85_spill] sm:$0xff] %v19648_v59  ;;  %v1808_v21 = vsub.f32 0.0, %v1444_v58  ;;  %v1447_v18 = vadd.f32 %v19530_v30, %v15573_v3  ;;  %v1438_v17 = vpop.f32.mrb[135].mxu0  ;;  %v19651_v2 = vpop.eup %18398  ;;  %18418 = vpow2.f32 %v2128_v47 }
 0x201   :  { %23503 = vst [vmem:[#allocation86_spill] sm:$0xff] %v19651_v2  ;;  %v1806_v55 = vsub.f32 0.0, %v1436_v0  ;;  %v1439_v5 = vadd.f32 %v19530_v30, %v1438_v17  ;;  %v19654_v61 = vpop.eup %18400  ;;  %18420 = vpow2.f32 %v2124_v20 }
 0x202   :  { %23504 = vst [vmem:[#allocation87_spill] sm:$0xff] %v19654_v61  ;;  %v1809_v60 = vsub.f32 0.0, %v1447_v18  ;;  %v19656_v10 = vpop.eup %18402  ;;  %18422 = vrcp.f32 %v2367_v24  ;;  %v2134_v57 = vmul.f32 1.442695, %v1808_v21 }
 0x203   :  { %23505 = vst [vmem:[#allocation88_spill] sm:$0xff] %v19656_v10  ;;  %v1807_v38 = vsub.f32 0.0, %v1439_v5  ;;  %v18405_v58 = vpop.eup %18404  ;;  %18424 = vrcp.f32 %v2372_v42  ;;  %v2130_v3 = vmul.f32 1.442695, %v1806_v55 }
 0x204   :  { %v18407_v1 = vpop.eup %18406  ;;  %18426 = vrcp.f32 %v2370_v11  ;;  %v2136_v63 = vmul.f32 1.442695, %v1809_v60  ;;  %v2371_v37 = vadd.f32 1.0, %v18405_v58 }
 0x205   :  { %v15576_v47 = vpop.f32.mrb[136].mxu0  ;;  %v18409_v0 = vpop.eup %18408  ;;  %18428 = vrcp.f32 %v2373_v12  ;;  %v2132_v17 = vmul.f32 1.442695, %v1807_v38  ;;  %v2376_v10 = vadd.f32 1.0, %v18407_v1 }
 0x206   :  { %v1451_v2 = vpop.f32.mrb[137].mxu0  ;;  %v18411_v61 = vpop.eup %18410  ;;  %18430 = vpow2.f32 %v2134_v57  ;;  %v1460_v5 = vadd.f32 %v19530_v30, %v15576_v47  ;;  %v2374_v21 = vadd.f32 1.0, %v18409_v0 }
 0x207   :  { %v15577_v20 = vpop.f32.mrb[138].mxu0  ;;  %v18413_v18 = vpop.eup %18412  ;;  %18432 = vpow2.f32 %v2130_v3  ;;  %v1452_v11 = vadd.f32 %v19530_v30, %v1451_v2  ;;  %v2377_v60 = vadd.f32 1.0, %v18411_v61 }
 0x208   :  { %v1454_v24 = vpop.f32.mrb[139].mxu0  ;;  %v18415_v42 = vpop.eup %18414  ;;  %18434 = vpow2.f32 %v2136_v63  ;;  %v1463_v12 = vadd.f32 %v19530_v30, %v15577_v20  ;;  %v2375_v57 = vadd.f32 1.0, %v18413_v18  ;;  %v1812_v47 = vsub.f32 0.0, %v1460_v5 }
 0x209   :  { %v18417_v55 = vpop.eup %18416  ;;  %18436 = vpow2.f32 %v2132_v17  ;;  %v1455_v58 = vadd.f32 %v19530_v30, %v1454_v24  ;;  %v2380_v3 = vadd.f32 1.0, %v18415_v42  ;;  %v1810_v0 = vsub.f32 0.0, %v1452_v11 }
 0x20a   :  { %v18419_v38 = vpop.eup %18418  ;;  %18438 = vrcp.f32 %v2371_v37  ;;  %v2378_v63 = vadd.f32 1.0, %v18417_v55  ;;  %v1813_v17 = vsub.f32 0.0, %v1463_v12  ;;  %v2142_v5 = vmul.f32 1.442695, %v1812_v47 }
 0x20b   :  { %v18421_v1 = vpop.eup %18420  ;;  %18440 = vrcp.f32 %v2376_v10  ;;  %v2381_v61 = vadd.f32 1.0, %v18419_v38  ;;  %v1811_v24 = vsub.f32 0.0, %v1455_v58  ;;  %v2138_v11 = vmul.f32 1.442695, %v1810_v0 }
 0x20c   :  { %v19662_v40 = vpop.eup %18422  ;;  %18442 = vrcp.f32 %v2374_v21  ;;  %v2379_v18 = vadd.f32 1.0, %v18421_v1  ;;  %v2144_v12 = vmul.f32 1.442695, %v1813_v17 }
 0x20d   :  { %v15580_v2 = vpop.f32.mrb[140].mxu0  ;;  %v19664_v59 = vpop.eup %18424  ;;  %18444 = vrcp.f32 %v2377_v60 }
 0x20e   :  { %23506 = vst [vmem:[#allocation89_spill] sm:$0xff] %v19664_v59  ;;  %v1467_v20 = vpop.f32.mrb[141].mxu0  ;;  %v19666_v37 = vpop.eup %18426  ;;  %18446 = vrcp.f32 %v2375_v57  ;;  %v1476_v59 = vadd.f32 %v19530_v30, %v15580_v2  ;;  %v2140_v57 = vmul.f32 1.442695, %v1811_v24 }
 0x20f   :  { %23507 = vst [vmem:[#allocation90_spill] sm:$0xff] %v19666_v37  ;;  %v15581_v10 = vpop.f32.mrb[142].mxu0  ;;  %v19668_v42 = vpop.eup %18428  ;;  %18448 = vrcp.f32 %v2380_v3  ;;  %v1468_v38 = vadd.f32 %v19530_v30, %v1467_v20 }
 0x210   :  { %23508 = vst [vmem:[#allocation91_spill] sm:$0xff] %v19668_v42  ;;  %v1470_v21 = vpop.f32.mrb[143].mxu0  ;;  %v18431_v55 = vpop.eup %18430  ;;  %18450 = vrcp.f32 %v2378_v63  ;;  %v1479_v58 = vadd.f32 %v19530_v30, %v15581_v10  ;;  %v1816_v0 = vsub.f32 0.0, %v1476_v59 }
 0x211   :  { %v18433_v60 = vpop.eup %18432  ;;  %18452 = vrcp.f32 %v2381_v61  ;;  %v2384_v42 = vadd.f32 1.0, %v18431_v55  ;;  %v1471_v3 = vadd.f32 %v19530_v30, %v1470_v21  ;;  %v1814_v20 = vsub.f32 0.0, %v1468_v38 }
 0x212   :  { %v18435_v37 = vpop.eup %18434  ;;  %18454 = vrcp.f32 %v2379_v18  ;;  %v2382_v63 = vadd.f32 1.0, %v18433_v60 }
 0x213   :  { %v18437_v1 = vpop.eup %18436  ;;  %18456 = vpow2.f32 %v2142_v5  ;;  %v2385_v17 = vadd.f32 1.0, %v18435_v37  ;;  %v1817_v5 = vsub.f32 0.0, %v1479_v58  ;;  %v1815_v59 = vsub.f32 0.0, %v1471_v3 }
 0x214   :  { %v19674_v47 = vpop.eup %18438  ;;  %18458 = vpow2.f32 %v2138_v11  ;;  %v2383_v55 = vadd.f32 1.0, %v18437_v1  ;;  %v2146_v58 = vmul.f32 1.442695, %v1814_v20 }
 0x215   :  { %23509 = vst [vmem:[#allocation92_spill] sm:$0xff] %v19674_v47  ;;  %v15584_v2 = vpop.f32.mrb[144].mxu0  ;;  %v19676_v61 = vpop.eup %18440  ;;  %18460 = vpow2.f32 %v2144_v12 }
 0x216   :  { %23510 = vst [vmem:[#allocation93_spill] sm:$0xff] %v19676_v61  ;;  %v1492_v18 = vadd.f32 %v19530_v30, %v15584_v2  ;;  %v1483_v24 = vpop.f32.mrb[145].mxu0  ;;  %v19679_v10 = vpop.eup %18442  ;;  %18462 = vpow2.f32 %v2140_v57  ;;  %v2150_v2 = vmul.f32 1.442695, %v1816_v0 }
 0x217   :  { %23511 = vst [vmem:[#allocation94_spill] sm:$0xff] %v19679_v10  ;;  %v1484_v21 = vadd.f32 %v19530_v30, %v1483_v24  ;;  %v15585_v47 = vpop.f32.mrb[146].mxu0  ;;  %v19682_v60 = vpop.eup %18444  ;;  %18464 = vrcp.f32 %v2384_v42  ;;  %v2152_v42 = vmul.f32 1.442695, %v1817_v5 }
 0x218   :  { %23512 = vst [vmem:[#allocation95_spill] sm:$0xff] %v19682_v60  ;;  %v1820_v11 = vsub.f32 0.0, %v1492_v18  ;;  %v1495_v37 = vadd.f32 %v19530_v30, %v15585_v47  ;;  %v1486_v12 = vpop.f32.mrb[147].mxu0  ;;  %v19685_v38 = vpop.eup %18446  ;;  %18466 = vrcp.f32 %v2382_v63  ;;  %v2148_v18 = vmul.f32 1.442695, %v1815_v59 }
 0x219   :  { %v1818_v61 = vsub.f32 0.0, %v1484_v21  ;;  %v1487_v1 = vadd.f32 %v19530_v30, %v1486_v12  ;;  %v19688_v57 = vpop.eup %18448  ;;  %18468 = vrcp.f32 %v2385_v17 }
 0x21a   :  { %23513 = vst [vmem:[#allocation96_spill] sm:$0xff] %v19688_v57  ;;  %v2158_v24 = vmul.f32 1.442695, %v1820_v11  ;;  %v1821_v10 = vsub.f32 0.0, %v1495_v37  ;;  %v19690_v60 = vpop.eup %18450  ;;  %18470 = vrcp.f32 %v2383_v55 }
 0x21b   :  { %23514 = vst [vmem:[#allocation97_spill] sm:$0xff] %v19690_v60  ;;  %v1819_v3 = vsub.f32 0.0, %v1487_v1  ;;  %v19692_v47 = vpop.eup %18452  ;;  %v2154_v0 = vmul.f32 1.442695, %v1818_v61 }
 0x21c   :  { %23515 = vst [vmem:[#allocation98_spill] sm:$0xff] %v19692_v47  ;;  %18472 = vpow2.f32 %v2158_v24  ;;  %v19694_v63 = vpop.eup %18454  ;;  %v2160_v17 = vmul.f32 1.442695, %v1821_v10 }
 0x21d   :  { %23516 = vst [vmem:[#allocation99_spill] sm:$0xff] %v19694_v63  ;;  %18474 = vpow2.f32 %v2150_v2  ;;  %v15588_v21 = vpop.f32.mrb[148].mxu0  ;;  %v18457_v12 = vpop.eup %18456  ;;  %v2156_v55 = vmul.f32 1.442695, %v1819_v3 }
 0x21e   :  { %18476 = vpow2.f32 %v2146_v58  ;;  %v1508_v20 = vadd.f32 %v19530_v30, %v15588_v21  ;;  %v1499_v11 = vpop.f32.mrb[149].mxu0  ;;  %v18459_v37 = vpop.eup %18458  ;;  %v2388_v63 = vadd.f32 1.0, %v18457_v12 }
 0x21f   :  { %18478 = vpow2.f32 %v2152_v42  ;;  %v1500_v5 = vadd.f32 %v19530_v30, %v1499_v11  ;;  %v15589_v1 = vpop.f32.mrb[150].mxu0  ;;  %v18461_v47 = vpop.eup %18460  ;;  %v2386_v21 = vadd.f32 1.0, %v18459_v37 }
 0x220   :  { %18480 = vpow2.f32 %v2148_v18  ;;  %v1824_v59 = vsub.f32 0.0, %v1508_v20  ;;  %v1511_v24 = vadd.f32 %v19530_v30, %v15589_v1  ;;  %v1502_v2 = vpop.f32.mrb[151].mxu0  ;;  %v18463_v61 = vpop.eup %18462  ;;  %v2389_v11 = vadd.f32 1.0, %v18461_v47 }
 0x221   :  { %18482 = vpow2.f32 %v2154_v0  ;;  %v1503_v10 = vadd.f32 %v19530_v30, %v1502_v2  ;;  %v19700_v58 = vpop.eup %18464  ;;  %v1822_v3 = vsub.f32 0.0, %v1500_v5  ;;  %v2387_v1 = vadd.f32 1.0, %v18463_v61 }
 0x222   :  { %23517 = vst [vmem:[#allocation100_spill] sm:$0xff] %v19700_v58  ;;  %18484 = vpow2.f32 %v2160_v17  ;;  %v2166_v42 = vmul.f32 1.442695, %v1824_v59  ;;  %v19702_v60 = vpop.eup %18466  ;;  %v1825_v18 = vsub.f32 0.0, %v1511_v24 }
 0x223   :  { %23518 = vst [vmem:[#allocation101_spill] sm:$0xff] %v19702_v60  ;;  %18486 = vpow2.f32 %v2156_v55  ;;  %v19704_v20 = vpop.eup %18468  ;;  %v1823_v57 = vsub.f32 0.0, %v1503_v10  ;;  %v2162_v37 = vmul.f32 1.442695, %v1822_v3 }
 0x224   :  { %23519 = vst [vmem:[#allocation102_spill] sm:$0xff] %v19704_v20  ;;  %18488 = vpow2.f32 %v2166_v42  ;;  %v19706_v12 = vpop.eup %18470  ;;  %v2168_v55 = vmul.f32 1.442695, %v1825_v18 }
 0x225   :  { %23520 = vst [vmem:[#allocation103_spill] sm:$0xff] %v19706_v12  ;;  %18490 = vrcp.f32 %v2388_v63  ;;  %v15592_v0 = vpop.f32.mrb[152].mxu0  ;;  %v2164_v10 = vmul.f32 1.442695, %v1823_v57 }
 0x226   :  { %v18473_v2 = vpop.eup %18472  ;;  %18492 = vrcp.f32 %v2386_v21  ;;  %v1524_v17 = vadd.f32 %v19530_v30, %v15592_v0  ;;  %v1515_v5 = vpop.f32.mrb[153].mxu0 }
 0x227   :  { %v19709_v59 = vpop.eup %18474  ;;  %18494 = vrcp.f32 %v2389_v11  ;;  %v2396_v47 = vadd.f32 1.0, %v18473_v2  ;;  %v1516_v24 = vadd.f32 %v19530_v30, %v1515_v5  ;;  %v15593_v61 = vpop.f32.mrb[154].mxu0 }
 0x228   :  { %v19712_v42 = vpop.eup %18476  ;;  %18496 = vrcp.f32 %v2387_v1  ;;  %v1828_v63 = vsub.f32 0.0, %v1524_v17  ;;  %v1527_v12 = vadd.f32 %v19530_v30, %v15593_v61  ;;  %v1518_v21 = vpop.f32.mrb[155].mxu0 }
 0x229   :  { %23521 = vst [vmem:[#allocation104_spill] sm:$0xff] %v19712_v42  ;;  %v19715_v3 = vpop.eup %18478  ;;  %18498 = vrcp.f32 %v2396_v47  ;;  %v1519_v0 = vadd.f32 %v19530_v30, %v1518_v21  ;;  %v1826_v18 = vsub.f32 0.0, %v1516_v24  ;;  %v23529_v42 = vld [vmem:[#allocation43_spill] sm:$0xff] }
 0x22a   :  { %23522 = vst [vmem:[#allocation105_spill] sm:$0xff] %v19715_v3  ;;  %v19718_v20 = vpop.eup %18480  ;;  %18500 = vpow2.f32 %v2162_v37  ;;  %v2174_v11 = vmul.f32 1.442695, %v1828_v63  ;;  %v1829_v5 = vsub.f32 0.0, %v1527_v12 }
 0x22b   :  { %23523 = vst [vmem:[#allocation106_spill] sm:$0xff] %v19718_v20  ;;  %v18483_v2 = vpop.eup %18482  ;;  %18502 = vpow2.f32 %v2168_v55  ;;  %v1827_v57 = vsub.f32 0.0, %v1519_v0  ;;  %v2170_v21 = vmul.f32 1.442695, %v1826_v18  ;;  %v19729_v18 = vld [vmem:[%s23239_s2] ss:$0 sm:$0xff] }
 0x22c   :  { %v18485_v60 = vpop.eup %18484  ;;  %v2394_v1 = vadd.f32 1.0, %v18483_v2  ;;  %18504 = vpow2.f32 %v2164_v10  ;;  %v2176_v12 = vmul.f32 1.442695, %v1829_v5 }
 0x22d   :  { %v18487_v17 = vpop.eup %18486  ;;  %v2397_v61 = vadd.f32 1.0, %v18485_v60  ;;  %18506 = vpow2.f32 %v2174_v11  ;;  %v15596_v58 = vpop.f32.mrb[156].mxu0  ;;  %v2172_v60 = vmul.f32 1.442695, %v1827_v57 }
 0x22e   :  { %v18489_v3 = vpop.eup %18488  ;;  %18508 = vrcp.f32 %v2394_v1  ;;  %v2395_v47 = vadd.f32 1.0, %v18487_v17  ;;  %v1540_v20 = vadd.f32 %v19530_v30, %v15596_v58  ;;  %v1531_v37 = vpop.f32.mrb[157].mxu0 }
 0x22f   :  { %v19721_v63 = vpop.eup %18490  ;;  %18510 = vrcp.f32 %v2397_v61  ;;  %v2400_v55 = vadd.f32 1.0, %v18489_v3  ;;  %v1532_v24 = vadd.f32 %v19530_v30, %v1531_v37  ;;  %v15597_v10 = vpop.f32.mrb[158].mxu0 }
 0x230   :  { %23524 = vst [vmem:[#allocation107_spill] sm:$0xff] %v19721_v63  ;;  %v19724_v0 = vpop.eup %18492  ;;  %18512 = vrcp.f32 %v2395_v47  ;;  %v1832_v11 = vsub.f32 0.0, %v1540_v20  ;;  %v1543_v58 = vadd.f32 %v19729_v18, %v15597_v10  ;;  %v1534_v2 = vpop.f32.mrb[159].mxu0 }
 0x231   :  { %23525 = vst [vmem:[#allocation108_spill] sm:$0xff] %v19724_v0  ;;  %v19732_v1 = vpop.eup %18494  ;;  %18514 = vrcp.f32 %v2400_v55  ;;  %v1830_v3 = vsub.f32 0.0, %v1532_v24  ;;  %v1535_v30 = vadd.f32 %v19729_v18, %v1534_v2  ;;  %v23528_v2 = vld [vmem:[#allocation7_spill] sm:$0xff] }
 0x232   :  { %23526 = vst [vmem:[#allocation109_spill] sm:$0xff] %v19732_v1  ;;  %v19735_v5 = vpop.eup %18496  ;;  %18516 = vpow2.f32 %v2170_v21  ;;  %v2182_v17 = vmul.f32 1.442695, %v1832_v11  ;;  %v1833_v57 = vsub.f32 0.0, %v1543_v58 }
 0x233   :  { %23527 = vst [vmem:[#allocation110_spill] sm:$0xff] %v19735_v5  ;;  %v18499_v20 = vpop.eup %18498  ;;  %18518 = vpow2.f32 %v2176_v12  ;;  %v2178_v61 = vmul.f32 1.442695, %v1830_v3  ;;  %v1831_v47 = vsub.f32 0.0, %v1535_v30  ;;  %v23530_v5 = vmax.f32 %v23528_v2, %v23529_v42 }
 0x234   :  { %v18501_v37 = vpop.eup %18500  ;;  %v2684_v0 = vmax.f32 %v19583_v7, %v18499_v20  ;;  %18520 = vpow2.f32 %v2172_v60  ;;  %v2184_v55 = vmul.f32 1.442695, %v1833_v57 }
 0x235   :  { %v18503_v10 = vpop.eup %18502  ;;  %v2398_v63 = vadd.f32 1.0, %v18501_v37  ;;  %18522 = vpow2.f32 %v2182_v17  ;;  %v15600_v24 = vpop.f32.mrb[160].mxu0  ;;  %v2180_v7 = vmul.f32 1.442695, %v1831_v47 }
 0x236   :  { %v18505_v1 = vpop.eup %18504  ;;  %v2732_v21 = vmax.f32 %v23530_v5, %v2684_v0  ;;  %v2401_v11 = vadd.f32 1.0, %v18503_v10  ;;  %18524 = vpow2.f32 %v2178_v61  ;;  %v1556_v12 = vadd.f32 %v19729_v18, %v15600_v24  ;;  %v1547_v58 = vpop.f32.mrb[161].mxu0 }
 0x237   :  { %v18507_v3 = vpop.eup %18506  ;;  %18526 = vrcp.f32 %v2398_v63  ;;  %v2399_v30 = vadd.f32 1.0, %v18505_v1  ;;  %v1548_v60 = vadd.f32 %v19729_v18, %v1547_v58  ;;  %v15601_v20 = vpop.f32.mrb[162].mxu0 }
 0x238   :  { %v18509_v17 = vpop.eup %18508  ;;  %2780 = vst [vmem:[#allocation2 + $0x10] sm:$0xff] %v2732_v21  ;;  %18528 = vrcp.f32 %v2401_v11  ;;  %v2404_v57 = vadd.f32 1.0, %v18507_v3  ;;  %v1836_v37 = vsub.f32 0.0, %v1556_v12  ;;  %v1559_v42 = vadd.f32 %v19729_v18, %v15601_v20  ;;  %v1550_v0 = vpop.f32.mrb[163].mxu0 }
 0x239   :  { %v18511_v5 = vpop.eup %18510  ;;  %v2682_v61 = vmax.f32 %v19588_v35, %v18509_v17  ;;  %18530 = vrcp.f32 %v2399_v30  ;;  %v1834_v10 = vsub.f32 0.0, %v1548_v60  ;;  %v1551_v63 = vadd.f32 %v19729_v18, %v1550_v0  ;;  %v23535_v0 = vld [vmem:[#allocation8_spill] sm:$0xff] }
 0x23a   :  { %v18513_v1 = vpop.eup %18512  ;;  %v2685_v47 = vmax.f32 %v19590_v33, %v18511_v5  ;;  %18532 = vrcp.f32 %v2404_v57  ;;  %v2190_v24 = vmul.f32 1.442695, %v1836_v37  ;;  %v1837_v2 = vsub.f32 0.0, %v1559_v42  ;;  %v23533_v57 = vld [vmem:[#allocation44_spill] sm:$0xff]  ;;  %v23536_v5 = vld [vmem:[#allocation45_spill] sm:$0xff] }
 0x23b   :  { %v18515_v21 = vpop.eup %18514  ;;  %v23531_v11 = vmax.f32 %v19071_v39, %v19294_v9  ;;  %v2683_v58 = vmax.f32 %v19593_v48, %v18513_v1  ;;  %18534 = vpow2.f32 %v2184_v55  ;;  %v2186_v3 = vmul.f32 1.442695, %v1834_v10 }
 0x23c   :  { %v18517_v35 = vpop.eup %18516  ;;  %v23532_v30 = vmax.f32 %v19074_v46, %v19297_v15  ;;  %v2688_v20 = vmax.f32 %v19596_v22, %v18515_v21  ;;  %18536 = vpow2.f32 %v2180_v7  ;;  %v2192_v33 = vmul.f32 1.442695, %v1837_v2 }
 0x23d   :  { %v2730_v12 = vmax.f32 %v23531_v11, %v2682_v61  ;;  %v18519_v17 = vpop.eup %18518  ;;  %v23534_v37 = vmax.f32 %v19076_v51, %v23533_v57  ;;  %v2402_v9 = vadd.f32 1.0, %v18517_v35  ;;  %18538 = vpow2.f32 %v2190_v24  ;;  %v15604_v55 = vpop.f32.mrb[164].mxu0 }
 0x23e   :  { %v2733_v60 = vmax.f32 %v23532_v30, %v2685_v47  ;;  %v1835_v48 = vsub.f32 0.0, %v1551_v63  ;;  %v18521_v42 = vpop.eup %18520  ;;  %v23537_v46 = vmax.f32 %v23535_v0, %v23536_v5  ;;  %v2405_v61 = vadd.f32 1.0, %v18519_v17  ;;  %v1563_v7 = vpop.f32.mrb[165].mxu0  ;;  %v23539_v0 = vld [vmem:[#allocation46_spill] sm:$0xff] }
 0x23f   :  { %2778 = vst [vmem:[#allocation2] sm:$0xff] %v2730_v12  ;;  %v2731_v39 = vmax.f32 %v23534_v37, %v2683_v58  ;;  %18540 = vpow2.f32 %v2186_v3  ;;  %v1572_v22 = vadd.f32 %v19729_v18, %v15604_v55  ;;  %v18523_v10 = vpop.eup %18522  ;;  %v2403_v51 = vadd.f32 1.0, %v18521_v42  ;;  %v15605_v63 = vpop.f32.mrb[166].mxu0  ;;  %v23538_v42 = vld [vmem:[#allocation9_spill] sm:$0xff] }
 0x240   :  { %2781 = vst [vmem:[#allocation2 + $0x18] sm:$0xff] %v2733_v60  ;;  %v2736_v15 = vmax.f32 %v23537_v46, %v2688_v20  ;;  %18542 = vrcp.f32 %v2402_v9  ;;  %v2188_v1 = vmul.f32 1.442695, %v1835_v48  ;;  %v1564_v47 = vadd.f32 %v19729_v18, %v1563_v7  ;;  %v18525_v24 = vpop.eup %18524  ;;  %v1566_v12 = vpop.f32.mrb[167].mxu0 }
 0x241   :  { %2779 = vst [vmem:[#allocation2 + $0x8] sm:$0xff] %v2731_v39  ;;  %18544 = vrcp.f32 %v2405_v61  ;;  %v2408_v2 = vadd.f32 1.0, %v18523_v10  ;;  %v1840_v21 = vsub.f32 0.0, %v1572_v22  ;;  %v1575_v11 = vadd.f32 %v19729_v18, %v15605_v63  ;;  %v18527_v58 = vpop.eup %18526 }
 0x242   :  { %2784 = vst [vmem:[#allocation2 + $0x30] sm:$0xff] %v2736_v15  ;;  %18546 = vrcp.f32 %v2403_v51  ;;  %v2406_v3 = vadd.f32 1.0, %v18525_v24  ;;  %v1838_v35 = vsub.f32 0.0, %v1564_v47  ;;  %v1567_v30 = vadd.f32 %v19729_v18, %v1566_v12  ;;  %v18529_v60 = vpop.eup %18528  ;;  %v23542_v24 = vld [vmem:[#allocation47_spill] sm:$0xff] }
 0x243   :  { %v2686_v20 = vmax.f32 %v19599_v14, %v18527_v58  ;;  %18548 = vrcp.f32 %v2408_v2  ;;  %v2198_v17 = vmul.f32 1.442695, %v1840_v21  ;;  %v1841_v57 = vsub.f32 0.0, %v1575_v11  ;;  %v18531_v37 = vpop.eup %18530 }
 0x244   :  { %v2689_v39 = vmax.f32 %v19605_v6, %v18529_v60  ;;  %18550 = vrcp.f32 %v2406_v3  ;;  %v2194_v9 = vmul.f32 1.442695, %v1838_v35  ;;  %v1839_v48 = vsub.f32 0.0, %v1567_v30  ;;  %v18533_v55 = vpop.eup %18532 }
 0x245   :  { %v23540_v5 = vmax.f32 %v23538_v42, %v23539_v0  ;;  %v2687_v15 = vmax.f32 %v19607_v56, %v18531_v37  ;;  %18552 = vpow2.f32 %v2192_v33  ;;  %v2200_v61 = vmul.f32 1.442695, %v1841_v57  ;;  %v18535_v22 = vpop.eup %18534  ;;  %v15608_v51 = vpop.f32.mrb[168].mxu0 }
 0x246   :  { %v23541_v14 = vmax.f32 %v19092_v13, %v19330_v32  ;;  %v2692_v10 = vmax.f32 %v19609_v49, %v18533_v55  ;;  %18554 = vpow2.f32 %v2188_v1  ;;  %v2196_v6 = vmul.f32 1.442695, %v1839_v48  ;;  %v18537_v63 = vpop.eup %18536  ;;  %v1579_v12 = vpop.f32.mrb[169].mxu0  ;;  %v23544_v32 = vld [vmem:[#allocation10_spill] sm:$0xff]  ;;  %v23545_v49 = vld [vmem:[#allocation48_spill] sm:$0xff] }
 0x247   :  { %v2734_v46 = vmax.f32 %v23540_v5, %v2686_v20  ;;  %v2867_v47 = vld [vmem:[#allocation2 + $0x11] sm:$0xff]  ;;  %v23543_v2 = vmax.f32 %v19097_v19, %v23542_v24  ;;  %v2409_v56 = vadd.f32 1.0, %v18535_v22  ;;  %18556 = vpow2.f32 %v2198_v17  ;;  %v18539_v13 = vpop.eup %18538  ;;  %v15609_v30 = vpop.f32.mrb[170].mxu0 }
 0x248   :  { %v2737_v7 = vmax.f32 %v23541_v14, %v2689_v39  ;;  %v1588_v33 = vadd.f32 %v19729_v18, %v15608_v51  ;;  %v2866_v11 = vld [vmem:[#allocation2 + $0x1] sm:$0xff]  ;;  %v23546_v1 = vmax.f32 %v23544_v32, %v23545_v49  ;;  %v2407_v3 = vadd.f32 1.0, %v18537_v63  ;;  %v1582_v57 = vpop.f32.mrb[171].mxu0 }
 0x249   :  { %2782 = vst [vmem:[#allocation2 + $0x20] sm:$0xff] %v2734_v46  ;;  %v2735_v21 = vmax.f32 %v23543_v2, %v2687_v15  ;;  %18558 = vpow2.f32 %v2194_v9  ;;  %v2882_v35 = vpack.c.bf16 %v2867_v47, %v2866_v11  ;;  %v18541_v60 = vpop.eup %18540  ;;  %v2412_v19 = vadd.f32 1.0, %v18539_v13 }
 0x24a   :  { %2785 = vst [vmem:[#allocation2 + $0x38] sm:$0xff] %v2737_v7  ;;  %v2740_v58 = vmax.f32 %v23546_v1, %v2692_v10  ;;  %18560 = vrcp.f32 %v2409_v56  ;;  %v1844_v20 = vsub.f32 0.0, %v1588_v33  ;;  %v1580_v17 = vadd.f32 %v19729_v18, %v1579_v12  ;;  %v18543_v37 = vpop.eup %18542  ;;  %v23547_v10 = vld [vmem:[#allocation49_spill] sm:$0xff] }
 0x24b   :  { %2783 = vst [vmem:[#allocation2 + $0x28] sm:$0xff] %v2735_v21  ;;  %18562 = vrcp.f32 %v2407_v3  ;;  %v2410_v39 = vadd.f32 1.0, %v18541_v60  ;;  %15646 = vmatprep.mubr.bf16.mxu1 %v2882_v35  ;;  %v1591_v48 = vadd.f32 %v19729_v18, %v15609_v30  ;;  %v1583_v55 = vadd.f32 %v19729_v18, %v1582_v57  ;;  %v18545_v9 = vpop.eup %18544 }
 0x24c   :  { %2788 = vst [vmem:[#allocation2 + $0x50] sm:$0xff] %v2740_v58  ;;  %v2690_v42 = vmax.f32 %v19611_v27, %v18543_v37  ;;  %18564 = vrcp.f32 %v2412_v19  ;;  %v2206_v0 = vmul.f32 1.442695, %v1844_v20  ;;  %v1842_v5 = vsub.f32 0.0, %v1580_v17  ;;  %v18547_v46 = vpop.eup %18546  ;;  %v16929_v37 = vld [vmem:[%s23240_s3 + $0x8] sm:$0xff]  }
 0x24d   :  { %v2693_v15 = vmax.f32 %v19618_v34, %v18545_v9  ;;  %18566 = vrcp.f32 %v2410_v39  ;;  %v1845_v22 = vsub.f32 0.0, %v1591_v48  ;;  %v1843_v14 = vsub.f32 0.0, %v1583_v55  ;;  %v18549_v7 = vpop.eup %18548  ;;  %v15612_v33 = vpop.f32.mrb[172].mxu0 }
 0x24e   :  { %v23548_v51 = vmax.f32 %v19105_v28, %v23547_v10  ;;  %v2691_v63 = vmax.f32 %v19620_v52, %v18547_v46  ;;  %18568 = vpow2.f32 %v2200_v61  ;;  %v2202_v24 = vmul.f32 1.442695, %v1842_v5  ;;  %v18551_v27 = vpop.eup %18550  ;;  %v23550_v28 = vld [vmem:[#allocation50_spill] sm:$0xff]  ;;  %v1595_v49 = vpop.f32.mrb[173].mxu0 }
 0x24f   :  { %v23549_v2 = vmax.f32 %v19110_v44, %v19356_v8  ;;  %v2696_v34 = vmax.f32 %v19622_v50, %v18549_v7  ;;  %18570 = vpow2.f32 %v2196_v6  ;;  %v2208_v56 = vmul.f32 1.442695, %v1845_v22  ;;  %v18553_v11 = vpop.eup %18552  ;;  %v23552_v8 = vld [vmem:[#allocation11_spill] sm:$0xff] }
 0x250   :  { %v19790_v47 = vmax.f32 %v23548_v51, %v2690_v42  ;;  %v23551_v12 = vmax.f32 %v19115_v53, %v23550_v28  ;;  %v2694_v52 = vmax.f32 %v19624_v29, %v18551_v27  ;;  %18572 = vpow2.f32 %v2206_v0  ;;  %v18555_v44 = vpop.eup %18554  ;;  %v23553_v50 = vld [vmem:[#allocation51_spill] sm:$0xff]  ;;  %v15613_v53 = vpop.f32.mrb[174].mxu0  ;;  %v23555_v29 = vld [vmem:[#allocation52_spill] sm:$0xff] }
 0x251   :  { %v2741_v21 = vmax.f32 %v23549_v2, %v2693_v15  ;;  %v2204_v61 = vmul.f32 1.442695, %v1843_v14  ;;  %v2869_v32 = vld [vmem:[#allocation2 + $0x31] sm:$0xff]  ;;  %v23554_v6 = vmax.f32 %v23552_v8, %v23553_v50  ;;  %v2413_v58 = vadd.f32 1.0, %v18553_v11  ;;  %v18557_v30 = vpop.eup %18556  ;;  %v1598_v57 = vpop.f32.mrb[175].mxu0 }
 0x252   :  { %2786 = vst [vmem:[#allocation2 + $0x40] sm:$0xff] %v19790_v47  ;;  %v2739_v13 = vmax.f32 %v23551_v12, %v2691_v63  ;;  %18574 = vpow2.f32 %v2202_v24  ;;  %v1604_v3 = vadd.f32 %v19729_v18, %v15612_v33  ;;  %v2868_v35 = vld [vmem:[#allocation2 + $0x21] sm:$0xff]  ;;  %v23556_v60 = vmax.f32 %v19123_v62, %v23555_v29  ;;  %v16930_v24 = vld [vmem:[%s23240_s3 + $0x10] sm:$0xff]  }
 0x253   :  { %2789 = vst [vmem:[#allocation2 + $0x58] sm:$0xff] %v2741_v21  ;;  %v19805_v1 = vmax.f32 %v23554_v6, %v2696_v34  ;;  %v2411_v20 = vadd.f32 1.0, %v18555_v44  ;;  %18576 = vpow2.f32 %v2208_v56  ;;  %v2883_v17 = vpack.c.bf16 %v2869_v32, %v2868_v35  ;;  %v18559_v39 = vpop.eup %18558 }
 0x254   :  { %2787 = vst [vmem:[#allocation2 + $0x48] sm:$0xff] %v2739_v13  ;;  %v19811_v19 = vmax.f32 %v23556_v60, %v2694_v52  ;;  %18578 = vrcp.f32 %v2413_v58  ;;  %v2416_v48 = vadd.f32 1.0, %v18557_v30  ;;  %v1848_v55 = vsub.f32 0.0, %v1604_v3  ;;  %v18561_v42 = vpop.eup %18560 }
 0x255   :  { %2792 = vst [vmem:[#allocation2 + $0x70] sm:$0xff] %v19805_v1  ;;  %v1596_v9 = vadd.f32 %v19729_v18, %v1595_v49  ;;  %18580 = vrcp.f32 %v2411_v20  ;;  %v2414_v62 = vadd.f32 1.0, %v18559_v39  ;;  %15647 = vmatmul.mubr.bf16.vlgmr.msra.gmra.mrb[0].mxu1 %v2883_v17  ;;  %v1607_v0 = vadd.f32 %v19729_v18, %v15613_v53  ;;  %v18563_v46 = vpop.eup %18562  ;;  %v15616_v34 = vpop.f32.mrb[176].mxu0 }
 0x256   :  { %2790 = vst [vmem:[#allocation2 + $0x60] sm:$0xff] %v19811_v19  ;;  %v1599_v5 = vadd.f32 %v19729_v18, %v1598_v57  ;;  %v2697_v15 = vmax.f32 %v19627_v23, %v18561_v42  ;;  %18582 = vrcp.f32 %v2416_v48  ;;  %v2214_v22 = vmul.f32 1.442695, %v1848_v55  ;;  %15663 = vmatpush3.bf16.msra.mxu1 %v19641_v45  ;;  %v18565_v7 = vpop.eup %18564  ;;  %v1611_v13 = vpop.f32.mrb[177].mxu0 }
 0x257   :  { %v1846_v14 = vsub.f32 0.0, %v1596_v9  ;;  %v2695_v10 = vmax.f32 %v19630_v4, %v18563_v46  ;;  %18584 = vrcp.f32 %v2414_v62  ;;  %v1849_v51 = vsub.f32 0.0, %v1607_v0  ;;  %15664 = vmatprep.subr.bf16.mxu1 %v16929_v37  ;;  %v18567_v27 = vpop.eup %18566  ;;  %v15617_v44 = vpop.f32.mrb[178].mxu0 }
 0x258   :  { %v1847_v63 = vsub.f32 0.0, %v1599_v5  ;;  %v23557_v23 = vmax.f32 %v19128_v16, %v19382_v54  ;;  %v2700_v21 = vmax.f32 %v19633_v36, %v18565_v7  ;;  %18586 = vpow2.f32 %v2204_v61  ;;  %v18569_v56 = vpop.eup %18568  ;;  %v23559_v16 = vld [vmem:[#allocation53_spill] sm:$0xff]  ;;  %v1614_v3 = vpop.f32.mrb[179].mxu0  ;;  %v16932_v5 = vld [vmem:[%s23240_s3 + $0x20] sm:$0xff]  }
 0x259   :  { %v2210_v45 = vmul.f32 1.442695, %v1846_v14  ;;  %v23558_v4 = vmax.f32 %v19133_v26, %v19384_v25  ;;  %v2698_v11 = vmax.f32 %v19636_v41, %v18567_v27  ;;  %18588 = vpow2.f32 %v2214_v22  ;;  %v18571_v52 = vpop.eup %18570  ;;  %v23561_v25 = vld [vmem:[#allocation12_spill] sm:$0xff]  ;;  %v23562_v41 = vld [vmem:[#allocation54_spill] sm:$0xff] }
 0x25a   :  { %v2745_v2 = vmax.f32 %v23557_v23, %v2697_v15  ;;  %v2216_v28 = vmul.f32 1.442695, %v1849_v51  ;;  %v2871_v12 = vld [vmem:[#allocation2 + $0x51] sm:$0xff]  ;;  %v23560_v54 = vmax.f32 %v19138_v31, %v23559_v16  ;;  %v2417_v61 = vadd.f32 1.0, %v18569_v56  ;;  %15665 = vmatpush3.bf16.msra.mxu1 %v16929_v37  ;;  %v18573_v26 = vpop.eup %18572  ;;  %v23568_v23 = vld [vmem:[#allocation86_spill] sm:$0xff] }
 0x25b   :  { %v2743_v33 = vmax.f32 %v23558_v4, %v2695_v10  ;;  %18590 = vpow2.f32 %v2210_v45  ;;  %v2212_v32 = vmul.f32 1.442695, %v1847_v63  ;;  %v2870_v49 = vld [vmem:[#allocation2 + $0x41] sm:$0xff]  ;;  %v23563_v8 = vmax.f32 %v23561_v25, %v23562_v41  ;;  %15666 = vmatprep.subr.bf16.mxu1 %v16930_v24  ;;  %v16931_v31 = vld [vmem:[%s23240_s3 + $0x18] sm:$0xff]  }
 0x25c   :  { %2793 = vst [vmem:[#allocation2 + $0x78] sm:$0xff] %v2745_v2  ;;  %v2748_v36 = vmax.f32 %v23560_v54, %v2700_v21  ;;  %v2415_v6 = vadd.f32 1.0, %v18571_v52  ;;  %18592 = vpow2.f32 %v2216_v28  ;;  %v1620_v58 = vadd.f32 %v19729_v18, %v15616_v34  ;;  %v18575_v35 = vpop.eup %18574  ;;  %v23564_v15 = vld [vmem:[#allocation85_spill] sm:$0xff]  ;;  %v23569_v4 = vld [vmem:[#allocation14_spill] sm:$0xff] }
 0x25d   :  { %2791 = vst [vmem:[#allocation2 + $0x68] sm:$0xff] %v2743_v33  ;;  %v2746_v50 = vmax.f32 %v23563_v8, %v2698_v11  ;;  %18594 = vrcp.f32 %v2417_v61  ;;  %v2420_v53 = vadd.f32 1.0, %v18573_v26  ;;  %v2884_v30 = vpack.c.bf16 %v2871_v12, %v2870_v49  ;;  %v18577_v60 = vpop.eup %18576  ;;  %v15620_v10 = vpop.f32.mrb[180].mxu0  ;;  %v23565_v63 = vld [vmem:[#allocation13_spill] sm:$0xff]  ;;  %v23570_v33 = vld [vmem:[#allocation56_spill] sm:$0xff]  ;;  %v23572_v12 = vld [vmem:[#allocation87_spill] sm:$0xff] }
 0x25e   :  { %2796 = vst [vmem:[#allocation2 + $0x90] sm:$0xff] %v2748_v36  ;;  %v1612_v29 = vadd.f32 %v19729_v18, %v1611_v13  ;;  %18596 = vrcp.f32 %v2415_v6  ;;  %v2418_v20 = vadd.f32 1.0, %v18575_v35  ;;  %v1852_v17 = vsub.f32 0.0, %v1620_v58  ;;  %v18579_v37 = vpop.eup %18578  ;;  %15667 = vmatpush3.bf16.msra.mxu1 %v16930_v24  ;;  %v23566_v24 = vld [vmem:[#allocation55_spill] sm:$0xff]  ;;  %v1627_v34 = vpop.f32.mrb[181].mxu0  ;;  %v23574_v49 = vld [vmem:[#allocation57_spill] sm:$0xff] }
 0x25f   :  { %2794 = vst [vmem:[#allocation2 + $0x80] sm:$0xff] %v2746_v50  ;;  %v1623_v57 = vadd.f32 %v19729_v18, %v15617_v44  ;;  %18598 = vrcp.f32 %v2420_v53  ;;  %v2421_v39 = vadd.f32 1.0, %v18577_v60  ;;  %15650 = vmatprep.mubr.bf16.mxu1 %v2884_v30  ;;  %v1615_v55 = vadd.f32 %v19729_v18, %v1614_v3  ;;  %v18581_v9 = vpop.eup %18580  ;;  %15668 = vmatprep.subr.bf16.mxu1 %v16931_v31  ;;  %v15621_v54 = vpop.f32.mrb[182].mxu0  ;;  %v23573_v61 = vld [vmem:[#allocation15_spill] sm:$0xff]  ;;  %v23576_v50 = vld [vmem:[#allocation16_spill] sm:$0xff]  ;;  %v23577_v6 = vld [vmem:[#allocation58_spill] sm:$0xff] }
 0x260   :  { %v1850_v48 = vsub.f32 0.0, %v1612_v29  ;;  %v2701_v42 = vmax.f32 %v19645_v43, %v18579_v37  ;;  %18600 = vrcp.f32 %v2418_v20  ;;  %v2222_v62 = vmul.f32 1.442695, %v1852_v17  ;;  %v18583_v46 = vpop.eup %18582  ;;  %v1630_v41 = vpop.f32.mrb[183].mxu0  ;;  %v16933_v53 = vld [vmem:[%s23240_s3 + $0x28] sm:$0xff]  }
 0x261   :  { %v1853_v0 = vsub.f32 0.0, %v1623_v57  ;;  %v2699_v22 = vmax.f32 %v23564_v15, %v18581_v9  ;;  %18602 = vrcp.f32 %v2421_v39  ;;  %v1851_v7 = vsub.f32 0.0, %v1615_v55  ;;  %v18585_v51 = vpop.eup %18584  ;;  %v23579_v55 = vld [vmem:[#allocation88_spill] sm:$0xff] }
 0x262   :  { %v2218_v14 = vmul.f32 1.442695, %v1850_v48  ;;  %v23567_v27 = vmax.f32 %v23565_v63, %v23566_v24  ;;  %v2704_v2 = vmax.f32 %v23568_v23, %v18583_v46  ;;  %18604 = vpow2.f32 %v2212_v32  ;;  %v18587_v56 = vpop.eup %18586  ;;  %15669 = vmatpush3.bf16.msra.mxu1 %v16931_v31  ;;  %v23581_v63 = vld [vmem:[#allocation59_spill] sm:$0xff] }
 0x263   :  { %v2224_v21 = vmul.f32 1.442695, %v1853_v0  ;;  %v2873_v45 = vld [vmem:[#allocation2 + $0x71] sm:$0xff]  ;;  %v23571_v11 = vmax.f32 %v23569_v4, %v23570_v33  ;;  %v2702_v13 = vmax.f32 %v23572_v12, %v18585_v51  ;;  %18606 = vpow2.f32 %v2222_v62  ;;  %v18589_v36 = vpop.eup %18588  ;;  %15670 = vmatprep.subr.bf16.mxu1 %v16932_v5  ;;  %v23587_v4 = vld [vmem:[#allocation90_spill] sm:$0xff] }
 0x264   :  { %v2749_v43 = vmax.f32 %v23567_v27, %v2701_v42  ;;  %v2220_v52 = vmul.f32 1.442695, %v1851_v7  ;;  %v2872_v16 = vld [vmem:[#allocation2 + $0x61] sm:$0xff]  ;;  %v23575_v32 = vmax.f32 %v23573_v61, %v23574_v49  ;;  %v2419_v26 = vadd.f32 1.0, %v18587_v56  ;;  %v16934_v7 = vld [vmem:[%s23240_s3 + $0x30] sm:$0xff]  }
 0x265   :  { %v2747_v28 = vmax.f32 %v23571_v11, %v2699_v22  ;;  %18608 = vpow2.f32 %v2218_v14  ;;  %v1636_v25 = vadd.f32 %v19729_v18, %v15620_v10  ;;  %v18591_v8 = vpop.eup %18590  ;;  %v23578_v58 = vmax.f32 %v23576_v50, %v23577_v6  ;;  %v15624_v14 = vpop.f32.mrb[184].mxu0  ;;  %v23580_v51 = vld [vmem:[#allocation17_spill] sm:$0xff] }
 0x266   :  { %2797 = vst [vmem:[#allocation2 + $0x98] sm:$0xff] %v2749_v43  ;;  %v2752_v44 = vmax.f32 %v23575_v32, %v2704_v2  ;;  %v2424_v35 = vadd.f32 1.0, %v18589_v36  ;;  %18610 = vpow2.f32 %v2224_v21  ;;  %v2885_v31 = vpack.c.bf16 %v2873_v45, %v2872_v16  ;;  %v18593_v30 = vpop.eup %18592  ;;  %15671 = vmatpush3.bf16.msra.mxu1 %v16932_v5  ;;  %v23583_v43 = vld [vmem:[#allocation89_spill] sm:$0xff]  ;;  %v1643_v2 = vpop.f32.mrb[185].mxu0  ;;  %v23584_v21 = vld [vmem:[#allocation18_spill] sm:$0xff]  ;;  %v23585_v45 = vld [vmem:[#allocation60_spill] sm:$0xff] }
 0x267   :  { %2795 = vst [vmem:[#allocation2 + $0x88] sm:$0xff] %v2747_v28  ;;  %v2750_v3 = vmax.f32 %v23578_v58, %v2702_v13  ;;  %18612 = vrcp.f32 %v2419_v26  ;;  %v2422_v29 = vadd.f32 1.0, %v18591_v8  ;;  %v1856_v60 = vsub.f32 0.0, %v1636_v25  ;;  %v18595_v17 = vpop.eup %18594  ;;  %15672 = vmatprep.subr.bf16.mxu1 %v16933_v53  ;;  %v15625_v28 = vpop.f32.mrb[186].mxu0  ;;  %v23588_v13 = vld [vmem:[#allocation19_spill] sm:$0xff]  ;;  %v23589_v16 = vld [vmem:[#allocation61_spill] sm:$0xff] }
 0x268   :  { %2800 = vst [vmem:[#allocation2 + $0xb0] sm:$0xff] %v2752_v44  ;;  %v1628_v20 = vadd.f32 %v19729_v18, %v1627_v34  ;;  %18614 = vrcp.f32 %v2424_v35  ;;  %v2425_v57 = vadd.f32 1.0, %v18593_v30  ;;  %15651 = vmatmul.mubr.bf16.gmra.mrb[4].mxu1 %v2885_v31  ;;  %v1639_v37 = vadd.f32 %v19729_v18, %v15621_v54  ;;  %v18597_v48 = vpop.eup %18596  ;;  %v1646_v32 = vpop.f32.mrb[187].mxu0  ;;  %v23592_v26 = vld [vmem:[#allocation20_spill] sm:$0xff]  ;;  %v23593_v25 = vld [vmem:[#allocation62_spill] sm:$0xff]  ;;  %v23595_v35 = vld [vmem:[#allocation21_spill] sm:$0xff] }
 0x269   :  { %2798 = vst [vmem:[#allocation2 + $0xa0] sm:$0xff] %v2750_v3  ;;  %v1631_v39 = vadd.f32 %v19729_v18, %v1630_v41  ;;  %v2705_v9 = vmax.f32 %v23579_v55, %v18595_v17  ;;  %18616 = vrcp.f32 %v2422_v29  ;;  %v2230_v42 = vmul.f32 1.442695, %v1856_v60  ;;  %v18599_v0 = vpop.eup %18598  ;;  %v16935_v58 = vld [vmem:[%s23240_s3 + $0x38] sm:$0xff]   ;;  %v23596_v31 = vld [vmem:[#allocation63_spill] sm:$0xff] }
 0x26a   :  { %v1854_v62 = vsub.f32 0.0, %v1628_v20  ;;  %v2703_v46 = vmax.f32 %v19662_v40, %v18597_v48  ;;  %18618 = vrcp.f32 %v2425_v57  ;;  %v1857_v15 = vsub.f32 0.0, %v1639_v37  ;;  %v18601_v10 = vpop.eup %18600  ;;  %15673 = vmatpush3.bf16.msra.mxu1 %v16933_v53 }
 0x26b   :  { %v1855_v22 = vsub.f32 0.0, %v1631_v39  ;;  %v23582_v24 = vmax.f32 %v23580_v51, %v23581_v63  ;;  %v2708_v23 = vmax.f32 %v23583_v43, %v18599_v0  ;;  %18620 = vpow2.f32 %v2220_v52  ;;  %v18603_v40 = vpop.eup %18602  ;;  %v23591_v52 = vld [vmem:[#allocation91_spill] sm:$0xff]  ;;  %15674 = vmatprep.subr.bf16.mxu1 %v16934_v7  ;;  %v23599_v51 = vld [vmem:[#allocation93_spill] sm:$0xff] }
 0x26c   :  { %v2226_v5 = vmul.f32 1.442695, %v1854_v62  ;;  %v23586_v34 = vmax.f32 %v23584_v21, %v23585_v45  ;;  %v2706_v33 = vmax.f32 %v23587_v4, %v18601_v10  ;;  %18622 = vpow2.f32 %v2230_v42  ;;  %v18605_v12 = vpop.eup %18604  ;;  %v23598_v62 = vld [vmem:[#allocation92_spill] sm:$0xff]  ;;  %v23603_v21 = vld [vmem:[#allocation94_spill] sm:$0xff] }
 0x26d   :  { %v2753_v27 = vmax.f32 %v23582_v24, %v2705_v9  ;;  %v2232_v11 = vmul.f32 1.442695, %v1857_v15  ;;  %v23590_v54 = vmax.f32 %v23588_v13, %v23589_v16  ;;  %v2709_v61 = vmax.f32 %v23591_v52, %v18603_v40  ;;  %v18607_v44 = vpop.eup %18606  ;;  %v23607_v13 = vld [vmem:[#allocation95_spill] sm:$0xff] }
 0x26e   :  { %v2751_v56 = vmax.f32 %v23586_v34, %v2703_v46  ;;  %18624 = vpow2.f32 %v2226_v5  ;;  %v2228_v49 = vmul.f32 1.442695, %v1855_v22  ;;  %v23594_v41 = vmax.f32 %v23592_v26, %v23593_v25  ;;  %15675 = vmatpush3.bf16.msra.mxu1 %v16934_v7  ;;  %v15628_v22 = vpop.f32.mrb[188].mxu0  ;;  %v23601_v5 = vld [vmem:[#allocation64_spill] sm:$0xff] }
 0x26f   :  { %2801 = vst [vmem:[#allocation2 + $0xb8] sm:$0xff] %v2753_v27  ;;  %v19890_v36 = vmax.f32 %v23590_v54, %v2708_v23  ;;  %v2423_v50 = vadd.f32 1.0, %v18605_v12  ;;  %18626 = vpow2.f32 %v2232_v11  ;;  %v1652_v6 = vadd.f32 %v19729_v18, %v15624_v14  ;;  %v18609_v3 = vpop.eup %18608  ;;  %15676 = vmatprep.subr.bf16.mxu1 %v16935_v58  ;;  %v19914_v14 = vld [vmem:[%s23240_s3 + $0x80] sm:$0xff]   ;;  %v1659_v7 = vpop.f32.mrb[189].mxu0  ;;  %v23605_v11 = vld [vmem:[#allocation65_spill] sm:$0xff] }
 0x270   :  { %2799 = vst [vmem:[#allocation2 + $0xa8] sm:$0xff] %v2751_v56  ;;  %v19896_v8 = vmax.f32 %v23594_v41, %v2706_v33  ;;  %v23597_v53 = vmax.f32 %v23595_v35, %v23596_v31  ;;  %v2428_v29 = vadd.f32 1.0, %v18607_v44  ;;  %18628 = vpow2.f32 %v2228_v49  ;;  %v18611_v20 = vpop.eup %18610  ;;  %v23600_v23 = vld [vmem:[#allocation22_spill] sm:$0xff]  ;;  %v15629_v56 = vpop.f32.mrb[190].mxu0  ;;  %v23604_v33 = vld [vmem:[#allocation23_spill] sm:$0xff]  ;;  %v23608_v49 = vld [vmem:[#allocation24_spill] sm:$0xff] }
 0x271   :  { %2804 = vst [vmem:[#allocation2 + $0xd0] sm:$0xff] %v19890_v36  ;;  %v1644_v60 = vadd.f32 %v19729_v18, %v1643_v2  ;;  %18630 = vrcp.f32 %v2423_v50  ;;  %v2426_v17 = vadd.f32 1.0, %v18609_v3  ;;  %v1860_v57 = vsub.f32 0.0, %v1652_v6  ;;  %v18613_v39 = vpop.eup %18612  ;;  %v1662_v52 = vpop.f32.mrb[191].mxu0  ;;  %v23611_v6 = vld [vmem:[#allocation25_spill] sm:$0xff]  ;;  %v23612_v3 = vld [vmem:[#allocation67_spill] sm:$0xff] }
 0x272   :  { %v2757_v30 = vmax.f32 %v23597_v53, %v2709_v61  ;;  %2802 = vst [vmem:[#allocation2 + $0xc0] sm:$0xff] %v19896_v8  ;;  %v1655_v37 = vadd.f32 %v19729_v18, %v15625_v28  ;;  %18632 = vrcp.f32 %v2428_v29  ;;  %v2429_v48 = vadd.f32 1.0, %v18611_v20  ;;  %v18615_v42 = vpop.eup %18614  ;;  %15677 = vmatpush3.bf16.msra.mxu1 %v16935_v58 }
 0x273   :  { %v1858_v55 = vsub.f32 0.0, %v1644_v60  ;;  %v1647_v9 = vadd.f32 %v19729_v18, %v1646_v32  ;;  %v2707_v0 = vmax.f32 %v23598_v62, %v18613_v39  ;;  %18634 = vrcp.f32 %v2426_v17  ;;  %v18617_v10 = vpop.eup %18616  ;;  %v23609_v32 = vld [vmem:[#allocation66_spill] sm:$0xff]  ;;  %15694 = vmatprep.subr.bf16.mxu1 %v19914_v14 }
 0x274   :  { %2805 = vst [vmem:[#allocation2 + $0xd8] sm:$0xff] %v2757_v30  ;;  %v2238_v46 = vmul.f32 1.442695, %v1860_v57  ;;  %v1861_v15 = vsub.f32 0.0, %v1655_v37  ;;  %v2712_v63 = vmax.f32 %v23599_v51, %v18615_v42  ;;  %18636 = vrcp.f32 %v2429_v48  ;;  %v18619_v43 = vpop.eup %18618  ;;  %v23615_v51 = vld [vmem:[#allocation96_spill] sm:$0xff] }
 0x275   :  { %v2234_v24 = vmul.f32 1.442695, %v1858_v55  ;;  %v1859_v27 = vsub.f32 0.0, %v1647_v9  ;;  %v23602_v2 = vmax.f32 %v23600_v23, %v23601_v5  ;;  %v2710_v45 = vmax.f32 %v23603_v21, %v18617_v10  ;;  %v18621_v4 = vpop.eup %18620  ;;  %v23619_v5 = vld [vmem:[#allocation97_spill] sm:$0xff] }
 0x276   :  { %18638 = vpow2.f32 %v2238_v46  ;;  %v2240_v34 = vmul.f32 1.442695, %v1861_v15  ;;  %v23606_v28 = vmax.f32 %v23604_v33, %v23605_v11  ;;  %v2713_v16 = vmax.f32 %v23607_v13, %v18619_v43  ;;  %v18623_v61 = vpop.eup %18622  ;;  %v23623_v33 = vld [vmem:[#allocation98_spill] sm:$0xff] }
 0x277   :  { %v2755_v40 = vmax.f32 %v23602_v2, %v2707_v0  ;;  %18640 = vpow2.f32 %v2234_v24  ;;  %v2236_v54 = vmul.f32 1.442695, %v1859_v27  ;;  %v23610_v44 = vmax.f32 %v23608_v49, %v23609_v32 }
 0x278   :  { %v19924_v12 = vmax.f32 %v23606_v28, %v2712_v63  ;;  %v2427_v25 = vadd.f32 1.0, %v18621_v4  ;;  %18642 = vpow2.f32 %v2240_v34  ;;  %v1668_v41 = vadd.f32 %v19729_v18, %v15628_v22  ;;  %v18625_v50 = vpop.eup %18624  ;;  %v23621_v34 = vld [vmem:[#allocation69_spill] sm:$0xff] }
 0x279   :  { %2803 = vst [vmem:[#allocation2 + $0xc8] sm:$0xff] %v2755_v40  ;;  %v19930_v26 = vmax.f32 %v23610_v44, %v2710_v45  ;;  %v23613_v35 = vmax.f32 %v23611_v6, %v23612_v3  ;;  %v2432_v31 = vadd.f32 1.0, %v18623_v61  ;;  %18644 = vpow2.f32 %v2236_v54  ;;  %v18627_v30 = vpop.eup %18626  ;;  %v23620_v45 = vld [vmem:[#allocation27_spill] sm:$0xff]  ;;  %v23625_v54 = vld [vmem:[#allocation70_spill] sm:$0xff] }
 0x27a   :  { %2808 = vst [vmem:[#allocation2 + $0xf0] sm:$0xff] %v19924_v12  ;;  %v1660_v53 = vadd.f32 %v19729_v18, %v1659_v7  ;;  %18646 = vrcp.f32 %v2427_v25  ;;  %v2430_v29 = vadd.f32 1.0, %v18625_v50  ;;  %v1864_v60 = vsub.f32 0.0, %v1668_v41  ;;  %v18629_v17 = vpop.eup %18628  ;;  %v23617_v7 = vld [vmem:[#allocation68_spill] sm:$0xff]  ;;  %v23627_v25 = vld [vmem:[#allocation29_spill] sm:$0xff]  ;;  %v23628_v41 = vld [vmem:[#allocation71_spill] sm:$0xff] }
 0x27b   :  { %v2761_v58 = vmax.f32 %v23613_v35, %v2713_v16  ;;  %2806 = vst [vmem:[#allocation2 + $0xe0] sm:$0xff] %v19930_v26  ;;  %v1671_v20 = vadd.f32 %v19729_v18, %v15629_v56  ;;  %18648 = vrcp.f32 %v2432_v31  ;;  %v2433_v57 = vadd.f32 1.0, %v18627_v30  ;;  %v18631_v48 = vpop.eup %18630  ;;  %v19943_v22 = vld [vmem:[#allocation2 + $0xd1] sm:$0xff] }
 0x27c   :  { %v1862_v37 = vsub.f32 0.0, %v1660_v53  ;;  %v1663_v39 = vadd.f32 %v19729_v18, %v1662_v52  ;;  %18650 = vrcp.f32 %v2430_v29  ;;  %v2431_v55 = vadd.f32 1.0, %v18629_v17  ;;  %v18633_v62 = vpop.eup %18632  ;;  %23614 = vst [vmem:[#allocation7_spill] sm:$0xff] %v19943_v22  ;;  %v23616_v18 = vld [vmem:[#allocation26_spill] sm:$0xff]  ;;  %v23624_v16 = vld [vmem:[#allocation28_spill] sm:$0xff] }
 0x27d   :  { %2809 = vst [vmem:[#allocation2 + $0xf8] sm:$0xff] %v2761_v58  ;;  %v2246_v9 = vmul.f32 1.442695, %v1864_v60  ;;  %v1865_v42 = vsub.f32 0.0, %v1671_v20  ;;  %v2711_v0 = vmax.f32 %v19685_v38, %v18631_v48  ;;  %18652 = vrcp.f32 %v2433_v57  ;;  %v18635_v10 = vpop.eup %18634  ;;  %v23630_v17 = vld [vmem:[#allocation104_spill] sm:$0xff]  ;;  %v20130_v29 = vld [vmem:[#allocation2 + $0xd3] sm:$0xff] }
 0x27e   :  { %v2242_v46 = vmul.f32 1.442695, %v1862_v37  ;;  %v1863_v15 = vsub.f32 0.0, %v1663_v39  ;;  %v2716_v63 = vmax.f32 %v23615_v51, %v18633_v62  ;;  %18654 = vrcp.f32 %v2431_v55  ;;  %v18637_v27 = vpop.eup %18636  ;;  %v23631_v37 = vld [vmem:[#allocation99_spill] sm:$0xff]  ;;  %v23632_v55 = vld [vmem:[#allocation105_spill] sm:$0xff]  ;;  %v23636_v51 = vld [vmem:[#allocation30_spill] sm:$0xff] }
 0x27f   :  { %v2248_v24 = vmul.f32 1.442695, %v1865_v42  ;;  %v23618_v43 = vmax.f32 %v23616_v18, %v23617_v7  ;;  %v2714_v2 = vmax.f32 %v23619_v5, %v18635_v10  ;;  %18656 = vpow2.f32 %v2246_v9  ;;  %v23633_v42 = vld [vmem:[#allocation100_spill] sm:$0xff]  ;;  %v23639_v18 = vld [vmem:[#allocation101_spill] sm:$0xff] }
 0x280   :  { %v2244_v40 = vmul.f32 1.442695, %v1863_v15  ;;  %v2874_v38 = vld [vmem:[#allocation2 + $0xc1] sm:$0xff]  ;;  %v18639_v21 = vpop.eup %18638  ;;  %v23622_v56 = vmax.f32 %v23620_v45, %v23621_v34  ;;  %v2717_v11 = vmax.f32 %v23623_v33, %v18637_v27  ;;  %18658 = vpow2.f32 %v2242_v46  ;;  %v23641_v5 = vld [vmem:[#allocation73_spill] sm:$0xff] }
 0x281   :  { %v2759_v23 = vmax.f32 %v23618_v43, %v2711_v0  ;;  %v2886_v28 = vpack.c.bf16 %v19943_v22, %v2874_v38  ;;  %v18641_v13 = vpop.eup %18640  ;;  %v23626_v52 = vmax.f32 %v23624_v16, %v23625_v54  ;;  %v2436_v49 = vadd.f32 1.0, %v18639_v21  ;;  %v23635_v15 = vld [vmem:[#allocation106_spill] sm:$0xff]  ;;  %v20128_v60 = vld [vmem:[#allocation2 + $0x50] sm:$0xff]  ;;  %v23691_v22 = vld [vmem:[#allocation83_spill] sm:$0xff] }
 0x282   :  { %v19953_v4 = vmax.f32 %v23622_v56, %v2716_v63  ;;  %18660 = vpow2.f32 %v2248_v24  ;;  %v18643_v32 = vpop.eup %18642  ;;  %v2392_v44 = vadd.f32 1.0, %v19709_v59  ;;  %v23629_v50 = vmax.f32 %v23627_v25, %v23628_v41  ;;  %v23637_v63 = vld [vmem:[#allocation72_spill] sm:$0xff]  ;;  %v23643_v38 = vld [vmem:[#allocation102_spill] sm:$0xff] }
 0x283   :  { %2807 = vst [vmem:[#allocation2 + $0xe8] sm:$0xff] %v2759_v23  ;;  %v19960_v61 = vmax.f32 %v23626_v52, %v2714_v2  ;;  %v2434_v3 = vadd.f32 1.0, %v18641_v13  ;;  %18662 = vpow2.f32 %v2244_v40  ;;  %15654 = vmatprep.mubr.bf16.mxu1 %v2886_v28  ;;  %v18645_v35 = vpop.eup %18644  ;;  %v2437_v58 = vadd.f32 1.0, %v18643_v32  ;;  %v23640_v23 = vld [vmem:[#allocation31_spill] sm:$0xff]  ;;  %v23645_v56 = vld [vmem:[#allocation32_spill] sm:$0xff]  ;;  %v23646_v33 = vld [vmem:[#allocation74_spill] sm:$0xff] }
 0x284   :  { %2812 = vst [vmem:[#allocation2 + $0x110] sm:$0xff] %v19953_v4  ;;  %v2765_v6 = vmax.f32 %v23629_v50, %v2717_v11  ;;  %18664 = vrcp.f32 %v2436_v49  ;;  %v18647_v53 = vpop.eup %18646  ;;  %v2435_v30 = vadd.f32 1.0, %v18645_v35  ;;  %v2390_v57 = vadd.f32 1.0, %v23630_v17  ;;  %v19980_v0 = vld [vmem:[#allocation2 + $0xf1] sm:$0xff]  ;;  %v23648_v13 = vld [vmem:[#allocation103_spill] sm:$0xff] }
 0x285   :  { %2810 = vst [vmem:[#allocation2 + $0x100] sm:$0xff] %v19960_v61  ;;  %18666 = vrcp.f32 %v2434_v3  ;;  %v18649_v20 = vpop.eup %18648  ;;  %v2715_v39 = vmax.f32 %v23631_v37, %v18647_v53  ;;  %v2393_v9 = vadd.f32 1.0, %v23632_v55  ;;  %23634 = vst [vmem:[#allocation43_spill] sm:$0xff] %v19980_v0  ;;  %v2391_v10 = vadd.f32 1.0, %v23635_v15  ;;  %v23649_v49 = vld [vmem:[#allocation33_spill] sm:$0xff]  ;;  %v23650_v32 = vld [vmem:[#allocation75_spill] sm:$0xff] }
 0x286   :  { %2813 = vst [vmem:[#allocation2 + $0x118] sm:$0xff] %v2765_v6  ;;  %18668 = vrcp.f32 %v2437_v58  ;;  %v18651_v48 = vpop.eup %18650  ;;  %v2720_v62 = vmax.f32 %v23633_v42, %v18649_v20  ;;  %v23638_v24 = vmax.f32 %v23636_v51, %v23637_v63  ;;  %v23642_v2 = vmax.f32 %v23640_v23, %v23641_v5  ;;  %v23652_v6 = vld [vmem:[#allocation34_spill] sm:$0xff]  ;;  %v23653_v3 = vld [vmem:[#allocation76_spill] sm:$0xff]  ;;  %v23656_v55 = vld [vmem:[#allocation107_spill] sm:$0xff] }
 0x287   :  { %18670 = vrcp.f32 %v2435_v30  ;;  %v18653_v46 = vpop.eup %18652  ;;  %v2718_v7 = vmax.f32 %v23639_v18, %v18651_v48  ;;  %v23647_v11 = vmax.f32 %v23645_v56, %v23646_v33  ;;  %v23654_v35 = vmax.f32 %v23652_v6, %v23653_v3  ;;  %v23659_v15 = vld [vmem:[#allocation108_spill] sm:$0xff]  ;;  %v23669_v56 = vld [vmem:[#allocation110_spill] sm:$0xff] }
 0x288   :  { %v2763_v27 = vmax.f32 %v23638_v24, %v2715_v39  ;;  %v18655_v43 = vpop.eup %18654  ;;  %18672 = vrcp.f32 %v2392_v44  ;;  %v19990_v40 = vmax.f32 %v23642_v2, %v2720_v62  ;;  %v2721_v21 = vmax.f32 %v23643_v38, %v18653_v46  ;;  %v20018_v62 = vld [vmem:[#allocation2 + $0x10] sm:$0xff]  ;;  %v23660_v24 = vld [vmem:[#allocation35_spill] sm:$0xff]  ;;  %v23666_v38 = vld [vmem:[#allocation78_spill] sm:$0xff] }
 0x289   :  { %v18657_v34 = vpop.eup %18656  ;;  %18674 = vrcp.f32 %v2390_v57  ;;  %v19998_v28 = vmax.f32 %v23647_v11, %v2718_v7  ;;  %v2719_v16 = vmax.f32 %v23648_v13, %v18655_v43  ;;  %v23651_v44 = vmax.f32 %v23649_v49, %v23650_v32  ;;  %v20013_v57 = vld [vmem:[#allocation2 + $0x20] sm:$0xff]  ;;  %23658 = vst [vmem:[#allocation9_spill] sm:$0xff] %v20018_v62  ;;  %v23663_v43 = vld [vmem:[#allocation109_spill] sm:$0xff]  ;;  %v23665_v2 = vld [vmem:[#allocation36_spill] sm:$0xff] }
 0x28a   :  { %v19993_v45 = vld [vmem:[#allocation2 + $0xe1] sm:$0xff]  ;;  %2811 = vst [vmem:[#allocation2 + $0x108] sm:$0xff] %v2763_v27  ;;  %v18659_v52 = vpop.eup %18658  ;;  %18676 = vrcp.f32 %v2393_v9  ;;  %2816 = vst [vmem:[#allocation2 + $0x130] sm:$0xff] %v19990_v40  ;;  %v2440_v41 = vadd.f32 1.0, %v18657_v34  ;;  %v23661_v27 = vld [vmem:[#allocation77_spill] sm:$0xff] }
 0x28b   :  { %23644 = vst [vmem:[#allocation44_spill] sm:$0xff] %v19993_v45  ;;  %v2887_v54 = vpack.c.bf16 %v19980_v0, %v19993_v45  ;;  %v2769_v25 = vmax.f32 %v23651_v44, %v2721_v21  ;;  %18678 = vrcp.f32 %v2391_v10  ;;  %2814 = vst [vmem:[#allocation2 + $0x120] sm:$0xff] %v19998_v28  ;;  %v2767_v58 = vmax.f32 %v23654_v35, %v2719_v16  ;;  %v23670_v16 = vld [vmem:[#allocation37_spill] sm:$0xff]  ;;  %v2826_v32 = vld [vmem:[#allocation2] sm:$0xff] }
 0x28c   :  { %v18661_v50 = vpop.eup %18660  ;;  %v2438_v53 = vadd.f32 1.0, %v18659_v52  ;;  %18680 = vrcp.f32 %v2440_v41  ;;  %23655 = vst [vmem:[#allocation8_spill] sm:$0xff] %v20013_v57  ;;  %v23662_v18 = vmax.f32 %v23660_v24, %v23661_v27  ;;  %v23667_v21 = vmax.f32 %v23665_v2, %v23666_v38  ;;  %v23674_v41 = vld [vmem:[#allocation80_spill] sm:$0xff]  ;;  %v20048_v35 = vld [vmem:[#allocation2 + $0x12] sm:$0xff]  ;;  %v20154_v0 = vld [vmem:[#allocation2 + $0x60] sm:$0xff] }
 0x28d   :  { %15655 = vmatmul.mubr.bf16.gmra.mrb[8].mxu1 %v2887_v54  ;;  %v18663_v20 = vpop.eup %18662  ;;  %2817 = vst [vmem:[#allocation2 + $0x138] sm:$0xff] %v2769_v25  ;;  %v2441_v17 = vadd.f32 1.0, %v18661_v50  ;;  %2815 = vst [vmem:[#allocation2 + $0x128] sm:$0xff] %v2767_v58  ;;  %v20016_v42 = vld [vmem:[#allocation2 + $0x111] sm:$0xff]  ;;  %v23671_v54 = vld [vmem:[#allocation79_spill] sm:$0xff]  ;;  %v2842_v27 = vpack.c.bf16 %v20018_v62, %v2826_v32 }
 0x28e   :  { %v18665_v37 = vpop.eup %18664  ;;  %18682 = vrcp.f32 %v2438_v53  ;;  %v2439_v39 = vadd.f32 1.0, %v18663_v20  ;;  %23657 = vst [vmem:[#allocation45_spill] sm:$0xff] %v20016_v42  ;;  %v23672_v52 = vmax.f32 %v23670_v16, %v23671_v54  ;;  %v23673_v25 = vld [vmem:[#allocation38_spill] sm:$0xff]  ;;  %v20050_v58 = vld [vmem:[#allocation2 + $0x22] sm:$0xff]  ;;  %v20093_v16 = vld [vmem:[#allocation2 + $0xd2] sm:$0xff] }
 0x28f   :  { %v18667_v48 = vpop.eup %18666  ;;  %v2724_v9 = vmax.f32 %v23656_v55, %v18665_v37  ;;  %18684 = vrcp.f32 %v2441_v17  ;;  %v23675_v50 = vmax.f32 %v23673_v25, %v23674_v41  ;;  %v20056_v17 = vld [vmem:[#allocation2 + $0x32] sm:$0xff]  ;;  %v20058_v37 = vld [vmem:[#allocation2 + $0x42] sm:$0xff] }
 0x290   :  { %v18669_v46 = vpop.eup %18668  ;;  %v2722_v10 = vmax.f32 %v23659_v15, %v18667_v48  ;;  %18686 = vrcp.f32 %v2439_v39  ;;  %v20060_v39 = vld [vmem:[#allocation2 + $0x62] sm:$0xff]  ;;  %v20095_v54 = vld [vmem:[#allocation2 + $0xf2] sm:$0xff] }
 0x291   :  { %v18671_v63 = vpop.eup %18670  ;;  %v2772_v7 = vmax.f32 %v23662_v18, %v2724_v9  ;;  %v2725_v23 = vmax.f32 %v23663_v43, %v18669_v46  ;;  %v20027_v5 = vld [vmem:[#allocation2 + $0x101] sm:$0xff]  ;;  %v20077_v18 = vld [vmem:[#allocation2 + $0x52] sm:$0xff] }
 0x292   :  { %23664 = vst [vmem:[#allocation46_spill] sm:$0xff] %v20027_v5  ;;  %v20032_v34 = vmax.f32 %v23667_v21, %v2722_v10  ;;  %v2723_v33 = vmax.f32 %v23669_v56, %v18671_v63  ;;  %v2888_v11 = vpack.c.bf16 %v20016_v42, %v20027_v5  ;;  %v18673_v13 = vpop.eup %18672  ;;  %v20062_v48 = vld [vmem:[#allocation2 + $0x23] sm:$0xff]  ;;  %v20081_v43 = vld [vmem:[#allocation2 + $0x33] sm:$0xff] }
 0x293   :  { %2820 = vst [vmem:[#allocation2 + $0x150] sm:$0xff] %v2772_v7  ;;  %v2773_v49 = vmax.f32 %v23672_v52, %v2725_v23  ;;  %v20040_v44 = vpop.eup %18674  ;;  %v20068_v46 = vld [vmem:[#allocation2 + $0xe2] sm:$0xff]  ;;  %v20079_v7 = vld [vmem:[#allocation2 + $0x13] sm:$0xff] }
 0x294   :  { %23668 = vst [vmem:[#allocation47_spill] sm:$0xff] %v20032_v34  ;;  %2818 = vst [vmem:[#allocation2 + $0x140] sm:$0xff] %v20032_v34  ;;  %v2771_v6 = vmax.f32 %v23675_v50, %v2723_v33  ;;  %15658 = vmatprep.mubr.bf16.mxu1 %v2888_v11  ;;  %v20046_v3 = vld [vmem:[#allocation2 + $0x131] sm:$0xff]  ;;  %v20052_v53 = vpop.eup %18676  ;;  %v20054_v20 = vld [vmem:[#allocation2 + $0x121] sm:$0xff] }
 0x295   :  { %23676 = vst [vmem:[#allocation10_spill] sm:$0xff] %v20046_v3  ;;  %2821 = vst [vmem:[#allocation2 + $0x158] sm:$0xff] %v2773_v49  ;;  %v20064_v55 = vpop.eup %18678  ;;  %v2889_v9 = vpack.c.bf16 %v20046_v3, %v20054_v20  ;;  %v20070_v15 = vld [vmem:[#allocation2 + $0x102] sm:$0xff]  ;;  %v20097_v52 = vld [vmem:[#allocation2 + $0x112] sm:$0xff] }
 0x296   :  { %23677 = vst [vmem:[#allocation48_spill] sm:$0xff] %v20054_v20  ;;  %2819 = vst [vmem:[#allocation2 + $0x148] sm:$0xff] %v2771_v6  ;;  %v20072_v10 = vld [vmem:[#allocation2 + $0x122] sm:$0xff]  ;;  %v18681_v24 = vpop.eup %18680  ;;  %v20099_v49 = vld [vmem:[#allocation2 + $0x53] sm:$0xff] }
 0x297   :  { %v20083_v23 = vld [vmem:[#allocation2 + $0x43] sm:$0xff]  ;;  %v2728_v11 = vmax.f32 %v18673_v13, %v18681_v24  ;;  %15659 = vmatmul.mubr.bf16.gmra.mrb[12].mxu1 %v2889_v9  ;;  %23679 = vst [vmem:[#allocation50_spill] sm:$0xff] %v20099_v49  ;;  %v20110_v9 = vld [vmem:[#allocation2 + $0x30] sm:$0xff] }
 0x298   :  { %v20085_v2 = vld [vmem:[#allocation2 + $0x63] sm:$0xff]  ;;  %v18683_v33 = vpop.eup %18682  ;;  %15678 = vmatprep.mubr.bf16.mxu1 %v2842_v27  ;;  %23680 = vst [vmem:[#allocation11_spill] sm:$0xff] %v20110_v9  ;;  %v23684_v27 = vld [vmem:[#allocation81_spill] sm:$0xff] }
 0x299   :  { %23678 = vst [vmem:[#allocation49_spill] sm:$0xff] %v20085_v2  ;;  %v20101_v32 = vld [vmem:[#allocation2 + $0x24] sm:$0xff]  ;;  %v18685_v13 = vpop.eup %18684  ;;  %v2726_v6 = vmax.f32 %v20040_v44, %v18683_v33  ;;  %v20132_v59 = vld [vmem:[#allocation2 + $0x14] sm:$0xff] }
 0x29a   :  { %v20103_v25 = vld [vmem:[#allocation2 + $0x44] sm:$0xff]  ;;  %v18687_v63 = vpop.eup %18686  ;;  %v2729_v30 = vmax.f32 %v20052_v53, %v18685_v13  ;;  %v20134_v38 = vld [vmem:[#allocation2 + $0x34] sm:$0xff] }
 0x29b   :  { %v20112_v24 = vld [vmem:[#allocation2 + $0xe3] sm:$0xff]  ;;  %v20136_v31 = vld [vmem:[#allocation2 + $0x54] sm:$0xff] }
 0x29c   :  { %23681 = vst [vmem:[#allocation51_spill] sm:$0xff] %v20112_v24  ;;  %v20114_v56 = vld [vmem:[#allocation2 + $0x103] sm:$0xff]  ;;  %v23687_v53 = vld [vmem:[#allocation82_spill] sm:$0xff]  ;;  %v20156_v5 = vld [vmem:[#allocation2 + $0x70] sm:$0xff] }
 0x29d   :  { %v20116_v21 = vld [vmem:[#allocation2 + $0x123] sm:$0xff]  ;;  %v20148_v3 = vld [vmem:[#allocation2 + $0xf3] sm:$0xff]  ;;  %23689 = vst [vmem:[#allocation53_spill] sm:$0xff] %v20156_v5 }
 0x29e   :  { %23682 = vst [vmem:[#allocation52_spill] sm:$0xff] %v20116_v21  ;;  %v23683_v44 = vld [vmem:[#allocation39_spill] sm:$0xff]  ;;  %v20150_v42 = vld [vmem:[#allocation2 + $0x113] sm:$0xff] }
 0x29f   :  { %v23685_v33 = vmax.f32 %v23683_v44, %v23684_v27  ;;  %v20138_v41 = vld [vmem:[#allocation2 + $0x64] sm:$0xff]  ;;  %v20181_v34 = vld [vmem:[#allocation2 + $0xf4] sm:$0xff] }
 0x2a0   :  { %v23686_v44 = vld [vmem:[#allocation40_spill] sm:$0xff]  ;;  %v20183_v62 = vld [vmem:[#allocation2 + $0xe0] sm:$0xff] }
 0x2a1   :  { %v2776_v51 = vmax.f32 %v23685_v33, %v2728_v11  ;;  %v23688_v13 = vmax.f32 %v23686_v44, %v23687_v53  ;;  %v2727_v33 = vmax.f32 %v20064_v55, %v18687_v63  ;;  %v20152_v20 = vld [vmem:[#allocation2 + $0xe4] sm:$0xff]  ;;  %v23690_v11 = vld [vmem:[#allocation41_spill] sm:$0xff]  ;;  %23696 = vst [vmem:[#allocation12_spill] sm:$0xff] %v20183_v62 }
 0x2a2   :  { %v23692_v44 = vmax.f32 %v23690_v11, %v23691_v22  ;;  %v16937_v55 = vld [vmem:[%s23240_s3 + $0x88] sm:$0xff]   ;;  %v20166_v63 = vld [vmem:[#allocation2 + $0xd4] sm:$0xff] }
 0x2a3   :  { %v2774_v27 = vmax.f32 %v23688_v13, %v2726_v6  ;;  %2824 = vst [vmem:[#allocation2 + $0x170] sm:$0xff] %v2776_v51  ;;  %v20168_v53 = vld [vmem:[#allocation2 + $0x104] sm:$0xff]  ;;  %v20185_v2 = vld [vmem:[#allocation2 + $0xf0] sm:$0xff] }
 0x2a4   :  { %v2777_v6 = vmax.f32 %v23692_v44, %v2729_v30  ;;  %v20170_v13 = vld [vmem:[#allocation2 + $0x124] sm:$0xff]  ;;  %v23693_v30 = vld [vmem:[#allocation42_spill] sm:$0xff]  ;;  %23697 = vst [vmem:[#allocation54_spill] sm:$0xff] %v20185_v2  ;;  %v20189_v45 = vld [vmem:[#allocation2 + $0x31] sm:$0xff] }
 0x2a5   :  { %2822 = vst [vmem:[#allocation2 + $0x160] sm:$0xff] %v2774_v27  ;;  %v23694_v11 = vld [vmem:[#allocation84_spill] sm:$0xff]  ;;  %v20187_v49 = vld [vmem:[#allocation2 + $0x21] sm:$0xff]  ;;  %23699 = vst [vmem:[#allocation13_spill] sm:$0xff] %v20189_v45  ;;  %v2844_v27 = vpack.c.bf16 %v20128_v60, %v19790_v47 }
 0x2a6   :  { %v23695_v44 = vmax.f32 %v23693_v30, %v23694_v11  ;;  %23698 = vst [vmem:[#allocation85_spill] sm:$0xff] %v20187_v49  ;;  %v20191_v24 = vld [vmem:[#allocation2 + $0x41] sm:$0xff]  ;;  %2825 = vst [vmem:[#allocation2 + $0x178] sm:$0xff] %v2777_v6  ;;  %v2843_v30 = vpack.c.bf16 %v20110_v9, %v20013_v57  ;;  %v20201_v11 = vld [vmem:[#allocation2 + $0x114] sm:$0xff] }
 0x2a7   :  { %23700 = vst [vmem:[#allocation55_spill] sm:$0xff] %v20191_v24  ;;  %v20205_v51 = vld [vmem:[#allocation2 + $0x110] sm:$0xff]  ;;  %v20251_v21 = vld [vmem:[#allocation2 + $0x121] sm:$0xff] }
 0x2a8   :  { %v2775_v50 = vmax.f32 %v23695_v44, %v2727_v33  ;;  %v20203_v44 = vld [vmem:[#allocation2 + $0x100] sm:$0xff]  ;;  %23702 = vst [vmem:[#allocation14_spill] sm:$0xff] %v20205_v51  ;;  %v20211_v22 = vld [vmem:[#allocation2 + $0x51] sm:$0xff]  ;;  %15679 = vmatmul.mubr.bf16.vlgmr.msra.gmra.mrb[0].mxu1 %v2843_v30  ;;  %v23707_v30 = vpack.c.bf16 %v19890_v36, %v19896_v8  ;;  %23709 = vst [vmem:[#allocation16_spill] sm:$0xff] %v20251_v21 }
 0x2a9   :  { %23701 = vst [vmem:[#allocation86_spill] sm:$0xff] %v20203_v44  ;;  %23703 = vst [vmem:[#allocation56_spill] sm:$0xff] %v20211_v22  ;;  %v20213_v33 = vld [vmem:[#allocation2 + $0x61] sm:$0xff]  ;;  %v20215_v6 = vld [vmem:[#allocation2 + $0x71] sm:$0xff]  ;;  %15695 = vmatpush3.bf16.msra.mxu1 %v19914_v14  ;;  %15682 = vmatprep.mubr.bf16.mxu1 %v2844_v27  ;;  %v23728_v44 = vpack.c.bf16 %v19924_v12, %v19930_v26  ;;  %v23734_v26 = vpack.c.bf16 %v19953_v4, %v19960_v61 }
 0x2aa   :  { %2823 = vst [vmem:[#allocation2 + $0x168] sm:$0xff] %v2775_v50  ;;  %23704 = vst [vmem:[#allocation87_spill] sm:$0xff] %v20213_v33  ;;  %15696 = vmatprep.subr.bf16.mxu1 %v16937_v55  ;;  %v16938_v9 = vld [vmem:[%s23240_s3 + $0x90] sm:$0xff]   ;;  %v16939_v27 = vld [vmem:[%s23240_s3 + $0x98] sm:$0xff]   ;;  %v23706_v50 = vpack.c.bf16 %v19805_v1, %v19811_v19 }
 0x2ab   :  { %23705 = vst [vmem:[#allocation15_spill] sm:$0xff] %v20215_v6  ;;  %v16940_v14 = vld [vmem:[%s23240_s3 + $0xa0] sm:$0xff]   ;;  %v20253_v47 = vld [vmem:[#allocation2 + $0xf1] sm:$0xff]  ;;  %v16941_v36 = vld [vmem:[%s23240_s3 + $0xa8] sm:$0xff]  }
 0x2ac   :  { %23710 = vst [vmem:[#allocation58_spill] sm:$0xff] %v20253_v47  ;;  %v20255_v57 = vld [vmem:[#allocation2 + $0x32] sm:$0xff]  ;;  %v20257_v1 = vld [vmem:[#allocation2 + $0x42] sm:$0xff] }
 0x2ad   :  { %15697 = vmatpush3.bf16.msra.mxu1 %v16937_v55  ;;  %v20249_v55 = vld [vmem:[#allocation2 + $0x101] sm:$0xff]  ;;  %23711 = vst [vmem:[#allocation88_spill] sm:$0xff] %v20255_v57  ;;  %23712 = vst [vmem:[#allocation17_spill] sm:$0xff] %v20257_v1  ;;  %v20264_v8 = vld [vmem:[#allocation2 + $0x111] sm:$0xff] }
 0x2ae   :  { %15698 = vmatprep.subr.bf16.mxu1 %v16938_v9  ;;  %23708 = vst [vmem:[#allocation57_spill] sm:$0xff] %v20249_v55  ;;  %v20259_v19 = vld [vmem:[#allocation2 + $0x62] sm:$0xff]  ;;  %23714 = vst [vmem:[#allocation89_spill] sm:$0xff] %v20264_v8  ;;  %v20272_v6 = vld [vmem:[#allocation2 + $0x33] sm:$0xff] }
 0x2af   :  { %23713 = vst [vmem:[#allocation59_spill] sm:$0xff] %v20259_v19  ;;  %23718 = vst [vmem:[#allocation19_spill] sm:$0xff] %v20272_v6  ;;  %v20274_v33 = vld [vmem:[#allocation2 + $0x43] sm:$0xff]  ;;  %v20282_v49 = vld [vmem:[#allocation2 + $0xf2] sm:$0xff] }
 0x2b0   :  { %15683 = vmatmul.mubr.bf16.gmra.mrb[4].mxu1 %v23706_v50  ;;  %v20268_v50 = vld [vmem:[#allocation2 + $0x122] sm:$0xff]  ;;  %23719 = vst [vmem:[#allocation61_spill] sm:$0xff] %v20274_v33  ;;  %23721 = vst [vmem:[#allocation20_spill] sm:$0xff] %v20282_v49  ;;  %v20284_v51 = vld [vmem:[#allocation2 + $0x112] sm:$0xff] }
 0x2b1   :  { %15699 = vmatpush3.bf16.msra.mxu1 %v16938_v9  ;;  %15686 = vmatprep.mubr.bf16.mxu1 %v23707_v30  ;;  %v20266_v9 = vld [vmem:[#allocation2 + $0x102] sm:$0xff]  ;;  %23716 = vst [vmem:[#allocation60_spill] sm:$0xff] %v20268_v50  ;;  %v20270_v30 = vld [vmem:[#allocation2 + $0x52] sm:$0xff]  ;;  %23722 = vst [vmem:[#allocation62_spill] sm:$0xff] %v20284_v51 }
 0x2b2   :  { %15700 = vmatprep.subr.bf16.mxu1 %v16939_v27  ;;  %23715 = vst [vmem:[#allocation18_spill] sm:$0xff] %v20266_v9  ;;  %23717 = vst [vmem:[#allocation90_spill] sm:$0xff] %v20270_v30  ;;  %v20276_v22 = vld [vmem:[#allocation2 + $0x63] sm:$0xff]  ;;  %v20292_v62 = vld [vmem:[#allocation2 + $0x53] sm:$0xff]  ;;  %v3214_v9 = vpack.c.bf16 %v20056_v17, %v20050_v58 }
 0x2b3   :  { %23720 = vst [vmem:[#allocation91_spill] sm:$0xff] %v20276_v22  ;;  %23724 = vst [vmem:[#allocation63_spill] sm:$0xff] %v20292_v62  ;;  %v20294_v5 = vld [vmem:[#allocation2 + $0x123] sm:$0xff]  ;;  %v20296_v24 = vld [vmem:[#allocation2 + $0x34] sm:$0xff] }
 0x2b4   :  { %23725 = vst [vmem:[#allocation92_spill] sm:$0xff] %v20294_v5  ;;  %23726 = vst [vmem:[#allocation93_spill] sm:$0xff] %v20296_v24  ;;  %v20298_v45 = vld [vmem:[#allocation2 + $0x44] sm:$0xff]  ;;  %v16942_v2 = vld [vmem:[%s23240_s3 + $0xb0] sm:$0xff]  }
 0x2b5   :  { %15701 = vmatpush3.bf16.msra.mxu1 %v16939_v27  ;;  %v20286_v27 = vld [vmem:[#allocation2 + $0x103] sm:$0xff]  ;;  %23727 = vst [vmem:[#allocation22_spill] sm:$0xff] %v20298_v45  ;;  %v20310_v19 = vld [vmem:[#allocation2 + $0xf3] sm:$0xff] }
 0x2b6   :  { %15702 = vmatprep.subr.bf16.mxu1 %v16940_v14  ;;  %23723 = vst [vmem:[#allocation21_spill] sm:$0xff] %v20286_v27  ;;  %23729 = vst [vmem:[#allocation64_spill] sm:$0xff] %v20310_v19  ;;  %v20312_v30 = vld [vmem:[#allocation2 + $0x54] sm:$0xff]  ;;  %v20314_v1 = vld [vmem:[#allocation2 + $0x64] sm:$0xff] }
 0x2b7   :  { %23730 = vst [vmem:[#allocation94_spill] sm:$0xff] %v20312_v30  ;;  %23731 = vst [vmem:[#allocation23_spill] sm:$0xff] %v20314_v1  ;;  %v20316_v57 = vld [vmem:[#allocation2 + $0x104] sm:$0xff]  ;;  %v20331_v51 = vld [vmem:[#allocation2 + $0x70] sm:$0xff] }
 0x2b8   :  { %15687 = vmatmul.mubr.bf16.gmra.mrb[8].mxu1 %v23728_v44  ;;  %23732 = vst [vmem:[#allocation65_spill] sm:$0xff] %v20316_v57  ;;  %v20318_v21 = vld [vmem:[#allocation2 + $0x60] sm:$0xff]  ;;  %v20327_v44 = vld [vmem:[#allocation2 + $0x113] sm:$0xff]  ;;  %23737 = vst [vmem:[#allocation25_spill] sm:$0xff] %v20331_v51 }
 0x2b9   :  { %23733 = vst [vmem:[#allocation95_spill] sm:$0xff] %v20318_v21  ;;  %15703 = vmatpush3.bf16.msra.mxu1 %v16940_v14  ;;  %15690 = vmatprep.mubr.bf16.mxu1 %v23734_v26  ;;  %23735 = vst [vmem:[#allocation24_spill] sm:$0xff] %v20327_v44  ;;  %v20329_v50 = vld [vmem:[#allocation2 + $0x124] sm:$0xff]  ;;  %v20335_v49 = vld [vmem:[#allocation2 + $0xf4] sm:$0xff] }
 0x2ba   :  { %23736 = vst [vmem:[#allocation66_spill] sm:$0xff] %v20329_v50  ;;  %15704 = vmatprep.subr.bf16.mxu1 %v16941_v36  ;;  %23738 = vst [vmem:[#allocation67_spill] sm:$0xff] %v20335_v49  ;;  %v20337_v8 = vld [vmem:[#allocation2 + $0x100] sm:$0xff]  ;;  %v20339_v12 = vld [vmem:[#allocation2 + $0x110] sm:$0xff] }
 0x2bb   :  { %23739 = vst [vmem:[#allocation96_spill] sm:$0xff] %v20337_v8  ;;  %23740 = vst [vmem:[#allocation26_spill] sm:$0xff] %v20339_v12  ;;  %v20345_v14 = vld [vmem:[#allocation2 + $0x114] sm:$0xff]  ;;  %v20347_v26 = vld [vmem:[#allocation2 + $0x41] sm:$0xff] }
 0x2bc   :  { %23741 = vst [vmem:[#allocation68_spill] sm:$0xff] %v20345_v14  ;;  %23742 = vst [vmem:[#allocation97_spill] sm:$0xff] %v20347_v26  ;;  %v20349_v22 = vld [vmem:[#allocation2 + $0x51] sm:$0xff]  ;;  %v3197_v27 = vld [vmem:[#allocation2 + $0x2] sm:$0xff] }
 0x2bd   :  { %23743 = vst [vmem:[#allocation27_spill] sm:$0xff] %v20349_v22  ;;  %v20355_v33 = vld [vmem:[#allocation2 + $0x61] sm:$0xff]  ;;  %v20357_v62 = vld [vmem:[#allocation2 + $0x71] sm:$0xff]  ;;  %15705 = vmatpush3.bf16.msra.mxu1 %v16941_v36  ;;  %v3213_v49 = vpack.c.bf16 %v20048_v35, %v3197_v27  ;;  %v23746_v36 = vpack.c.bf16 %v19990_v40, %v19998_v28  ;;  %v3215_v40 = vpack.c.bf16 %v20077_v18, %v20058_v37 }
 0x2be   :  { %23744 = vst [vmem:[#allocation69_spill] sm:$0xff] %v20355_v33  ;;  %23745 = vst [vmem:[#allocation98_spill] sm:$0xff] %v20357_v62  ;;  %15706 = vmatprep.subr.bf16.mxu1 %v16942_v2  ;;  %v16943_v19 = vld [vmem:[%s23240_s3 + $0xb8] sm:$0xff]   ;;  %v16944_v24 = vld [vmem:[%s23240_s3 + $0xc0] sm:$0xff]  }
 0x2bf   :  { %v16945_v27 = vld [vmem:[%s23240_s3 + $0xc8] sm:$0xff]   ;;  %v16947_v61 = vld [vmem:[%s23240_s3 + $0xd8] sm:$0xff]   ;;  %v16968_v51 = vld [vmem:[%s23240_s3 + $0x180] sm:$0xff]  }
 0x2c0   :  { %15691 = vmatmul.mubr.bf16.gmra.mrb[12].mxu1 %v23746_v36  ;;  %v16951_v4 = vld [vmem:[%s23240_s3 + $0xf8] sm:$0xff]   ;;  %v16957_v22 = vld [vmem:[%s23240_s3 + $0x128] sm:$0xff]  }
 0x2c1   :  { %15707 = vmatpush3.bf16.msra.mxu1 %v16942_v2  ;;  %15710 = vmatprep.mubr.bf16.mxu1 %v3213_v49  ;;  %v16946_v2 = vld [vmem:[%s23240_s3 + $0xd0] sm:$0xff]   ;;  %v23747_v33 = vld [vmem:[#allocation50_spill] sm:$0xff]  ;;  %v23754_v14 = vld [vmem:[#allocation11_spill] sm:$0xff] }
 0x2c2   :  { %15708 = vmatprep.subr.bf16.mxu1 %v16943_v19  ;;  %v20389_v49 = vld [vmem:[#allocation2 + $0x72] sm:$0xff]  ;;  %v23758_v57 = vld [vmem:[#allocation86_spill] sm:$0xff]  ;;  %v16973_v1 = vld [vmem:[%s23240_s3 + $0x1a8] sm:$0xff]  }
 0x2c3   :  { %v3216_v36 = vpack.c.bf16 %v20389_v49, %v20060_v39  ;;  %v16955_v26 = vld [vmem:[%s23240_s3 + $0x118] sm:$0xff]   ;;  %v23763_v5 = vld [vmem:[#allocation55_spill] sm:$0xff]  ;;  %v23764_v55 = vld [vmem:[#allocation56_spill] sm:$0xff] }
 0x2c4   :  { %v16959_v12 = vld [vmem:[%s23240_s3 + $0x138] sm:$0xff]   ;;  %v16977_v6 = vld [vmem:[%s23240_s3 + $0x1c8] sm:$0xff]  }
 0x2c5   :  { %15709 = vmatpush3.bf16.msra.mxu1 %v16943_v19  ;;  %v3205_v19 = vld [vmem:[#allocation2 + $0xc2] sm:$0xff]  ;;  %v16963_v21 = vld [vmem:[%s23240_s3 + $0x158] sm:$0xff]  }
 0x2c6   :  { %15726 = vmatprep.subr.bf16.mxu1 %v16944_v24  ;;  %v23759_v45 = vld [vmem:[#allocation14_spill] sm:$0xff]  ;;  %v4006_v44 = vld [vmem:[#allocation2 + $0x11] sm:$0xff]  ;;  %v23765_v47 = vld [vmem:[#allocation87_spill] sm:$0xff] }
 0x2c8   :  { %15711 = vmatmul.mubr.bf16.vlgmr.msra.gmra.mrb[0].mxu1 %v3214_v9  ;;  %v16948_v9 = vld [vmem:[%s23240_s3 + $0xe0] sm:$0xff]  }
 0x2c9   :  { %15727 = vmatpush3.bf16.msra.mxu1 %v16944_v24  ;;  %15714 = vmatprep.mubr.bf16.mxu1 %v3215_v40  ;;  %v3217_v24 = vpack.c.bf16 %v20093_v16, %v3205_v19  ;;  %v16949_v40 = vld [vmem:[%s23240_s3 + $0xe8] sm:$0xff]   ;;  %v3219_v19 = vpack.c.bf16 %v20097_v52, %v20070_v15 }
 0x2ca   :  { %15728 = vmatprep.subr.bf16.mxu1 %v16945_v27 }
 0x2cd   :  { %15729 = vmatpush3.bf16.msra.mxu1 %v16945_v27  ;;  %v3218_v27 = vpack.c.bf16 %v20095_v54, %v20068_v46 }
 0x2ce   :  { %15730 = vmatprep.subr.bf16.mxu1 %v16946_v2 }
 0x2d0   :  { %15715 = vmatmul.mubr.bf16.gmra.mrb[4].mxu1 %v3216_v36  ;;  %v3399_v36 = vld [vmem:[#allocation2 + $0x3] sm:$0xff] }
 0x2d1   :  { %15731 = vmatpush3.bf16.msra.mxu1 %v16946_v2  ;;  %15718 = vmatprep.mubr.bf16.mxu1 %v3217_v24  ;;  %v16950_v2 = vld [vmem:[%s23240_s3 + $0xf0] sm:$0xff]  }
 0x2d2   :  { %15732 = vmatprep.subr.bf16.mxu1 %v16947_v61 }
 0x2d5   :  { %15733 = vmatpush3.bf16.msra.mxu1 %v16947_v61  ;;  %v20410_v61 = vld [vmem:[#allocation2 + $0x132] sm:$0xff] }
 0x2d6   :  { %15734 = vmatprep.subr.bf16.mxu1 %v16948_v9  ;;  %v3220_v24 = vpack.c.bf16 %v20410_v61, %v20072_v10 }
 0x2d8   :  { %15719 = vmatmul.mubr.bf16.gmra.mrb[8].mxu1 %v3218_v27  ;;  %v16952_v27 = vld [vmem:[%s23240_s3 + $0x100] sm:$0xff]  }
 0x2d9   :  { %15735 = vmatpush3.bf16.msra.mxu1 %v16948_v9  ;;  %15722 = vmatprep.mubr.bf16.mxu1 %v3219_v19  ;;  %v3415_v9 = vpack.c.bf16 %v20079_v7, %v3399_v36  ;;  %v16953_v19 = vld [vmem:[%s23240_s3 + $0x108] sm:$0xff]   ;;  %v3417_v36 = vpack.c.bf16 %v23747_v33, %v20083_v23 }
 0x2da   :  { %15736 = vmatprep.subr.bf16.mxu1 %v16949_v40 }
 0x2dd   :  { %15737 = vmatpush3.bf16.msra.mxu1 %v16949_v40  ;;  %v3416_v40 = vpack.c.bf16 %v20081_v43, %v20062_v48 }
 0x2de   :  { %15738 = vmatprep.subr.bf16.mxu1 %v16950_v2 }
 0x2e0   :  { %15723 = vmatmul.mubr.bf16.gmra.mrb[12].mxu1 %v3220_v24  ;;  %v3407_v24 = vld [vmem:[#allocation2 + $0xc3] sm:$0xff] }
 0x2e1   :  { %15739 = vmatpush3.bf16.msra.mxu1 %v16950_v2  ;;  %15742 = vmatprep.mubr.bf16.mxu1 %v3415_v9  ;;  %v16954_v2 = vld [vmem:[%s23240_s3 + $0x110] sm:$0xff]  }
 0x2e2   :  { %15740 = vmatprep.subr.bf16.mxu1 %v16951_v4  ;;  %v23748_v9 = vld [vmem:[#allocation49_spill] sm:$0xff] }
 0x2e5   :  { %15741 = vmatpush3.bf16.msra.mxu1 %v16951_v4  ;;  %v20431_v4 = vld [vmem:[#allocation2 + $0x73] sm:$0xff] }
 0x2e6   :  { %15758 = vmatprep.subr.bf16.mxu1 %v16952_v27  ;;  %v3418_v62 = vpack.c.bf16 %v20431_v4, %v23748_v9 }
 0x2e8   :  { %15743 = vmatmul.mubr.bf16.vlgmr.msra.gmra.mrb[0].mxu1 %v3416_v40  ;;  %v16956_v40 = vld [vmem:[%s23240_s3 + $0x120] sm:$0xff]  }
 0x2e9   :  { %15759 = vmatpush3.bf16.msra.mxu1 %v16952_v27  ;;  %15746 = vmatprep.mubr.bf16.mxu1 %v3417_v36  ;;  %v3419_v27 = vpack.c.bf16 %v20130_v29, %v3407_v24  ;;  %v3421_v24 = vpack.c.bf16 %v20150_v42, %v20114_v56 }
 0x2ea   :  { %15760 = vmatprep.subr.bf16.mxu1 %v16953_v19 }
 0x2ed   :  { %15761 = vmatpush3.bf16.msra.mxu1 %v16953_v19  ;;  %v23749_v19 = vld [vmem:[#allocation51_spill] sm:$0xff] }
 0x2ee   :  { %15762 = vmatprep.subr.bf16.mxu1 %v16954_v2  ;;  %v3420_v36 = vpack.c.bf16 %v20148_v3, %v23749_v19 }
 0x2f0   :  { %15747 = vmatmul.mubr.bf16.gmra.mrb[4].mxu1 %v3418_v62  ;;  %v16958_v62 = vld [vmem:[%s23240_s3 + $0x130] sm:$0xff]  }
 0x2f1   :  { %15763 = vmatpush3.bf16.msra.mxu1 %v16954_v2  ;;  %15750 = vmatprep.mubr.bf16.mxu1 %v3419_v27  ;;  %v3601_v2 = vld [vmem:[#allocation2 + $0x4] sm:$0xff] }
 0x2f2   :  { %15764 = vmatprep.subr.bf16.mxu1 %v16955_v26  ;;  %v23750_v27 = vld [vmem:[#allocation52_spill] sm:$0xff] }
 0x2f5   :  { %15765 = vmatpush3.bf16.msra.mxu1 %v16955_v26  ;;  %v20452_v26 = vld [vmem:[#allocation2 + $0x133] sm:$0xff] }
 0x2f6   :  { %15766 = vmatprep.subr.bf16.mxu1 %v16956_v40  ;;  %v3422_v8 = vpack.c.bf16 %v20452_v26, %v23750_v27 }
 0x2f8   :  { %15751 = vmatmul.mubr.bf16.gmra.mrb[8].mxu1 %v3420_v36  ;;  %v16960_v36 = vld [vmem:[%s23240_s3 + $0x140] sm:$0xff]  }
 0x2f9   :  { %15767 = vmatpush3.bf16.msra.mxu1 %v16956_v40  ;;  %15754 = vmatprep.mubr.bf16.mxu1 %v3421_v24  ;;  %v3617_v40 = vpack.c.bf16 %v20132_v59, %v3601_v2  ;;  %v16961_v24 = vld [vmem:[%s23240_s3 + $0x148] sm:$0xff]   ;;  %v3619_v2 = vpack.c.bf16 %v20136_v31, %v20103_v25 }
 0x2fa   :  { %15768 = vmatprep.subr.bf16.mxu1 %v16957_v22 }
 0x2fd   :  { %15769 = vmatpush3.bf16.msra.mxu1 %v16957_v22  ;;  %v3618_v22 = vpack.c.bf16 %v20134_v38, %v20101_v32 }
 0x2fe   :  { %15770 = vmatprep.subr.bf16.mxu1 %v16958_v62 }
 0x300   :  { %15755 = vmatmul.mubr.bf16.gmra.mrb[12].mxu1 %v3422_v8  ;;  %v16962_v8 = vld [vmem:[%s23240_s3 + $0x150] sm:$0xff]  }
 0x301   :  { %15771 = vmatpush3.bf16.msra.mxu1 %v16958_v62  ;;  %15774 = vmatprep.mubr.bf16.mxu1 %v3617_v40  ;;  %v3609_v62 = vld [vmem:[#allocation2 + $0xc4] sm:$0xff] }
 0x302   :  { %15772 = vmatprep.subr.bf16.mxu1 %v16959_v12 }
 0x305   :  { %15773 = vmatpush3.bf16.msra.mxu1 %v16959_v12  ;;  %v20473_v12 = vld [vmem:[#allocation2 + $0x74] sm:$0xff] }
 0x306   :  { %15790 = vmatprep.subr.bf16.mxu1 %v16960_v36  ;;  %v3620_v40 = vpack.c.bf16 %v20473_v12, %v20138_v41 }
 0x308   :  { %15775 = vmatmul.mubr.bf16.vlgmr.msra.gmra.mrb[0].mxu1 %v3618_v22  ;;  %v16964_v22 = vld [vmem:[%s23240_s3 + $0x160] sm:$0xff]  }
 0x309   :  { %15791 = vmatpush3.bf16.msra.mxu1 %v16960_v36  ;;  %15778 = vmatprep.mubr.bf16.mxu1 %v3619_v2  ;;  %v3621_v36 = vpack.c.bf16 %v20166_v63, %v3609_v62  ;;  %v16965_v2 = vld [vmem:[%s23240_s3 + $0x168] sm:$0xff]   ;;  %v3623_v62 = vpack.c.bf16 %v20201_v11, %v20168_v53 }
 0x30a   :  { %15792 = vmatprep.subr.bf16.mxu1 %v16961_v24 }
 0x30d   :  { %15793 = vmatpush3.bf16.msra.mxu1 %v16961_v24  ;;  %v3622_v24 = vpack.c.bf16 %v20181_v34, %v20152_v20 }
 0x30e   :  { %15794 = vmatprep.subr.bf16.mxu1 %v16962_v8 }
 0x310   :  { %15779 = vmatmul.mubr.bf16.gmra.mrb[4].mxu1 %v3620_v40 }
 0x311   :  { %15795 = vmatpush3.bf16.msra.mxu1 %v16962_v8  ;;  %15782 = vmatprep.mubr.bf16.mxu1 %v3621_v36  ;;  %v16966_v8 = vld [vmem:[%s23240_s3 + $0x170] sm:$0xff]   ;;  %v16967_v36 = vld [vmem:[%s23240_s3 + $0x178] sm:$0xff]  }
 0x312   :  { %15796 = vmatprep.subr.bf16.mxu1 %v16963_v21 }
 0x315   :  { %15797 = vmatpush3.bf16.msra.mxu1 %v16963_v21  ;;  %v20494_v21 = vld [vmem:[#allocation2 + $0x134] sm:$0xff] }
 0x316   :  { %15798 = vmatprep.subr.bf16.mxu1 %v16964_v22  ;;  %v3624_v40 = vpack.c.bf16 %v20494_v21, %v20170_v13 }
 0x318   :  { %15783 = vmatmul.mubr.bf16.gmra.mrb[8].mxu1 %v3622_v24  ;;  %v23752_v24 = vld [vmem:[#allocation9_spill] sm:$0xff] }
 0x319   :  { %15799 = vmatpush3.bf16.msra.mxu1 %v16964_v22  ;;  %15786 = vmatprep.mubr.bf16.mxu1 %v3623_v62  ;;  %v23751_v22 = vld [vmem:[#allocation8_spill] sm:$0xff] }
 0x31a   :  { %15800 = vmatprep.subr.bf16.mxu1 %v16965_v2  ;;  %v23753_v62 = vpack.c.bf16 %v23751_v22, %v23752_v24  ;;  %v16970_v22 = vld [vmem:[%s23240_s3 + $0x190] sm:$0xff]  }
 0x31d   :  { %15801 = vmatpush3.bf16.msra.mxu1 %v16965_v2  ;;  %v20507_v2 = vld [vmem:[#allocation2 + $0x40] sm:$0xff] }
 0x31e   :  { %15802 = vmatprep.subr.bf16.mxu1 %v16966_v8  ;;  %v3821_v50 = vpack.c.bf16 %v20507_v2, %v23754_v14  ;;  %v23755_v14 = vld [vmem:[#allocation53_spill] sm:$0xff] }
 0x320   :  { %15787 = vmatmul.mubr.bf16.gmra.mrb[12].mxu1 %v3624_v40  ;;  %v3822_v40 = vpack.c.bf16 %v20154_v0, %v20128_v60  ;;  %v16971_v60 = vld [vmem:[%s23240_s3 + $0x198] sm:$0xff]  }
 0x321   :  { %15803 = vmatpush3.bf16.msra.mxu1 %v16966_v8  ;;  %15806 = vmatprep.mubr.bf16.mxu1 %v23753_v62  ;;  %v16969_v8 = vld [vmem:[%s23240_s3 + $0x188] sm:$0xff]   ;;  %v3812_v62 = vld [vmem:[#allocation2 + $0xd0] sm:$0xff] }
 0x322   :  { %15804 = vmatprep.subr.bf16.mxu1 %v16967_v36 }
 0x325   :  { %15805 = vmatpush3.bf16.msra.mxu1 %v16967_v36  ;;  %v20519_v36 = vld [vmem:[#allocation2 + $0x80] sm:$0xff] }
 0x326   :  { %15822 = vmatprep.subr.bf16.mxu1 %v16968_v51  ;;  %v3823_v24 = vpack.c.bf16 %v20519_v36, %v23755_v14 }
 0x328   :  { %15807 = vmatmul.mubr.bf16.vlgmr.msra.gmra.mrb[0].mxu1 %v3821_v50  ;;  %v23756_v50 = vld [vmem:[#allocation12_spill] sm:$0xff] }
 0x329   :  { %15823 = vmatpush3.bf16.msra.mxu1 %v16968_v51  ;;  %15810 = vmatprep.mubr.bf16.mxu1 %v3822_v40  ;;  %v3824_v51 = vpack.c.bf16 %v23756_v50, %v3812_v62  ;;  %v16972_v40 = vld [vmem:[%s23240_s3 + $0x1a0] sm:$0xff]   ;;  %v3826_v62 = vpack.c.bf16 %v19998_v28, %v23759_v45  ;;  %v16975_v28 = vld [vmem:[%s23240_s3 + $0x1b8] sm:$0xff]  }
 0x32a   :  { %15824 = vmatprep.subr.bf16.mxu1 %v16969_v8 }
 0x32d   :  { %15825 = vmatpush3.bf16.msra.mxu1 %v16969_v8  ;;  %v23757_v8 = vld [vmem:[#allocation54_spill] sm:$0xff] }
 0x32e   :  { %15826 = vmatprep.subr.bf16.mxu1 %v16970_v22  ;;  %v3825_v30 = vpack.c.bf16 %v23758_v57, %v23757_v8 }
 0x330   :  { %15811 = vmatmul.mubr.bf16.gmra.mrb[4].mxu1 %v3823_v24  ;;  %v20540_v24 = vld [vmem:[#allocation2 + $0x130] sm:$0xff] }
 0x331   :  { %15827 = vmatpush3.bf16.msra.mxu1 %v16970_v22  ;;  %15814 = vmatprep.mubr.bf16.mxu1 %v3824_v51  ;;  %v16974_v22 = vld [vmem:[%s23240_s3 + $0x1b0] sm:$0xff]  }
 0x332   :  { %15828 = vmatprep.subr.bf16.mxu1 %v16971_v60 }
 0x335   :  { %15829 = vmatpush3.bf16.msra.mxu1 %v16971_v60  ;;  %v23760_v60 = vld [vmem:[#allocation47_spill] sm:$0xff] }
 0x336   :  { %15830 = vmatprep.subr.bf16.mxu1 %v16972_v40  ;;  %v3827_v51 = vpack.c.bf16 %v23760_v60, %v20540_v24 }
 0x338   :  { %15815 = vmatmul.mubr.bf16.gmra.mrb[8].mxu1 %v3825_v30  ;;  %v23761_v30 = vld [vmem:[#allocation85_spill] sm:$0xff] }
 0x339   :  { %15831 = vmatpush3.bf16.msra.mxu1 %v16972_v40  ;;  %15818 = vmatprep.mubr.bf16.mxu1 %v3826_v62  ;;  %v4022_v40 = vpack.c.bf16 %v23761_v30, %v4006_v44  ;;  %v16976_v62 = vld [vmem:[%s23240_s3 + $0x1c0] sm:$0xff]   ;;  %v4024_v44 = vpack.c.bf16 %v23765_v47, %v23764_v55 }
 0x33a   :  { %15832 = vmatprep.subr.bf16.mxu1 %v16973_v1  ;;  %v16980_v47 = vld [vmem:[%s23240_s3 + $0x1e0] sm:$0xff]  }
 0x33d   :  { %15833 = vmatpush3.bf16.msra.mxu1 %v16973_v1  ;;  %v23762_v1 = vld [vmem:[#allocation13_spill] sm:$0xff] }
 0x33e   :  { %15834 = vmatprep.subr.bf16.mxu1 %v16974_v22  ;;  %v4023_v60 = vpack.c.bf16 %v23763_v5, %v23762_v1  ;;  %v16979_v5 = vld [vmem:[%s23240_s3 + $0x1d8] sm:$0xff]  }
 0x340   :  { %15819 = vmatmul.mubr.bf16.gmra.mrb[12].mxu1 %v3827_v51  ;;  %v20561_v51 = vld [vmem:[#allocation2 + $0x81] sm:$0xff] }
 0x341   :  { %15835 = vmatpush3.bf16.msra.mxu1 %v16974_v22  ;;  %15838 = vmatprep.mubr.bf16.mxu1 %v4022_v40  ;;  %v16978_v22 = vld [vmem:[%s23240_s3 + $0x1d0] sm:$0xff]   ;;  %23766 = vst [vmem:[#allocation28_spill] sm:$0xff] %v20561_v51 }
 0x342   :  { %15836 = vmatprep.subr.bf16.mxu1 %v16975_v28 }
 0x345   :  { %15837 = vmatpush3.bf16.msra.mxu1 %v16975_v28  ;;  %v23767_v28 = vld [vmem:[#allocation15_spill] sm:$0xff] }
 0x346   :  { %15854 = vmatprep.subr.bf16.mxu1 %v16976_v62  ;;  %v4025_v40 = vpack.c.bf16 %v20561_v51, %v23767_v28  ;;  %v23771_v51 = vld [vmem:[#allocation46_spill] sm:$0xff]  ;;  %v23772_v28 = vld [vmem:[#allocation43_spill] sm:$0xff] }
 0x347   :  { %v23773_v55 = vpack.c.bf16 %v23771_v51, %v23772_v28  ;;  %v16984_v51 = vld [vmem:[%s23240_s3 + $0x200] sm:$0xff]   ;;  %v16985_v28 = vld [vmem:[%s23240_s3 + $0x208] sm:$0xff]  }
 0x348   :  { %15839 = vmatmul.mubr.bf16.vlgmr.msra.gmra.mrb[0].mxu1 %v4023_v60  ;;  %v23769_v60 = vld [vmem:[#allocation7_spill] sm:$0xff] }
 0x349   :  { %15855 = vmatpush3.bf16.msra.mxu1 %v16976_v62  ;;  %15842 = vmatprep.mubr.bf16.mxu1 %v4024_v44  ;;  %v23768_v62 = vld [vmem:[#allocation44_spill] sm:$0xff] }
 0x34a   :  { %15856 = vmatprep.subr.bf16.mxu1 %v16977_v6  ;;  %v23770_v44 = vpack.c.bf16 %v23768_v62, %v23769_v60  ;;  %v16982_v60 = vld [vmem:[%s23240_s3 + $0x1f0] sm:$0xff]  }
 0x34d   :  { %15857 = vmatpush3.bf16.msra.mxu1 %v16977_v6  ;;  %v16981_v6 = vld [vmem:[%s23240_s3 + $0x1e8] sm:$0xff]  }
 0x34e   :  { %15858 = vmatprep.subr.bf16.mxu1 %v16978_v22 }
 0x350   :  { %15843 = vmatmul.mubr.bf16.gmra.mrb[4].mxu1 %v4025_v40  ;;  %v23775_v40 = vld [vmem:[#allocation45_spill] sm:$0xff] }
 0x351   :  { %15859 = vmatpush3.bf16.msra.mxu1 %v16978_v22  ;;  %15846 = vmatprep.mubr.bf16.mxu1 %v23770_v44  ;;  %v23774_v22 = vld [vmem:[#allocation48_spill] sm:$0xff]  ;;  %v23777_v44 = vld [vmem:[#allocation10_spill] sm:$0xff] }
 0x352   :  { %15860 = vmatprep.subr.bf16.mxu1 %v16979_v5  ;;  %v23776_v62 = vpack.c.bf16 %v23774_v22, %v23775_v40  ;;  %v20636_v40 = vld [vmem:[#allocation2 + $0x142] sm:$0xff] }
 0x355   :  { %15861 = vmatpush3.bf16.msra.mxu1 %v16979_v5  ;;  %v20586_v5 = vld [vmem:[#allocation2 + $0x141] sm:$0xff] }
 0x356   :  { %15862 = vmatprep.subr.bf16.mxu1 %v16980_v47  ;;  %v4029_v30 = vpack.c.bf16 %v20586_v5, %v23777_v44 }
 0x358   :  { %15847 = vmatmul.mubr.bf16.gmra.mrb[8].mxu1 %v23773_v55  ;;  %v23778_v55 = vpack.c.bf16 %v20050_v58, %v20048_v35  ;;  %v23780_v35 = vpack.c.bf16 %v20060_v39, %v20077_v18  ;;  %v16986_v58 = vld [vmem:[%s23240_s3 + $0x210] sm:$0xff]   ;;  %v16988_v39 = vld [vmem:[%s23240_s3 + $0x220] sm:$0xff]   ;;  %v16989_v18 = vld [vmem:[%s23240_s3 + $0x228] sm:$0xff]  }
 0x359   :  { %15863 = vmatpush3.bf16.msra.mxu1 %v16980_v47  ;;  %15850 = vmatprep.mubr.bf16.mxu1 %v23776_v62  ;;  %v16983_v47 = vld [vmem:[%s23240_s3 + $0x1f8] sm:$0xff]   ;;  %v4231_v62 = vpack.c.bf16 %v20636_v40, %v20410_v61  ;;  %v23785_v61 = vpack.c.bf16 %v20083_v23, %v20081_v43  ;;  %v23787_v23 = vpack.c.bf16 %v23749_v19, %v20130_v29  ;;  %v16998_v19 = vld [vmem:[%s23240_s3 + $0x270] sm:$0xff]  }
 0x35a   :  { %15864 = vmatprep.subr.bf16.mxu1 %v16981_v6  ;;  %v16995_v43 = vld [vmem:[%s23240_s3 + $0x258] sm:$0xff]   ;;  %v23789_v29 = vpack.c.bf16 %v23750_v27, %v20150_v42  ;;  %v23790_v42 = vpack.c.bf16 %v20101_v32, %v20132_v59  ;;  %v23791_v27 = vpack.c.bf16 %v20103_v25, %v20134_v38  ;;  %v23792_v59 = vpack.c.bf16 %v20138_v41, %v20136_v31  ;;  %v17002_v32 = vld [vmem:[%s23240_s3 + $0x290] sm:$0xff]   ;;  %v17004_v25 = vld [vmem:[%s23240_s3 + $0x2a0] sm:$0xff]  }
 0x35b   :  { %v17003_v38 = vld [vmem:[%s23240_s3 + $0x298] sm:$0xff]   ;;  %v23793_v31 = vpack.c.bf16 %v20152_v20, %v20166_v63  ;;  %v17005_v41 = vld [vmem:[%s23240_s3 + $0x2a8] sm:$0xff]   ;;  %v23795_v20 = vpack.c.bf16 %v20170_v13, %v20201_v11  ;;  %v17006_v63 = vld [vmem:[%s23240_s3 + $0x2b0] sm:$0xff]  }
 0x35c   :  { %v17008_v11 = vld [vmem:[%s23240_s3 + $0x2c0] sm:$0xff]  }
 0x35d   :  { %15865 = vmatpush3.bf16.msra.mxu1 %v16981_v6  ;;  %v23779_v6 = vpack.c.bf16 %v20058_v37, %v20056_v17  ;;  %v16987_v17 = vld [vmem:[%s23240_s3 + $0x218] sm:$0xff]   ;;  %v23781_v37 = vpack.c.bf16 %v20068_v46, %v20093_v16  ;;  %v23783_v46 = vpack.c.bf16 %v20072_v10, %v20097_v52  ;;  %v16990_v16 = vld [vmem:[%s23240_s3 + $0x230] sm:$0xff]   ;;  %v23784_v10 = vpack.c.bf16 %v20062_v48, %v20079_v7  ;;  %v16993_v52 = vld [vmem:[%s23240_s3 + $0x248] sm:$0xff]  }
 0x35e   :  { %15866 = vmatprep.subr.bf16.mxu1 %v16982_v60  ;;  %v23786_v48 = vpack.c.bf16 %v23748_v9, %v23747_v33  ;;  %v16994_v7 = vld [vmem:[%s23240_s3 + $0x250] sm:$0xff]   ;;  %v16996_v33 = vld [vmem:[%s23240_s3 + $0x260] sm:$0xff]   ;;  %v23788_v9 = vpack.c.bf16 %v20114_v56, %v20148_v3  ;;  %v16999_v3 = vld [vmem:[%s23240_s3 + $0x278] sm:$0xff]  }
 0x35f   :  { %v17000_v56 = vld [vmem:[%s23240_s3 + $0x280] sm:$0xff]  }
 0x360   :  { %15851 = vmatmul.mubr.bf16.gmra.mrb[12].mxu1 %v4029_v30  ;;  %v20611_v30 = vld [vmem:[#allocation2 + $0x82] sm:$0xff] }
 0x361   :  { %15867 = vmatpush3.bf16.msra.mxu1 %v16982_v60  ;;  %15870 = vmatprep.mubr.bf16.mxu1 %v23778_v55  ;;  %v4227_v22 = vpack.c.bf16 %v20611_v30, %v20389_v49  ;;  %v23782_v49 = vpack.c.bf16 %v20070_v15, %v20095_v54  ;;  %v16991_v15 = vld [vmem:[%s23240_s3 + $0x238] sm:$0xff]   ;;  %v16992_v54 = vld [vmem:[%s23240_s3 + $0x240] sm:$0xff]  }
 0x362   :  { %15868 = vmatprep.subr.bf16.mxu1 %v16983_v47  ;;  %v20661_v60 = vld [vmem:[#allocation2 + $0x83] sm:$0xff] }
 0x363   :  { %v4429_v44 = vpack.c.bf16 %v20661_v60, %v20431_v4  ;;  %v16997_v4 = vld [vmem:[%s23240_s3 + $0x268] sm:$0xff]  }
 0x365   :  { %15869 = vmatpush3.bf16.msra.mxu1 %v16983_v47  ;;  %v20686_v47 = vld [vmem:[#allocation2 + $0x143] sm:$0xff] }
 0x366   :  { %15886 = vmatprep.subr.bf16.mxu1 %v16984_v51  ;;  %v4433_v55 = vpack.c.bf16 %v20686_v47, %v20452_v26  ;;  %v17001_v26 = vld [vmem:[%s23240_s3 + $0x288] sm:$0xff]  }
 0x368   :  { %15871 = vmatmul.mubr.bf16.vlgmr.msra.gmra.mrb[0].mxu1 %v23779_v6  ;;  %v20736_v6 = vld [vmem:[#allocation2 + $0x144] sm:$0xff] }
 0x369   :  { %15887 = vmatpush3.bf16.msra.mxu1 %v16984_v51  ;;  %15874 = vmatprep.mubr.bf16.mxu1 %v23780_v35  ;;  %v20711_v51 = vld [vmem:[#allocation2 + $0x84] sm:$0xff] }
 0x36a   :  { %15888 = vmatprep.subr.bf16.mxu1 %v16985_v28  ;;  %v4815_v35 = vld [vmem:[#allocation2 + $0x20] sm:$0xff] }
 0x36d   :  { %15889 = vmatpush3.bf16.msra.mxu1 %v16985_v28  ;;  %v4631_v28 = vpack.c.bf16 %v20711_v51, %v20473_v12  ;;  %v23794_v12 = vpack.c.bf16 %v20168_v53, %v20181_v34  ;;  %v4635_v34 = vpack.c.bf16 %v20736_v6, %v20494_v21  ;;  %v17007_v53 = vld [vmem:[%s23240_s3 + $0x2b8] sm:$0xff]  }
 0x36e   :  { %15890 = vmatprep.subr.bf16.mxu1 %v16986_v58 }
 0x370   :  { %15875 = vmatmul.mubr.bf16.gmra.mrb[4].mxu1 %v4227_v22  ;;  %v20749_v22 = vld [vmem:[#allocation2 + $0x50] sm:$0xff] }
 0x371   :  { %15891 = vmatpush3.bf16.msra.mxu1 %v16986_v58  ;;  %15878 = vmatprep.mubr.bf16.mxu1 %v23781_v37  ;;  %v20738_v58 = vld [vmem:[#allocation2 + $0x30] sm:$0xff]  ;;  %v4832_v21 = vpack.c.bf16 %v20749_v22, %v20507_v2  ;;  %v23796_v37 = vpack.c.bf16 %v23755_v14, %v20154_v0  ;;  %v23797_v0 = vpack.c.bf16 %v23757_v8, %v23756_v50  ;;  %v17012_v14 = vld [vmem:[%s23240_s3 + $0x2e0] sm:$0xff]  }
 0x372   :  { %15892 = vmatprep.subr.bf16.mxu1 %v16987_v17  ;;  %v4831_v13 = vpack.c.bf16 %v20738_v58, %v4815_v35  ;;  %v23798_v50 = vpack.c.bf16 %v23759_v45, %v23758_v57  ;;  %v17014_v8 = vld [vmem:[%s23240_s3 + $0x2f0] sm:$0xff]   ;;  %v17015_v45 = vld [vmem:[%s23240_s3 + $0x2f8] sm:$0xff]  }
 0x373   :  { %v23799_v57 = vld [vmem:[#allocation85_spill] sm:$0xff] }
 0x375   :  { %15893 = vmatpush3.bf16.msra.mxu1 %v16987_v17  ;;  %v17009_v17 = vld [vmem:[%s23240_s3 + $0x2c8] sm:$0xff]  }
 0x376   :  { %15894 = vmatprep.subr.bf16.mxu1 %v16988_v39 }
 0x378   :  { %15879 = vmatmul.mubr.bf16.gmra.mrb[8].mxu1 %v23782_v49  ;;  %v17011_v49 = vld [vmem:[%s23240_s3 + $0x2d8] sm:$0xff]  }
 0x379   :  { %15895 = vmatpush3.bf16.msra.mxu1 %v16988_v39  ;;  %15882 = vmatprep.mubr.bf16.mxu1 %v23783_v46  ;;  %v17010_v39 = vld [vmem:[%s23240_s3 + $0x2d0] sm:$0xff]   ;;  %v20775_v46 = vld [vmem:[#allocation2 + $0x120] sm:$0xff] }
 0x37a   :  { %15896 = vmatprep.subr.bf16.mxu1 %v16989_v18 }
 0x37d   :  { %15897 = vmatpush3.bf16.msra.mxu1 %v16989_v18  ;;  %v20762_v18 = vld [vmem:[#allocation2 + $0x90] sm:$0xff] }
 0x37e   :  { %15898 = vmatprep.subr.bf16.mxu1 %v16990_v16  ;;  %v4834_v2 = vpack.c.bf16 %v20762_v18, %v20519_v36  ;;  %v17013_v36 = vld [vmem:[%s23240_s3 + $0x2e8] sm:$0xff]  }
 0x380   :  { %15883 = vmatmul.mubr.bf16.gmra.mrb[12].mxu1 %v4231_v62  ;;  %v20788_v62 = vld [vmem:[#allocation2 + $0x140] sm:$0xff] }
 0x381   :  { %15899 = vmatpush3.bf16.msra.mxu1 %v16990_v16  ;;  %15902 = vmatprep.mubr.bf16.mxu1 %v23784_v10  ;;  %v4837_v16 = vpack.c.bf16 %v20540_v24, %v20775_v46  ;;  %v23800_v10 = vpack.c.bf16 %v23762_v1, %v23799_v57  ;;  %v17029_v57 = vld [vmem:[%s23240_s3 + $0x368] sm:$0xff]  }
 0x382   :  { %15900 = vmatprep.subr.bf16.mxu1 %v16991_v15 }
 0x385   :  { %15901 = vmatpush3.bf16.msra.mxu1 %v16991_v15  ;;  %v20790_v15 = vld [vmem:[#allocation2 + $0x150] sm:$0xff] }
 0x386   :  { %15918 = vmatprep.subr.bf16.mxu1 %v16992_v54  ;;  %v4838_v24 = vpack.c.bf16 %v20790_v15, %v20788_v62 }
 0x388   :  { %15903 = vmatmul.mubr.bf16.vlgmr.msra.gmra.mrb[0].mxu1 %v23785_v61  ;;  %v23801_v61 = vld [vmem:[#allocation56_spill] sm:$0xff] }
 0x389   :  { %15919 = vmatpush3.bf16.msra.mxu1 %v16992_v54  ;;  %15906 = vmatprep.mubr.bf16.mxu1 %v23786_v48  ;;  %v17016_v54 = vld [vmem:[%s23240_s3 + $0x300] sm:$0xff]  }
 0x38a   :  { %15920 = vmatprep.subr.bf16.mxu1 %v16993_v52  ;;  %v23802_v48 = vld [vmem:[#allocation55_spill] sm:$0xff] }
 0x38d   :  { %15921 = vmatpush3.bf16.msra.mxu1 %v16993_v52  ;;  %v17017_v52 = vld [vmem:[%s23240_s3 + $0x308] sm:$0xff]  }
 0x38e   :  { %15922 = vmatprep.subr.bf16.mxu1 %v16994_v7 }
 0x390   :  { %15907 = vmatmul.mubr.bf16.gmra.mrb[4].mxu1 %v4429_v44  ;;  %v23804_v44 = vld [vmem:[#allocation15_spill] sm:$0xff] }
 0x391   :  { %15923 = vmatpush3.bf16.msra.mxu1 %v16994_v7  ;;  %15910 = vmatprep.mubr.bf16.mxu1 %v23787_v23  ;;  %v23803_v7 = vpack.c.bf16 %v23801_v61, %v23802_v48  ;;  %v17018_v23 = vld [vmem:[%s23240_s3 + $0x310] sm:$0xff]   ;;  %v5421_v48 = vld [vmem:[#allocation2 + $0x23] sm:$0xff] }
 0x392   :  { %15924 = vmatprep.subr.bf16.mxu1 %v16995_v43  ;;  %v20884_v61 = vld [vmem:[#allocation2 + $0x152] sm:$0xff] }
 0x395   :  { %15925 = vmatpush3.bf16.msra.mxu1 %v16995_v43  ;;  %v23805_v43 = vld [vmem:[#allocation87_spill] sm:$0xff] }
 0x396   :  { %15926 = vmatprep.subr.bf16.mxu1 %v16996_v33  ;;  %v23806_v1 = vpack.c.bf16 %v23804_v44, %v23805_v43  ;;  %v17031_v44 = vld [vmem:[%s23240_s3 + $0x378] sm:$0xff]   ;;  %v23820_v43 = vld [vmem:[#allocation19_spill] sm:$0xff] }
 0x398   :  { %15911 = vmatmul.mubr.bf16.gmra.mrb[8].mxu1 %v23788_v9  ;;  %v23807_v9 = vld [vmem:[#allocation28_spill] sm:$0xff] }
 0x399   :  { %15927 = vmatpush3.bf16.msra.mxu1 %v16996_v33  ;;  %15914 = vmatprep.mubr.bf16.mxu1 %v23789_v29  ;;  %v20815_v33 = vld [vmem:[#allocation2 + $0x91] sm:$0xff] }
 0x39a   :  { %15928 = vmatprep.subr.bf16.mxu1 %v16997_v4  ;;  %v5036_v29 = vpack.c.bf16 %v20815_v33, %v23807_v9  ;;  %v18728_v9 = vld [vmem:[#allocation2 + $0x43] sm:$0xff] }
 0x39d   :  { %15929 = vmatpush3.bf16.msra.mxu1 %v16997_v4  ;;  %v5025_v4 = vld [vmem:[#allocation2 + $0xe1] sm:$0xff] }
 0x39e   :  { %15930 = vmatprep.subr.bf16.mxu1 %v16998_v19 }
 0x3a0   :  { %15915 = vmatmul.mubr.bf16.gmra.mrb[12].mxu1 %v4433_v55  ;;  %v23808_v55 = vld [vmem:[#allocation58_spill] sm:$0xff] }
 0x3a1   :  { %15931 = vmatpush3.bf16.msra.mxu1 %v16998_v19  ;;  %15934 = vmatprep.mubr.bf16.mxu1 %v23790_v42  ;;  %v17019_v19 = vld [vmem:[%s23240_s3 + $0x318] sm:$0xff]   ;;  %v17020_v42 = vld [vmem:[%s23240_s3 + $0x320] sm:$0xff]  }
 0x3a2   :  { %15932 = vmatprep.subr.bf16.mxu1 %v16999_v3 }
 0x3a5   :  { %15933 = vmatpush3.bf16.msra.mxu1 %v16999_v3  ;;  %v5037_v3 = vpack.c.bf16 %v23808_v55, %v5025_v4  ;;  %v20895_v4 = vld [vmem:[#allocation2 + $0x73] sm:$0xff] }
 0x3a6   :  { %15950 = vmatprep.subr.bf16.mxu1 %v17000_v56 }
 0x3a8   :  { %15935 = vmatmul.mubr.bf16.vlgmr.msra.gmra.mrb[0].mxu1 %v23791_v27  ;;  %v23810_v27 = vld [vmem:[#allocation89_spill] sm:$0xff] }
 0x3a9   :  { %15951 = vmatpush3.bf16.msra.mxu1 %v17000_v56  ;;  %15938 = vmatprep.mubr.bf16.mxu1 %v23792_v59  ;;  %v20826_v56 = vld [vmem:[#allocation2 + $0x131] sm:$0xff] }
 0x3aa   :  { %15952 = vmatprep.subr.bf16.mxu1 %v17001_v26 }
 0x3ad   :  { %15953 = vmatpush3.bf16.msra.mxu1 %v17001_v26  ;;  %v23809_v26 = vld [vmem:[#allocation57_spill] sm:$0xff] }
 0x3ae   :  { %15954 = vmatprep.subr.bf16.mxu1 %v17002_v32  ;;  %v5038_v59 = vpack.c.bf16 %v23810_v27, %v23809_v26 }
 0x3b0   :  { %15939 = vmatmul.mubr.bf16.gmra.mrb[4].mxu1 %v4631_v28  ;;  %v23811_v28 = vld [vmem:[#allocation16_spill] sm:$0xff] }
 0x3b1   :  { %15955 = vmatpush3.bf16.msra.mxu1 %v17002_v32  ;;  %15942 = vmatprep.mubr.bf16.mxu1 %v23793_v31  ;;  %v17021_v32 = vld [vmem:[%s23240_s3 + $0x328] sm:$0xff]   ;;  %v17022_v31 = vld [vmem:[%s23240_s3 + $0x330] sm:$0xff]  }
 0x3b2   :  { %15956 = vmatprep.subr.bf16.mxu1 %v17003_v38 }
 0x3b5   :  { %15957 = vmatpush3.bf16.msra.mxu1 %v17003_v38  ;;  %v5039_v38 = vpack.c.bf16 %v20826_v56, %v23811_v28 }
 0x3b6   :  { %15958 = vmatprep.subr.bf16.mxu1 %v17004_v25 }
 0x3b8   :  { %15943 = vmatmul.mubr.bf16.gmra.mrb[8].mxu1 %v23794_v12 }
 0x3b9   :  { %15959 = vmatpush3.bf16.msra.mxu1 %v17004_v25  ;;  %15946 = vmatprep.mubr.bf16.mxu1 %v23795_v20  ;;  %v20838_v25 = vld [vmem:[#allocation2 + $0x151] sm:$0xff] }
 0x3ba   :  { %15960 = vmatprep.subr.bf16.mxu1 %v17005_v41  ;;  %v5040_v12 = vpack.c.bf16 %v20838_v25, %v20586_v5  ;;  %v17023_v20 = vld [vmem:[%s23240_s3 + $0x338] sm:$0xff]  }
 0x3bb   :  { %v23814_v5 = vld [vmem:[#allocation90_spill] sm:$0xff] }
 0x3bd   :  { %15961 = vmatpush3.bf16.msra.mxu1 %v17005_v41  ;;  %v5219_v41 = vld [vmem:[#allocation2 + $0x22] sm:$0xff] }
 0x3be   :  { %15962 = vmatprep.subr.bf16.mxu1 %v17006_v63 }
 0x3c0   :  { %15947 = vmatmul.mubr.bf16.gmra.mrb[12].mxu1 %v4635_v34  ;;  %v17024_v34 = vld [vmem:[%s23240_s3 + $0x340] sm:$0xff]  }
 0x3c1   :  { %15963 = vmatpush3.bf16.msra.mxu1 %v17006_v63  ;;  %15966 = vmatprep.mubr.bf16.mxu1 %v4831_v13  ;;  %v23812_v63 = vld [vmem:[#allocation88_spill] sm:$0xff]  ;;  %v23813_v13 = vld [vmem:[#allocation17_spill] sm:$0xff] }
 0x3c2   :  { %15964 = vmatprep.subr.bf16.mxu1 %v17007_v53  ;;  %v5235_v35 = vpack.c.bf16 %v23812_v63, %v5219_v41  ;;  %v17035_v41 = vld [vmem:[%s23240_s3 + $0x398] sm:$0xff]  }
 0x3c5   :  { %15965 = vmatpush3.bf16.msra.mxu1 %v17007_v53  ;;  %v20849_v53 = vld [vmem:[#allocation2 + $0x72] sm:$0xff] }
 0x3c6   :  { %15982 = vmatprep.subr.bf16.mxu1 %v17008_v11 }
 0x3c8   :  { %15967 = vmatmul.mubr.bf16.vlgmr.msra.gmra.mrb[0].mxu1 %v4832_v21  ;;  %v17025_v21 = vld [vmem:[%s23240_s3 + $0x348] sm:$0xff]  }
 0x3c9   :  { %15983 = vmatpush3.bf16.msra.mxu1 %v17008_v11  ;;  %15970 = vmatprep.mubr.bf16.mxu1 %v23796_v37  ;;  %v5236_v11 = vpack.c.bf16 %v23814_v5, %v23813_v13 }
 0x3ca   :  { %15984 = vmatprep.subr.bf16.mxu1 %v17009_v17 }
 0x3cd   :  { %15985 = vmatpush3.bf16.msra.mxu1 %v17009_v17  ;;  %v23815_v17 = vld [vmem:[#allocation59_spill] sm:$0xff] }
 0x3ce   :  { %15986 = vmatprep.subr.bf16.mxu1 %v17010_v39  ;;  %v5237_v37 = vpack.c.bf16 %v20849_v53, %v23815_v17 }
 0x3d0   :  { %15971 = vmatmul.mubr.bf16.gmra.mrb[4].mxu1 %v4834_v2  ;;  %v20861_v2 = vld [vmem:[#allocation2 + $0x92] sm:$0xff] }
 0x3d1   :  { %15987 = vmatpush3.bf16.msra.mxu1 %v17010_v39  ;;  %15974 = vmatprep.mubr.bf16.mxu1 %v23797_v0  ;;  %v17026_v39 = vld [vmem:[%s23240_s3 + $0x350] sm:$0xff]   ;;  %v5238_v0 = vpack.c.bf16 %v20861_v2, %v20611_v30  ;;  %v23818_v30 = vld [vmem:[#allocation62_spill] sm:$0xff] }
 0x3d2   :  { %15988 = vmatprep.subr.bf16.mxu1 %v17011_v49 }
 0x3d5   :  { %15989 = vmatpush3.bf16.msra.mxu1 %v17011_v49  ;;  %v5227_v49 = vld [vmem:[#allocation2 + $0xe2] sm:$0xff] }
 0x3d6   :  { %15990 = vmatprep.subr.bf16.mxu1 %v17012_v14 }
 0x3d8   :  { %15975 = vmatmul.mubr.bf16.gmra.mrb[8].mxu1 %v23798_v50  ;;  %v17028_v50 = vld [vmem:[%s23240_s3 + $0x360] sm:$0xff]  }
 0x3d9   :  { %15991 = vmatpush3.bf16.msra.mxu1 %v17012_v14  ;;  %15978 = vmatprep.mubr.bf16.mxu1 %v4837_v16  ;;  %v17027_v14 = vld [vmem:[%s23240_s3 + $0x358] sm:$0xff]  }
 0x3da   :  { %15992 = vmatprep.subr.bf16.mxu1 %v17013_v36 }
 0x3dd   :  { %15993 = vmatpush3.bf16.msra.mxu1 %v17013_v36  ;;  %v23816_v36 = vld [vmem:[#allocation20_spill] sm:$0xff] }
 0x3de   :  { %15994 = vmatprep.subr.bf16.mxu1 %v17014_v8  ;;  %v5239_v16 = vpack.c.bf16 %v23816_v36, %v5227_v49 }
 0x3e0   :  { %15979 = vmatmul.mubr.bf16.gmra.mrb[12].mxu1 %v4838_v24  ;;  %v23817_v24 = vld [vmem:[#allocation18_spill] sm:$0xff] }
 0x3e1   :  { %15995 = vmatpush3.bf16.msra.mxu1 %v17014_v8  ;;  %15998 = vmatprep.mubr.bf16.mxu1 %v23800_v10  ;;  %v20872_v8 = vld [vmem:[#allocation2 + $0x132] sm:$0xff]  ;;  %v23819_v10 = vld [vmem:[#allocation60_spill] sm:$0xff] }
 0x3e2   :  { %15996 = vmatprep.subr.bf16.mxu1 %v17015_v45 }
 0x3e5   :  { %15997 = vmatpush3.bf16.msra.mxu1 %v17015_v45  ;;  %v5240_v45 = vpack.c.bf16 %v23818_v30, %v23817_v24 }
 0x3e6   :  { %16014 = vmatprep.subr.bf16.mxu1 %v17016_v54 }
 0x3e8   :  { %15999 = vmatmul.mubr.bf16.vlgmr.msra.gmra.mrb[0].mxu1 %v23803_v7  ;;  %v5242_v7 = vpack.c.bf16 %v20884_v61, %v20636_v40  ;;  %v23821_v40 = vld [vmem:[#allocation63_spill] sm:$0xff] }
 0x3e9   :  { %16015 = vmatpush3.bf16.msra.mxu1 %v17016_v54  ;;  %16002 = vmatprep.mubr.bf16.mxu1 %v23806_v1  ;;  %v5241_v54 = vpack.c.bf16 %v20872_v8, %v23819_v10  ;;  %v5437_v1 = vpack.c.bf16 %v23820_v43, %v5421_v48  ;;  %v20934_v48 = vld [vmem:[#allocation2 + $0x74] sm:$0xff] }
 0x3ea   :  { %16016 = vmatprep.subr.bf16.mxu1 %v17017_v52 }
 0x3ed   :  { %16017 = vmatpush3.bf16.msra.mxu1 %v17017_v52  ;;  %v17030_v52 = vld [vmem:[%s23240_s3 + $0x370] sm:$0xff]  }
 0x3ee   :  { %16018 = vmatprep.subr.bf16.mxu1 %v17018_v23 }
 0x3f0   :  { %16003 = vmatmul.mubr.bf16.gmra.mrb[4].mxu1 %v5036_v29  ;;  %v5438_v29 = vpack.c.bf16 %v23821_v40, %v18728_v9 }
 0x3f1   :  { %16019 = vmatpush3.bf16.msra.mxu1 %v17018_v23  ;;  %16006 = vmatprep.mubr.bf16.mxu1 %v5037_v3  ;;  %v17032_v23 = vld [vmem:[%s23240_s3 + $0x380] sm:$0xff]  }
 0x3f2   :  { %16020 = vmatprep.subr.bf16.mxu1 %v17019_v19  ;;  %v18729_v3 = vld [vmem:[#allocation2 + $0x63] sm:$0xff] }
 0x3f5   :  { %16021 = vmatpush3.bf16.msra.mxu1 %v17019_v19  ;;  %v17033_v19 = vld [vmem:[%s23240_s3 + $0x388] sm:$0xff]  }
 0x3f6   :  { %16022 = vmatprep.subr.bf16.mxu1 %v17020_v42 }
 0x3f8   :  { %16007 = vmatmul.mubr.bf16.gmra.mrb[8].mxu1 %v5038_v59  ;;  %v17034_v59 = vld [vmem:[%s23240_s3 + $0x390] sm:$0xff]  }
 0x3f9   :  { %16023 = vmatpush3.bf16.msra.mxu1 %v17020_v42  ;;  %16010 = vmatprep.mubr.bf16.mxu1 %v5039_v38  ;;  %v5439_v42 = vpack.c.bf16 %v20895_v4, %v18729_v3  ;;  %v5429_v38 = vld [vmem:[#allocation2 + $0xe3] sm:$0xff] }
 0x3fa   :  { %16024 = vmatprep.subr.bf16.mxu1 %v17021_v32  ;;  %v5631_v3 = vld [vmem:[#allocation2 + $0xe4] sm:$0xff] }
 0x3fd   :  { %16025 = vmatpush3.bf16.msra.mxu1 %v17021_v32  ;;  %v20905_v32 = vld [vmem:[#allocation2 + $0x93] sm:$0xff] }
 0x3fe   :  { %16026 = vmatprep.subr.bf16.mxu1 %v17022_v31 }
 0x400   :  { %16011 = vmatmul.mubr.bf16.gmra.mrb[12].mxu1 %v5040_v12  ;;  %v18730_v12 = vld [vmem:[#allocation2 + $0xf3] sm:$0xff] }
 0x401   :  { %16027 = vmatpush3.bf16.msra.mxu1 %v17022_v31  ;;  %16030 = vmatprep.mubr.bf16.mxu1 %v5235_v35  ;;  %v5440_v31 = vpack.c.bf16 %v20905_v32, %v20661_v60  ;;  %v17036_v35 = vld [vmem:[%s23240_s3 + $0x3a0] sm:$0xff]   ;;  %v18732_v60 = vld [vmem:[#allocation2 + $0x113] sm:$0xff] }
 0x402   :  { %16028 = vmatprep.subr.bf16.mxu1 %v17023_v20 }
 0x405   :  { %16029 = vmatpush3.bf16.msra.mxu1 %v17023_v20  ;;  %v5441_v20 = vpack.c.bf16 %v18730_v12, %v5429_v38  ;;  %v18738_v38 = vld [vmem:[#allocation2 + $0xf4] sm:$0xff] }
 0x406   :  { %16046 = vmatprep.subr.bf16.mxu1 %v17024_v34  ;;  %v20953_v12 = vld [vmem:[#allocation2 + $0x134] sm:$0xff] }
 0x408   :  { %16031 = vmatmul.mubr.bf16.vlgmr.msra.gmra.mrb[0].mxu1 %v5236_v11  ;;  %v18731_v11 = vld [vmem:[#allocation2 + $0x103] sm:$0xff] }
 0x409   :  { %16047 = vmatpush3.bf16.msra.mxu1 %v17024_v34  ;;  %16034 = vmatprep.mubr.bf16.mxu1 %v5237_v37  ;;  %v20915_v34 = vld [vmem:[#allocation2 + $0x133] sm:$0xff]  ;;  %v17037_v37 = vld [vmem:[%s23240_s3 + $0x3a8] sm:$0xff]  }
 0x40a   :  { %16048 = vmatprep.subr.bf16.mxu1 %v17025_v21 }
 0x40d   :  { %16049 = vmatpush3.bf16.msra.mxu1 %v17025_v21  ;;  %v5442_v21 = vpack.c.bf16 %v18732_v60, %v18731_v11  ;;  %v17045_v11 = vld [vmem:[%s23240_s3 + $0x3e8] sm:$0xff]  }
 0x40e   :  { %16050 = vmatprep.subr.bf16.mxu1 %v17026_v39  ;;  %v18741_v60 = vld [vmem:[#allocation2 + $0x124] sm:$0xff] }
 0x410   :  { %16035 = vmatmul.mubr.bf16.gmra.mrb[4].mxu1 %v5238_v0  ;;  %v17038_v0 = vld [vmem:[%s23240_s3 + $0x3b0] sm:$0xff]  }
 0x411   :  { %16051 = vmatpush3.bf16.msra.mxu1 %v17026_v39  ;;  %16038 = vmatprep.mubr.bf16.mxu1 %v5239_v16  ;;  %v18733_v39 = vld [vmem:[#allocation2 + $0x123] sm:$0xff] }
 0x412   :  { %16052 = vmatprep.subr.bf16.mxu1 %v17027_v14  ;;  %v5443_v49 = vpack.c.bf16 %v20915_v34, %v18733_v39  ;;  %v5623_v16 = vld [vmem:[#allocation2 + $0x24] sm:$0xff]  ;;  %v20962_v39 = vld [vmem:[#allocation2 + $0x154] sm:$0xff] }
 0x415   :  { %16053 = vmatpush3.bf16.msra.mxu1 %v17027_v14  ;;  %v20924_v14 = vld [vmem:[#allocation2 + $0x153] sm:$0xff] }
 0x416   :  { %16054 = vmatprep.subr.bf16.mxu1 %v17028_v50 }
 0x418   :  { %16039 = vmatmul.mubr.bf16.gmra.mrb[8].mxu1 %v5240_v45  ;;  %v17039_v45 = vld [vmem:[%s23240_s3 + $0x3b8] sm:$0xff]  }
 0x419   :  { %16055 = vmatpush3.bf16.msra.mxu1 %v17028_v50  ;;  %16042 = vmatprep.mubr.bf16.mxu1 %v5241_v54  ;;  %v5444_v50 = vpack.c.bf16 %v20924_v14, %v20686_v47  ;;  %v18736_v47 = vld [vmem:[#allocation2 + $0x54] sm:$0xff] }
 0x41a   :  { %16056 = vmatprep.subr.bf16.mxu1 %v17029_v57 }
 0x41d   :  { %16057 = vmatpush3.bf16.msra.mxu1 %v17029_v57  ;;  %v18734_v57 = vld [vmem:[#allocation2 + $0x34] sm:$0xff] }
 0x41e   :  { %16058 = vmatprep.subr.bf16.mxu1 %v17030_v52  ;;  %v5639_v54 = vpack.c.bf16 %v18734_v57, %v5623_v16  ;;  %v17047_v16 = vld [vmem:[%s23240_s3 + $0x3f8] sm:$0xff]   ;;  %v20976_v57 = vld [vmem:[#allocation2 + $0x80] sm:$0xff] }
 0x420   :  { %16043 = vmatmul.mubr.bf16.gmra.mrb[12].mxu1 %v5242_v7  ;;  %v18735_v7 = vld [vmem:[#allocation2 + $0x44] sm:$0xff] }
 0x421   :  { %16059 = vmatpush3.bf16.msra.mxu1 %v17030_v52  ;;  %16062 = vmatprep.mubr.bf16.mxu1 %v5437_v1  ;;  %v17040_v52 = vld [vmem:[%s23240_s3 + $0x3c0] sm:$0xff]   ;;  %v17041_v1 = vld [vmem:[%s23240_s3 + $0x3c8] sm:$0xff]  }
 0x422   :  { %16060 = vmatprep.subr.bf16.mxu1 %v17031_v44 }
 0x425   :  { %16061 = vmatpush3.bf16.msra.mxu1 %v17031_v44  ;;  %v5640_v44 = vpack.c.bf16 %v18736_v47, %v18735_v7  ;;  %v17050_v47 = vld [vmem:[%s23240_s3 + $0x410] sm:$0xff]  }
 0x426   :  { %16078 = vmatprep.subr.bf16.mxu1 %v17032_v23 }
 0x428   :  { %16063 = vmatmul.mubr.bf16.vlgmr.msra.gmra.mrb[0].mxu1 %v5438_v29  ;;  %v17042_v29 = vld [vmem:[%s23240_s3 + $0x3d0] sm:$0xff]  }
 0x429   :  { %16079 = vmatpush3.bf16.msra.mxu1 %v17032_v23  ;;  %16066 = vmatprep.mubr.bf16.mxu1 %v5439_v42  ;;  %v18737_v23 = vld [vmem:[#allocation2 + $0x64] sm:$0xff] }
 0x42a   :  { %16080 = vmatprep.subr.bf16.mxu1 %v17033_v19  ;;  %v5641_v9 = vpack.c.bf16 %v20934_v48, %v18737_v23  ;;  %v17051_v23 = vld [vmem:[%s23240_s3 + $0x418] sm:$0xff]  }
 0x42d   :  { %16081 = vmatpush3.bf16.msra.mxu1 %v17033_v19  ;;  %v20943_v19 = vld [vmem:[#allocation2 + $0x94] sm:$0xff] }
 0x42e   :  { %16082 = vmatprep.subr.bf16.mxu1 %v17034_v59  ;;  %v5642_v42 = vpack.c.bf16 %v20943_v19, %v20711_v51  ;;  %v18740_v51 = vld [vmem:[#allocation2 + $0x114] sm:$0xff] }
 0x430   :  { %16067 = vmatmul.mubr.bf16.gmra.mrb[4].mxu1 %v5440_v31  ;;  %v5643_v31 = vpack.c.bf16 %v18738_v38, %v5631_v3  ;;  %v17052_v3 = vld [vmem:[%s23240_s3 + $0x420] sm:$0xff]   ;;  %v17053_v38 = vld [vmem:[%s23240_s3 + $0x428] sm:$0xff]  }
 0x431   :  { %16083 = vmatpush3.bf16.msra.mxu1 %v17034_v59  ;;  %16070 = vmatprep.mubr.bf16.mxu1 %v5441_v20  ;;  %v17043_v59 = vld [vmem:[%s23240_s3 + $0x3d8] sm:$0xff]   ;;  %v18739_v20 = vld [vmem:[#allocation2 + $0x104] sm:$0xff] }
 0x432   :  { %16084 = vmatprep.subr.bf16.mxu1 %v17035_v41 }
 0x435   :  { %16085 = vmatpush3.bf16.msra.mxu1 %v17035_v41  ;;  %v17044_v41 = vld [vmem:[%s23240_s3 + $0x3e0] sm:$0xff]  }
 0x436   :  { %16086 = vmatprep.subr.bf16.mxu1 %v17036_v35 }
 0x438   :  { %16071 = vmatmul.mubr.bf16.gmra.mrb[8].mxu1 %v5442_v21  ;;  %v5645_v21 = vpack.c.bf16 %v20953_v12, %v18741_v60  ;;  %v17056_v60 = vld [vmem:[%s23240_s3 + $0x440] sm:$0xff]  }
 0x439   :  { %16087 = vmatpush3.bf16.msra.mxu1 %v17036_v35  ;;  %16074 = vmatprep.mubr.bf16.mxu1 %v5443_v49  ;;  %v5644_v35 = vpack.c.bf16 %v18740_v51, %v18739_v20  ;;  %v20964_v49 = vld [vmem:[#allocation2 + $0x40] sm:$0xff]  ;;  %v6028_v51 = vld [vmem:[#allocation2 + $0x31] sm:$0xff] }
 0x43a   :  { %16088 = vmatprep.subr.bf16.mxu1 %v17037_v37  ;;  %v21007_v20 = vld [vmem:[#allocation2 + $0x160] sm:$0xff] }
 0x43d   :  { %16089 = vmatpush3.bf16.msra.mxu1 %v17037_v37  ;;  %v17046_v37 = vld [vmem:[%s23240_s3 + $0x3f0] sm:$0xff]  }
 0x43e   :  { %16090 = vmatprep.subr.bf16.mxu1 %v17038_v0 }
 0x440   :  { %16075 = vmatmul.mubr.bf16.gmra.mrb[12].mxu1 %v5444_v50  ;;  %v5842_v50 = vpack.c.bf16 %v20964_v49, %v20738_v58  ;;  %v18743_v58 = vld [vmem:[#allocation2 + $0x70] sm:$0xff] }
 0x441   :  { %16091 = vmatpush3.bf16.msra.mxu1 %v17038_v0  ;;  %16094 = vmatprep.mubr.bf16.mxu1 %v5639_v54  ;;  %v5646_v0 = vpack.c.bf16 %v20962_v39, %v20736_v6  ;;  %v18742_v6 = vld [vmem:[#allocation2 + $0x60] sm:$0xff]  ;;  %v5844_v7 = vpack.c.bf16 %v20976_v57, %v18743_v58  ;;  %v17059_v58 = vld [vmem:[%s23240_s3 + $0x458] sm:$0xff]  }
 0x442   :  { %16092 = vmatprep.subr.bf16.mxu1 %v17039_v45  ;;  %v5843_v54 = vpack.c.bf16 %v18742_v6, %v20749_v22  ;;  %v17058_v6 = vld [vmem:[%s23240_s3 + $0x450] sm:$0xff]  }
 0x445   :  { %16093 = vmatpush3.bf16.msra.mxu1 %v17039_v45  ;;  %v17048_v45 = vld [vmem:[%s23240_s3 + $0x400] sm:$0xff]  }
 0x446   :  { %16110 = vmatprep.subr.bf16.mxu1 %v17040_v52 }
 0x448   :  { %16095 = vmatmul.mubr.bf16.vlgmr.msra.gmra.mrb[0].mxu1 %v5640_v44  ;;  %v20986_v44 = vld [vmem:[#allocation2 + $0xa0] sm:$0xff] }
 0x449   :  { %16111 = vmatpush3.bf16.msra.mxu1 %v17040_v52  ;;  %16098 = vmatprep.mubr.bf16.mxu1 %v5641_v9  ;;  %v17049_v52 = vld [vmem:[%s23240_s3 + $0x408] sm:$0xff]   ;;  %v5845_v22 = vpack.c.bf16 %v20986_v44, %v20762_v18  ;;  %v18744_v9 = vld [vmem:[#allocation2 + $0x100] sm:$0xff] }
 0x44a   :  { %16112 = vmatprep.subr.bf16.mxu1 %v17041_v1 }
 0x44d   :  { %16113 = vmatpush3.bf16.msra.mxu1 %v17041_v1  ;;  %v5834_v1 = vld [vmem:[#allocation2 + $0xf0] sm:$0xff] }
 0x44e   :  { %16114 = vmatprep.subr.bf16.mxu1 %v17042_v29 }
 0x450   :  { %16099 = vmatmul.mubr.bf16.gmra.mrb[4].mxu1 %v5642_v42  ;;  %v18745_v42 = vld [vmem:[#allocation2 + $0x110] sm:$0xff] }
 0x451   :  { %16115 = vmatpush3.bf16.msra.mxu1 %v17042_v29  ;;  %16102 = vmatprep.mubr.bf16.mxu1 %v5643_v31  ;;  %v5846_v29 = vpack.c.bf16 %v18744_v9, %v5834_v1  ;;  %v5847_v18 = vpack.c.bf16 %v20775_v46, %v18745_v42  ;;  %v5849_v46 = vpack.c.bf16 %v21007_v20, %v20790_v15  ;;  %v18747_v15 = vld [vmem:[#allocation2 + $0x51] sm:$0xff]  ;;  %v21045_v1 = vld [vmem:[#allocation2 + $0x141] sm:$0xff] }
 0x452   :  { %16116 = vmatprep.subr.bf16.mxu1 %v17043_v59  ;;  %v17062_v9 = vld [vmem:[%s23240_s3 + $0x470] sm:$0xff]   ;;  %v21071_v42 = vld [vmem:[#allocation2 + $0x82] sm:$0xff] }
 0x455   :  { %16117 = vmatpush3.bf16.msra.mxu1 %v17043_v59  ;;  %v20997_v59 = vld [vmem:[#allocation2 + $0x130] sm:$0xff] }
 0x456   :  { %16118 = vmatprep.subr.bf16.mxu1 %v17044_v41  ;;  %v5848_v31 = vpack.c.bf16 %v20788_v62, %v20997_v59  ;;  %v17055_v62 = vld [vmem:[%s23240_s3 + $0x438] sm:$0xff]  }
 0x458   :  { %16103 = vmatmul.mubr.bf16.gmra.mrb[8].mxu1 %v5644_v35  ;;  %v18746_v35 = vld [vmem:[#allocation2 + $0x41] sm:$0xff] }
 0x459   :  { %16119 = vmatpush3.bf16.msra.mxu1 %v17044_v41  ;;  %16106 = vmatprep.mubr.bf16.mxu1 %v5645_v21  ;;  %v17054_v41 = vld [vmem:[%s23240_s3 + $0x430] sm:$0xff]   ;;  %v21017_v21 = vld [vmem:[#allocation2 + $0x81] sm:$0xff] }
 0x45a   :  { %16120 = vmatprep.subr.bf16.mxu1 %v17045_v11 }
 0x45d   :  { %16121 = vmatpush3.bf16.msra.mxu1 %v17045_v11  ;;  %v6044_v11 = vpack.c.bf16 %v18746_v35, %v6028_v51  ;;  %v21110_v51 = vld [vmem:[#allocation2 + $0x162] sm:$0xff] }
 0x45e   :  { %16122 = vmatprep.subr.bf16.mxu1 %v17046_v37  ;;  %v17106_v35 = vld [vmem:[%s23242_s5 + $0x120] ss:$16 sps:$4 sm:$0xff]  }
 0x460   :  { %16107 = vmatmul.mubr.bf16.gmra.mrb[12].mxu1 %v5646_v0 }
 0x461   :  { %16123 = vmatpush3.bf16.msra.mxu1 %v17046_v37  ;;  %16126 = vmatprep.mubr.bf16.mxu1 %v5842_v50  ;;  %v18748_v37 = vld [vmem:[#allocation2 + $0x61] sm:$0xff]  ;;  %v18749_v50 = vld [vmem:[#allocation2 + $0x71] sm:$0xff] }
 0x462   :  { %16124 = vmatprep.subr.bf16.mxu1 %v17047_v16  ;;  %v6045_v0 = vpack.c.bf16 %v18748_v37, %v18747_v15  ;;  %v23830_v37 = vld [vmem:[#allocation91_spill] sm:$0xff] }
 0x465   :  { %16125 = vmatpush3.bf16.msra.mxu1 %v17047_v16  ;;  %v17057_v16 = vld [vmem:[%s23240_s3 + $0x448] sm:$0xff]  }
 0x466   :  { %16142 = vmatprep.subr.bf16.mxu1 %v17048_v45 }
 0x468   :  { %16127 = vmatmul.mubr.bf16.vlgmr.msra.gmra.mrb[0].mxu1 %v5843_v54  ;;  %v21026_v54 = vld [vmem:[#allocation2 + $0xa1] sm:$0xff] }
 0x469   :  { %16143 = vmatpush3.bf16.msra.mxu1 %v17048_v45  ;;  %16130 = vmatprep.mubr.bf16.mxu1 %v5844_v7  ;;  %v6046_v45 = vpack.c.bf16 %v21017_v21, %v18749_v50  ;;  %v23822_v7 = vpack.c.bf16 %v23809_v26, %v23808_v55  ;;  %v17061_v55 = vld [vmem:[%s23240_s3 + $0x468] sm:$0xff]   ;;  %v6050_v26 = vpack.c.bf16 %v21045_v1, %v20826_v56  ;;  %v17063_v56 = vld [vmem:[%s23240_s3 + $0x478] sm:$0xff]  }
 0x46a   :  { %16144 = vmatprep.subr.bf16.mxu1 %v17049_v52  ;;  %v21142_v50 = vld [vmem:[#allocation2 + $0xa3] sm:$0xff] }
 0x46d   :  { %16145 = vmatpush3.bf16.msra.mxu1 %v17049_v52  ;;  %v6047_v52 = vpack.c.bf16 %v21026_v54, %v20815_v33  ;;  %v17060_v33 = vld [vmem:[%s23240_s3 + $0x460] sm:$0xff]  }
 0x46e   :  { %16146 = vmatprep.subr.bf16.mxu1 %v17050_v47 }
 0x470   :  { %16131 = vmatmul.mubr.bf16.gmra.mrb[4].mxu1 %v5845_v22  ;;  %v17093_v22 = vld [vmem:[%s23242_s5 + $0x104] ss:$16 sps:$4 sm:$0xff]  }
 0x471   :  { %16147 = vmatpush3.bf16.msra.mxu1 %v17050_v47  ;;  %16134 = vmatprep.mubr.bf16.mxu1 %v5846_v29  ;;  %v17091_v47 = vld [vmem:[%s23242_s5 + $0x100] ss:$16 sps:$4 sm:$0xff]  }
 0x472   :  { %16148 = vmatprep.subr.bf16.mxu1 %v17051_v23  ;;  %8169 = vmatprep.subr.bf16.mxu0 %v17093_v22  ;;  %v21058_v29 = vld [vmem:[#allocation2 + $0x161] sm:$0xff]  ;;  %v23835_v22 = vld [vmem:[#allocation92_spill] sm:$0xff] }
 0x473   :  { %8170 = vmatpush1.bf16.msra.mxu0 %v17091_v47 }
 0x475   :  { %16149 = vmatpush3.bf16.msra.mxu1 %v17051_v23  ;;  %v23823_v23 = vpack.c.bf16 %v23811_v28, %v23810_v27  ;;  %v23824_v27 = vpack.c.bf16 %v23813_v13, %v23812_v63  ;;  %v17064_v28 = vld [vmem:[%s23240_s3 + $0x480] sm:$0xff]   ;;  %v23825_v63 = vpack.c.bf16 %v23815_v17, %v23814_v5  ;;  %v17066_v13 = vld [vmem:[%s23240_s3 + $0x490] sm:$0xff]   ;;  %v23826_v5 = vpack.c.bf16 %v23817_v24, %v23816_v36 }
 0x476   :  { %16150 = vmatprep.subr.bf16.mxu1 %v17052_v3  ;;  %v17068_v17 = vld [vmem:[%s23240_s3 + $0x4a0] sm:$0xff]   ;;  %v23827_v36 = vpack.c.bf16 %v23819_v10, %v23818_v30  ;;  %v17070_v24 = vld [vmem:[%s23240_s3 + $0x4b0] sm:$0xff]  }
 0x477   :  { %v23828_v30 = vld [vmem:[#allocation61_spill] sm:$0xff] }
 0x478   :  { %16135 = vmatmul.mubr.bf16.gmra.mrb[8].mxu1 %v5847_v18  ;;  %v6248_v18 = vpack.c.bf16 %v21071_v42, %v20849_v53  ;;  %v17067_v53 = vld [vmem:[%s23240_s3 + $0x498] sm:$0xff]   ;;  %v23829_v10 = vpack.c.bf16 %v23828_v30, %v23820_v43  ;;  %v17073_v43 = vld [vmem:[%s23240_s3 + $0x4c8] sm:$0xff]  }
 0x479   :  { %16151 = vmatpush3.bf16.msra.mxu1 %v17052_v3  ;;  %16138 = vmatprep.mubr.bf16.mxu1 %v5848_v31  ;;  %v6051_v3 = vpack.c.bf16 %v21058_v29, %v20838_v25  ;;  %v17065_v25 = vld [vmem:[%s23240_s3 + $0x488] sm:$0xff]  }
 0x47a   :  { %16152 = vmatprep.subr.bf16.mxu1 %v17053_v38  ;;  %v17085_v30 = vld [vmem:[%s23240_s3 + $0x528] sm:$0xff]  }
 0x47d   :  { %16153 = vmatpush3.bf16.msra.mxu1 %v17053_v38  ;;  %v21084_v38 = vld [vmem:[#allocation2 + $0xa2] sm:$0xff] }
 0x47e   :  { %16154 = vmatprep.subr.bf16.mxu1 %v17054_v41  ;;  %v6249_v31 = vpack.c.bf16 %v21084_v38, %v20861_v2  ;;  %v17069_v2 = vld [vmem:[%s23240_s3 + $0x4a8] sm:$0xff]  }
 0x480   :  { %16139 = vmatmul.mubr.bf16.gmra.mrb[12].mxu1 %v5849_v46 }
 0x481   :  { %16155 = vmatpush3.bf16.msra.mxu1 %v17054_v41  ;;  %16158 = vmatprep.mubr.bf16.mxu1 %v6044_v11  ;;  %v21097_v41 = vld [vmem:[#allocation2 + $0x142] sm:$0xff] }
 0x482   :  { %16156 = vmatprep.subr.bf16.mxu1 %v17055_v62  ;;  %v6252_v46 = vpack.c.bf16 %v21097_v41, %v20872_v8  ;;  %v17071_v8 = vld [vmem:[%s23240_s3 + $0x4b8] sm:$0xff]   ;;  %v17108_v11 = vld [vmem:[%s23242_s5 + $0x124] ss:$16 sps:$4 sm:$0xff]  }
 0x483   :  { %8171 = vmatprep.subr.bf16.mxu0 %v17108_v11  ;;  %v23848_v11 = vld [vmem:[#allocation68_spill] sm:$0xff] }
 0x484   :  { %8172 = vmatpush1.bf16.msra.mxu0 %v17106_v35  ;;  %v23847_v35 = vld [vmem:[#allocation66_spill] sm:$0xff] }
 0x485   :  { %16157 = vmatpush3.bf16.msra.mxu1 %v17055_v62  ;;  %v6253_v62 = vpack.c.bf16 %v21110_v51, %v20884_v61  ;;  %v17072_v61 = vld [vmem:[%s23240_s3 + $0x4c0] sm:$0xff]  }
 0x486   :  { %16174 = vmatprep.subr.bf16.mxu1 %v17056_v60 }
 0x488   :  { %16159 = vmatmul.mubr.bf16.vlgmr.msra.gmra.mrb[0].mxu1 %v6045_v0  ;;  %v23831_v0 = vpack.c.bf16 %v23830_v37, %v23821_v40  ;;  %v23832_v40 = vld [vmem:[#allocation21_spill] sm:$0xff] }
 0x489   :  { %16175 = vmatpush3.bf16.msra.mxu1 %v17056_v60  ;;  %16162 = vmatprep.mubr.bf16.mxu1 %v6046_v45  ;;  %v21129_v60 = vld [vmem:[#allocation2 + $0x83] sm:$0xff]  ;;  %v6451_v45 = vpack.c.bf16 %v21142_v50, %v20905_v32  ;;  %v6838_v37 = vld [vmem:[#allocation2 + $0x50] sm:$0xff] }
 0x48a   :  { %16176 = vmatprep.subr.bf16.mxu1 %v17057_v16  ;;  %v6450_v15 = vpack.c.bf16 %v21129_v60, %v20895_v4  ;;  %v17075_v4 = vld [vmem:[%s23240_s3 + $0x4d8] sm:$0xff]   ;;  %v17077_v32 = vld [vmem:[%s23240_s3 + $0x4e8] sm:$0xff]  }
 0x48d   :  { %16177 = vmatpush3.bf16.msra.mxu1 %v17057_v16  ;;  %v17074_v16 = vld [vmem:[%s23240_s3 + $0x4d0] sm:$0xff]  }
 0x48e   :  { %16178 = vmatprep.subr.bf16.mxu1 %v17058_v6 }
 0x490   :  { %16163 = vmatmul.mubr.bf16.gmra.mrb[4].mxu1 %v6047_v52 }
 0x491   :  { %16179 = vmatpush3.bf16.msra.mxu1 %v17058_v6  ;;  %16166 = vmatprep.mubr.bf16.mxu1 %v23822_v7  ;;  %v23833_v6 = vld [vmem:[#allocation64_spill] sm:$0xff] }
 0x492   :  { %16180 = vmatprep.subr.bf16.mxu1 %v17059_v58  ;;  %v23834_v52 = vpack.c.bf16 %v23832_v40, %v23833_v6  ;;  %v21155_v7 = vld [vmem:[#allocation2 + $0x143] sm:$0xff]  ;;  %v23850_v6 = vld [vmem:[#allocation25_spill] sm:$0xff] }
 0x493   :  { %v6454_v47 = vpack.c.bf16 %v21155_v7, %v20915_v34  ;;  %v17079_v34 = vld [vmem:[%s23240_s3 + $0x4f8] sm:$0xff]  }
 0x495   :  { %16181 = vmatpush3.bf16.msra.mxu1 %v17059_v58  ;;  %v17076_v58 = vld [vmem:[%s23240_s3 + $0x4e0] sm:$0xff]  }
 0x496   :  { %16182 = vmatprep.subr.bf16.mxu1 %v17060_v33 }
 0x498   :  { %16167 = vmatmul.mubr.bf16.gmra.mrb[8].mxu1 %v23823_v23  ;;  %v21168_v23 = vld [vmem:[#allocation2 + $0x163] sm:$0xff] }
 0x499   :  { %16183 = vmatpush3.bf16.msra.mxu1 %v17060_v33  ;;  %16170 = vmatprep.mubr.bf16.mxu1 %v6050_v26  ;;  %v23836_v33 = vld [vmem:[#allocation24_spill] sm:$0xff] }
 0x49a   :  { %16184 = vmatprep.subr.bf16.mxu1 %v17061_v55  ;;  %v17078_v26 = vld [vmem:[%s23240_s3 + $0x4f0] sm:$0xff]  }
 0x49d   :  { %16185 = vmatpush3.bf16.msra.mxu1 %v17061_v55  ;;  %v23837_v55 = vpack.c.bf16 %v23835_v22, %v23836_v33  ;;  %v23853_v22 = vld [vmem:[#allocation26_spill] sm:$0xff]  ;;  %v23854_v33 = vld [vmem:[#allocation96_spill] sm:$0xff] }
 0x49e   :  { %16186 = vmatprep.subr.bf16.mxu1 %v17062_v9 }
 0x4a0   :  { %16171 = vmatmul.mubr.bf16.gmra.mrb[12].mxu1 %v6051_v3  ;;  %v23838_v3 = vld [vmem:[#allocation22_spill] sm:$0xff] }
 0x4a1   :  { %16187 = vmatpush3.bf16.msra.mxu1 %v17062_v9  ;;  %16190 = vmatprep.mubr.bf16.mxu1 %v23824_v27  ;;  %v6455_v9 = vpack.c.bf16 %v21168_v23, %v20924_v14  ;;  %v17081_v14 = vld [vmem:[%s23240_s3 + $0x508] sm:$0xff]  }
 0x4a2   :  { %16188 = vmatprep.subr.bf16.mxu1 %v17063_v56 }
 0x4a5   :  { %16189 = vmatpush3.bf16.msra.mxu1 %v17063_v56  ;;  %v23839_v56 = vld [vmem:[#allocation93_spill] sm:$0xff] }
 0x4a6   :  { %16206 = vmatprep.subr.bf16.mxu1 %v17064_v28  ;;  %v23840_v27 = vpack.c.bf16 %v23838_v3, %v23839_v56  ;;  %v6850_v3 = vld [vmem:[#allocation2 + $0x150] sm:$0xff]  ;;  %v17096_v56 = vld [vmem:[%s23240_s3 + $0x568] sm:$0xff]  }
 0x4a8   :  { %16191 = vmatmul.mubr.bf16.vlgmr.msra.gmra.mrb[0].mxu1 %v23825_v63  ;;  %v23841_v63 = vld [vmem:[#allocation23_spill] sm:$0xff] }
 0x4a9   :  { %16207 = vmatpush3.bf16.msra.mxu1 %v17064_v28  ;;  %16194 = vmatprep.mubr.bf16.mxu1 %v6248_v18  ;;  %v17080_v28 = vld [vmem:[%s23240_s3 + $0x500] sm:$0xff]  }
 0x4aa   :  { %16208 = vmatprep.subr.bf16.mxu1 %v17065_v25 }
 0x4ad   :  { %16209 = vmatpush3.bf16.msra.mxu1 %v17065_v25  ;;  %v21181_v25 = vld [vmem:[#allocation2 + $0x84] sm:$0xff] }
 0x4ae   :  { %16210 = vmatprep.subr.bf16.mxu1 %v17066_v13  ;;  %v6652_v18 = vpack.c.bf16 %v21181_v25, %v20934_v48  ;;  %v17083_v48 = vld [vmem:[%s23240_s3 + $0x518] sm:$0xff]  }
 0x4b0   :  { %16195 = vmatmul.mubr.bf16.gmra.mrb[4].mxu1 %v6249_v31 }
 0x4b1   :  { %16211 = vmatpush3.bf16.msra.mxu1 %v17066_v13  ;;  %16198 = vmatprep.mubr.bf16.mxu1 %v23826_v5  ;;  %v23842_v13 = vld [vmem:[#allocation94_spill] sm:$0xff]  ;;  %v21194_v5 = vld [vmem:[#allocation2 + $0xa4] sm:$0xff] }
 0x4b2   :  { %16212 = vmatprep.subr.bf16.mxu1 %v17067_v53  ;;  %v23843_v31 = vpack.c.bf16 %v23841_v63, %v23842_v13  ;;  %v17129_v63 = vld [vmem:[%s23242_s5 + $0x160] ss:$16 sps:$4 sm:$0xff]   ;;  %v17131_v13 = vld [vmem:[%s23242_s5 + $0x164] ss:$16 sps:$4 sm:$0xff]  }
 0x4b5   :  { %16213 = vmatpush3.bf16.msra.mxu1 %v17067_v53  ;;  %v17082_v53 = vld [vmem:[%s23240_s3 + $0x510] sm:$0xff]  }
 0x4b6   :  { %16214 = vmatprep.subr.bf16.mxu1 %v17068_v17 }
 0x4b8   :  { %16199 = vmatmul.mubr.bf16.gmra.mrb[8].mxu1 %v23827_v36 }
 0x4b9   :  { %16215 = vmatpush3.bf16.msra.mxu1 %v17068_v17  ;;  %16202 = vmatprep.mubr.bf16.mxu1 %v6252_v46  ;;  %v6653_v17 = vpack.c.bf16 %v21194_v5, %v20943_v19  ;;  %v23845_v46 = vld [vmem:[#allocation67_spill] sm:$0xff] }
 0x4ba   :  { %16216 = vmatprep.subr.bf16.mxu1 %v17069_v2  ;;  %v17084_v19 = vld [vmem:[%s23240_s3 + $0x520] sm:$0xff]  }
 0x4bd   :  { %16217 = vmatpush3.bf16.msra.mxu1 %v17069_v2  ;;  %v23844_v2 = vld [vmem:[#allocation65_spill] sm:$0xff] }
 0x4be   :  { %16218 = vmatprep.subr.bf16.mxu1 %v17070_v24  ;;  %v23846_v36 = vpack.c.bf16 %v23844_v2, %v23845_v46  ;;  %v17132_v2 = vld [vmem:[%s23242_s5 + $0x180] ss:$16 sps:$4 sm:$0xff]  }
 0x4bf   :  { %v7044_v46 = vld [vmem:[#allocation2 + $0x91] sm:$0xff] }
 0x4c0   :  { %16203 = vmatmul.mubr.bf16.gmra.mrb[12].mxu1 %v6253_v62  ;;  %v17123_v62 = vld [vmem:[%s23242_s5 + $0x144] ss:$16 sps:$4 sm:$0xff]  }
 0x4c1   :  { %16219 = vmatpush3.bf16.msra.mxu1 %v17070_v24  ;;  %16222 = vmatprep.mubr.bf16.mxu1 %v23829_v10  ;;  %v17121_v24 = vld [vmem:[%s23242_s5 + $0x140] ss:$16 sps:$4 sm:$0xff]  }
 0x4c2   :  { %16220 = vmatprep.subr.bf16.mxu1 %v17071_v8  ;;  %8173 = vmatprep.subr.bf16.mxu0 %v17123_v62  ;;  %v7057_v62 = vpack.c.bf16 %v7044_v46, %v21017_v21  ;;  %v17101_v21 = vld [vmem:[%s23240_s3 + $0x590] sm:$0xff]   ;;  %v7443_v46 = vld [vmem:[#allocation2 + $0x43] sm:$0xff] }
 0x4c3   :  { %8174 = vmatpush1.bf16.msra.mxu0 %v17121_v24  ;;  %v17100_v24 = vld [vmem:[%s23240_s3 + $0x588] sm:$0xff]  }
 0x4c4   :  { %8175 = vmatprep.subr.bf16.mxu0 %v17131_v13  ;;  %v7251_v13 = vld [vmem:[#allocation2 + $0x122] sm:$0xff] }
 0x4c5   :  { %16221 = vmatpush3.bf16.msra.mxu1 %v17071_v8  ;;  %v21213_v8 = vld [vmem:[#allocation2 + $0x144] sm:$0xff] }
 0x4c6   :  { %16238 = vmatprep.subr.bf16.mxu1 %v17072_v61  ;;  %v6656_v10 = vpack.c.bf16 %v21213_v8, %v20953_v12  ;;  %v17087_v12 = vld [vmem:[%s23240_s3 + $0x538] sm:$0xff]  }
 0x4c7   :  { %8176 = vmatpush1.bf16.msra.mxu0 %v17129_v63  ;;  %v17114_v63 = vld [vmem:[%s23240_s3 + $0x5e0] sm:$0xff]  }
 0x4c8   :  { %16223 = vmatmul.mubr.bf16.vlgmr.msra.gmra.mrb[0].mxu1 %v23831_v0 }
 0x4c9   :  { %16239 = vmatpush3.bf16.msra.mxu1 %v17072_v61  ;;  %16226 = vmatprep.mubr.bf16.mxu1 %v6450_v15  ;;  %v23849_v61 = vpack.c.bf16 %v23847_v35, %v23848_v11  ;;  %v21226_v15 = vld [vmem:[#allocation2 + $0x164] sm:$0xff] }
 0x4ca   :  { %16240 = vmatprep.subr.bf16.mxu1 %v17073_v43  ;;  %v6657_v0 = vpack.c.bf16 %v21226_v15, %v20962_v39  ;;  %v17089_v39 = vld [vmem:[%s23240_s3 + $0x548] sm:$0xff]   ;;  %v17140_v11 = vld [vmem:[%s23242_s5 + $0x1c4] ss:$16 sps:$4 sm:$0xff]  }
 0x4cd   :  { %16241 = vmatpush3.bf16.msra.mxu1 %v17073_v43  ;;  %v17086_v43 = vld [vmem:[%s23240_s3 + $0x530] sm:$0xff]  }
 0x4ce   :  { %16242 = vmatprep.subr.bf16.mxu1 %v17074_v16 }
 0x4d0   :  { %16227 = vmatmul.mubr.bf16.gmra.mrb[4].mxu1 %v6451_v45  ;;  %v17088_v45 = vld [vmem:[%s23240_s3 + $0x540] sm:$0xff]  }
 0x4d1   :  { %16243 = vmatpush3.bf16.msra.mxu1 %v17074_v16  ;;  %16230 = vmatprep.mubr.bf16.mxu1 %v23834_v52  ;;  %v6853_v16 = vpack.c.bf16 %v6838_v37, %v20964_v49  ;;  %v23851_v52 = vld [vmem:[#allocation95_spill] sm:$0xff] }
 0x4d2   :  { %16244 = vmatprep.subr.bf16.mxu1 %v17075_v4  ;;  %v23852_v49 = vpack.c.bf16 %v23850_v6, %v23851_v52  ;;  %v7047_v37 = vld [vmem:[#allocation2 + $0x101] sm:$0xff]  ;;  %v7052_v6 = vld [vmem:[#allocation2 + $0x151] sm:$0xff] }
 0x4d3   :  { %v17104_v52 = vld [vmem:[%s23240_s3 + $0x5a8] sm:$0xff]  }
 0x4d5   :  { %16245 = vmatpush3.bf16.msra.mxu1 %v17075_v4  ;;  %v6842_v4 = vld [vmem:[#allocation2 + $0x90] sm:$0xff] }
 0x4d6   :  { %16246 = vmatprep.subr.bf16.mxu1 %v17076_v58  ;;  %v6855_v40 = vpack.c.bf16 %v6842_v4, %v20976_v57  ;;  %v17094_v57 = vld [vmem:[%s23240_s3 + $0x558] sm:$0xff]   ;;  %v17103_v4 = vld [vmem:[%s23240_s3 + $0x5a0] sm:$0xff]  }
 0x4d8   :  { %16231 = vmatmul.mubr.bf16.gmra.mrb[8].mxu1 %v23837_v55  ;;  %v23855_v55 = vpack.c.bf16 %v23853_v22, %v23854_v33  ;;  %v17109_v33 = vld [vmem:[%s23240_s3 + $0x5b8] sm:$0xff]  }
 0x4d9   :  { %16247 = vmatpush3.bf16.msra.mxu1 %v17076_v58  ;;  %16234 = vmatprep.mubr.bf16.mxu1 %v6454_v47  ;;  %v17090_v58 = vld [vmem:[%s23240_s3 + $0x550] sm:$0xff]  }
 0x4da   :  { %16248 = vmatprep.subr.bf16.mxu1 %v17077_v32 }
 0x4dd   :  { %16249 = vmatpush3.bf16.msra.mxu1 %v17077_v32  ;;  %v6844_v32 = vld [vmem:[#allocation2 + $0xb0] sm:$0xff] }
 0x4de   :  { %16250 = vmatprep.subr.bf16.mxu1 %v17078_v26  ;;  %v6856_v47 = vpack.c.bf16 %v6844_v32, %v20986_v44  ;;  %v7054_v32 = vld [vmem:[#allocation2 + $0x171] sm:$0xff] }
 0x4df   :  { %v7062_v22 = vpack.c.bf16 %v7054_v32, %v21058_v29  ;;  %v17111_v29 = vld [vmem:[%s23240_s3 + $0x5c8] sm:$0xff]   ;;  %v7646_v32 = vld [vmem:[#allocation2 + $0x54] sm:$0xff] }
 0x4e0   :  { %16235 = vmatmul.mubr.bf16.gmra.mrb[12].mxu1 %v6455_v9  ;;  %v6847_v9 = vld [vmem:[#allocation2 + $0x120] sm:$0xff] }
 0x4e1   :  { %16251 = vmatpush3.bf16.msra.mxu1 %v17078_v26  ;;  %16254 = vmatprep.mubr.bf16.mxu1 %v23840_v27  ;;  %v17095_v26 = vld [vmem:[%s23240_s3 + $0x560] sm:$0xff]   ;;  %v6858_v44 = vpack.c.bf16 %v20997_v59, %v6847_v9  ;;  %v17098_v59 = vld [vmem:[%s23240_s3 + $0x578] sm:$0xff]  }
 0x4e2   :  { %16252 = vmatprep.subr.bf16.mxu1 %v17079_v34  ;;  %v7244_v9 = vld [vmem:[#allocation2 + $0x72] sm:$0xff] }
 0x4e5   :  { %16253 = vmatpush3.bf16.msra.mxu1 %v17079_v34  ;;  %v6849_v34 = vld [vmem:[#allocation2 + $0x140] sm:$0xff] }
 0x4e6   :  { %16270 = vmatprep.subr.bf16.mxu1 %v17080_v28  ;;  %v6859_v27 = vpack.c.bf16 %v6850_v3, %v6849_v34  ;;  %v7246_v34 = vld [vmem:[#allocation2 + $0x92] sm:$0xff] }
 0x4e8   :  { %16255 = vmatmul.mubr.bf16.vlgmr.msra.gmra.mrb[0].mxu1 %v23843_v31  ;;  %v23856_v31 = vld [vmem:[#allocation27_spill] sm:$0xff] }
 0x4e9   :  { %16271 = vmatpush3.bf16.msra.mxu1 %v17080_v28  ;;  %16258 = vmatprep.mubr.bf16.mxu1 %v6652_v18  ;;  %v17097_v28 = vld [vmem:[%s23240_s3 + $0x570] sm:$0xff]  }
 0x4ea   :  { %16272 = vmatprep.subr.bf16.mxu1 %v17081_v14 }
 0x4ed   :  { %16273 = vmatpush3.bf16.msra.mxu1 %v17081_v14  ;;  %v6852_v14 = vld [vmem:[#allocation2 + $0x170] sm:$0xff] }
 0x4ee   :  { %16274 = vmatprep.subr.bf16.mxu1 %v17082_v53  ;;  %v6860_v18 = vpack.c.bf16 %v6852_v14, %v21007_v20  ;;  %v17134_v20 = vld [vmem:[%s23242_s5 + $0x184] ss:$16 sps:$4 sm:$0xff]  }
 0x4ef   :  { %8177 = vmatprep.subr.bf16.mxu0 %v17134_v20  ;;  %v7250_v14 = vld [vmem:[#allocation2 + $0x112] sm:$0xff] }
 0x4f0   :  { %16259 = vmatmul.mubr.bf16.gmra.mrb[4].mxu1 %v6653_v17  ;;  %8178 = vmatpush1.bf16.msra.mxu0 %v17132_v2  ;;  %v7256_v2 = vld [vmem:[#allocation2 + $0x172] sm:$0xff] }
 0x4f1   :  { %16275 = vmatpush3.bf16.msra.mxu1 %v17082_v53  ;;  %16262 = vmatprep.mubr.bf16.mxu1 %v23846_v36  ;;  %v23857_v53 = vld [vmem:[#allocation97_spill] sm:$0xff] }
 0x4f2   :  { %16276 = vmatprep.subr.bf16.mxu1 %v17083_v48  ;;  %v23858_v17 = vpack.c.bf16 %v23856_v31, %v23857_v53  ;;  %v17137_v36 = vld [vmem:[%s23242_s5 + $0x1a4] ss:$16 sps:$4 sm:$0xff]  }
 0x4f3   :  { %8179 = vmatprep.subr.bf16.mxu0 %v17137_v36  ;;  %v7252_v31 = vld [vmem:[#allocation2 + $0x132] sm:$0xff] }
 0x4f4   :  { %v7254_v53 = vld [vmem:[#allocation2 + $0x152] sm:$0xff] }
 0x4f5   :  { %16277 = vmatpush3.bf16.msra.mxu1 %v17083_v48  ;;  %v17099_v48 = vld [vmem:[%s23240_s3 + $0x580] sm:$0xff]   ;;  %v7263_v20 = vpack.c.bf16 %v7254_v53, %v21097_v41  ;;  %v7444_v36 = vld [vmem:[#allocation2 + $0x53] sm:$0xff] }
 0x4f6   :  { %16278 = vmatprep.subr.bf16.mxu1 %v17084_v19  ;;  %v7459_v41 = vpack.c.bf16 %v7444_v36, %v7443_v46  ;;  %v17155_v53 = vld [vmem:[%s23242_s5 + $0x764] ss:$16 sps:$4 sm:$0xff]   ;;  %v17159_v36 = vld [vmem:[%s23242_s5 + $0x7a0] ss:$16 sps:$4 sm:$0xff]  }
 0x4f7   :  { %v17161_v46 = vld [vmem:[%s23242_s5 + $0x7a4] ss:$16 sps:$4 sm:$0xff]  }
 0x4f8   :  { %16263 = vmatmul.mubr.bf16.gmra.mrb[8].mxu1 %v23849_v61  ;;  %v7046_v61 = vld [vmem:[#allocation2 + $0xb1] sm:$0xff] }
 0x4f9   :  { %16279 = vmatpush3.bf16.msra.mxu1 %v17084_v19  ;;  %16266 = vmatprep.mubr.bf16.mxu1 %v6656_v10  ;;  %v17135_v19 = vld [vmem:[%s23242_s5 + $0x1a0] ss:$16 sps:$4 sm:$0xff]  }
 0x4fa   :  { %16280 = vmatprep.subr.bf16.mxu1 %v17085_v30  ;;  %v23860_v10 = vld [vmem:[#allocation69_spill] sm:$0xff]  ;;  %8180 = vmatpush1.bf16.msra.mxu0 %v17135_v19  ;;  %v17118_v19 = vld [vmem:[%s23240_s3 + $0x600] sm:$0xff]  }
 0x4fb   :  { %8181 = vmatprep.subr.bf16.mxu0 %v17140_v11 }
 0x4fd   :  { %16281 = vmatpush3.bf16.msra.mxu1 %v17085_v30  ;;  %v23859_v30 = vld [vmem:[#allocation98_spill] sm:$0xff] }
 0x4fe   :  { %16282 = vmatprep.subr.bf16.mxu1 %v17086_v43  ;;  %v23861_v35 = vpack.c.bf16 %v23859_v30, %v23860_v10  ;;  %v7445_v30 = vld [vmem:[#allocation2 + $0x63] sm:$0xff]  ;;  %v7446_v10 = vld [vmem:[#allocation2 + $0x73] sm:$0xff] }
 0x4ff   :  { %v7460_v11 = vpack.c.bf16 %v7446_v10, %v7445_v30  ;;  %v17170_v30 = vld [vmem:[%s23242_s5 + $0x804] ss:$16 sps:$4 sm:$0xff]   ;;  %v13848_v10 = vld [vmem:[%s23241_s4] ss:$0 sm:$0xff] }
 0x500   :  { %16267 = vmatmul.mubr.bf16.gmra.mrb[12].mxu1 %v6657_v0  ;;  %v7048_v0 = vld [vmem:[#allocation2 + $0x111] sm:$0xff] }
 0x501   :  { %16283 = vmatpush3.bf16.msra.mxu1 %v17086_v43  ;;  %16286 = vmatprep.mubr.bf16.mxu1 %v6853_v16  ;;  %v17138_v43 = vld [vmem:[%s23242_s5 + $0x1c0] ss:$16 sps:$4 sm:$0xff]   ;;  %v17102_v16 = vld [vmem:[%s23240_s3 + $0x598] sm:$0xff]  }
 0x502   :  { %16284 = vmatprep.subr.bf16.mxu1 %v17087_v12  ;;  %8182 = vmatpush1.bf16.msra.mxu0 %v17138_v43  ;;  %v7450_v43 = vld [vmem:[#allocation2 + $0xb3] sm:$0xff] }
 0x505   :  { %16285 = vmatpush3.bf16.msra.mxu1 %v17087_v12  ;;  %v7058_v12 = vpack.c.bf16 %v7046_v61, %v21026_v54  ;;  %v17120_v61 = vld [vmem:[%s23240_s3 + $0x610] sm:$0xff]  }
 0x506   :  { %16302 = vmatprep.subr.bf16.mxu1 %v17088_v45 }
 0x508   :  { %16287 = vmatmul.mubr.bf16.vlgmr.msra.gmra.mrb[0].mxu1 %v23852_v49  ;;  %v7061_v49 = vpack.c.bf16 %v7052_v6, %v21045_v1 }
 0x509   :  { %16303 = vmatpush3.bf16.msra.mxu1 %v17088_v45  ;;  %16290 = vmatprep.mubr.bf16.mxu1 %v6855_v40  ;;  %v7059_v45 = vpack.c.bf16 %v7048_v0, %v7047_v37  ;;  %v7050_v40 = vld [vmem:[#allocation2 + $0x131] sm:$0xff]  ;;  %v7451_v37 = vld [vmem:[#allocation2 + $0x103] sm:$0xff] }
 0x50a   :  { %16304 = vmatprep.subr.bf16.mxu1 %v17089_v39  ;;  %v7452_v0 = vld [vmem:[#allocation2 + $0x113] sm:$0xff] }
 0x50d   :  { %16305 = vmatpush3.bf16.msra.mxu1 %v17089_v39  ;;  %v7049_v39 = vld [vmem:[#allocation2 + $0x121] sm:$0xff] }
 0x50e   :  { %16306 = vmatprep.subr.bf16.mxu1 %v17090_v58  ;;  %v7060_v54 = vpack.c.bf16 %v7050_v40, %v7049_v39  ;;  %v7454_v39 = vld [vmem:[#allocation2 + $0x133] sm:$0xff] }
 0x50f   :  { %v7456_v40 = vld [vmem:[#allocation2 + $0x153] sm:$0xff] }
 0x510   :  { %16291 = vmatmul.mubr.bf16.gmra.mrb[4].mxu1 %v6856_v47  ;;  %v7241_v47 = vld [vmem:[#allocation2 + $0x42] sm:$0xff] }
 0x511   :  { %16307 = vmatpush3.bf16.msra.mxu1 %v17090_v58  ;;  %16294 = vmatprep.mubr.bf16.mxu1 %v23855_v55  ;;  %v17105_v58 = vld [vmem:[%s23240_s3 + $0x5b0] sm:$0xff]   ;;  %v17110_v55 = vld [vmem:[%s23240_s3 + $0x5c0] sm:$0xff]  }
 0x512   :  { %16308 = vmatprep.subr.bf16.mxu1 %v17094_v57 }
 0x515   :  { %16309 = vmatpush3.bf16.msra.mxu1 %v17094_v57  ;;  %v7242_v57 = vld [vmem:[#allocation2 + $0x52] sm:$0xff] }
 0x516   :  { %16310 = vmatprep.subr.bf16.mxu1 %v17095_v26  ;;  %v7257_v1 = vpack.c.bf16 %v7242_v57, %v7241_v47  ;;  %v17128_v57 = vld [vmem:[%s23240_s3 + $0x638] sm:$0xff]  }
 0x518   :  { %16295 = vmatmul.mubr.bf16.gmra.mrb[8].mxu1 %v6858_v44  ;;  %v7259_v44 = vpack.c.bf16 %v7246_v34, %v21071_v42  ;;  %v7654_v34 = vld [vmem:[#allocation2 + $0x114] sm:$0xff] }
 0x519   :  { %16311 = vmatpush3.bf16.msra.mxu1 %v17095_v26  ;;  %16298 = vmatprep.mubr.bf16.mxu1 %v6859_v27  ;;  %v7243_v26 = vld [vmem:[#allocation2 + $0x62] sm:$0xff]  ;;  %v7248_v27 = vld [vmem:[#allocation2 + $0xb2] sm:$0xff] }
 0x51a   :  { %16312 = vmatprep.subr.bf16.mxu1 %v17096_v56  ;;  %v7258_v3 = vpack.c.bf16 %v7244_v9, %v7243_v26  ;;  %v7652_v9 = vld [vmem:[#allocation2 + $0xb4] sm:$0xff] }
 0x51d   :  { %16313 = vmatpush3.bf16.msra.mxu1 %v17096_v56  ;;  %v17112_v56 = vld [vmem:[%s23240_s3 + $0x5d0] sm:$0xff]  }
 0x51e   :  { %16314 = vmatprep.subr.bf16.mxu1 %v17097_v28 }
 0x520   :  { %16299 = vmatmul.mubr.bf16.gmra.mrb[12].mxu1 %v6860_v18  ;;  %v7260_v18 = vpack.c.bf16 %v7248_v27, %v21084_v38  ;;  %v17115_v38 = vld [vmem:[%s23240_s3 + $0x5e8] sm:$0xff]   ;;  %v7658_v27 = vld [vmem:[#allocation2 + $0x154] sm:$0xff] }
 0x521   :  { %16315 = vmatpush3.bf16.msra.mxu1 %v17097_v28  ;;  %16318 = vmatprep.mubr.bf16.mxu1 %v23858_v17  ;;  %v7249_v28 = vld [vmem:[#allocation2 + $0x102] sm:$0xff]  ;;  %v7262_v17 = vpack.c.bf16 %v7252_v31, %v7251_v13 }
 0x522   :  { %16316 = vmatprep.subr.bf16.mxu1 %v17098_v59  ;;  %v7261_v42 = vpack.c.bf16 %v7250_v14, %v7249_v28  ;;  %v7667_v14 = vpack.c.bf16 %v7658_v27, %v21213_v8  ;;  %v17144_v8 = vld [vmem:[%s23242_s5 + $0x700] ss:$16 sps:$4 sm:$0xff]   ;;  %v17152_v31 = vld [vmem:[%s23242_s5 + $0x744] ss:$16 sps:$4 sm:$0xff]  }
 0x523   :  { %v17150_v13 = vld [vmem:[%s23242_s5 + $0x740] ss:$16 sps:$4 sm:$0xff]  }
 0x525   :  { %16317 = vmatpush3.bf16.msra.mxu1 %v17098_v59  ;;  %v17113_v59 = vld [vmem:[%s23240_s3 + $0x5d8] sm:$0xff]  }
 0x526   :  { %16334 = vmatprep.subr.bf16.mxu1 %v17099_v48 }
 0x528   :  { %16319 = vmatmul.mubr.bf16.vlgmr.msra.gmra.mrb[0].mxu1 %v23861_v35  ;;  %v7448_v35 = vld [vmem:[#allocation2 + $0x93] sm:$0xff] }
 0x529   :  { %16335 = vmatpush3.bf16.msra.mxu1 %v17099_v48  ;;  %16322 = vmatprep.mubr.bf16.mxu1 %v7057_v62  ;;  %v17116_v48 = vld [vmem:[%s23240_s3 + $0x5f0] sm:$0xff]   ;;  %v17117_v62 = vld [vmem:[%s23240_s3 + $0x5f8] sm:$0xff]  }
 0x52a   :  { %16336 = vmatprep.subr.bf16.mxu1 %v17100_v24 }
 0x52d   :  { %16337 = vmatpush3.bf16.msra.mxu1 %v17100_v24  ;;  %v7264_v24 = vpack.c.bf16 %v7256_v2, %v21110_v51  ;;  %v17119_v51 = vld [vmem:[%s23240_s3 + $0x608] sm:$0xff]   ;;  %v17156_v2 = vld [vmem:[%s23242_s5 + $0x780] ss:$16 sps:$4 sm:$0xff]  }
 0x52e   :  { %16338 = vmatprep.subr.bf16.mxu1 %v17101_v21 }
 0x530   :  { %16323 = vmatmul.mubr.bf16.gmra.mrb[4].mxu1 %v7058_v12  ;;  %v7462_v12 = vpack.c.bf16 %v7450_v43, %v21142_v50  ;;  %v17126_v50 = vld [vmem:[%s23240_s3 + $0x628] sm:$0xff]  }
 0x531   :  { %16339 = vmatpush3.bf16.msra.mxu1 %v17101_v21  ;;  %16326 = vmatprep.mubr.bf16.mxu1 %v7059_v45  ;;  %v7461_v21 = vpack.c.bf16 %v7448_v35, %v21129_v60  ;;  %v7463_v60 = vpack.c.bf16 %v7452_v0, %v7451_v37  ;;  %v17125_v45 = vld [vmem:[%s23240_s3 + $0x620] sm:$0xff]  }
 0x532   :  { %16340 = vmatprep.subr.bf16.mxu1 %v17102_v16 }
 0x535   :  { %16341 = vmatpush3.bf16.msra.mxu1 %v17102_v16  ;;  %v17124_v16 = vld [vmem:[%s23240_s3 + $0x618] sm:$0xff]  }
 0x536   :  { %16342 = vmatprep.subr.bf16.mxu1 %v17103_v4 }
 0x538   :  { %16327 = vmatmul.mubr.bf16.gmra.mrb[8].mxu1 %v7060_v54  ;;  %v7465_v54 = vpack.c.bf16 %v7456_v40, %v21155_v7 }
 0x539   :  { %16343 = vmatpush3.bf16.msra.mxu1 %v17103_v4  ;;  %16330 = vmatprep.mubr.bf16.mxu1 %v7061_v49  ;;  %v7453_v4 = vld [vmem:[#allocation2 + $0x123] sm:$0xff]  ;;  %v7458_v49 = vld [vmem:[#allocation2 + $0x173] sm:$0xff] }
 0x53a   :  { %16344 = vmatprep.subr.bf16.mxu1 %v17104_v52  ;;  %v7464_v6 = vpack.c.bf16 %v7454_v39, %v7453_v4  ;;  %v7466_v47 = vpack.c.bf16 %v7458_v49, %v21168_v23  ;;  %v7653_v23 = vld [vmem:[#allocation2 + $0x104] sm:$0xff] }
 0x53d   :  { %16345 = vmatpush3.bf16.msra.mxu1 %v17104_v52  ;;  %v17127_v52 = vld [vmem:[%s23240_s3 + $0x630] sm:$0xff]  }
 0x53e   :  { %16346 = vmatprep.subr.bf16.mxu1 %v17105_v58 }
 0x540   :  { %16331 = vmatmul.mubr.bf16.gmra.mrb[12].mxu1 %v7062_v22  ;;  %v7647_v22 = vld [vmem:[#allocation2 + $0x64] sm:$0xff] }
 0x541   :  { %16347 = vmatpush3.bf16.msra.mxu1 %v17105_v58  ;;  %16350 = vmatprep.mubr.bf16.mxu1 %v7257_v1  ;;  %v7645_v58 = vld [vmem:[#allocation2 + $0x44] sm:$0xff]  ;;  %v7650_v1 = vld [vmem:[#allocation2 + $0x94] sm:$0xff] }
 0x542   :  { %16348 = vmatprep.subr.bf16.mxu1 %v17109_v33  ;;  %v7661_v7 = vpack.c.bf16 %v7646_v32, %v7645_v58  ;;  %v7663_v26 = vpack.c.bf16 %v7650_v1, %v21181_v25 }
 0x545   :  { %16349 = vmatpush3.bf16.msra.mxu1 %v17109_v33  ;;  %v7648_v33 = vld [vmem:[#allocation2 + $0x74] sm:$0xff] }
 0x546   :  { %16366 = vmatprep.subr.bf16.mxu1 %v17110_v55 }
 0x548   :  { %16351 = vmatmul.mubr.bf16.vlgmr.msra.gmra.mrb[0].mxu1 %v7258_v3  ;;  %v7664_v3 = vpack.c.bf16 %v7652_v9, %v21194_v5  ;;  %v17143_v5 = vld [vmem:[%s23242_s5 + $0x1e4] ss:$16 sps:$4 sm:$0xff]  }
 0x549   :  { %16367 = vmatpush3.bf16.msra.mxu1 %v17110_v55  ;;  %16354 = vmatprep.mubr.bf16.mxu1 %v7259_v44  ;;  %v7662_v55 = vpack.c.bf16 %v7648_v33, %v7647_v22  ;;  %v7655_v44 = vld [vmem:[#allocation2 + $0x124] sm:$0xff] }
 0x54a   :  { %16368 = vmatprep.subr.bf16.mxu1 %v17111_v29  ;;  %8183 = vmatprep.subr.bf16.mxu0 %v17143_v5 }
 0x54d   :  { %16369 = vmatpush3.bf16.msra.mxu1 %v17111_v29  ;;  %v7665_v29 = vpack.c.bf16 %v7654_v34, %v7653_v23 }
 0x54e   :  { %16370 = vmatprep.subr.bf16.mxu1 %v17112_v56 }
 0x550   :  { %16355 = vmatmul.mubr.bf16.gmra.mrb[4].mxu1 %v7260_v18  ;;  %v7660_v18 = vld [vmem:[#allocation2 + $0x174] sm:$0xff] }
 0x551   :  { %16371 = vmatpush3.bf16.msra.mxu1 %v17112_v56  ;;  %16358 = vmatprep.mubr.bf16.mxu1 %v7261_v42  ;;  %v7656_v56 = vld [vmem:[#allocation2 + $0x134] sm:$0xff]  ;;  %v7668_v25 = vpack.c.bf16 %v7660_v18, %v21226_v15  ;;  %v17147_v15 = vld [vmem:[%s23242_s5 + $0x720] ss:$16 sps:$4 sm:$0xff]  }
 0x552   :  { %16372 = vmatprep.subr.bf16.mxu1 %v17113_v59  ;;  %v7666_v28 = vpack.c.bf16 %v7656_v56, %v7655_v44  ;;  %v17146_v42 = vld [vmem:[%s23242_s5 + $0x704] ss:$16 sps:$4 sm:$0xff]  }
 0x555   :  { %16373 = vmatpush3.bf16.msra.mxu1 %v17113_v59  ;;  %v17141_v59 = vld [vmem:[%s23242_s5 + $0x1e0] ss:$16 sps:$4 sm:$0xff]  }
 0x556   :  { %16374 = vmatprep.subr.bf16.mxu1 %v17114_v63  ;;  %8184 = vmatpush1.bf16.msra.mxu0 %v17141_v59 }
 0x558   :  { %16359 = vmatmul.mubr.bf16.gmra.mrb[8].mxu1 %v7262_v17  ;;  %v17153_v17 = vld [vmem:[%s23242_s5 + $0x760] ss:$16 sps:$4 sm:$0xff]  }
 0x559   :  { %16375 = vmatpush3.bf16.msra.mxu1 %v17114_v63  ;;  %16362 = vmatprep.mubr.bf16.mxu1 %v7263_v20  ;;  %v17149_v63 = vld [vmem:[%s23242_s5 + $0x724] ss:$16 sps:$4 sm:$0xff]   ;;  %v18774_v20 = vmov 0  }
 0x55a   :  { %16376 = vmatprep.subr.bf16.mxu1 %v17115_v38  ;;  %8201 = vmatprep.mubr.bf16.mxu0 %v18774_v20 }
 0x55d   :  { %16377 = vmatpush3.bf16.msra.mxu1 %v17115_v38  ;;  %v17158_v38 = vld [vmem:[%s23242_s5 + $0x784] ss:$16 sps:$4 sm:$0xff]  }
 0x55e   :  { %16378 = vmatprep.subr.bf16.mxu1 %v17116_v48 }
 0x560   :  { %16363 = vmatmul.mubr.bf16.gmra.mrb[12].mxu1 %v7264_v24  ;;  %v17164_v24 = vld [vmem:[%s23242_s5 + $0x7c4] ss:$16 sps:$4 sm:$0xff]  }
 0x561   :  { %16379 = vmatpush3.bf16.msra.mxu1 %v17116_v48  ;;  %16382 = vmatprep.mubr.bf16.mxu1 %v7459_v41  ;;  %v17173_v48 = vld [vmem:[%s23242_s5 + $0x10c] ss:$16 sps:$4 sm:$0xff]   ;;  %v17167_v41 = vld [vmem:[%s23242_s5 + $0x7e4] ss:$16 sps:$4 sm:$0xff]  }
 0x562   :  { %16380 = vmatprep.subr.bf16.mxu1 %v17117_v62  ;;  %8210 = vmatprep.subr.bf16.mxu0 %v17173_v48 }
 0x565   :  { %16381 = vmatpush3.bf16.msra.mxu1 %v17117_v62  ;;  %v17162_v62 = vld [vmem:[%s23242_s5 + $0x7c0] ss:$16 sps:$4 sm:$0xff]  }
 0x566   :  { %16398 = vmatprep.subr.bf16.mxu1 %v17118_v19 }
 0x568   :  { %16383 = vmatmul.mubr.bf16.vlgmr.msra.gmra.mrb[0].mxu1 %v7460_v11 }
 0x569   :  { %16399 = vmatpush3.bf16.msra.mxu1 %v17118_v19  ;;  %16386 = vmatprep.mubr.bf16.mxu1 %v7461_v21  ;;  %v17165_v19 = vld [vmem:[%s23242_s5 + $0x7e0] ss:$16 sps:$4 sm:$0xff]  }
 0x56a   :  { %16400 = vmatprep.subr.bf16.mxu1 %v17119_v51 }
 0x56d   :  { %16401 = vmatpush3.bf16.msra.mxu1 %v17119_v51 }
 0x56e   :  { %16402 = vmatprep.subr.bf16.mxu1 %v17120_v61 }
 0x570   :  { %16387 = vmatmul.mubr.bf16.gmra.mrb[4].mxu1 %v7462_v12 }
 0x571   :  { %16403 = vmatpush3.bf16.msra.mxu1 %v17120_v61  ;;  %16390 = vmatprep.mubr.bf16.mxu1 %v7463_v60 }
 0x572   :  { %16404 = vmatprep.subr.bf16.mxu1 %v17124_v16 }
 0x575   :  { %16405 = vmatpush3.bf16.msra.mxu1 %v17124_v16 }
 0x576   :  { %16406 = vmatprep.subr.bf16.mxu1 %v17125_v45 }
 0x578   :  { %16391 = vmatmul.mubr.bf16.gmra.mrb[8].mxu1 %v7464_v6 }
 0x579   :  { %16407 = vmatpush3.bf16.msra.mxu1 %v17125_v45  ;;  %16394 = vmatprep.mubr.bf16.mxu1 %v7465_v54 }
 0x57a   :  { %16408 = vmatprep.subr.bf16.mxu1 %v17126_v50 }
 0x57d   :  { %16409 = vmatpush3.bf16.msra.mxu1 %v17126_v50 }
 0x57e   :  { %16410 = vmatprep.subr.bf16.mxu1 %v17127_v52 }
 0x580   :  { %16395 = vmatmul.mubr.bf16.gmra.mrb[12].mxu1 %v7466_v47 }
 0x581   :  { %16411 = vmatpush3.bf16.msra.mxu1 %v17127_v52  ;;  %16414 = vmatprep.mubr.bf16.mxu1 %v7661_v7 }
 0x582   :  { %16412 = vmatprep.subr.bf16.mxu1 %v17128_v57 }
 0x585   :  { %16413 = vmatpush3.bf16.msra.mxu1 %v17128_v57 }
 0x586   :  { %10235 = vmatprep.subr.bf16.mxu1 %v17146_v42 }
 0x588   :  { %16415 = vmatmul.mubr.bf16.vlgmr.msra.gmra.mrb[0].mxu1 %v7662_v55 }
 0x589   :  { %16418 = vmatprep.mubr.bf16.mxu1 %v7663_v26  ;;  %10236 = vmatpush1.bf16.msra.mxu1 %v17144_v8 }
 0x58a   :  { %10237 = vmatprep.subr.bf16.mxu1 %v17149_v63 }
 0x58d   :  { %10238 = vmatpush1.bf16.msra.mxu1 %v17147_v15 }
 0x58e   :  { %10239 = vmatprep.subr.bf16.mxu1 %v17152_v31 }
 0x590   :  { %16419 = vmatmul.mubr.bf16.gmra.mrb[4].mxu1 %v7664_v3 }
 0x591   :  { %16422 = vmatprep.mubr.bf16.mxu1 %v7665_v29  ;;  %10240 = vmatpush1.bf16.msra.mxu1 %v17150_v13 }
 0x592   :  { %10241 = vmatprep.subr.bf16.mxu1 %v17155_v53 }
 0x595   :  { %10242 = vmatpush1.bf16.msra.mxu1 %v17153_v17 }
 0x596   :  { %10243 = vmatprep.subr.bf16.mxu1 %v17158_v38 }
 0x598   :  { %16423 = vmatmul.mubr.bf16.gmra.mrb[8].mxu1 %v7666_v28 }
 0x599   :  { %16426 = vmatprep.mubr.bf16.mxu1 %v7667_v14  ;;  %10244 = vmatpush1.bf16.msra.mxu1 %v17156_v2 }
 0x59a   :  { %10245 = vmatprep.subr.bf16.mxu1 %v17161_v46 }
 0x59d   :  { %10246 = vmatpush1.bf16.msra.mxu1 %v17159_v36 }
 0x59e   :  { %10247 = vmatprep.subr.bf16.mxu1 %v17164_v24 }
 0x5a0   :  { %16427 = vmatmul.mubr.bf16.gmra.mrb[12].mxu1 %v7668_v25 }
 0x5a1   :  { %10267 = vmatprep.mubr.bf16.mxu1 %v18774_v20  ;;  %10248 = vmatpush1.bf16.msra.mxu1 %v17162_v62 }
 0x5a2   :  { %10249 = vmatprep.subr.bf16.mxu1 %v17167_v41 }
 0x5a5   :  { %10250 = vmatpush1.bf16.msra.mxu1 %v17165_v19 }
 0x5a6   :  { %10540 = vmatprep.subr.bf16.mxu1 %v17170_v30 }
 0x65b   :  { %v16416_v35 = vpop.f32.mrb[0].mxu1 }
 0x65c   :  { %v7856_v11 = vadd.f32 %v16416_v35, %v13848_v10  ;;  %v7768_v51 = vpop.f32.mrb[1].mxu1 }
 0x65d   :  { %v7854_v21 = vadd.f32 %v13848_v10, %v7768_v51  ;;  %v16417_v61 = vpop.f32.mrb[2].mxu1 }
 0x65e   :  { %18688 = vtanh.f32 %v7856_v11  ;;  %v7857_v43 = vadd.f32 %v16417_v61, %v13848_v10  ;;  %v7771_v37 = vpop.f32.mrb[3].mxu1 }
 0x65f   :  { %18690 = vtanh.f32 %v7854_v21  ;;  %v7855_v0 = vadd.f32 %v13848_v10, %v7771_v37 }
 0x660   :  { %18692 = vtanh.f32 %v7857_v43 }
 0x661   :  { %18694 = vtanh.f32 %v7855_v0 }
 0x663   :  { %v16420_v12 = vpop.f32.mrb[4].mxu1 }
 0x664   :  { %v7860_v16 = vadd.f32 %v16420_v12, %v13848_v10  ;;  %v7784_v60 = vpop.f32.mrb[5].mxu1 }
 0x665   :  { %v7858_v45 = vadd.f32 %v13848_v10, %v7784_v60  ;;  %v16421_v4 = vpop.f32.mrb[6].mxu1 }
 0x666   :  { %18696 = vtanh.f32 %v7860_v16  ;;  %v7861_v39 = vadd.f32 %v16421_v4, %v13848_v10  ;;  %v7787_v40 = vpop.f32.mrb[7].mxu1 }
 0x667   :  { %18698 = vtanh.f32 %v7858_v45  ;;  %v7859_v6 = vadd.f32 %v13848_v10, %v7787_v40 }
 0x668   :  { %v18689_v50 = vpop.eup %18688  ;;  %18700 = vtanh.f32 %v7861_v39 }
 0x669   :  { %v18691_v54 = vpop.eup %18690  ;;  %7888 = vst [vmem:[#allocation3 + $0x10] sm:$0xff] %v18689_v50  ;;  %18702 = vtanh.f32 %v7859_v6 }
 0x66a   :  { %v18693_v52 = vpop.eup %18692  ;;  %7886 = vst [vmem:[#allocation3] sm:$0xff] %v18691_v54 }
 0x66b   :  { %v18695_v49 = vpop.eup %18694  ;;  %7889 = vst [vmem:[#allocation3 + $0x18] sm:$0xff] %v18693_v52  ;;  %v16424_v58 = vpop.f32.mrb[8].mxu1 }
 0x66c   :  { %7887 = vst [vmem:[#allocation3 + $0x8] sm:$0xff] %v18695_v49  ;;  %v7864_v32 = vadd.f32 %v16424_v58, %v13848_v10  ;;  %v7800_v47 = vpop.f32.mrb[9].mxu1 }
 0x66d   :  { %v7862_v57 = vadd.f32 %v13848_v10, %v7800_v47  ;;  %v16425_v7 = vpop.f32.mrb[10].mxu1 }
 0x66e   :  { %18704 = vtanh.f32 %v7864_v32  ;;  %v7865_v22 = vadd.f32 %v16425_v7, %v13848_v10  ;;  %v7803_v33 = vpop.f32.mrb[11].mxu1 }
 0x66f   :  { %18706 = vtanh.f32 %v7862_v57  ;;  %v7863_v1 = vadd.f32 %v13848_v10, %v7803_v33  ;;  %v17168_v57 = vld [vmem:[%s23242_s5 + $0x800] ss:$16 sps:$4 sm:$0xff]  }
 0x670   :  { %v18697_v55 = vpop.eup %18696  ;;  %18708 = vtanh.f32 %v7865_v22  ;;  %v10018_v13 = vld [vmem:[#allocation3 + $0x16] sm:$0x1]  ;;  %v10020_v31 = vld [vmem:[#allocation3 + $0x17] sm:$0x1]  ;;  %v17171_v22 = vld [vmem:[%s23242_s5 + $0x108] ss:$16 sps:$4 sm:$0xff]  }
 0x671   :  { %v18699_v26 = vpop.eup %18698  ;;  %7892 = vst [vmem:[#allocation3 + $0x30] sm:$0xff] %v18697_v55  ;;  %18710 = vtanh.f32 %v7863_v1  ;;  %v7951_v17 = vld [vmem:[#allocation3 + $0x2] sm:$0x1]  ;;  %v7953_v38 = vld [vmem:[#allocation3 + $0x3] sm:$0x1]  ;;  %v10022_v62 = vmax.f32 %v10018_v13, %v10020_v31 }
 0x672   :  { %v18701_v9 = vpop.eup %18700  ;;  %7890 = vst [vmem:[#allocation3 + $0x20] sm:$0xff] %v18699_v26  ;;  %v10024_v8 = vld [vmem:[#allocation3 + $0x1e] sm:$0x1]  ;;  %v10026_v42 = vld [vmem:[#allocation3 + $0x1f] sm:$0x1]  ;;  %v7955_v11 = vmax.f32 %v7951_v17, %v7953_v38 }
 0x673   :  { %v18703_v23 = vpop.eup %18702  ;;  %7893 = vst [vmem:[#allocation3 + $0x38] sm:$0xff] %v18701_v9  ;;  %v16428_v34 = vpop.f32.mrb[12].mxu1  ;;  %v7957_v15 = vld [vmem:[#allocation3 + $0xa] sm:$0x1]  ;;  %v7959_v63 = vld [vmem:[#allocation3 + $0xb] sm:$0x1]  ;;  %v10028_v53 = vmax.f32 %v10024_v8, %v10026_v42 }
 0x674   :  { %7891 = vst [vmem:[#allocation3 + $0x28] sm:$0xff] %v18703_v23  ;;  %v7868_v3 = vadd.f32 %v16428_v34, %v13848_v10  ;;  %v7816_v29 = vpop.f32.mrb[13].mxu1  ;;  %v7961_v36 = vmax.f32 %v7957_v15, %v7959_v63  ;;  %v17176_v55 = vld [vmem:[%s23242_s5 + $0x824] ss:$16 sps:$4 sm:$0xff]   ;;  %v17179_v9 = vld [vmem:[%s23242_s5 + $0x12c] ss:$16 sps:$4 sm:$0xff]  }
 0x675   :  { %v7866_v44 = vadd.f32 %v13848_v10, %v7816_v29  ;;  %v16429_v56 = vpop.f32.mrb[14].mxu1  ;;  %v10030_v43 = vmax.f32 %v10022_v62, %v10028_v53  ;;  %v17174_v23 = vld [vmem:[%s23242_s5 + $0x820] ss:$16 sps:$4 sm:$0xff]   ;;  %v17177_v34 = vld [vmem:[%s23242_s5 + $0x128] ss:$16 sps:$4 sm:$0xff]  }
 0x676   :  { %18712 = vtanh.f32 %v7868_v3  ;;  %v7869_v27 = vadd.f32 %v16429_v56, %v13848_v10  ;;  %v7819_v28 = vpop.f32.mrb[15].mxu1  ;;  %v7963_v60 = vmax.f32 %v7955_v11, %v7961_v36  ;;  %v17182_v3 = vld [vmem:[%s23242_s5 + $0x844] ss:$16 sps:$4 sm:$0xff]   ;;  %v17185_v29 = vld [vmem:[%s23242_s5 + $0x14c] ss:$16 sps:$4 sm:$0xff]  }
 0x677   :  { %18714 = vtanh.f32 %v7866_v44  ;;  %v7867_v14 = vadd.f32 %v13848_v10, %v7819_v28  ;;  %v10032_v39 = vpack.c.bf16 %v10030_v43, %v10030_v43  ;;  %v17183_v28 = vld [vmem:[%s23242_s5 + $0x148] ss:$16 sps:$4 sm:$0xff]   ;;  %v17186_v8 = vld [vmem:[%s23242_s5 + $0x860] ss:$16 sps:$4 sm:$0xff]   ;;  %v17194_v63 = vld [vmem:[%s23242_s5 + $0x884] ss:$16 sps:$4 sm:$0xff]  }
 0x678   :  { %v18705_v18 = vpop.eup %18704  ;;  %18716 = vtanh.f32 %v7869_v27  ;;  %v7965_v6 = vpack.c.bf16 %v7963_v60, %v7963_v60  ;;  %v17180_v27 = vld [vmem:[%s23242_s5 + $0x840] ss:$16 sps:$4 sm:$0xff]   ;;  %v17189_v42 = vld [vmem:[%s23242_s5 + $0x168] ss:$16 sps:$4 sm:$0xff]   ;;  %v17197_v53 = vld [vmem:[%s23242_s5 + $0x18c] ss:$16 sps:$4 sm:$0xff]  }
 0x679   :  { %v18707_v25 = vpop.eup %18706  ;;  %7896 = vst [vmem:[#allocation3 + $0x50] sm:$0xff] %v18705_v18  ;;  %18718 = vtanh.f32 %v7867_v14  ;;  %v10069_v49 = vunpack.c.l.b16 %v10032_v39  ;;  %v17188_v14 = vld [vmem:[%s23242_s5 + $0x864] ss:$16 sps:$4 sm:$0xff]   ;;  %v10322_v38 = vld [vmem:[#allocation3 + $0x20] sm:$0x1] }
 0x67a   :  { %v18709_v59 = vpop.eup %18708  ;;  %7894 = vst [vmem:[#allocation3 + $0x40] sm:$0xff] %v18707_v25  ;;  %v8002_v32 = vunpack.c.l.b16 %v7965_v6  ;;  %v17195_v36 = vld [vmem:[%s23242_s5 + $0x188] ss:$16 sps:$4 sm:$0xff]   ;;  %v17203_v62 = vld [vmem:[%s23242_s5 + $0x1ac] ss:$16 sps:$4 sm:$0xff]  }
 0x67b   :  { %v18711_v5 = vpop.eup %18710  ;;  %7897 = vst [vmem:[#allocation3 + $0x58] sm:$0xff] %v18709_v59  ;;  %v17191_v59 = vld [vmem:[%s23242_s5 + $0x16c] ss:$16 sps:$4 sm:$0xff]   ;;  %v10329_v13 = vld [vmem:[#allocation3 + $0x28] sm:$0x1] }
 0x67c   :  { %7895 = vst [vmem:[#allocation3 + $0x48] sm:$0xff] %v18711_v5  ;;  %v10331_v31 = vld [vmem:[#allocation3 + $0x29] sm:$0x1]  ;;  %v17206_v11 = vld [vmem:[%s23242_s5 + $0x8c4] ss:$16 sps:$4 sm:$0xff]  }
 0x67d   :  { %v17210_v60 = vld [vmem:[%s23242_s5 + $0x8e0] ss:$16 sps:$4 sm:$0xff]   ;;  %v17218_v39 = vld [vmem:[%s23242_s5 + $0x904] ss:$16 sps:$4 sm:$0xff]  }
 0x67e   :  { %v17221_v6 = vld [vmem:[%s23242_s5 + $0x4] ss:$16 sps:$4 sm:$0xff]  }
 0x680   :  { %v18713_v48 = vpop.eup %18712  ;;  %v10019_v2 = vld [vmem:[#allocation3 + $0x56] sm:$0x1]  ;;  %v10021_v46 = vld [vmem:[#allocation3 + $0x57] sm:$0x1] }
 0x681   :  { %v18715_v24 = vpop.eup %18714  ;;  %7900 = vst [vmem:[#allocation3 + $0x70] sm:$0xff] %v18713_v48  ;;  %v7952_v41 = vld [vmem:[#allocation3 + $0x42] sm:$0x1]  ;;  %v7954_v19 = vld [vmem:[#allocation3 + $0x43] sm:$0x1]  ;;  %v10023_v21 = vmax.f32 %v10019_v2, %v10021_v46  ;;  %v10333_v46 = vmax.f32 %v10329_v13, %v10331_v31 }
 0x682   :  { %v18717_v30 = vpop.eup %18716  ;;  %7898 = vst [vmem:[#allocation3 + $0x60] sm:$0xff] %v18715_v24  ;;  %v10025_v10 = vld [vmem:[#allocation3 + $0x5e] sm:$0x1]  ;;  %v10027_v35 = vld [vmem:[#allocation3 + $0x5f] sm:$0x1]  ;;  %v7956_v12 = vmax.f32 %v7952_v41, %v7954_v19 }
 0x683   :  { %v18719_v51 = vpop.eup %18718  ;;  %7901 = vst [vmem:[#allocation3 + $0x78] sm:$0xff] %v18717_v30  ;;  %v10029_v61 = vmax.f32 %v10025_v10, %v10027_v35  ;;  %v7958_v37 = vld [vmem:[#allocation3 + $0x4a] sm:$0x1]  ;;  %v7960_v0 = vld [vmem:[#allocation3 + $0x4b] sm:$0x1] }
 0x684   :  { %7899 = vst [vmem:[#allocation3 + $0x68] sm:$0xff] %v18719_v51  ;;  %v7962_v16 = vmax.f32 %v7958_v37, %v7960_v0  ;;  %v10324_v48 = vld [vmem:[#allocation3 + $0x21] sm:$0x1]  ;;  %v17200_v24 = vld [vmem:[%s23242_s5 + $0x8a4] ss:$16 sps:$4 sm:$0xff]  }
 0x685   :  { %v10031_v45 = vmax.f32 %v10023_v21, %v10029_v61  ;;  %v17192_v2 = vld [vmem:[%s23242_s5 + $0x880] ss:$16 sps:$4 sm:$0xff]   ;;  %v10326_v41 = vmax.f32 %v10322_v38, %v10324_v48  ;;  %v17201_v35 = vld [vmem:[%s23242_s5 + $0x1a8] ss:$16 sps:$4 sm:$0xff]   ;;  %v17209_v51 = vld [vmem:[%s23242_s5 + $0x1cc] ss:$16 sps:$4 sm:$0xff]  }
 0x686   :  { %v7964_v4 = vmax.f32 %v7956_v12, %v7962_v16  ;;  %v17198_v30 = vld [vmem:[%s23242_s5 + $0x8a0] ss:$16 sps:$4 sm:$0xff]   ;;  %v17207_v37 = vld [vmem:[%s23242_s5 + $0x1c8] ss:$16 sps:$4 sm:$0xff]   ;;  %v17212_v0 = vld [vmem:[%s23242_s5 + $0x8e4] ss:$16 sps:$4 sm:$0xff]  }
 0x687   :  { %v10033_v40 = vpack.c.bf16 %v10031_v45, %v10031_v45  ;;  %v10335_v10 = vmax.f32 %v10326_v41, %v10333_v46  ;;  %v17204_v61 = vld [vmem:[%s23242_s5 + $0x8c0] ss:$16 sps:$4 sm:$0xff]   ;;  %v17215_v12 = vld [vmem:[%s23242_s5 + $0x1ec] ss:$16 sps:$4 sm:$0xff]   ;;  %v7909_v31 = vld [vmem:[#allocation3 + $0x8] sm:$0x1] }
 0x688   :  { %v7966_v50 = vpack.c.bf16 %v7964_v4, %v7964_v4  ;;  %v17213_v4 = vld [vmem:[%s23242_s5 + $0x1e8] ss:$16 sps:$4 sm:$0xff]   ;;  %v10628_v38 = vld [vmem:[#allocation3 + $0x23] sm:$0x1]  ;;  %v17248_v41 = vld [vmem:[%s23242_s5 + $0x9a4] ss:$16 sps:$4 sm:$0xff]  }
 0x689   :  { %v10070_v54 = vunpack.c.l.b16 %v10033_v40  ;;  %v10323_v18 = vld [vmem:[#allocation3 + $0x60] sm:$0x1]  ;;  %v10325_v25 = vld [vmem:[#allocation3 + $0x61] sm:$0x1]  ;;  %v10337_v43 = vpack.c.bf16 %v10335_v10, %v10335_v10 }
 0x68a   :  { %v8003_v52 = vunpack.c.l.b16 %v7966_v50  ;;  %v10327_v15 = vmax.f32 %v10323_v18, %v10325_v25  ;;  %v17216_v50 = vld [vmem:[%s23242_s5 + $0x900] ss:$16 sps:$4 sm:$0xff]  }
 0x68b   :  { %v10071_v58 = vrot.slane %v10070_v54, 7  ;;  %v10330_v44 = vld [vmem:[#allocation3 + $0x68] sm:$0x1]  ;;  %v10332_v56 = vld [vmem:[#allocation3 + $0x69] sm:$0x1]  ;;  %v10374_v45 = vunpack.c.l.b16 %v10337_v43 }
 0x68c   :  { %v8004_v47 = vrot.slane %v8003_v52, 7  ;;  %v10334_v5 = vmax.f32 %v10330_v44, %v10332_v56  ;;  %v17219_v52 = vld [vmem:[%s23242_s5] ss:$16 sps:$4 sm:$0xff]   ;;  %v17239_v44 = vld [vmem:[%s23242_s5 + $0x64] ss:$16 sps:$4 sm:$0xff]  }
 0x68d   :  { %v10072_v7 = vsel %vm8005_vm0, %v10071_v58, %v10069_v49  ;;  %v17224_v49 = vld [vmem:[%s23242_s5 + $0x924] ss:$16 sps:$4 sm:$0xff]   ;;  %v17234_v18 = vld [vmem:[%s23242_s5 + $0x960] ss:$16 sps:$4 sm:$0xff]  }
 0x68e   :  { %v21458_v33 = vpack.c.b16 %v10072_v7, %v10072_v7  ;;  %v8006_v1 = vsel %vm8005_vm0, %v8004_v47, %v8002_v32  ;;  %v10336_v17 = vmax.f32 %v10327_v15, %v10334_v5  ;;  %v17227_v58 = vld [vmem:[%s23242_s5 + $0x24] ss:$16 sps:$4 sm:$0xff]   ;;  %v17222_v32 = vld [vmem:[%s23242_s5 + $0x920] ss:$16 sps:$4 sm:$0xff]  }
 0x68f   :  { %v21464_v26 = vpack.c.b16 %v8006_v1, %v8006_v1  ;;  %v17225_v47 = vld [vmem:[%s23242_s5 + $0x20] ss:$16 sps:$4 sm:$0xff]   ;;  %v17233_v7 = vld [vmem:[%s23242_s5 + $0x44] ss:$16 sps:$4 sm:$0xff]   ;;  %v10633_v1 = vld [vmem:[#allocation3 + $0x6a] sm:$0x1] }
 0x690   :  { %10268 = vmatmul.mubr.bf16.vlgmr.msra.gmra.mrb[16].mxu1 %v21458_v33  ;;  %v10338_v19 = vpack.c.bf16 %v10336_v17, %v10336_v17  ;;  %v17237_v25 = vld [vmem:[%s23242_s5 + $0x60] ss:$16 sps:$4 sm:$0xff]   ;;  %v17242_v5 = vld [vmem:[%s23242_s5 + $0x984] ss:$16 sps:$4 sm:$0xff]  }
 0x691   :  { %10541 = vmatpush1.bf16.msra.mxu1 %v17168_v57  ;;  %8202 = vmatmul.mubr.bf16.vlgmr.msra.gmra.mrb[192].mxu0 %v21464_v26  ;;  %v17230_v57 = vld [vmem:[%s23242_s5 + $0x944] ss:$16 sps:$4 sm:$0xff]   ;;  %v10626_v17 = vld [vmem:[#allocation3 + $0x22] sm:$0x1] }
 0x692   :  { %8211 = vmatpush1.bf16.msra.mxu0 %v17171_v22  ;;  %10542 = vmatprep.subr.bf16.mxu1 %v17176_v55  ;;  %v10375_v21 = vunpack.c.l.b16 %v10338_v19  ;;  %v17228_v22 = vld [vmem:[%s23242_s5 + $0x940] ss:$16 sps:$4 sm:$0xff]   ;;  %v10635_v55 = vld [vmem:[#allocation3 + $0x6b] sm:$0x1]  ;;  %v10630_v10 = vmax.f32 %v10626_v17, %v10628_v38  ;;  %v17290_v17 = vld [vmem:[%s23242_s5 + $0xa84] ss:$16 sps:$4 sm:$0xff]  }
 0x693   :  { %8212 = vmatprep.subr.bf16.mxu0 %v17179_v9  ;;  %10572 = vmatprep.mubr.bf16.mxu1 %v18774_v20  ;;  %v7910_v9 = vld [vmem:[#allocation3 + $0x48] sm:$0x1]  ;;  %v10637_v56 = vmax.f32 %v10633_v1, %v10635_v55  ;;  %v17249_v43 = vld [vmem:[%s23242_s5 + $0xa0] ss:$16 sps:$4 sm:$0xff]   ;;  %v17269_v1 = vld [vmem:[%s23242_s5 + $0xc] ss:$16 sps:$4 sm:$0xff]  }
 0x694   :  { %8242 = vmatprep.mubr.bf16.mxu0 %v18774_v20  ;;  %v10376_v16 = vrot.slane %v10375_v21, 7  ;;  %v17246_v21 = vld [vmem:[%s23242_s5 + $0x9a0] ss:$16 sps:$4 sm:$0xff]   ;;  %v10935_v38 = vld [vmem:[#allocation3 + $0x2c] sm:$0x1] }
 0x695   :  { %10543 = vmatpush1.bf16.msra.mxu1 %v17174_v23  ;;  %v7912_v23 = vld [vmem:[#allocation3 + $0x49] sm:$0x1] }
 0x696   :  { %8213 = vmatpush1.bf16.msra.mxu0 %v17177_v34  ;;  %10544 = vmatprep.subr.bf16.mxu1 %v17182_v3  ;;  %v10377_v40 = vsel %vm8005_vm0, %v10376_v16, %v10374_v45  ;;  %v17236_v34 = vld [vmem:[%s23242_s5 + $0x964] ss:$16 sps:$4 sm:$0xff]   ;;  %v10627_v3 = vld [vmem:[#allocation3 + $0x62] sm:$0x1] }
 0x697   :  { %8214 = vmatprep.subr.bf16.mxu0 %v17185_v29  ;;  %v21561_v54 = vpack.c.b16 %v10377_v40, %v10377_v40  ;;  %v10629_v29 = vld [vmem:[#allocation3 + $0x63] sm:$0x1]  ;;  %v17260_v40 = vld [vmem:[%s23242_s5 + $0x9e4] ss:$16 sps:$4 sm:$0xff]  }
 0x698   :  { %v17252_v45 = vld [vmem:[%s23242_s5 + $0x9c0] ss:$16 sps:$4 sm:$0xff]  }
 0x699   :  { %10545 = vmatpush1.bf16.msra.mxu1 %v17180_v27  ;;  %v7903_v27 = vld [vmem:[#allocation3 + $0x40] sm:$0x1] }
 0x69a   :  { %8215 = vmatpush1.bf16.msra.mxu0 %v17183_v28  ;;  %10546 = vmatprep.subr.bf16.mxu1 %v17188_v14  ;;  %v7905_v28 = vld [vmem:[#allocation3 + $0x41] sm:$0x1]  ;;  %v7914_v14 = vmax.f32 %v7910_v9, %v7912_v23  ;;  %v17267_v23 = vld [vmem:[%s23242_s5 + $0x8] ss:$16 sps:$4 sm:$0xff]  }
 0x69b   :  { %8216 = vmatprep.subr.bf16.mxu0 %v17191_v59  ;;  %v10631_v59 = vmax.f32 %v10627_v3, %v10629_v29  ;;  %v7907_v15 = vmax.f32 %v7903_v27, %v7905_v28  ;;  %v17275_v29 = vld [vmem:[%s23242_s5 + $0x2c] ss:$16 sps:$4 sm:$0xff]   ;;  %v17278_v27 = vld [vmem:[%s23242_s5 + $0xa44] ss:$16 sps:$4 sm:$0xff]  }
 0x69c   :  { %v17281_v28 = vld [vmem:[%s23242_s5 + $0x4c] ss:$16 sps:$4 sm:$0xff]  }
 0x69d   :  { %10547 = vmatpush1.bf16.msra.mxu1 %v17186_v8  ;;  %v10632_v8 = vld [vmem:[#allocation3 + $0x2a] sm:$0x1]  ;;  %v10639_v13 = vmax.f32 %v10631_v59, %v10637_v56  ;;  %v7916_v48 = vmax.f32 %v7907_v15, %v7914_v14  ;;  %v10936_v14 = vld [vmem:[#allocation3 + $0x6c] sm:$0x1] }
 0x69e   :  { %8217 = vmatpush1.bf16.msra.mxu0 %v17189_v42  ;;  %10548 = vmatprep.subr.bf16.mxu1 %v17194_v63  ;;  %v10634_v42 = vld [vmem:[#allocation3 + $0x2b] sm:$0x1]  ;;  %v17245_v63 = vld [vmem:[%s23242_s5 + $0x84] ss:$16 sps:$4 sm:$0xff]   ;;  %v17287_v15 = vld [vmem:[%s23242_s5 + $0x6c] ss:$16 sps:$4 sm:$0xff]  }
 0x69f   :  { %8218 = vmatprep.subr.bf16.mxu0 %v17197_v53  ;;  %v7911_v53 = vld [vmem:[#allocation3 + $0x9] sm:$0x1]  ;;  %v10636_v46 = vmax.f32 %v10632_v8, %v10634_v42  ;;  %v10930_v8 = vld [vmem:[#allocation3 + $0x64] sm:$0x1]  ;;  %v10932_v42 = vld [vmem:[#allocation3 + $0x65] sm:$0x1] }
 0x6a0   :  { %v7913_v19 = vmax.f32 %v7909_v31, %v7911_v53  ;;  %v17273_v56 = vld [vmem:[%s23242_s5 + $0x28] ss:$16 sps:$4 sm:$0xff]   ;;  %v10934_v53 = vmax.f32 %v10930_v8, %v10932_v42  ;;  %v8504_v8 = vld [vmem:[#allocation3 + $0x45] sm:$0x1] }
 0x6a1   :  { %10549 = vmatpush1.bf16.msra.mxu1 %v17192_v2  ;;  %v17240_v2 = vld [vmem:[%s23242_s5 + $0x980] ss:$16 sps:$4 sm:$0xff]   ;;  %v17279_v59 = vld [vmem:[%s23242_s5 + $0x48] ss:$16 sps:$4 sm:$0xff]  }
 0x6a2   :  { %8219 = vmatpush1.bf16.msra.mxu0 %v17195_v36  ;;  %10550 = vmatprep.subr.bf16.mxu1 %v17200_v24  ;;  %v7902_v36 = vld [vmem:[#allocation3] sm:$0x1]  ;;  %v7904_v24 = vld [vmem:[#allocation3 + $0x1] sm:$0x1]  ;;  %v17285_v31 = vld [vmem:[%s23242_s5 + $0x68] ss:$16 sps:$4 sm:$0xff]  }
 0x6a3   :  { %8220 = vmatprep.subr.bf16.mxu0 %v17203_v62  ;;  %v17243_v62 = vld [vmem:[%s23242_s5 + $0x80] ss:$16 sps:$4 sm:$0xff]  }
 0x6a5   :  { %10551 = vmatpush1.bf16.msra.mxu1 %v17198_v30  ;;  %v17251_v30 = vld [vmem:[%s23242_s5 + $0xa4] ss:$16 sps:$4 sm:$0xff]  }
 0x6a6   :  { %8221 = vmatpush1.bf16.msra.mxu0 %v17201_v35  ;;  %10552 = vmatprep.subr.bf16.mxu1 %v17206_v11  ;;  %v10641_v35 = vpack.c.bf16 %v10639_v13, %v10639_v13  ;;  %v7906_v11 = vmax.f32 %v7902_v36, %v7904_v24  ;;  %v17282_v13 = vld [vmem:[%s23242_s5 + $0xa60] ss:$16 sps:$4 sm:$0xff]   ;;  %v10929_v36 = vld [vmem:[#allocation3 + $0x24] sm:$0x1]  ;;  %v10931_v24 = vld [vmem:[#allocation3 + $0x25] sm:$0x1] }
 0x6a7   :  { %8222 = vmatprep.subr.bf16.mxu0 %v17209_v51  ;;  %v7918_v51 = vpack.c.bf16 %v7916_v48, %v7916_v48  ;;  %v10937_v48 = vld [vmem:[#allocation3 + $0x2d] sm:$0x1] }
 0x6a8   :  { %v10678_v16 = vunpack.c.l.b16 %v10641_v35  ;;  %v10933_v35 = vmax.f32 %v10929_v36, %v10931_v24  ;;  %v8509_v36 = vld [vmem:[#allocation3 + $0xd] sm:$0x1]  ;;  %v11232_v24 = vld [vmem:[#allocation3 + $0x26] sm:$0x1] }
 0x6a9   :  { %10553 = vmatpush1.bf16.msra.mxu1 %v17204_v61  ;;  %v10638_v61 = vmax.f32 %v10630_v10, %v10636_v46  ;;  %v17299_v10 = vld [vmem:[%s23242_s5 + $0xac] ss:$16 sps:$4 sm:$0xff]  }
 0x6aa   :  { %8223 = vmatpush1.bf16.msra.mxu0 %v17207_v37  ;;  %10554 = vmatprep.subr.bf16.mxu1 %v17212_v0  ;;  %v17254_v37 = vld [vmem:[%s23242_s5 + $0x9c4] ss:$16 sps:$4 sm:$0xff]   ;;  %v7915_v0 = vmax.f32 %v7906_v11, %v7913_v19  ;;  %v17291_v19 = vld [vmem:[%s23242_s5 + $0x88] ss:$16 sps:$4 sm:$0xff]  }
 0x6ab   :  { %8224 = vmatprep.subr.bf16.mxu0 %v17215_v12  ;;  %v17257_v12 = vld [vmem:[%s23242_s5 + $0xc4] ss:$16 sps:$4 sm:$0xff]  }
 0x6ad   :  { %10555 = vmatpush1.bf16.msra.mxu1 %v17210_v60  ;;  %v8254_v60 = vunpack.c.l.b16 %v7918_v51  ;;  %v17294_v51 = vld [vmem:[%s23242_s5 + $0xaa0] ss:$16 sps:$4 sm:$0xff]  }
 0x6ae   :  { %8225 = vmatpush1.bf16.msra.mxu0 %v17213_v4  ;;  %10843 = vmatprep.subr.bf16.mxu1 %v17218_v39  ;;  %v10640_v4 = vpack.c.bf16 %v10638_v61, %v10638_v61  ;;  %v17255_v39 = vld [vmem:[%s23242_s5 + $0xc0] ss:$16 sps:$4 sm:$0xff]   ;;  %v17297_v61 = vld [vmem:[%s23242_s5 + $0xa8] ss:$16 sps:$4 sm:$0xff]  }
 0x6af   :  { %8419 = vmatprep.subr.bf16.mxu0 %v17221_v6  ;;  %v7917_v6 = vpack.c.bf16 %v7915_v0, %v7915_v0 }
 0x6b0   :  { %10573 = vmatmul.mubr.bf16.vlgmr.msra.gmra.mrb[20].mxu1 %v21561_v54 }
 0x6b1   :  { %8243 = vmatmul.mubr.bf16.vlgmr.msra.gmra.mrb[196].mxu0 %v21464_v26  ;;  %10844 = vmatpush1.bf16.msra.mxu1 %v17216_v50  ;;  %v17231_v26 = vld [vmem:[%s23242_s5 + $0x40] ss:$16 sps:$4 sm:$0xff]   ;;  %v17263_v50 = vld [vmem:[%s23242_s5 + $0xe4] ss:$16 sps:$4 sm:$0xff]  }
 0x6b2   :  { %8420 = vmatpush1.bf16.msra.mxu0 %v17219_v52  ;;  %10845 = vmatprep.subr.bf16.mxu1 %v17224_v49  ;;  %v10679_v52 = vrot.slane %v10678_v16, 7  ;;  %v8255_v49 = vrot.slane %v8254_v60, 7  ;;  %v17303_v60 = vld [vmem:[%s23242_s5 + $0xc8] ss:$16 sps:$4 sm:$0xff]  }
 0x6b3   :  { %8421 = vmatprep.subr.bf16.mxu0 %v17227_v58  ;;  %10875 = vmatprep.mubr.bf16.mxu1 %v18774_v20  ;;  %v17258_v58 = vld [vmem:[%s23242_s5 + $0x9e0] ss:$16 sps:$4 sm:$0xff]  }
 0x6b4   :  { %8451 = vmatprep.mubr.bf16.mxu0 %v18774_v20 }
 0x6b5   :  { %10846 = vmatpush1.bf16.msra.mxu1 %v17222_v32  ;;  %v10677_v32 = vunpack.c.l.b16 %v10640_v4  ;;  %v17311_v4 = vld [vmem:[%s23242_s5 + $0xec] ss:$16 sps:$4 sm:$0xff]  }
 0x6b6   :  { %8422 = vmatpush1.bf16.msra.mxu0 %v17225_v47  ;;  %10847 = vmatprep.subr.bf16.mxu1 %v17230_v57  ;;  %v17261_v47 = vld [vmem:[%s23242_s5 + $0xe0] ss:$16 sps:$4 sm:$0xff]   ;;  %v17266_v57 = vld [vmem:[%s23242_s5 + $0xa04] ss:$16 sps:$4 sm:$0xff]  }
 0x6b7   :  { %8423 = vmatprep.subr.bf16.mxu0 %v17233_v7  ;;  %v8253_v7 = vunpack.c.l.b16 %v7917_v6 }
 0x6b9   :  { %10848 = vmatpush1.bf16.msra.mxu1 %v17228_v22  ;;  %v10680_v22 = vsel %vm8005_vm0, %v10679_v52, %v10677_v32  ;;  %v8256_v55 = vsel %vm8005_vm0, %v8255_v49, %v8253_v7  ;;  %v17314_v52 = vld [vmem:[%s23242_s5 + $0xb04] ss:$16 sps:$4 sm:$0xff]   ;;  %v17312_v32 = vld [vmem:[%s23242_s5 + $0xb00] ss:$16 sps:$4 sm:$0xff]  }
 0x6ba   :  { %8424 = vmatpush1.bf16.msra.mxu0 %v17231_v26  ;;  %10849 = vmatprep.subr.bf16.mxu1 %v17236_v34  ;;  %v17264_v26 = vld [vmem:[%s23242_s5 + $0xa00] ss:$16 sps:$4 sm:$0xff]   ;;  %v21665_v9 = vpack.c.b16 %v10680_v22, %v10680_v22  ;;  %v17272_v34 = vld [vmem:[%s23242_s5 + $0xa24] ss:$16 sps:$4 sm:$0xff]   ;;  %v21673_v3 = vpack.c.b16 %v8256_v55, %v8256_v55 }
 0x6bb   :  { %8425 = vmatprep.subr.bf16.mxu0 %v17239_v44  ;;  %v17270_v44 = vld [vmem:[%s23242_s5 + $0xa20] ss:$16 sps:$4 sm:$0xff]   ;;  %v17320_v7 = vld [vmem:[%s23242_s5 + $0xb24] ss:$16 sps:$4 sm:$0xff]  }
 0x6bc   :  { %v17323_v22 = vld [vmem:[%s23242_s5 + $0x224] ss:$16 sps:$4 sm:$0xff]   ;;  %v17321_v55 = vld [vmem:[%s23242_s5 + $0x220] ss:$16 sps:$4 sm:$0xff]  }
 0x6bd   :  { %10850 = vmatpush1.bf16.msra.mxu1 %v17234_v18  ;;  %v10938_v18 = vld [vmem:[#allocation3 + $0x6d] sm:$0x1] }
 0x6be   :  { %8426 = vmatpush1.bf16.msra.mxu0 %v17237_v25  ;;  %10851 = vmatprep.subr.bf16.mxu1 %v17242_v5  ;;  %v17276_v25 = vld [vmem:[%s23242_s5 + $0xa40] ss:$16 sps:$4 sm:$0xff]   ;;  %v17284_v5 = vld [vmem:[%s23242_s5 + $0xa64] ss:$16 sps:$4 sm:$0xff]  }
 0x6bf   :  { %8427 = vmatprep.subr.bf16.mxu0 %v17245_v63  ;;  %v10940_v63 = vmax.f32 %v10936_v14, %v10938_v18  ;;  %v11233_v14 = vld [vmem:[#allocation3 + $0x66] sm:$0x1]  ;;  %v11235_v18 = vld [vmem:[#allocation3 + $0x67] sm:$0x1] }
 0x6c1   :  { %10852 = vmatpush1.bf16.msra.mxu1 %v17240_v2  ;;  %v17293_v2 = vld [vmem:[%s23242_s5 + $0x8c] ss:$16 sps:$4 sm:$0xff]   ;;  %v10942_v46 = vmax.f32 %v10934_v53, %v10940_v63  ;;  %v17333_v63 = vld [vmem:[%s23242_s5 + $0x260] ss:$16 sps:$4 sm:$0xff]  }
 0x6c2   :  { %8428 = vmatpush1.bf16.msra.mxu0 %v17243_v62  ;;  %10853 = vmatprep.subr.bf16.mxu1 %v17248_v41  ;;  %v17288_v62 = vld [vmem:[%s23242_s5 + $0xa80] ss:$16 sps:$4 sm:$0xff]   ;;  %v10939_v41 = vmax.f32 %v10935_v38, %v10937_v48  ;;  %v11238_v53 = vld [vmem:[#allocation3 + $0x2e] sm:$0x1]  ;;  %v17341_v48 = vld [vmem:[%s23242_s5 + $0x284] ss:$16 sps:$4 sm:$0xff]  }
 0x6c3   :  { %8429 = vmatprep.subr.bf16.mxu0 %v17251_v30  ;;  %v17296_v30 = vld [vmem:[%s23242_s5 + $0xaa4] ss:$16 sps:$4 sm:$0xff]   ;;  %v10944_v11 = vpack.c.bf16 %v10942_v46, %v10942_v46  ;;  %v8507_v46 = vld [vmem:[#allocation3 + $0xc] sm:$0x1] }
 0x6c5   :  { %10854 = vmatpush1.bf16.msra.mxu1 %v17246_v21  ;;  %v10941_v21 = vmax.f32 %v10933_v35, %v10939_v41  ;;  %v10981_v0 = vunpack.c.l.b16 %v10944_v11  ;;  %v8503_v35 = vld [vmem:[#allocation3 + $0x5] sm:$0x1]  ;;  %v17339_v11 = vld [vmem:[%s23242_s5 + $0x280] ss:$16 sps:$4 sm:$0xff]  }
 0x6c6   :  { %8430 = vmatpush1.bf16.msra.mxu0 %v17249_v43  ;;  %10855 = vmatprep.subr.bf16.mxu1 %v17254_v37  ;;  %v17302_v43 = vld [vmem:[%s23242_s5 + $0xac4] ss:$16 sps:$4 sm:$0xff]   ;;  %v17305_v37 = vld [vmem:[%s23242_s5 + $0xcc] ss:$16 sps:$4 sm:$0xff]  }
 0x6c7   :  { %8431 = vmatprep.subr.bf16.mxu0 %v17257_v12  ;;  %v17300_v12 = vld [vmem:[%s23242_s5 + $0xac0] ss:$16 sps:$4 sm:$0xff]   ;;  %v10943_v16 = vpack.c.bf16 %v10941_v21, %v10941_v21  ;;  %v8511_v21 = vmax.f32 %v8507_v46, %v8509_v36 }
 0x6c8   :  { %v17378_v36 = vld [vmem:[%s23242_s5 + $0xc60] ss:$16 sps:$4 sm:$0xff]  }
 0x6c9   :  { %10856 = vmatpush1.bf16.msra.mxu1 %v17252_v45  ;;  %v17308_v45 = vld [vmem:[%s23242_s5 + $0xae4] ss:$16 sps:$4 sm:$0xff]   ;;  %v10980_v6 = vunpack.c.l.b16 %v10943_v16  ;;  %v17342_v16 = vld [vmem:[%s23242_s5 + $0xba0] ss:$16 sps:$4 sm:$0xff]  }
 0x6ca   :  { %8432 = vmatpush1.bf16.msra.mxu0 %v17255_v39  ;;  %10857 = vmatprep.subr.bf16.mxu1 %v17260_v40  ;;  %v10982_v39 = vrot.slane %v10981_v0, 7  ;;  %v17306_v40 = vld [vmem:[%s23242_s5 + $0xae0] ss:$16 sps:$4 sm:$0xff]  }
 0x6cb   :  { %8433 = vmatprep.subr.bf16.mxu0 %v17263_v50  ;;  %v17309_v50 = vld [vmem:[%s23242_s5 + $0xe8] ss:$16 sps:$4 sm:$0xff]  }
 0x6cc   :  { %v10983_v49 = vsel %vm8005_vm0, %v10982_v39, %v10980_v6 }
 0x6cd   :  { %10858 = vmatpush1.bf16.msra.mxu1 %v17258_v58  ;;  %v17317_v58 = vld [vmem:[%s23242_s5 + $0x204] ss:$16 sps:$4 sm:$0xff]  }
 0x6ce   :  { %8434 = vmatpush1.bf16.msra.mxu0 %v17261_v47  ;;  %11146 = vmatprep.subr.bf16.mxu1 %v17266_v57  ;;  %v21770_v47 = vpack.c.b16 %v10983_v49, %v10983_v49  ;;  %v17315_v57 = vld [vmem:[%s23242_s5 + $0x200] ss:$16 sps:$4 sm:$0xff]  }
 0x6cf   :  { %8460 = vmatprep.subr.bf16.mxu0 %v17269_v1  ;;  %v17318_v1 = vld [vmem:[%s23242_s5 + $0xb20] ss:$16 sps:$4 sm:$0xff]  }
 0x6d0   :  { %10876 = vmatmul.mubr.bf16.vlgmr.msra.gmra.mrb[24].mxu1 %v21665_v9 }
 0x6d1   :  { %8452 = vmatmul.mubr.bf16.vlgmr.msra.gmra.mrb[200].mxu0 %v21673_v3  ;;  %11147 = vmatpush1.bf16.msra.mxu1 %v17264_v26  ;;  %v17326_v26 = vld [vmem:[%s23242_s5 + $0xb44] ss:$16 sps:$4 sm:$0xff]  }
 0x6d2   :  { %8461 = vmatpush1.bf16.msra.mxu0 %v17267_v23  ;;  %11148 = vmatprep.subr.bf16.mxu1 %v17272_v34  ;;  %v17329_v23 = vld [vmem:[%s23242_s5 + $0x244] ss:$16 sps:$4 sm:$0xff]   ;;  %v17324_v34 = vld [vmem:[%s23242_s5 + $0xb40] ss:$16 sps:$4 sm:$0xff]  }
 0x6d3   :  { %8462 = vmatprep.subr.bf16.mxu0 %v17275_v29  ;;  %11178 = vmatprep.mubr.bf16.mxu1 %v18774_v20  ;;  %v11241_v29 = vld [vmem:[#allocation3 + $0x6f] sm:$0x1] }
 0x6d4   :  { %8492 = vmatprep.mubr.bf16.mxu0 %v18774_v20 }
 0x6d5   :  { %11149 = vmatpush1.bf16.msra.mxu1 %v17270_v44  ;;  %v17327_v44 = vld [vmem:[%s23242_s5 + $0x240] ss:$16 sps:$4 sm:$0xff]  }
 0x6d6   :  { %8463 = vmatpush1.bf16.msra.mxu0 %v17273_v56  ;;  %11150 = vmatprep.subr.bf16.mxu1 %v17278_v27  ;;  %v8508_v56 = vld [vmem:[#allocation3 + $0x4c] sm:$0x1]  ;;  %v8510_v27 = vld [vmem:[#allocation3 + $0x4d] sm:$0x1] }
 0x6d7   :  { %8464 = vmatprep.subr.bf16.mxu0 %v17281_v28  ;;  %v17332_v28 = vld [vmem:[%s23242_s5 + $0xb64] ss:$16 sps:$4 sm:$0xff]   ;;  %v8512_v42 = vmax.f32 %v8508_v56, %v8510_v27  ;;  %v17360_v27 = vld [vmem:[%s23242_s5 + $0xc00] ss:$16 sps:$4 sm:$0xff]  }
 0x6d9   :  { %11151 = vmatpush1.bf16.msra.mxu1 %v17276_v25  ;;  %v17335_v25 = vld [vmem:[%s23242_s5 + $0x264] ss:$16 sps:$4 sm:$0xff]  }
 0x6da   :  { %8465 = vmatpush1.bf16.msra.mxu0 %v17279_v59  ;;  %11152 = vmatprep.subr.bf16.mxu1 %v17284_v5  ;;  %v8502_v5 = vld [vmem:[#allocation3 + $0x44] sm:$0x1] }
 0x6db   :  { %8466 = vmatprep.subr.bf16.mxu0 %v17287_v15  ;;  %v17330_v15 = vld [vmem:[%s23242_s5 + $0xb60] ss:$16 sps:$4 sm:$0xff]   ;;  %v8506_v38 = vmax.f32 %v8502_v5, %v8504_v8  ;;  %v17369_v8 = vld [vmem:[%s23242_s5 + $0x228] ss:$16 sps:$4 sm:$0xff]  }
 0x6dc   :  { %v17366_v5 = vld [vmem:[%s23242_s5 + $0xc20] ss:$16 sps:$4 sm:$0xff]  }
 0x6dd   :  { %11153 = vmatpush1.bf16.msra.mxu1 %v17282_v13  ;;  %v11237_v13 = vmax.f32 %v11233_v14, %v11235_v18  ;;  %v8514_v41 = vmax.f32 %v8506_v38, %v8512_v42  ;;  %v17363_v14 = vld [vmem:[%s23242_s5 + $0x208] ss:$16 sps:$4 sm:$0xff]   ;;  %v17368_v18 = vld [vmem:[%s23242_s5 + $0xc24] ss:$16 sps:$4 sm:$0xff]   ;;  %v11537_v38 = vld [vmem:[#allocation3 + $0x70] sm:$0x1] }
 0x6de   :  { %8467 = vmatpush1.bf16.msra.mxu0 %v17285_v31  ;;  %11154 = vmatprep.subr.bf16.mxu1 %v17290_v17  ;;  %v17338_v31 = vld [vmem:[%s23242_s5 + $0xb84] ss:$16 sps:$4 sm:$0xff]   ;;  %v11240_v17 = vld [vmem:[#allocation3 + $0x2f] sm:$0x1] }
 0x6df   :  { %8468 = vmatprep.subr.bf16.mxu0 %v17293_v2  ;;  %v17374_v42 = vld [vmem:[%s23242_s5 + $0xc44] ss:$16 sps:$4 sm:$0xff]  }
 0x6e1   :  { %11155 = vmatpush1.bf16.msra.mxu1 %v17288_v62  ;;  %v11234_v62 = vld [vmem:[#allocation3 + $0x27] sm:$0x1] }
 0x6e2   :  { %8469 = vmatpush1.bf16.msra.mxu0 %v17291_v19  ;;  %11156 = vmatprep.subr.bf16.mxu1 %v17296_v30  ;;  %v17336_v19 = vld [vmem:[%s23242_s5 + $0xb80] ss:$16 sps:$4 sm:$0xff]   ;;  %v11242_v30 = vmax.f32 %v11238_v53, %v11240_v17  ;;  %v17375_v53 = vld [vmem:[%s23242_s5 + $0x248] ss:$16 sps:$4 sm:$0xff]   ;;  %v17380_v17 = vld [vmem:[%s23242_s5 + $0xc64] ss:$16 sps:$4 sm:$0xff]  }
 0x6e3   :  { %8470 = vmatprep.subr.bf16.mxu0 %v17299_v10  ;;  %v8501_v10 = vld [vmem:[#allocation3 + $0x4] sm:$0x1] }
 0x6e4   :  { %v8505_v0 = vmax.f32 %v8501_v10, %v8503_v35  ;;  %v17389_v10 = vld [vmem:[%s23242_s5 + $0x28c] ss:$16 sps:$4 sm:$0xff]  }
 0x6e5   :  { %11157 = vmatpush1.bf16.msra.mxu1 %v17294_v51  ;;  %v17344_v51 = vld [vmem:[%s23242_s5 + $0xba4] ss:$16 sps:$4 sm:$0xff]  }
 0x6e6   :  { %8471 = vmatpush1.bf16.msra.mxu0 %v17297_v61  ;;  %11158 = vmatprep.subr.bf16.mxu1 %v17302_v43  ;;  %v17347_v61 = vld [vmem:[%s23242_s5 + $0x2a4] ss:$16 sps:$4 sm:$0xff]   ;;  %v11236_v43 = vmax.f32 %v11232_v24, %v11234_v62  ;;  %v8513_v39 = vmax.f32 %v8505_v0, %v8511_v21  ;;  %v11543_v62 = vld [vmem:[#allocation3 + $0x38] sm:$0x1]  ;;  %v17384_v21 = vld [vmem:[%s23242_s5 + $0xc80] ss:$16 sps:$4 sm:$0xff]  }
 0x6e7   :  { %8472 = vmatprep.subr.bf16.mxu0 %v17305_v37  ;;  %v17395_v0 = vld [vmem:[%s23242_s5 + $0x2ac] ss:$16 sps:$4 sm:$0xff]  }
 0x6e9   :  { %11159 = vmatpush1.bf16.msra.mxu1 %v17300_v12  ;;  %v8516_v12 = vpack.c.bf16 %v8514_v41, %v8514_v41  ;;  %v17381_v41 = vld [vmem:[%s23242_s5 + $0x268] ss:$16 sps:$4 sm:$0xff]  }
 0x6ea   :  { %8473 = vmatpush1.bf16.msra.mxu0 %v17303_v60  ;;  %11160 = vmatprep.subr.bf16.mxu1 %v17308_v45  ;;  %v11244_v60 = vmax.f32 %v11236_v43, %v11242_v30  ;;  %v17345_v45 = vld [vmem:[%s23242_s5 + $0x2a0] ss:$16 sps:$4 sm:$0xff]   ;;  %v11545_v30 = vld [vmem:[#allocation3 + $0x39] sm:$0x1] }
 0x6eb   :  { %8474 = vmatprep.subr.bf16.mxu0 %v17311_v4  ;;  %v17350_v4 = vld [vmem:[%s23242_s5 + $0xbc4] ss:$16 sps:$4 sm:$0xff]   ;;  %v17387_v43 = vld [vmem:[%s23242_s5 + $0x288] ss:$16 sps:$4 sm:$0xff]  }
 0x6ec   :  { %v11246_v49 = vpack.c.bf16 %v11244_v60, %v11244_v60  ;;  %v17390_v60 = vld [vmem:[%s23242_s5 + $0xca0] ss:$16 sps:$4 sm:$0xff]  }
 0x6ed   :  { %11161 = vmatpush1.bf16.msra.mxu1 %v17306_v40  ;;  %v17353_v40 = vld [vmem:[%s23242_s5 + $0x2c4] ss:$16 sps:$4 sm:$0xff]  }
 0x6ee   :  { %8475 = vmatpush1.bf16.msra.mxu0 %v17309_v50  ;;  %11449 = vmatprep.subr.bf16.mxu1 %v17314_v52  ;;  %v8553_v50 = vunpack.c.l.b16 %v8516_v12  ;;  %v17348_v52 = vld [vmem:[%s23242_s5 + $0xbc0] ss:$16 sps:$4 sm:$0xff]  }
 0x6ef   :  { %8718 = vmatprep.subr.bf16.mxu0 %v17317_v58  ;;  %v17351_v58 = vld [vmem:[%s23242_s5 + $0x2c0] ss:$16 sps:$4 sm:$0xff]  }
 0x6f0   :  { %11179 = vmatmul.mubr.bf16.vlgmr.msra.gmra.mrb[28].mxu1 %v21770_v47 }
 0x6f1   :  { %8493 = vmatmul.mubr.bf16.vlgmr.msra.gmra.mrb[204].mxu0 %v21673_v3  ;;  %11450 = vmatpush1.bf16.msra.mxu1 %v17312_v32  ;;  %v11239_v3 = vld [vmem:[#allocation3 + $0x6e] sm:$0x1]  ;;  %v17356_v32 = vld [vmem:[%s23242_s5 + $0xbe4] ss:$16 sps:$4 sm:$0xff]  }
 0x6f2   :  { %8719 = vmatpush1.bf16.msra.mxu0 %v17315_v57  ;;  %11451 = vmatprep.subr.bf16.mxu1 %v17320_v7  ;;  %v11243_v59 = vmax.f32 %v11239_v3, %v11241_v29  ;;  %v8515_v57 = vpack.c.bf16 %v8513_v39, %v8513_v39  ;;  %v17359_v7 = vld [vmem:[%s23242_s5 + $0x2e4] ss:$16 sps:$4 sm:$0xff]  }
 0x6f3   :  { %8720 = vmatprep.subr.bf16.mxu0 %v17323_v22  ;;  %11481 = vmatprep.mubr.bf16.mxu1 %v18774_v20  ;;  %v17398_v39 = vld [vmem:[%s23242_s5 + $0xcc4] ss:$16 sps:$4 sm:$0xff]  }
 0x6f4   :  { %8750 = vmatprep.mubr.bf16.mxu0 %v18774_v20  ;;  %v11245_v2 = vmax.f32 %v11237_v13, %v11243_v59  ;;  %v8552_v3 = vunpack.c.l.b16 %v8515_v57  ;;  %v17371_v59 = vld [vmem:[%s23242_s5 + $0x22c] ss:$16 sps:$4 sm:$0xff]   ;;  %v11546_v13 = vld [vmem:[#allocation3 + $0x79] sm:$0x1] }
 0x6f5   :  { %11452 = vmatpush1.bf16.msra.mxu1 %v17318_v1  ;;  %v8554_v1 = vrot.slane %v8553_v50, 7  ;;  %v17396_v50 = vld [vmem:[%s23242_s5 + $0xcc0] ss:$16 sps:$4 sm:$0xff]  }
 0x6f6   :  { %8721 = vmatpush1.bf16.msra.mxu0 %v17321_v55  ;;  %11453 = vmatprep.subr.bf16.mxu1 %v17326_v26  ;;  %v11247_v37 = vpack.c.bf16 %v11245_v2, %v11245_v2  ;;  %v17354_v55 = vld [vmem:[%s23242_s5 + $0xbe0] ss:$16 sps:$4 sm:$0xff]   ;;  %v11283_v26 = vunpack.c.l.b16 %v11246_v49  ;;  %v17383_v2 = vld [vmem:[%s23242_s5 + $0x26c] ss:$16 sps:$4 sm:$0xff]   ;;  %v17399_v49 = vld [vmem:[%s23242_s5 + $0x2c8] ss:$16 sps:$4 sm:$0xff]  }
 0x6f7   :  { %8722 = vmatprep.subr.bf16.mxu0 %v17329_v23  ;;  %v17357_v23 = vld [vmem:[%s23242_s5 + $0x2e0] ss:$16 sps:$4 sm:$0xff]   ;;  %v8555_v56 = vsel %vm8005_vm0, %v8554_v1, %v8552_v3  ;;  %v17405_v1 = vld [vmem:[%s23242_s5 + $0x2e8] ss:$16 sps:$4 sm:$0xff]  }
 0x6f8   :  { %v11284_v6 = vunpack.c.l.b16 %v11247_v37  ;;  %v17392_v37 = vld [vmem:[%s23242_s5 + $0xca4] ss:$16 sps:$4 sm:$0xff]  }
 0x6f9   :  { %11454 = vmatpush1.bf16.msra.mxu1 %v17324_v34  ;;  %v17362_v34 = vld [vmem:[%s23242_s5 + $0xc04] ss:$16 sps:$4 sm:$0xff]  }
 0x6fa   :  { %8723 = vmatpush1.bf16.msra.mxu0 %v17327_v44  ;;  %11455 = vmatprep.subr.bf16.mxu1 %v17332_v28  ;;  %v11285_v22 = vrot.slane %v11284_v6, 7  ;;  %v17365_v44 = vld [vmem:[%s23242_s5 + $0x20c] ss:$16 sps:$4 sm:$0xff]  }
 0x6fb   :  { %8724 = vmatprep.subr.bf16.mxu0 %v17335_v25  ;;  %v21882_v25 = vpack.c.b16 %v8555_v56, %v8555_v56  ;;  %v17419_v56 = vld [vmem:[%s23242_s5 + $0x324] ss:$16 sps:$4 sm:$0xff]  }
 0x6fc   :  { %v11286_v29 = vsel %vm8005_vm0, %v11285_v22, %v11283_v26 }
 0x6fd   :  { %11456 = vmatpush1.bf16.msra.mxu1 %v17330_v15  ;;  %v21874_v28 = vpack.c.b16 %v11286_v29, %v11286_v29  ;;  %v17377_v15 = vld [vmem:[%s23242_s5 + $0x24c] ss:$16 sps:$4 sm:$0xff]   ;;  %v17411_v29 = vld [vmem:[%s23242_s5 + $0x300] ss:$16 sps:$4 sm:$0xff]  }
 0x6fe   :  { %8725 = vmatpush1.bf16.msra.mxu0 %v17333_v63  ;;  %11457 = vmatprep.subr.bf16.mxu1 %v17338_v31  ;;  %v11544_v63 = vld [vmem:[#allocation3 + $0x78] sm:$0x1]  ;;  %v17372_v31 = vld [vmem:[%s23242_s5 + $0xc40] ss:$16 sps:$4 sm:$0xff]  }
 0x6ff   :  { %8726 = vmatprep.subr.bf16.mxu0 %v17341_v48  ;;  %v11539_v48 = vld [vmem:[#allocation3 + $0x71] sm:$0x1]  ;;  %v11548_v46 = vmax.f32 %v11544_v63, %v11546_v13  ;;  %v8813_v63 = vld [vmem:[#allocation3 + $0x4f] sm:$0x1] }
 0x700   :  { %v11541_v24 = vmax.f32 %v11537_v38, %v11539_v48  ;;  %v17423_v13 = vld [vmem:[%s23242_s5 + $0x340] ss:$16 sps:$4 sm:$0xff]   ;;  %v8805_v48 = vld [vmem:[#allocation3 + $0x46] sm:$0x1] }
 0x701   :  { %11458 = vmatpush1.bf16.msra.mxu1 %v17336_v19  ;;  %v17386_v19 = vld [vmem:[%s23242_s5 + $0xc84] ss:$16 sps:$4 sm:$0xff]  }
 0x702   :  { %8727 = vmatpush1.bf16.msra.mxu0 %v17339_v11  ;;  %11459 = vmatprep.subr.bf16.mxu1 %v17344_v51  ;;  %v11550_v35 = vmax.f32 %v11541_v24, %v11548_v46  ;;  %v11536_v11 = vld [vmem:[#allocation3 + $0x30] sm:$0x1]  ;;  %v11538_v51 = vld [vmem:[#allocation3 + $0x31] sm:$0x1] }
 0x703   :  { %8728 = vmatprep.subr.bf16.mxu0 %v17347_v61  ;;  %v11547_v61 = vmax.f32 %v11543_v62, %v11545_v30  ;;  %v11540_v12 = vmax.f32 %v11536_v11, %v11538_v51  ;;  %v11846_v62 = vld [vmem:[#allocation3 + $0x3a] sm:$0x1]  ;;  %v11848_v30 = vld [vmem:[#allocation3 + $0x3b] sm:$0x1]  ;;  %v8810_v51 = vld [vmem:[#allocation3 + $0xe] sm:$0x1] }
 0x705   :  { %11460 = vmatpush1.bf16.msra.mxu1 %v17342_v16  ;;  %v11552_v16 = vpack.c.bf16 %v11550_v35, %v11550_v35  ;;  %v17437_v35 = vld [vmem:[%s23242_s5 + $0x384] ss:$16 sps:$4 sm:$0xff]  }
 0x706   :  { %8729 = vmatpush1.bf16.msra.mxu0 %v17345_v45  ;;  %11461 = vmatprep.subr.bf16.mxu1 %v17350_v4  ;;  %v11549_v45 = vmax.f32 %v11540_v12, %v11547_v61  ;;  %v17393_v4 = vld [vmem:[%s23242_s5 + $0x2a8] ss:$16 sps:$4 sm:$0xff]   ;;  %v11840_v61 = vld [vmem:[#allocation3 + $0x32] sm:$0x1]  ;;  %v11850_v12 = vmax.f32 %v11846_v62, %v11848_v30  ;;  %v17473_v62 = vld [vmem:[%s23242_s5 + $0x34c] ss:$16 sps:$4 sm:$0xff]  }
 0x707   :  { %8730 = vmatprep.subr.bf16.mxu0 %v17353_v40  ;;  %v17401_v40 = vld [vmem:[%s23242_s5 + $0x2cc] ss:$16 sps:$4 sm:$0xff]   ;;  %v11589_v6 = vunpack.c.l.b16 %v11552_v16  ;;  %v8804_v16 = vld [vmem:[#allocation3 + $0x6] sm:$0x1]  ;;  %v17468_v30 = vld [vmem:[%s23242_s5 + $0xe40] ss:$16 sps:$4 sm:$0xff]  }
 0x709   :  { %11462 = vmatpush1.bf16.msra.mxu1 %v17348_v52  ;;  %v11551_v52 = vpack.c.bf16 %v11549_v45, %v11549_v45  ;;  %v11590_v57 = vrot.slane %v11589_v6, 7  ;;  %v17435_v45 = vld [vmem:[%s23242_s5 + $0x380] ss:$16 sps:$4 sm:$0xff]  }
 0x70a   :  { %8731 = vmatpush1.bf16.msra.mxu0 %v17351_v58  ;;  %11463 = vmatprep.subr.bf16.mxu1 %v17356_v32  ;;  %v17404_v58 = vld [vmem:[%s23242_s5 + $0xce4] ss:$16 sps:$4 sm:$0xff]   ;;  %v17407_v32 = vld [vmem:[%s23242_s5 + $0x2ec] ss:$16 sps:$4 sm:$0xff]  }
 0x70b   :  { %8732 = vmatprep.subr.bf16.mxu0 %v17359_v7  ;;  %v17402_v7 = vld [vmem:[%s23242_s5 + $0xce0] ss:$16 sps:$4 sm:$0xff]   ;;  %v11588_v22 = vunpack.c.l.b16 %v11551_v52 }
 0x70d   :  { %11464 = vmatpush1.bf16.msra.mxu1 %v17354_v55  ;;  %v17410_v55 = vld [vmem:[%s23242_s5 + $0xd04] ss:$16 sps:$4 sm:$0xff]   ;;  %v11591_v26 = vsel %vm8005_vm0, %v11590_v57, %v11588_v22  ;;  %v17441_v57 = vld [vmem:[%s23242_s5 + $0x3a0] ss:$16 sps:$4 sm:$0xff]  }
 0x70e   :  { %8733 = vmatpush1.bf16.msra.mxu0 %v17357_v23  ;;  %11754 = vmatprep.subr.bf16.mxu1 %v17362_v34  ;;  %v17413_v23 = vld [vmem:[%s23242_s5 + $0x304] ss:$16 sps:$4 sm:$0xff]   ;;  %v17408_v34 = vld [vmem:[%s23242_s5 + $0xd00] ss:$16 sps:$4 sm:$0xff]   ;;  %v21979_v3 = vpack.c.b16 %v11591_v26, %v11591_v26 }
 0x70f   :  { %8759 = vmatprep.subr.bf16.mxu0 %v17365_v44  ;;  %v17416_v44 = vld [vmem:[%s23242_s5 + $0xd24] ss:$16 sps:$4 sm:$0xff]  }
 0x710   :  { %11482 = vmatmul.mubr.bf16.vlgmr.msra.gmra.mrb[32].mxu1 %v21874_v28 }
 0x711   :  { %8751 = vmatmul.mubr.bf16.vlgmr.msra.gmra.mrb[208].mxu0 %v21882_v25  ;;  %11755 = vmatpush1.bf16.msra.mxu1 %v17360_v27  ;;  %v17414_v27 = vld [vmem:[%s23242_s5 + $0xd20] ss:$16 sps:$4 sm:$0xff]  }
 0x712   :  { %8760 = vmatpush1.bf16.msra.mxu0 %v17363_v14  ;;  %11756 = vmatprep.subr.bf16.mxu1 %v17368_v18  ;;  %v17417_v14 = vld [vmem:[%s23242_s5 + $0x320] ss:$16 sps:$4 sm:$0xff]   ;;  %v17422_v18 = vld [vmem:[%s23242_s5 + $0xd44] ss:$16 sps:$4 sm:$0xff]  }
 0x713   :  { %8761 = vmatprep.subr.bf16.mxu0 %v17371_v59  ;;  %11786 = vmatprep.mubr.bf16.mxu1 %v18774_v20  ;;  %v11841_v59 = vld [vmem:[#allocation3 + $0x72] sm:$0x1] }
 0x714   :  { %8791 = vmatprep.mubr.bf16.mxu0 %v18774_v20 }
 0x715   :  { %11757 = vmatpush1.bf16.msra.mxu1 %v17366_v5  ;;  %v11847_v5 = vld [vmem:[#allocation3 + $0x7a] sm:$0x1] }
 0x716   :  { %8762 = vmatpush1.bf16.msra.mxu0 %v17369_v8  ;;  %11758 = vmatprep.subr.bf16.mxu1 %v17374_v42  ;;  %v11849_v8 = vld [vmem:[#allocation3 + $0x7b] sm:$0x1]  ;;  %v17420_v42 = vld [vmem:[%s23242_s5 + $0xd40] ss:$16 sps:$4 sm:$0xff]  }
 0x717   :  { %8763 = vmatprep.subr.bf16.mxu0 %v17377_v15  ;;  %v8811_v15 = vld [vmem:[#allocation3 + $0x4e] sm:$0x1]  ;;  %v11851_v38 = vmax.f32 %v11847_v5, %v11849_v8  ;;  %v17453_v5 = vld [vmem:[%s23242_s5 + $0x3e0] ss:$16 sps:$4 sm:$0xff]   ;;  %v17458_v8 = vld [vmem:[%s23242_s5 + $0xe04] ss:$16 sps:$4 sm:$0xff]  }
 0x718   :  { %v8815_v46 = vmax.f32 %v8811_v15, %v8813_v63  ;;  %v17461_v63 = vld [vmem:[%s23242_s5 + $0x30c] ss:$16 sps:$4 sm:$0xff]  }
 0x719   :  { %11759 = vmatpush1.bf16.msra.mxu1 %v17372_v31  ;;  %v17428_v31 = vld [vmem:[%s23242_s5 + $0xd64] ss:$16 sps:$4 sm:$0xff]  }
 0x71a   :  { %8764 = vmatpush1.bf16.msra.mxu0 %v17375_v53  ;;  %11760 = vmatprep.subr.bf16.mxu1 %v17380_v17  ;;  %v11843_v53 = vld [vmem:[#allocation3 + $0x73] sm:$0x1]  ;;  %v17431_v17 = vld [vmem:[%s23242_s5 + $0x364] ss:$16 sps:$4 sm:$0xff]  }
 0x71b   :  { %8765 = vmatprep.subr.bf16.mxu0 %v17383_v2  ;;  %v8807_v2 = vld [vmem:[#allocation3 + $0x47] sm:$0x1]  ;;  %v11845_v24 = vmax.f32 %v11841_v59, %v11843_v53 }
 0x71d   :  { %11761 = vmatpush1.bf16.msra.mxu1 %v17378_v36  ;;  %v17426_v36 = vld [vmem:[%s23242_s5 + $0xd60] ss:$16 sps:$4 sm:$0xff]   ;;  %v11853_v11 = vmax.f32 %v11845_v24, %v11851_v38  ;;  %v17464_v38 = vld [vmem:[%s23242_s5 + $0xe24] ss:$16 sps:$4 sm:$0xff]  }
 0x71e   :  { %8766 = vmatpush1.bf16.msra.mxu0 %v17381_v41  ;;  %11762 = vmatprep.subr.bf16.mxu1 %v17386_v19  ;;  %v17429_v41 = vld [vmem:[%s23242_s5 + $0x360] ss:$16 sps:$4 sm:$0xff]   ;;  %v17434_v19 = vld [vmem:[%s23242_s5 + $0xd84] ss:$16 sps:$4 sm:$0xff]  }
 0x71f   :  { %8767 = vmatprep.subr.bf16.mxu0 %v17389_v10  ;;  %v8809_v10 = vmax.f32 %v8805_v48, %v8807_v2  ;;  %v17467_v2 = vld [vmem:[%s23242_s5 + $0x32c] ss:$16 sps:$4 sm:$0xff]   ;;  %v17470_v24 = vld [vmem:[%s23242_s5 + $0xe44] ss:$16 sps:$4 sm:$0xff]  }
 0x721   :  { %11763 = vmatpush1.bf16.msra.mxu1 %v17384_v21  ;;  %v8812_v21 = vld [vmem:[#allocation3 + $0xf] sm:$0x1] }
 0x722   :  { %8768 = vmatpush1.bf16.msra.mxu0 %v17387_v43  ;;  %11764 = vmatprep.subr.bf16.mxu1 %v17392_v37  ;;  %v11842_v43 = vld [vmem:[#allocation3 + $0x33] sm:$0x1]  ;;  %v8817_v37 = vmax.f32 %v8809_v10, %v8815_v46  ;;  %v12144_v10 = vld [vmem:[#allocation3 + $0x74] sm:$0x1] }
 0x723   :  { %8769 = vmatprep.subr.bf16.mxu0 %v17395_v0  ;;  %v17432_v0 = vld [vmem:[%s23242_s5 + $0xd80] ss:$16 sps:$4 sm:$0xff]   ;;  %v11844_v6 = vmax.f32 %v11840_v61, %v11842_v43 }
 0x724   :  { %v17462_v46 = vld [vmem:[%s23242_s5 + $0xe20] ss:$16 sps:$4 sm:$0xff]  }
 0x725   :  { %11765 = vmatpush1.bf16.msra.mxu1 %v17390_v60  ;;  %v8806_v60 = vld [vmem:[#allocation3 + $0x7] sm:$0x1]  ;;  %v17474_v43 = vld [vmem:[%s23242_s5 + $0xe60] ss:$16 sps:$4 sm:$0xff]  }
 0x726   :  { %8770 = vmatpush1.bf16.msra.mxu0 %v17393_v4  ;;  %11766 = vmatprep.subr.bf16.mxu1 %v17398_v39  ;;  %v17440_v4 = vld [vmem:[%s23242_s5 + $0xda4] ss:$16 sps:$4 sm:$0xff]   ;;  %v8814_v39 = vmax.f32 %v8810_v51, %v8812_v21  ;;  %v8808_v52 = vmax.f32 %v8804_v16, %v8806_v60  ;;  %v17479_v21 = vld [vmem:[%s23242_s5 + $0x36c] ss:$16 sps:$4 sm:$0xff]  }
 0x727   :  { %8771 = vmatprep.subr.bf16.mxu0 %v17401_v40  ;;  %v17443_v40 = vld [vmem:[%s23242_s5 + $0x3a4] ss:$16 sps:$4 sm:$0xff]   ;;  %v12151_v60 = vld [vmem:[#allocation3 + $0x3d] sm:$0x1] }
 0x728   :  { %v8816_v22 = vmax.f32 %v8808_v52, %v8814_v39  ;;  %v12146_v51 = vld [vmem:[#allocation3 + $0x75] sm:$0x1]  ;;  %v12143_v39 = vld [vmem:[#allocation3 + $0x34] sm:$0x1]  ;;  %v17483_v52 = vld [vmem:[%s23242_s5 + $0x388] ss:$16 sps:$4 sm:$0xff]  }
 0x729   :  { %11767 = vmatpush1.bf16.msra.mxu1 %v17396_v50  ;;  %v11855_v50 = vpack.c.bf16 %v11853_v11, %v11853_v11  ;;  %v17476_v11 = vld [vmem:[%s23242_s5 + $0xe64] ss:$16 sps:$4 sm:$0xff]  }
 0x72a   :  { %8772 = vmatpush1.bf16.msra.mxu0 %v17399_v49  ;;  %11768 = vmatprep.subr.bf16.mxu1 %v17404_v58  ;;  %v8819_v49 = vpack.c.bf16 %v8817_v37, %v8817_v37  ;;  %v17438_v58 = vld [vmem:[%s23242_s5 + $0xda0] ss:$16 sps:$4 sm:$0xff]   ;;  %v12148_v37 = vmax.f32 %v12144_v10, %v12146_v51  ;;  %v17482_v16 = vld [vmem:[%s23242_s5 + $0xe84] ss:$16 sps:$4 sm:$0xff]   ;;  %v12453_v51 = vld [vmem:[#allocation3 + $0x7e] sm:$0x1] }
 0x72b   :  { %8773 = vmatprep.subr.bf16.mxu0 %v17407_v32  ;;  %v11852_v32 = vmax.f32 %v11844_v6, %v11850_v12  ;;  %v17477_v12 = vld [vmem:[%s23242_s5 + $0x368] ss:$16 sps:$4 sm:$0xff]   ;;  %v17480_v6 = vld [vmem:[%s23242_s5 + $0xe80] ss:$16 sps:$4 sm:$0xff]  }
 0x72c   :  { %v8856_v26 = vunpack.c.l.b16 %v8819_v49  ;;  %v17488_v49 = vld [vmem:[%s23242_s5 + $0xea4] ss:$16 sps:$4 sm:$0xff]   ;;  %v17513_v10 = vld [vmem:[%s23242_s5 + $0x420] ss:$16 sps:$4 sm:$0xff]  }
 0x72d   :  { %11769 = vmatpush1.bf16.msra.mxu1 %v17402_v7  ;;  %v17446_v7 = vld [vmem:[%s23242_s5 + $0xdc4] ss:$16 sps:$4 sm:$0xff]  }
 0x72e   :  { %8774 = vmatpush1.bf16.msra.mxu0 %v17405_v1  ;;  %12057 = vmatprep.subr.bf16.mxu1 %v17410_v55  ;;  %v17449_v1 = vld [vmem:[%s23242_s5 + $0x3c4] ss:$16 sps:$4 sm:$0xff]   ;;  %v11892_v55 = vunpack.c.l.b16 %v11855_v50 }
 0x72f   :  { %9021 = vmatprep.subr.bf16.mxu0 %v17413_v23  ;;  %v17444_v23 = vld [vmem:[%s23242_s5 + $0xdc0] ss:$16 sps:$4 sm:$0xff]  }
 0x730   :  { %11787 = vmatmul.mubr.bf16.vlgmr.msra.gmra.mrb[36].mxu1 %v21979_v3 }
 0x731   :  { %8792 = vmatmul.mubr.bf16.vlgmr.msra.gmra.mrb[212].mxu0 %v21882_v25  ;;  %12058 = vmatpush1.bf16.msra.mxu1 %v17408_v34  ;;  %v17425_v25 = vld [vmem:[%s23242_s5 + $0x344] ss:$16 sps:$4 sm:$0xff]   ;;  %v11854_v34 = vpack.c.bf16 %v11852_v32, %v11852_v32 }
 0x732   :  { %9022 = vmatpush1.bf16.msra.mxu0 %v17411_v29  ;;  %12059 = vmatprep.subr.bf16.mxu1 %v17416_v44  ;;  %v17447_v29 = vld [vmem:[%s23242_s5 + $0x3c0] ss:$16 sps:$4 sm:$0xff]   ;;  %v17452_v44 = vld [vmem:[%s23242_s5 + $0xde4] ss:$16 sps:$4 sm:$0xff]  }
 0x733   :  { %9023 = vmatprep.subr.bf16.mxu0 %v17419_v56  ;;  %12089 = vmatprep.mubr.bf16.mxu1 %v18774_v20  ;;  %v8818_v56 = vpack.c.bf16 %v8816_v22, %v8816_v22  ;;  %v11891_v59 = vunpack.c.l.b16 %v11854_v34 }
 0x734   :  { %9053 = vmatprep.mubr.bf16.mxu0 %v18774_v20 }
 0x735   :  { %12060 = vmatpush1.bf16.msra.mxu1 %v17414_v27  ;;  %v17455_v27 = vld [vmem:[%s23242_s5 + $0x3e4] ss:$16 sps:$4 sm:$0xff]  }
 0x736   :  { %9024 = vmatpush1.bf16.msra.mxu0 %v17417_v14  ;;  %12061 = vmatprep.subr.bf16.mxu1 %v17422_v18  ;;  %v11893_v14 = vrot.slane %v11892_v55, 7  ;;  %v8857_v18 = vrot.slane %v8856_v26, 7  ;;  %v17494_v55 = vld [vmem:[%s23242_s5 + $0xec4] ss:$16 sps:$4 sm:$0xff]  }
 0x737   :  { %9025 = vmatprep.subr.bf16.mxu0 %v17425_v25  ;;  %v17450_v25 = vld [vmem:[%s23242_s5 + $0xde0] ss:$16 sps:$4 sm:$0xff]  }
 0x738   :  { %v11894_v15 = vsel %vm8005_vm0, %v11893_v14, %v11891_v59  ;;  %v17492_v14 = vld [vmem:[%s23242_s5 + $0xec0] ss:$16 sps:$4 sm:$0xff]  }
 0x739   :  { %12062 = vmatpush1.bf16.msra.mxu1 %v17420_v42  ;;  %v8855_v42 = vunpack.c.l.b16 %v8818_v56  ;;  %v22083_v53 = vpack.c.b16 %v11894_v15, %v11894_v15  ;;  %v17503_v15 = vld [vmem:[%s23242_s5 + $0x3ec] ss:$16 sps:$4 sm:$0xff]  }
 0x73a   :  { %9026 = vmatpush1.bf16.msra.mxu0 %v17423_v13  ;;  %12063 = vmatprep.subr.bf16.mxu1 %v17428_v31  ;;  %v17456_v31 = vld [vmem:[%s23242_s5 + $0xe00] ss:$16 sps:$4 sm:$0xff]  }
 0x73b   :  { %9027 = vmatprep.subr.bf16.mxu0 %v17431_v17  ;;  %v8858_v13 = vsel %vm8005_vm0, %v8857_v18, %v8855_v42  ;;  %v17459_v17 = vld [vmem:[%s23242_s5 + $0x308] ss:$16 sps:$4 sm:$0xff]  }
 0x73c   :  { %v22091_v48 = vpack.c.b16 %v8858_v13, %v8858_v13  ;;  %v17498_v13 = vld [vmem:[%s23242_s5 + $0xee0] ss:$16 sps:$4 sm:$0xff]  }
 0x73d   :  { %12064 = vmatpush1.bf16.msra.mxu1 %v17426_v36  ;;  %v17465_v36 = vld [vmem:[%s23242_s5 + $0x328] ss:$16 sps:$4 sm:$0xff]  }
 0x73e   :  { %9028 = vmatpush1.bf16.msra.mxu0 %v17429_v41  ;;  %12065 = vmatprep.subr.bf16.mxu1 %v17434_v19  ;;  %v12150_v41 = vld [vmem:[#allocation3 + $0x7c] sm:$0x1]  ;;  %v12152_v19 = vld [vmem:[#allocation3 + $0x7d] sm:$0x1] }
 0x73f   :  { %9029 = vmatprep.subr.bf16.mxu0 %v17437_v35  ;;  %v17471_v35 = vld [vmem:[%s23242_s5 + $0x348] ss:$16 sps:$4 sm:$0xff]   ;;  %v12154_v61 = vmax.f32 %v12150_v41, %v12152_v19  ;;  %v17512_v41 = vld [vmem:[%s23242_s5 + $0xf24] ss:$16 sps:$4 sm:$0xff]  }
 0x740   :  { %v17515_v19 = vld [vmem:[%s23242_s5 + $0x424] ss:$16 sps:$4 sm:$0xff]  }
 0x741   :  { %12066 = vmatpush1.bf16.msra.mxu1 %v17432_v0  ;;  %v12149_v0 = vld [vmem:[#allocation3 + $0x3c] sm:$0x1] }
 0x742   :  { %9030 = vmatpush1.bf16.msra.mxu0 %v17435_v45  ;;  %12067 = vmatprep.subr.bf16.mxu1 %v17440_v4  ;;  %v17485_v45 = vld [vmem:[%s23242_s5 + $0x38c] ss:$16 sps:$4 sm:$0xff]   ;;  %v12156_v4 = vmax.f32 %v12148_v37, %v12154_v61  ;;  %v12153_v50 = vmax.f32 %v12149_v0, %v12151_v60  ;;  %v17516_v61 = vld [vmem:[%s23242_s5 + $0xf40] ss:$16 sps:$4 sm:$0xff]   ;;  %v9118_v37 = vld [vmem:[#allocation3 + $0x59] sm:$0x1] }
 0x743   :  { %9031 = vmatprep.subr.bf16.mxu0 %v17443_v40  ;;  %v12145_v40 = vld [vmem:[#allocation3 + $0x35] sm:$0x1]  ;;  %v17519_v0 = vld [vmem:[%s23242_s5 + $0x440] ss:$16 sps:$4 sm:$0xff]  }
 0x744   :  { %v12147_v32 = vmax.f32 %v12143_v39, %v12145_v40  ;;  %v17527_v60 = vld [vmem:[%s23242_s5 + $0x464] ss:$16 sps:$4 sm:$0xff]   ;;  %v9111_v39 = vld [vmem:[#allocation3 + $0x51] sm:$0x1] }
 0x745   :  { %12068 = vmatpush1.bf16.msra.mxu1 %v17438_v58  ;;  %v17491_v58 = vld [vmem:[%s23242_s5 + $0x3ac] ss:$16 sps:$4 sm:$0xff]  }
 0x746   :  { %9032 = vmatpush1.bf16.msra.mxu0 %v17441_v57  ;;  %12069 = vmatprep.subr.bf16.mxu1 %v17446_v7  ;;  %v12158_v57 = vpack.c.bf16 %v12156_v4, %v12156_v4  ;;  %v17486_v7 = vld [vmem:[%s23242_s5 + $0xea0] ss:$16 sps:$4 sm:$0xff]   ;;  %v12155_v22 = vmax.f32 %v12147_v32, %v12153_v50  ;;  %v12454_v32 = vld [vmem:[#allocation3 + $0x3f] sm:$0x1] }
 0x747   :  { %9033 = vmatprep.subr.bf16.mxu0 %v17449_v1  ;;  %v17489_v1 = vld [vmem:[%s23242_s5 + $0x3a8] ss:$16 sps:$4 sm:$0xff]   ;;  %v9109_v4 = vld [vmem:[#allocation3 + $0x50] sm:$0x1] }
 0x748   :  { %v12195_v34 = vunpack.c.l.b16 %v12158_v57  ;;  %v12157_v18 = vpack.c.bf16 %v12155_v22, %v12155_v22  ;;  %v9113_v57 = vmax.f32 %v9109_v4, %v9111_v39 }
 0x749   :  { %12070 = vmatpush1.bf16.msra.mxu1 %v17444_v23  ;;  %v17497_v23 = vld [vmem:[%s23242_s5 + $0x3cc] ss:$16 sps:$4 sm:$0xff]  }
 0x74a   :  { %9034 = vmatpush1.bf16.msra.mxu0 %v17447_v29  ;;  %12071 = vmatprep.subr.bf16.mxu1 %v17452_v44 }
 0x74b   :  { %9035 = vmatprep.subr.bf16.mxu0 %v17455_v27 }
 0x74d   :  { %12072 = vmatpush1.bf16.msra.mxu1 %v17450_v25 }
 0x74e   :  { %9036 = vmatpush1.bf16.msra.mxu0 %v17453_v5  ;;  %12360 = vmatprep.subr.bf16.mxu1 %v17458_v8  ;;  %v17495_v5 = vld [vmem:[%s23242_s5 + $0x3c8] ss:$16 sps:$4 sm:$0xff]   ;;  %v17500_v8 = vld [vmem:[%s23242_s5 + $0xee4] ss:$16 sps:$4 sm:$0xff]  }
 0x74f   :  { %9062 = vmatprep.subr.bf16.mxu0 %v17461_v63  ;;  %v12196_v63 = vrot.slane %v12195_v34, 7  ;;  %v12448_v34 = vld [vmem:[#allocation3 + $0x37] sm:$0x1] }
 0x750   :  { %12090 = vmatmul.mubr.bf16.vlgmr.msra.gmra.mrb[40].mxu1 %v22083_v53 }
 0x751   :  { %9054 = vmatmul.mubr.bf16.vlgmr.msra.gmra.mrb[216].mxu0 %v22091_v48  ;;  %12361 = vmatpush1.bf16.msra.mxu1 %v17456_v31  ;;  %v12194_v31 = vunpack.c.l.b16 %v12157_v18 }
 0x752   :  { %9063 = vmatpush1.bf16.msra.mxu0 %v17459_v17  ;;  %12362 = vmatprep.subr.bf16.mxu1 %v17464_v38  ;;  %v17501_v17 = vld [vmem:[%s23242_s5 + $0x3e8] ss:$16 sps:$4 sm:$0xff]   ;;  %v17506_v38 = vld [vmem:[%s23242_s5 + $0xf04] ss:$16 sps:$4 sm:$0xff]  }
 0x753   :  { %9064 = vmatprep.subr.bf16.mxu0 %v17467_v2  ;;  %12392 = vmatprep.mubr.bf16.mxu1 %v18774_v20  ;;  %v12197_v2 = vsel %vm8005_vm0, %v12196_v63, %v12194_v31 }
 0x754   :  { %9094 = vmatprep.mubr.bf16.mxu0 %v18774_v20 }
 0x755   :  { %12363 = vmatpush1.bf16.msra.mxu1 %v17462_v46  ;;  %v17509_v46 = vld [vmem:[%s23242_s5 + $0x404] ss:$16 sps:$4 sm:$0xff]  }
 0x756   :  { %9065 = vmatpush1.bf16.msra.mxu0 %v17465_v36  ;;  %12364 = vmatprep.subr.bf16.mxu1 %v17470_v24  ;;  %v17504_v36 = vld [vmem:[%s23242_s5 + $0xf00] ss:$16 sps:$4 sm:$0xff]   ;;  %v22196_v24 = vpack.c.b16 %v12197_v2, %v12197_v2 }
 0x757   :  { %9066 = vmatprep.subr.bf16.mxu0 %v17473_v62  ;;  %v17507_v62 = vld [vmem:[%s23242_s5 + $0x400] ss:$16 sps:$4 sm:$0xff]  }
 0x759   :  { %12365 = vmatpush1.bf16.msra.mxu1 %v17468_v30  ;;  %v17510_v30 = vld [vmem:[%s23242_s5 + $0xf20] ss:$16 sps:$4 sm:$0xff]  }
 0x75a   :  { %9067 = vmatpush1.bf16.msra.mxu0 %v17471_v35  ;;  %12366 = vmatprep.subr.bf16.mxu1 %v17476_v11  ;;  %v17518_v35 = vld [vmem:[%s23242_s5 + $0xf44] ss:$16 sps:$4 sm:$0xff]  }
 0x75b   :  { %9068 = vmatprep.subr.bf16.mxu0 %v17479_v21  ;;  %v12447_v11 = vld [vmem:[#allocation3 + $0x76] sm:$0x1]  ;;  %v12455_v21 = vld [vmem:[#allocation3 + $0x7f] sm:$0x1] }
 0x75d   :  { %12367 = vmatpush1.bf16.msra.mxu1 %v17474_v43  ;;  %v9116_v43 = vld [vmem:[#allocation3 + $0x58] sm:$0x1] }
 0x75e   :  { %9069 = vmatpush1.bf16.msra.mxu0 %v17477_v12  ;;  %12368 = vmatprep.subr.bf16.mxu1 %v17482_v16  ;;  %v17524_v12 = vld [vmem:[%s23242_s5 + $0xf64] ss:$16 sps:$4 sm:$0xff]   ;;  %v9120_v40 = vmax.f32 %v9116_v43, %v9118_v37 }
 0x75f   :  { %9070 = vmatprep.subr.bf16.mxu0 %v17485_v45  ;;  %v12449_v16 = vld [vmem:[#allocation3 + $0x77] sm:$0x1]  ;;  %v12457_v45 = vmax.f32 %v12453_v51, %v12455_v21  ;;  %v17540_v21 = vld [vmem:[%s23242_s5 + $0xfc0] ss:$16 sps:$4 sm:$0xff]  }
 0x760   :  { %v12451_v50 = vmax.f32 %v12447_v11, %v12449_v16 }
 0x761   :  { %12369 = vmatpush1.bf16.msra.mxu1 %v17480_v6  ;;  %v17522_v6 = vld [vmem:[%s23242_s5 + $0xf60] ss:$16 sps:$4 sm:$0xff]  }
 0x762   :  { %9071 = vmatpush1.bf16.msra.mxu0 %v17483_v52  ;;  %12370 = vmatprep.subr.bf16.mxu1 %v17488_v49  ;;  %v12452_v52 = vld [vmem:[#allocation3 + $0x3e] sm:$0x1]  ;;  %v17525_v49 = vld [vmem:[%s23242_s5 + $0x460] ss:$16 sps:$4 sm:$0xff]   ;;  %v12459_v22 = vmax.f32 %v12451_v50, %v12457_v45  ;;  %v17551_v45 = vld [vmem:[%s23242_s5 + $0x4e4] ss:$16 sps:$4 sm:$0xff]  }
 0x763   :  { %v22157_v26 = vpop.f32.mrb[16].mxu1  ;;  %9072 = vmatprep.subr.bf16.mxu0 %v17491_v58  ;;  %v17530_v58 = vld [vmem:[%s23242_s5 + $0xf84] ss:$16 sps:$4 sm:$0xff]   ;;  %v12456_v18 = vmax.f32 %v12452_v52, %v12454_v32  ;;  %v17549_v50 = vld [vmem:[%s23242_s5 + $0x4e0] ss:$16 sps:$4 sm:$0xff]  }
 0x764   :  { %v22162_v29 = vpop.f32.mrb[192].mxu0  ;;  %v22164_v44 = vpop.f32.mrb[17].mxu1 }
 0x765   :  { %12371 = vmatpush1.bf16.msra.mxu1 %v17486_v7  ;;  %v22166_v56 = vpop.f32.mrb[193].mxu0  ;;  %v10273_v27 = vpop.f32.mrb[18].mxu1  ;;  %v17533_v7 = vld [vmem:[%s23242_s5 + $0x484] ss:$16 sps:$4 sm:$0xff]  }
 0x766   :  { %9073 = vmatpush1.bf16.msra.mxu0 %v17489_v1  ;;  %v8207_v25 = vpop.f32.mrb[194].mxu0  ;;  %v10274_v59 = vpop.f32.mrb[19].mxu1  ;;  %12372 = vmatprep.subr.bf16.mxu1 %v17494_v55  ;;  %v9115_v1 = vld [vmem:[#allocation3 + $0x18] sm:$0x1]  ;;  %v9117_v55 = vld [vmem:[#allocation3 + $0x19] sm:$0x1]  ;;  %v9122_v27 = vmax.f32 %v9113_v57, %v9120_v40 }
 0x767   :  { %v8208_v42 = vpop.f32.mrb[195].mxu0  ;;  %9074 = vmatprep.subr.bf16.mxu0 %v17497_v23  ;;  %v12446_v23 = vld [vmem:[#allocation3 + $0x36] sm:$0x1]  ;;  %v9108_v25 = vld [vmem:[#allocation3 + $0x10] sm:$0x1] }
 0x768   :  { %v9110_v59 = vld [vmem:[#allocation3 + $0x11] sm:$0x1]  ;;  %v9119_v42 = vmax.f32 %v9115_v1, %v9117_v55  ;;  %v12450_v63 = vmax.f32 %v12446_v23, %v12448_v34  ;;  %v17557_v1 = vld [vmem:[%s23242_s5 + $0x42c] ss:$16 sps:$4 sm:$0xff]   ;;  %v17555_v55 = vld [vmem:[%s23242_s5 + $0x428] ss:$16 sps:$4 sm:$0xff]  }
 0x769   :  { %12373 = vmatpush1.bf16.msra.mxu1 %v17492_v14  ;;  %v17528_v14 = vld [vmem:[%s23242_s5 + $0xf80] ss:$16 sps:$4 sm:$0xff]   ;;  %v9112_v31 = vmax.f32 %v9108_v25, %v9110_v59  ;;  %v17560_v23 = vld [vmem:[%s23242_s5 + $0x44c] ss:$16 sps:$4 sm:$0xff]   ;;  %v17558_v34 = vld [vmem:[%s23242_s5 + $0x448] ss:$16 sps:$4 sm:$0xff]  }
 0x76a   :  { %9075 = vmatpush1.bf16.msra.mxu0 %v17495_v5  ;;  %12374 = vmatprep.subr.bf16.mxu1 %v17500_v8  ;;  %v17531_v5 = vld [vmem:[%s23242_s5 + $0x480] ss:$16 sps:$4 sm:$0xff]   ;;  %v17536_v8 = vld [vmem:[%s23242_s5 + $0xfa4] ss:$16 sps:$4 sm:$0xff]   ;;  %v12458_v2 = vmax.f32 %v12450_v63, %v12456_v18  ;;  %v17566_v18 = vld [vmem:[%s23242_s5 + $0x48c] ss:$16 sps:$4 sm:$0xff]  }
 0x76b   :  { %9076 = vmatprep.subr.bf16.mxu0 %v17503_v15  ;;  %v17539_v15 = vld [vmem:[%s23242_s5 + $0x4a4] ss:$16 sps:$4 sm:$0xff]   ;;  %v17546_v40 = vld [vmem:[%s23242_s5 + $0xfe0] ss:$16 sps:$4 sm:$0xff]   ;;  %v17564_v25 = vld [vmem:[%s23242_s5 + $0x488] ss:$16 sps:$4 sm:$0xff]  }
 0x76c   :  { %v17569_v59 = vld [vmem:[%s23242_s5 + $0x4ac] ss:$16 sps:$4 sm:$0xff]  }
 0x76d   :  { %12375 = vmatpush1.bf16.msra.mxu1 %v17498_v13  ;;  %v12461_v13 = vpack.c.bf16 %v12459_v22, %v12459_v22 }
 0x76e   :  { %9077 = vmatpush1.bf16.msra.mxu0 %v17501_v17  ;;  %12663 = vmatprep.subr.bf16.mxu1 %v17506_v38  ;;  %v9124_v17 = vpack.c.bf16 %v9122_v27, %v9122_v27  ;;  %v17534_v38 = vld [vmem:[%s23242_s5 + $0xfa0] ss:$16 sps:$4 sm:$0xff]   ;;  %v17563_v27 = vld [vmem:[%s23242_s5 + $0x46c] ss:$16 sps:$4 sm:$0xff]  }
 0x76f   :  { %9326 = vmatprep.subr.bf16.mxu0 %v17509_v46  ;;  %v17537_v46 = vld [vmem:[%s23242_s5 + $0x4a0] ss:$16 sps:$4 sm:$0xff]  }
 0x770   :  { %12393 = vmatmul.mubr.bf16.vlgmr.msra.gmra.mrb[44].mxu1 %v22196_v24 }
 0x771   :  { %9095 = vmatmul.mubr.bf16.vlgmr.msra.gmra.mrb[220].mxu0 %v22091_v48  ;;  %12664 = vmatpush1.bf16.msra.mxu1 %v17504_v36  ;;  %v17521_v48 = vld [vmem:[%s23242_s5 + $0x444] ss:$16 sps:$4 sm:$0xff]  }
 0x772   :  { %9327 = vmatpush1.bf16.msra.mxu0 %v17507_v62  ;;  %12665 = vmatprep.subr.bf16.mxu1 %v17512_v41  ;;  %v17542_v36 = vld [vmem:[%s23242_s5 + $0xfc4] ss:$16 sps:$4 sm:$0xff]   ;;  %v9121_v62 = vmax.f32 %v9112_v31, %v9119_v42  ;;  %v17572_v42 = vld [vmem:[%s23242_s5 + $0x4cc] ss:$16 sps:$4 sm:$0xff]  }
 0x773   :  { %9328 = vmatprep.subr.bf16.mxu0 %v17515_v19  ;;  %12695 = vmatprep.mubr.bf16.mxu1 %v18774_v20  ;;  %v17545_v19 = vld [vmem:[%s23242_s5 + $0x4c4] ss:$16 sps:$4 sm:$0xff]  }
 0x774   :  { %9358 = vmatprep.mubr.bf16.mxu0 %v18774_v20  ;;  %v9123_v16 = vpack.c.bf16 %v9121_v62, %v9121_v62 }
 0x775   :  { %12666 = vmatpush1.bf16.msra.mxu1 %v17510_v30  ;;  %v12498_v30 = vunpack.c.l.b16 %v12461_v13 }
 0x776   :  { %9329 = vmatpush1.bf16.msra.mxu0 %v17513_v10  ;;  %12667 = vmatprep.subr.bf16.mxu1 %v17518_v35  ;;  %v9160_v52 = vunpack.c.l.b16 %v9123_v16  ;;  %v9415_v16 = vld [vmem:[#allocation3 + $0x53] sm:$0x1] }
 0x777   :  { %9330 = vmatprep.subr.bf16.mxu0 %v17521_v48  ;;  %v9161_v48 = vunpack.c.l.b16 %v9124_v17  ;;  %v12499_v4 = vrot.slane %v12498_v30, 7  ;;  %v17576_v30 = vld [vmem:[%s23242_s5 + $0x500] ss:$16 sps:$4 sm:$0xff]  }
 0x779   :  { %12668 = vmatpush1.bf16.msra.mxu1 %v17516_v61  ;;  %v12460_v61 = vpack.c.bf16 %v12458_v2, %v12458_v2  ;;  %v9162_v39 = vrot.slane %v9161_v48, 7  ;;  %v17581_v48 = vld [vmem:[%s23242_s5 + $0x524] ss:$16 sps:$4 sm:$0xff]  }
 0x77a   :  { %9331 = vmatpush1.bf16.msra.mxu0 %v17519_v0  ;;  %12669 = vmatprep.subr.bf16.mxu1 %v17524_v12  ;;  %v17543_v0 = vld [vmem:[%s23242_s5 + $0x4c0] ss:$16 sps:$4 sm:$0xff]   ;;  %v17548_v12 = vld [vmem:[%s23242_s5 + $0xfe4] ss:$16 sps:$4 sm:$0xff]  }
 0x77b   :  { %9332 = vmatprep.subr.bf16.mxu0 %v17527_v60  ;;  %v9163_v32 = vsel %vm8005_vm0, %v9162_v39, %v9160_v52  ;;  %v17590_v39 = vld [vmem:[%s23242_s5 + $0x584] ss:$16 sps:$4 sm:$0xff]   ;;  %v9412_v52 = vld [vmem:[#allocation3 + $0x12] sm:$0x1] }
 0x77c   :  { %v9164_v22 = vpack.c.b16 %v9163_v32, %v9163_v32 }
 0x77d   :  { %12670 = vmatpush1.bf16.msra.mxu1 %v17522_v6  ;;  %v12497_v6 = vunpack.c.l.b16 %v12460_v61  ;;  %v9419_v61 = vld [vmem:[#allocation3 + $0x5a] sm:$0x1] }
 0x77e   :  { %9333 = vmatpush1.bf16.msra.mxu0 %v17525_v49  ;;  %12671 = vmatprep.subr.bf16.mxu1 %v17530_v58  ;;  %v17554_v58 = vld [vmem:[%s23242_s5 + $0x40c] ss:$16 sps:$4 sm:$0xff]  }
 0x77f   :  { %9334 = vmatprep.subr.bf16.mxu0 %v17533_v7  ;;  %v12500_v49 = vsel %vm8005_vm0, %v12499_v4, %v12497_v6  ;;  %v17552_v7 = vld [vmem:[%s23242_s5 + $0x408] ss:$16 sps:$4 sm:$0xff]  }
 0x780   :  { %v22302_v57 = vpack.c.b16 %v12500_v49, %v12500_v49  ;;  %v9420_v6 = vld [vmem:[#allocation3 + $0x1b] sm:$0x1]  ;;  %v9414_v49 = vld [vmem:[#allocation3 + $0x13] sm:$0x1] }
 0x781   :  { %12672 = vmatpush1.bf16.msra.mxu1 %v17528_v14  ;;  %v17561_v14 = vld [vmem:[%s23242_s5 + $0x468] ss:$16 sps:$4 sm:$0xff]  }
 0x782   :  { %9335 = vmatpush1.bf16.msra.mxu0 %v17531_v5  ;;  %12673 = vmatprep.subr.bf16.mxu1 %v17536_v8  ;;  %v17567_v5 = vld [vmem:[%s23242_s5 + $0x4a8] ss:$16 sps:$4 sm:$0xff]  }
 0x783   :  { %v22268_v41 = vpop.f32.mrb[20].mxu1  ;;  %9336 = vmatprep.subr.bf16.mxu0 %v17539_v15 }
 0x784   :  { %v22273_v10 = vpop.f32.mrb[196].mxu0  ;;  %v22275_v35 = vpop.f32.mrb[21].mxu1 }
 0x785   :  { %v22277_v11 = vpop.f32.mrb[197].mxu0  ;;  %v10578_v51 = vpop.f32.mrb[22].mxu1  ;;  %12674 = vmatpush1.bf16.msra.mxu1 %v17534_v38 }
 0x786   :  { %v8248_v43 = vpop.f32.mrb[198].mxu0  ;;  %9337 = vmatpush1.bf16.msra.mxu0 %v17537_v46  ;;  %v10579_v37 = vpop.f32.mrb[23].mxu1  ;;  %12675 = vmatprep.subr.bf16.mxu1 %v17542_v36  ;;  %v17570_v36 = vld [vmem:[%s23242_s5 + $0x4c8] ss:$16 sps:$4 sm:$0xff]   ;;  %v17579_v51 = vld [vmem:[%s23242_s5 + $0x520] ss:$16 sps:$4 sm:$0xff]  }
 0x787   :  { %v8249_v60 = vpop.f32.mrb[199].mxu0  ;;  %9338 = vmatprep.subr.bf16.mxu0 %v17545_v19  ;;  %v17575_v19 = vld [vmem:[%s23242_s5 + $0x4ec] ss:$16 sps:$4 sm:$0xff]   ;;  %v9421_v43 = vld [vmem:[#allocation3 + $0x5b] sm:$0x1] }
 0x788   :  { %v17582_v37 = vld [vmem:[%s23242_s5 + $0x540] ss:$16 sps:$4 sm:$0xff]   ;;  %v9423_v60 = vmax.f32 %v9419_v61, %v9421_v43  ;;  %v17608_v61 = vld [vmem:[%s23242_s5 + $0x54c] ss:$16 sps:$4 sm:$0xff]   ;;  %v17606_v43 = vld [vmem:[%s23242_s5 + $0x548] ss:$16 sps:$4 sm:$0xff]  }
 0x789   :  { %12676 = vmatpush1.bf16.msra.mxu1 %v17540_v21  ;;  %v17584_v21 = vld [vmem:[%s23242_s5 + $0x544] ss:$16 sps:$4 sm:$0xff]  }
 0x78a   :  { %9339 = vmatpush1.bf16.msra.mxu0 %v17543_v0  ;;  %12677 = vmatprep.subr.bf16.mxu1 %v17548_v12  ;;  %v17587_v0 = vld [vmem:[%s23242_s5 + $0x564] ss:$16 sps:$4 sm:$0xff]   ;;  %v9413_v12 = vld [vmem:[#allocation3 + $0x52] sm:$0x1] }
 0x78b   :  { %9340 = vmatprep.subr.bf16.mxu0 %v17551_v45  ;;  %v17585_v45 = vld [vmem:[%s23242_s5 + $0x560] ss:$16 sps:$4 sm:$0xff]   ;;  %v9417_v4 = vmax.f32 %v9413_v12, %v9415_v16  ;;  %v17614_v12 = vld [vmem:[%s23242_s5 + $0x58c] ss:$16 sps:$4 sm:$0xff]   ;;  %v17612_v16 = vld [vmem:[%s23242_s5 + $0x588] ss:$16 sps:$4 sm:$0xff]  }
 0x78d   :  { %12678 = vmatpush1.bf16.msra.mxu1 %v17546_v40  ;;  %v9418_v40 = vld [vmem:[#allocation3 + $0x1a] sm:$0x1] }
 0x78e   :  { %9341 = vmatpush1.bf16.msra.mxu0 %v17549_v50  ;;  %v9425_v50 = vmax.f32 %v9417_v4, %v9423_v60  ;;  %v9422_v32 = vmax.f32 %v9418_v40, %v9420_v6  ;;  %v17617_v60 = vld [vmem:[%s23242_s5 + $0x5ac] ss:$16 sps:$4 sm:$0xff]  }
 0x78f   :  { %9367 = vmatprep.subr.bf16.mxu0 %v17554_v58  ;;  %v17588_v58 = vld [vmem:[%s23242_s5 + $0x580] ss:$16 sps:$4 sm:$0xff]  }
 0x790   :  { %12696 = vmatmul.mubr.bf16.vlgmr.msra.gmra.mrb[48].mxu1 %v22302_v57 }
 0x791   :  { %9359 = vmatmul.mubr.bf16.vlgmr.msra.gmra.mrb[224].mxu0 %v9164_v22 }
 0x792   :  { %9368 = vmatpush1.bf16.msra.mxu0 %v17552_v7  ;;  %9399 = vmatprep.mubr.bf16.mxu0 %v18774_v20  ;;  %v17593_v7 = vld [vmem:[%s23242_s5 + $0x5a4] ss:$16 sps:$4 sm:$0xff]  }
 0x793   :  { %9369 = vmatprep.subr.bf16.mxu0 %v17557_v1  ;;  %v9427_v1 = vpack.c.bf16 %v9425_v50, %v9425_v50 }
 0x796   :  { %9370 = vmatpush1.bf16.msra.mxu0 %v17555_v55  ;;  %v17591_v55 = vld [vmem:[%s23242_s5 + $0x5a0] ss:$16 sps:$4 sm:$0xff]  }
 0x797   :  { %9371 = vmatprep.subr.bf16.mxu0 %v17560_v23 }
 0x79a   :  { %9372 = vmatpush1.bf16.msra.mxu0 %v17558_v34 }
 0x79b   :  { %9373 = vmatprep.subr.bf16.mxu0 %v17563_v27  ;;  %v17596_v27 = vld [vmem:[%s23242_s5 + $0x5c4] ss:$16 sps:$4 sm:$0xff]  }
 0x79e   :  { %9374 = vmatpush1.bf16.msra.mxu0 %v17561_v14 }
 0x79f   :  { %9375 = vmatprep.subr.bf16.mxu0 %v17566_v18 }
 0x7a2   :  { %9376 = vmatpush1.bf16.msra.mxu0 %v17564_v25  ;;  %v9464_v25 = vunpack.c.l.b16 %v9427_v1 }
 0x7a3   :  { %v22339_v8 = vpop.f32.mrb[24].mxu1  ;;  %9377 = vmatprep.subr.bf16.mxu0 %v17569_v59 }
 0x7a4   :  { %v8453_v15 = vpop.f32.mrb[200].mxu0  ;;  %v22344_v63 = vpop.f32.mrb[25].mxu1 }
 0x7a5   :  { %v22347_v13 = vadd.f32 %v8453_v15, %v22162_v29  ;;  %v8455_v31 = vpop.f32.mrb[201].mxu0  ;;  %v10881_v17 = vpop.f32.mrb[26].mxu1  ;;  %v17573_v29 = vld [vmem:[%s23242_s5 + $0x4e8] ss:$16 sps:$4 sm:$0xff]  }
 0x7a6   :  { %v22350_v38 = vadd.f32 %v8455_v31, %v22166_v56  ;;  %v8457_v2 = vpop.f32.mrb[202].mxu0  ;;  %9378 = vmatpush1.bf16.msra.mxu0 %v17567_v5  ;;  %v10882_v46 = vpop.f32.mrb[27].mxu1  ;;  %v17578_v56 = vld [vmem:[%s23242_s5 + $0x504] ss:$16 sps:$4 sm:$0xff]  }
 0x7a7   :  { %v8458_v62 = vpop.f32.mrb[203].mxu0  ;;  %9379 = vmatprep.subr.bf16.mxu0 %v17572_v42  ;;  %v17594_v2 = vld [vmem:[%s23242_s5 + $0x5c0] ss:$16 sps:$4 sm:$0xff]  }
 0x7a8   :  { %v9465_v62 = vrot.slane %v9464_v25, 7  ;;  %v17632_v25 = vld [vmem:[%s23242_s5 + $0x644] ss:$16 sps:$4 sm:$0xff]  }
 0x7aa   :  { %9380 = vmatpush1.bf16.msra.mxu0 %v17570_v36 }
 0x7ab   :  { %9381 = vmatprep.subr.bf16.mxu0 %v17575_v19 }
 0x7ae   :  { %9382 = vmatpush1.bf16.msra.mxu0 %v17573_v29  ;;  %v17602_v29 = vld [vmem:[%s23242_s5 + $0x50c] ss:$16 sps:$4 sm:$0xff]  }
 0x7af   :  { %9629 = vmatprep.subr.bf16.mxu0 %v17578_v56 }
 0x7b1   :  { %9400 = vmatmul.mubr.bf16.vlgmr.msra.gmra.mrb[228].mxu0 %v9164_v22  ;;  %v9416_v22 = vmax.f32 %v9412_v52, %v9414_v49 }
 0x7b2   :  { %9630 = vmatpush1.bf16.msra.mxu0 %v17576_v30  ;;  %9661 = vmatprep.mubr.bf16.mxu0 %v18774_v20  ;;  %v17600_v30 = vld [vmem:[%s23242_s5 + $0x508] ss:$16 sps:$4 sm:$0xff]  }
 0x7b3   :  { %9631 = vmatprep.subr.bf16.mxu0 %v17581_v48  ;;  %v9424_v23 = vmax.f32 %v9416_v22, %v9422_v32  ;;  %v17618_v22 = vld [vmem:[%s23242_s5 + $0x5c8] ss:$16 sps:$4 sm:$0xff]  }
 0x7b5   :  { %v9426_v46 = vpack.c.bf16 %v9424_v23, %v9424_v23  ;;  %v17624_v23 = vld [vmem:[%s23242_s5 + $0x600] ss:$16 sps:$4 sm:$0xff]  }
 0x7b6   :  { %9632 = vmatpush1.bf16.msra.mxu0 %v17579_v51  ;;  %v17605_v51 = vld [vmem:[%s23242_s5 + $0x52c] ss:$16 sps:$4 sm:$0xff]  }
 0x7b7   :  { %9633 = vmatprep.subr.bf16.mxu0 %v17584_v21  ;;  %v9463_v19 = vunpack.c.l.b16 %v9426_v46  ;;  %v17603_v21 = vld [vmem:[%s23242_s5 + $0x528] ss:$16 sps:$4 sm:$0xff]   ;;  %v9718_v46 = vld [vmem:[#allocation3 + $0x55] sm:$0x1] }
 0x7b9   :  { %v9466_v56 = vsel %vm8005_vm0, %v9465_v62, %v9463_v19  ;;  %v9721_v19 = vld [vmem:[#allocation3 + $0x1c] sm:$0x1] }
 0x7ba   :  { %9634 = vmatpush1.bf16.msra.mxu0 %v17582_v37  ;;  %v9467_v48 = vpack.c.b16 %v9466_v56, %v9466_v56  ;;  %v17611_v37 = vld [vmem:[%s23242_s5 + $0x56c] ss:$16 sps:$4 sm:$0xff]  }
 0x7bb   :  { %9635 = vmatprep.subr.bf16.mxu0 %v17587_v0  ;;  %v17609_v0 = vld [vmem:[%s23242_s5 + $0x568] ss:$16 sps:$4 sm:$0xff]  }
 0x7be   :  { %9636 = vmatpush1.bf16.msra.mxu0 %v17585_v45  ;;  %v17615_v45 = vld [vmem:[%s23242_s5 + $0x5a8] ss:$16 sps:$4 sm:$0xff]  }
 0x7bf   :  { %9637 = vmatprep.subr.bf16.mxu0 %v17590_v39  ;;  %v17620_v39 = vld [vmem:[%s23242_s5 + $0x5cc] ss:$16 sps:$4 sm:$0xff]  }
 0x7c2   :  { %9638 = vmatpush1.bf16.msra.mxu0 %v17588_v58 }
 0x7c3   :  { %v22398_v34 = vpop.f32.mrb[28].mxu1  ;;  %9639 = vmatprep.subr.bf16.mxu0 %v17593_v7 }
 0x7c4   :  { %v8494_v14 = vpop.f32.mrb[204].mxu0  ;;  %v22403_v18 = vpop.f32.mrb[29].mxu1 }
 0x7c5   :  { %v22406_v59 = vadd.f32 %v8494_v14, %v22273_v10  ;;  %v8496_v5 = vpop.f32.mrb[205].mxu0  ;;  %v11184_v42 = vpop.f32.mrb[30].mxu1  ;;  %v17599_v10 = vld [vmem:[%s23242_s5 + $0x5e4] ss:$16 sps:$4 sm:$0xff]   ;;  %v17627_v14 = vld [vmem:[%s23242_s5 + $0x620] ss:$16 sps:$4 sm:$0xff]  }
 0x7c6   :  { %v22409_v15 = vadd.f32 %v8496_v5, %v22277_v11  ;;  %v8498_v31 = vpop.f32.mrb[206].mxu0  ;;  %9640 = vmatpush1.bf16.msra.mxu0 %v17591_v55  ;;  %v11185_v17 = vpop.f32.mrb[31].mxu1  ;;  %v17597_v11 = vld [vmem:[%s23242_s5 + $0x5e0] ss:$16 sps:$4 sm:$0xff]   ;;  %v17623_v55 = vld [vmem:[%s23242_s5 + $0x5ec] ss:$16 sps:$4 sm:$0xff]  }
 0x7c7   :  { %v8499_v36 = vpop.f32.mrb[207].mxu0  ;;  %9641 = vmatprep.subr.bf16.mxu0 %v17596_v27  ;;  %v17629_v27 = vld [vmem:[%s23242_s5 + $0x624] ss:$16 sps:$4 sm:$0xff]   ;;  %v9722_v5 = vld [vmem:[#allocation3 + $0x5c] sm:$0x1] }
 0x7c8   :  { %v9724_v42 = vld [vmem:[#allocation3 + $0x5d] sm:$0x1]  ;;  %v17630_v31 = vld [vmem:[%s23242_s5 + $0x640] ss:$16 sps:$4 sm:$0xff]   ;;  %v17635_v17 = vld [vmem:[%s23242_s5 + $0x664] ss:$16 sps:$4 sm:$0xff]  }
 0x7c9   :  { %v9726_v36 = vmax.f32 %v9722_v5, %v9724_v42  ;;  %v17648_v5 = vld [vmem:[%s23242_s5 + $0x608] ss:$16 sps:$4 sm:$0xff]  }
 0x7ca   :  { %9642 = vmatpush1.bf16.msra.mxu0 %v17594_v2  ;;  %v9716_v2 = vld [vmem:[#allocation3 + $0x54] sm:$0x1] }
 0x7cb   :  { %9643 = vmatprep.subr.bf16.mxu0 %v17599_v10  ;;  %v17633_v10 = vld [vmem:[%s23242_s5 + $0x660] ss:$16 sps:$4 sm:$0xff]   ;;  %v9720_v62 = vmax.f32 %v9716_v2, %v9718_v46  ;;  %v17656_v2 = vld [vmem:[%s23242_s5 + $0x64c] ss:$16 sps:$4 sm:$0xff]   ;;  %v17654_v46 = vld [vmem:[%s23242_s5 + $0x648] ss:$16 sps:$4 sm:$0xff]  }
 0x7cd   :  { %v9728_v56 = vmax.f32 %v9720_v62, %v9726_v36  ;;  %v17659_v36 = vld [vmem:[%s23242_s5 + $0x66c] ss:$16 sps:$4 sm:$0xff]  }
 0x7ce   :  { %9644 = vmatpush1.bf16.msra.mxu0 %v17597_v11  ;;  %v17638_v11 = vld [vmem:[%s23242_s5 + $0x684] ss:$16 sps:$4 sm:$0xff]   ;;  %v17662_v62 = vld [vmem:[%s23242_s5 + $0x68c] ss:$16 sps:$4 sm:$0xff]  }
 0x7cf   :  { %9670 = vmatprep.subr.bf16.mxu0 %v17602_v29  ;;  %v9723_v29 = vld [vmem:[#allocation3 + $0x1d] sm:$0x1] }
 0x7d1   :  { %9662 = vmatmul.mubr.bf16.vlgmr.msra.gmra.mrb[232].mxu0 %v9467_v48 }
 0x7d2   :  { %9671 = vmatpush1.bf16.msra.mxu0 %v17600_v30  ;;  %9702 = vmatprep.mubr.bf16.mxu0 %v18774_v20  ;;  %v9715_v30 = vld [vmem:[#allocation3 + $0x14] sm:$0x1] }
 0x7d3   :  { %9672 = vmatprep.subr.bf16.mxu0 %v17605_v51  ;;  %v17636_v51 = vld [vmem:[%s23242_s5 + $0x680] ss:$16 sps:$4 sm:$0xff]  }
 0x7d6   :  { %9673 = vmatpush1.bf16.msra.mxu0 %v17603_v21  ;;  %v9725_v21 = vmax.f32 %v9721_v19, %v9723_v29  ;;  %v17665_v19 = vld [vmem:[%s23242_s5 + $0x6ac] ss:$16 sps:$4 sm:$0xff]   ;;  %v17663_v29 = vld [vmem:[%s23242_s5 + $0x6a8] ss:$16 sps:$4 sm:$0xff]  }
 0x7d7   :  { %9674 = vmatprep.subr.bf16.mxu0 %v17608_v61  ;;  %v17641_v61 = vld [vmem:[%s23242_s5 + $0x6a4] ss:$16 sps:$4 sm:$0xff]  }
 0x7da   :  { %9675 = vmatpush1.bf16.msra.mxu0 %v17606_v43 }
 0x7db   :  { %9676 = vmatprep.subr.bf16.mxu0 %v17611_v37  ;;  %v9730_v37 = vpack.c.bf16 %v9728_v56, %v9728_v56 }
 0x7de   :  { %9677 = vmatpush1.bf16.msra.mxu0 %v17609_v0  ;;  %v17639_v0 = vld [vmem:[%s23242_s5 + $0x6a0] ss:$16 sps:$4 sm:$0xff]  }
 0x7df   :  { %9678 = vmatprep.subr.bf16.mxu0 %v17614_v12 }
 0x7e2   :  { %9679 = vmatpush1.bf16.msra.mxu0 %v17612_v16 }
 0x7e3   :  { %v22458_v4 = vpop.f32.mrb[32].mxu1  ;;  %9680 = vmatprep.subr.bf16.mxu0 %v17617_v60  ;;  %v17644_v60 = vld [vmem:[%s23242_s5 + $0x6c4] ss:$16 sps:$4 sm:$0xff]  }
 0x7e4   :  { %v8752_v40 = vpop.f32.mrb[208].mxu0  ;;  %v22463_v6 = vpop.f32.mrb[33].mxu1 }
 0x7e5   :  { %v22466_v50 = vadd.f32 %v8752_v40, %v22347_v13  ;;  %v8754_v52 = vpop.f32.mrb[209].mxu0  ;;  %v11487_v49 = vpop.f32.mrb[34].mxu1  ;;  %v17621_v13 = vld [vmem:[%s23242_s5 + $0x5e8] ss:$16 sps:$4 sm:$0xff]   ;;  %v9767_v40 = vunpack.c.l.b16 %v9730_v37 }
 0x7e6   :  { %v22469_v58 = vadd.f32 %v8754_v52, %v22350_v38  ;;  %v8756_v32 = vpop.f32.mrb[210].mxu0  ;;  %9681 = vmatpush1.bf16.msra.mxu0 %v17615_v45  ;;  %v11488_v7 = vpop.f32.mrb[35].mxu1  ;;  %v17626_v38 = vld [vmem:[%s23242_s5 + $0x604] ss:$16 sps:$4 sm:$0xff]  }
 0x7e7   :  { %v8757_v1 = vpop.f32.mrb[211].mxu0  ;;  %9682 = vmatprep.subr.bf16.mxu0 %v17620_v39 }
 0x7ea   :  { %9683 = vmatpush1.bf16.msra.mxu0 %v17618_v22 }
 0x7eb   :  { %9684 = vmatprep.subr.bf16.mxu0 %v17623_v55  ;;  %v17642_v55 = vld [vmem:[%s23242_s5 + $0x6c0] ss:$16 sps:$4 sm:$0xff]  }
 0x7ee   :  { %9685 = vmatpush1.bf16.msra.mxu0 %v17621_v13 }
 0x7ef   :  { %9932 = vmatprep.subr.bf16.mxu0 %v17626_v38 }
 0x7f1   :  { %9703 = vmatmul.mubr.bf16.vlgmr.msra.gmra.mrb[236].mxu0 %v9467_v48  ;;  %v9717_v48 = vld [vmem:[#allocation3 + $0x15] sm:$0x1] }
 0x7f2   :  { %9933 = vmatpush1.bf16.msra.mxu0 %v17624_v23  ;;  %9964 = vmatprep.mubr.bf16.mxu0 %v18774_v20  ;;  %v9719_v43 = vmax.f32 %v9715_v30, %v9717_v48  ;;  %v9768_v23 = vrot.slane %v9767_v40, 7  ;;  %v17668_v30 = vld [vmem:[%s23242_s5 + $0x6cc] ss:$16 sps:$4 sm:$0xff]  }
 0x7f3   :  { %9934 = vmatprep.subr.bf16.mxu0 %v17629_v27  ;;  %v17671_v40 = vld [vmem:[%s23242_s5 + $0x6ec] ss:$16 sps:$4 sm:$0xff]  }
 0x7f4   :  { %v9727_v12 = vmax.f32 %v9719_v43, %v9725_v21 }
 0x7f6   :  { %9935 = vmatpush1.bf16.msra.mxu0 %v17627_v14  ;;  %v9729_v13 = vpack.c.bf16 %v9727_v12, %v9727_v12  ;;  %v17650_v14 = vld [vmem:[%s23242_s5 + $0x60c] ss:$16 sps:$4 sm:$0xff]  }
 0x7f7   :  { %9936 = vmatprep.subr.bf16.mxu0 %v17632_v25 }
 0x7f8   :  { %v9766_v27 = vunpack.c.l.b16 %v9729_v13  ;;  %v17683_v13 = vld [vmem:[%s23242_s5 + $0x76c] ss:$16 sps:$4 sm:$0xff]  }
 0x7fa   :  { %9937 = vmatpush1.bf16.msra.mxu0 %v17630_v31  ;;  %v9769_v25 = vsel %vm8005_vm0, %v9768_v23, %v9766_v27  ;;  %v17653_v31 = vld [vmem:[%s23242_s5 + $0x62c] ss:$16 sps:$4 sm:$0xff]   ;;  %v17684_v23 = vld [vmem:[%s23242_s5 + $0x788] ss:$16 sps:$4 sm:$0xff]  }
 0x7fb   :  { %9938 = vmatprep.subr.bf16.mxu0 %v17635_v17  ;;  %v9770_v42 = vpack.c.b16 %v9769_v25, %v9769_v25  ;;  %v17651_v17 = vld [vmem:[%s23242_s5 + $0x628] ss:$16 sps:$4 sm:$0xff]   ;;  %v17692_v25 = vld [vmem:[%s23242_s5 + $0x7cc] ss:$16 sps:$4 sm:$0xff]  }
 0x7fc   :  { %v17687_v27 = vld [vmem:[%s23242_s5 + $0x7a8] ss:$16 sps:$4 sm:$0xff]  }
 0x7fe   :  { %9939 = vmatpush1.bf16.msra.mxu0 %v17633_v10  ;;  %v17657_v10 = vld [vmem:[%s23242_s5 + $0x668] ss:$16 sps:$4 sm:$0xff]  }
 0x7ff   :  { %9940 = vmatprep.subr.bf16.mxu0 %v17638_v11  ;;  %v17660_v11 = vld [vmem:[%s23242_s5 + $0x688] ss:$16 sps:$4 sm:$0xff]  }
 0x802   :  { %9941 = vmatpush1.bf16.msra.mxu0 %v17636_v51 }
 0x803   :  { %v22517_v16 = vpop.f32.mrb[36].mxu1  ;;  %9942 = vmatprep.subr.bf16.mxu0 %v17641_v61 }
 0x804   :  { %v8793_v45 = vpop.f32.mrb[212].mxu0  ;;  %v22522_v39 = vpop.f32.mrb[37].mxu1 }
 0x805   :  { %v22525_v52 = vadd.f32 %v8793_v45, %v22406_v59  ;;  %v8795_v49 = vpop.f32.mrb[213].mxu0  ;;  %v11792_v32 = vpop.f32.mrb[38].mxu1  ;;  %v17647_v59 = vld [vmem:[%s23242_s5 + $0x6e4] ss:$16 sps:$4 sm:$0xff]  }
 0x806   :  { %v22528_v7 = vadd.f32 %v8795_v49, %v22409_v15  ;;  %v8797_v22 = vpop.f32.mrb[214].mxu0  ;;  %9943 = vmatpush1.bf16.msra.mxu0 %v17639_v0  ;;  %v11793_v1 = vpop.f32.mrb[39].mxu1  ;;  %v17645_v15 = vld [vmem:[%s23242_s5 + $0x6e0] ss:$16 sps:$4 sm:$0xff]   ;;  %v17672_v49 = vld [vmem:[%s23242_s5 + $0x708] ss:$16 sps:$4 sm:$0xff]  }
 0x807   :  { %v8798_v38 = vpop.f32.mrb[215].mxu0  ;;  %9944 = vmatprep.subr.bf16.mxu0 %v17644_v60  ;;  %v17666_v60 = vld [vmem:[%s23242_s5 + $0x6c8] ss:$16 sps:$4 sm:$0xff]   ;;  %v17677_v32 = vld [vmem:[%s23242_s5 + $0x72c] ss:$16 sps:$4 sm:$0xff]  }
 0x808   :  { %v17675_v22 = vld [vmem:[%s23242_s5 + $0x728] ss:$16 sps:$4 sm:$0xff]   ;;  %v17680_v1 = vld [vmem:[%s23242_s5 + $0x74c] ss:$16 sps:$4 sm:$0xff]  }
 0x809   :  { %v17681_v38 = vld [vmem:[%s23242_s5 + $0x768] ss:$16 sps:$4 sm:$0xff]  }
 0x80a   :  { %9945 = vmatpush1.bf16.msra.mxu0 %v17642_v55  ;;  %v17678_v55 = vld [vmem:[%s23242_s5 + $0x748] ss:$16 sps:$4 sm:$0xff]  }
 0x80b   :  { %9946 = vmatprep.subr.bf16.mxu0 %v17647_v59  ;;  %v17686_v59 = vld [vmem:[%s23242_s5 + $0x78c] ss:$16 sps:$4 sm:$0xff]  }
 0x80e   :  { %9947 = vmatpush1.bf16.msra.mxu0 %v17645_v15  ;;  %v17689_v15 = vld [vmem:[%s23242_s5 + $0x7ac] ss:$16 sps:$4 sm:$0xff]  }
 0x80f   :  { %9973 = vmatprep.subr.bf16.mxu0 %v17650_v14 }
 0x811   :  { %9965 = vmatmul.mubr.bf16.vlgmr.msra.gmra.mrb[240].mxu0 %v9770_v42 }
 0x812   :  { %9974 = vmatpush1.bf16.msra.mxu0 %v17648_v5  ;;  %10005 = vmatprep.mubr.bf16.mxu0 %v18774_v20 }
 0x813   :  { %9975 = vmatprep.subr.bf16.mxu0 %v17653_v31 }
 0x816   :  { %9976 = vmatpush1.bf16.msra.mxu0 %v17651_v17 }
 0x817   :  { %9977 = vmatprep.subr.bf16.mxu0 %v17656_v2 }
 0x81a   :  { %9978 = vmatpush1.bf16.msra.mxu0 %v17654_v46 }
 0x81b   :  { %9979 = vmatprep.subr.bf16.mxu0 %v17659_v36 }
 0x81e   :  { %9980 = vmatpush1.bf16.msra.mxu0 %v17657_v10 }
 0x81f   :  { %9981 = vmatprep.subr.bf16.mxu0 %v17662_v62  ;;  %v17690_v62 = vld [vmem:[%s23242_s5 + $0x7c8] ss:$16 sps:$4 sm:$0xff]  }
 0x822   :  { %9982 = vmatpush1.bf16.msra.mxu0 %v17660_v11 }
 0x823   :  { %v22577_v56 = vpop.f32.mrb[40].mxu1  ;;  %9983 = vmatprep.subr.bf16.mxu0 %v17665_v19  ;;  %v17695_v19 = vld [vmem:[%s23242_s5 + $0x7ec] ss:$16 sps:$4 sm:$0xff]  }
 0x824   :  { %v9055_v48 = vpop.f32.mrb[216].mxu0  ;;  %v22582_v51 = vpop.f32.mrb[41].mxu1 }
 0x825   :  { %v22585_v21 = vadd.f32 %v9055_v48, %v22466_v50  ;;  %v9057_v61 = vpop.f32.mrb[217].mxu0  ;;  %v12095_v43 = vpop.f32.mrb[42].mxu1  ;;  %v17669_v50 = vld [vmem:[%s23242_s5 + $0x6e8] ss:$16 sps:$4 sm:$0xff]  }
 0x826   :  { %v22588_v37 = vadd.f32 %v9057_v61, %v22469_v58  ;;  %v9059_v0 = vpop.f32.mrb[218].mxu0  ;;  %9984 = vmatpush1.bf16.msra.mxu0 %v17663_v29  ;;  %v12096_v12 = vpop.f32.mrb[43].mxu1  ;;  %v17674_v58 = vld [vmem:[%s23242_s5 + $0x70c] ss:$16 sps:$4 sm:$0xff]   ;;  %v17696_v29 = vld [vmem:[%s23242_s5 + $0x808] ss:$16 sps:$4 sm:$0xff]  }
 0x827   :  { %v9060_v45 = vpop.f32.mrb[219].mxu0  ;;  %9985 = vmatprep.subr.bf16.mxu0 %v17668_v30  ;;  %v17701_v30 = vld [vmem:[%s23242_s5 + $0x82c] ss:$16 sps:$4 sm:$0xff]   ;;  %v17699_v48 = vld [vmem:[%s23242_s5 + $0x828] ss:$16 sps:$4 sm:$0xff]  }
 0x828   :  { %v17704_v61 = vld [vmem:[%s23242_s5 + $0x84c] ss:$16 sps:$4 sm:$0xff]   ;;  %v17702_v43 = vld [vmem:[%s23242_s5 + $0x848] ss:$16 sps:$4 sm:$0xff]  }
 0x829   :  { %v17705_v0 = vld [vmem:[%s23242_s5 + $0x868] ss:$16 sps:$4 sm:$0xff]   ;;  %v17710_v12 = vld [vmem:[%s23242_s5 + $0x88c] ss:$16 sps:$4 sm:$0xff]  }
 0x82a   :  { %9986 = vmatpush1.bf16.msra.mxu0 %v17666_v60  ;;  %v17708_v60 = vld [vmem:[%s23242_s5 + $0x888] ss:$16 sps:$4 sm:$0xff]   ;;  %v17713_v45 = vld [vmem:[%s23242_s5 + $0x8ac] ss:$16 sps:$4 sm:$0xff]  }
 0x82b   :  { %9987 = vmatprep.subr.bf16.mxu0 %v17671_v40  ;;  %v17807_v40 = vld [vmem:[%s23244_s7 + $0x40] sm:$0xff]  }
 0x82c   :  { %15378 = vmatprep.subr.bf16.mxu1 %v17807_v40  ;;  %v17735_v40 = vld [vmem:[%s23242_s5 + $0x9a8] ss:$16 sps:$4 sm:$0xff]  }
 0x82e   :  { %9988 = vmatpush1.bf16.msra.mxu0 %v17669_v50  ;;  %v17711_v50 = vld [vmem:[%s23242_s5 + $0x8a8] ss:$16 sps:$4 sm:$0xff]  }
 0x82f   :  { %10276 = vmatprep.subr.bf16.mxu0 %v17674_v58  ;;  %v17808_v58 = vld [vmem:[%s23244_s7] sm:$0xff]  }
 0x830   :  { %15379 = vmatpush3.bf16.msra.mxu1 %v17808_v58  ;;  %v17740_v58 = vld [vmem:[%s23242_s5 + $0x9cc] ss:$16 sps:$4 sm:$0xff]  }
 0x831   :  { %10006 = vmatmul.mubr.bf16.vlgmr.msra.gmra.mrb[244].mxu0 %v9770_v42 }
 0x832   :  { %10277 = vmatpush1.bf16.msra.mxu0 %v17672_v49  ;;  %10308 = vmatprep.mubr.bf16.mxu0 %v18774_v20 }
 0x833   :  { %10278 = vmatprep.subr.bf16.mxu0 %v17677_v32  ;;  %v17716_v32 = vld [vmem:[%s23242_s5 + $0x8cc] ss:$16 sps:$4 sm:$0xff]  }
 0x836   :  { %10279 = vmatpush1.bf16.msra.mxu0 %v17675_v22 }
 0x837   :  { %10280 = vmatprep.subr.bf16.mxu0 %v17680_v1 }
 0x83a   :  { %10281 = vmatpush1.bf16.msra.mxu0 %v17678_v55 }
 0x83b   :  { %10282 = vmatprep.subr.bf16.mxu0 %v17683_v13 }
 0x83e   :  { %10283 = vmatpush1.bf16.msra.mxu0 %v17681_v38 }
 0x83f   :  { %10284 = vmatprep.subr.bf16.mxu0 %v17686_v59 }
 0x842   :  { %10285 = vmatpush1.bf16.msra.mxu0 %v17684_v23 }
 0x843   :  { %v22636_v14 = vpop.f32.mrb[44].mxu1  ;;  %10286 = vmatprep.subr.bf16.mxu0 %v17689_v15 }
 0x844   :  { %v9096_v5 = vpop.f32.mrb[220].mxu0  ;;  %v22641_v42 = vpop.f32.mrb[45].mxu1 }
 0x845   :  { %v22644_v31 = vadd.f32 %v9096_v5, %v22525_v52  ;;  %v9098_v17 = vpop.f32.mrb[221].mxu0  ;;  %v12398_v2 = vpop.f32.mrb[46].mxu1  ;;  %v17693_v52 = vld [vmem:[%s23242_s5 + $0x7e8] ss:$16 sps:$4 sm:$0xff]   ;;  %v17719_v5 = vld [vmem:[%s23242_s5 + $0x8ec] ss:$16 sps:$4 sm:$0xff]  }
 0x846   :  { %v22647_v46 = vadd.f32 %v9098_v17, %v22528_v7  ;;  %v9100_v36 = vpop.f32.mrb[222].mxu0  ;;  %10287 = vmatpush1.bf16.msra.mxu0 %v17687_v27  ;;  %v12399_v10 = vpop.f32.mrb[47].mxu1  ;;  %v17698_v7 = vld [vmem:[%s23242_s5 + $0x80c] ss:$16 sps:$4 sm:$0xff]   ;;  %v17714_v27 = vld [vmem:[%s23242_s5 + $0x8c8] ss:$16 sps:$4 sm:$0xff]  }
 0x847   :  { %v9101_v11 = vpop.f32.mrb[223].mxu0  ;;  %10288 = vmatprep.subr.bf16.mxu0 %v17692_v25  ;;  %v17720_v17 = vld [vmem:[%s23242_s5 + $0x908] ss:$16 sps:$4 sm:$0xff]   ;;  %v17725_v2 = vld [vmem:[%s23242_s5 + $0x92c] ss:$16 sps:$4 sm:$0xff]  }
 0x848   :  { %v17723_v36 = vld [vmem:[%s23242_s5 + $0x928] ss:$16 sps:$4 sm:$0xff]   ;;  %v17817_v11 = vld [vmem:[%s23244_s7 + $0x50] sm:$0xff]  }
 0x849   :  { %v17812_v10 = vld [vmem:[%s23244_s7 + $0x48] sm:$0xff]  }
 0x84a   :  { %10289 = vmatpush1.bf16.msra.mxu0 %v17690_v62  ;;  %v17728_v62 = vld [vmem:[%s23242_s5 + $0x94c] ss:$16 sps:$4 sm:$0xff]   ;;  %15380 = vmatprep.subr.bf16.mxu1 %v17812_v10 }
 0x84b   :  { %10290 = vmatprep.subr.bf16.mxu0 %v17695_v19  ;;  %v17818_v19 = vld [vmem:[%s23244_s7 + $0x10] sm:$0xff]   ;;  %v17752_v10 = vld [vmem:[%s23242_s5 + $0xa4c] ss:$16 sps:$4 sm:$0xff]  }
 0x84e   :  { %10291 = vmatpush1.bf16.msra.mxu0 %v17693_v52  ;;  %v17726_v52 = vld [vmem:[%s23242_s5 + $0x948] ss:$16 sps:$4 sm:$0xff]  }
 0x84f   :  { %10581 = vmatprep.subr.bf16.mxu0 %v17698_v7  ;;  %v17822_v7 = vld [vmem:[%s23244_s7 + $0x58] sm:$0xff]  }
 0x851   :  { %10309 = vmatmul.mubr.bf16.vlgmr.msra.gmra.mrb[248].mxu0 %v21458_v33  ;;  %v17707_v33 = vld [vmem:[%s23242_s5 + $0x86c] ss:$16 sps:$4 sm:$0xff]  }
 0x852   :  { %10582 = vmatpush1.bf16.msra.mxu0 %v17696_v29  ;;  %10613 = vmatprep.mubr.bf16.mxu0 %v18774_v20  ;;  %v17731_v29 = vld [vmem:[%s23242_s5 + $0x96c] ss:$16 sps:$4 sm:$0xff]  }
 0x853   :  { %10583 = vmatprep.subr.bf16.mxu0 %v17701_v30  ;;  %v17823_v30 = vld [vmem:[%s23244_s7 + $0x18] sm:$0xff]  }
 0x856   :  { %10584 = vmatpush1.bf16.msra.mxu0 %v17699_v48  ;;  %v17729_v48 = vld [vmem:[%s23242_s5 + $0x968] ss:$16 sps:$4 sm:$0xff]  }
 0x857   :  { %10585 = vmatprep.subr.bf16.mxu0 %v17704_v61  ;;  %v17827_v61 = vld [vmem:[%s23244_s7 + $0x60] sm:$0xff]  }
 0x85a   :  { %10586 = vmatpush1.bf16.msra.mxu0 %v17702_v43  ;;  %v17734_v43 = vld [vmem:[%s23242_s5 + $0x98c] ss:$16 sps:$4 sm:$0xff]  }
 0x85b   :  { %10587 = vmatprep.subr.bf16.mxu0 %v17707_v33  ;;  %v17828_v33 = vld [vmem:[%s23244_s7 + $0x20] sm:$0xff]  }
 0x85e   :  { %10588 = vmatpush1.bf16.msra.mxu0 %v17705_v0  ;;  %v17732_v0 = vld [vmem:[%s23242_s5 + $0x988] ss:$16 sps:$4 sm:$0xff]  }
 0x85f   :  { %10589 = vmatprep.subr.bf16.mxu0 %v17710_v12  ;;  %v17832_v12 = vld [vmem:[%s23244_s7 + $0x68] sm:$0xff]  }
 0x862   :  { %10590 = vmatpush1.bf16.msra.mxu0 %v17708_v60  ;;  %v17737_v60 = vld [vmem:[%s23242_s5 + $0x9ac] ss:$16 sps:$4 sm:$0xff]  }
 0x863   :  { %v22702_v49 = vpop.f32.mrb[48].mxu1  ;;  %10591 = vmatprep.subr.bf16.mxu0 %v17713_v45  ;;  %v17833_v45 = vld [vmem:[%s23244_s7 + $0x28] sm:$0xff]  }
 0x864   :  { %v9360_v22 = vpop.f32.mrb[224].mxu0  ;;  %v22707_v1 = vpop.f32.mrb[49].mxu1 }
 0x865   :  { %v22710_v55 = vadd.f32 %v9360_v22, %v22585_v21  ;;  %v9362_v13 = vpop.f32.mrb[225].mxu0  ;;  %v12701_v38 = vpop.f32.mrb[50].mxu1  ;;  %v17717_v21 = vld [vmem:[%s23242_s5 + $0x8e8] ss:$16 sps:$4 sm:$0xff]  }
 0x866   :  { %v22713_v59 = vadd.f32 %v9362_v13, %v22588_v37  ;;  %v9364_v23 = vpop.f32.mrb[226].mxu0  ;;  %10592 = vmatpush1.bf16.msra.mxu0 %v17711_v50  ;;  %v12702_v15 = vpop.f32.mrb[51].mxu1  ;;  %v17722_v37 = vld [vmem:[%s23242_s5 + $0x90c] ss:$16 sps:$4 sm:$0xff]   ;;  %v17837_v50 = vld [vmem:[%s23244_s7 + $0x70] sm:$0xff]  }
 0x867   :  { %v9365_v25 = vpop.f32.mrb[227].mxu0  ;;  %10593 = vmatprep.subr.bf16.mxu0 %v17716_v32  ;;  %v17838_v38 = vld [vmem:[%s23244_s7 + $0x30] sm:$0xff]  }
 0x86a   :  { %10594 = vmatpush1.bf16.msra.mxu0 %v17714_v27  ;;  %v17738_v27 = vld [vmem:[%s23242_s5 + $0x9c8] ss:$16 sps:$4 sm:$0xff]  }
 0x86b   :  { %10595 = vmatprep.subr.bf16.mxu0 %v17719_v5  ;;  %v17743_v5 = vld [vmem:[%s23242_s5 + $0x9ec] ss:$16 sps:$4 sm:$0xff]  }
 0x86e   :  { %10596 = vmatpush1.bf16.msra.mxu0 %v17717_v21  ;;  %v17741_v21 = vld [vmem:[%s23242_s5 + $0x9e8] ss:$16 sps:$4 sm:$0xff]  }
 0x86f   :  { %10884 = vmatprep.subr.bf16.mxu0 %v17722_v37  ;;  %v17746_v37 = vld [vmem:[%s23242_s5 + $0xa0c] ss:$16 sps:$4 sm:$0xff]  }
 0x871   :  { %10614 = vmatmul.mubr.bf16.vlgmr.msra.gmra.mrb[252].mxu0 %v21561_v54  ;;  %v17813_v54 = vld [vmem:[%s23244_s7 + $0x8] sm:$0xff]  }
 0x872   :  { %10885 = vmatpush1.bf16.msra.mxu0 %v17720_v17  ;;  %10916 = vmatprep.mubr.bf16.mxu0 %v18774_v20  ;;  %v17744_v17 = vld [vmem:[%s23242_s5 + $0xa08] ss:$16 sps:$4 sm:$0xff]  }
 0x873   :  { %10886 = vmatprep.subr.bf16.mxu0 %v17725_v2  ;;  %15381 = vmatpush3.bf16.msra.mxu1 %v17813_v54  ;;  %v17749_v2 = vld [vmem:[%s23242_s5 + $0xa2c] ss:$16 sps:$4 sm:$0xff]   ;;  %v17753_v54 = vld [vmem:[%s23242_s5 + $0xa68] ss:$16 sps:$4 sm:$0xff]  }
 0x874   :  { %15382 = vmatprep.subr.bf16.mxu1 %v17817_v11  ;;  %v17758_v11 = vld [vmem:[%s23242_s5 + $0xa8c] ss:$16 sps:$4 sm:$0xff]  }
 0x876   :  { %10887 = vmatpush1.bf16.msra.mxu0 %v17723_v36  ;;  %v17747_v36 = vld [vmem:[%s23242_s5 + $0xa28] ss:$16 sps:$4 sm:$0xff]  }
 0x877   :  { %10888 = vmatprep.subr.bf16.mxu0 %v17728_v62  ;;  %15383 = vmatpush3.bf16.msra.mxu1 %v17818_v19  ;;  %v17750_v62 = vld [vmem:[%s23242_s5 + $0xa48] ss:$16 sps:$4 sm:$0xff]  }
 0x878   :  { %15384 = vmatprep.subr.bf16.mxu1 %v17822_v7  ;;  %v17756_v19 = vld [vmem:[%s23242_s5 + $0xa88] ss:$16 sps:$4 sm:$0xff]  }
 0x879   :  { %v17759_v7 = vld [vmem:[%s23242_s5 + $0xaa8] ss:$16 sps:$4 sm:$0xff]  }
 0x87a   :  { %10889 = vmatpush1.bf16.msra.mxu0 %v17726_v52  ;;  %v17761_v52 = vld [vmem:[%s23242_s5 + $0xaac] ss:$16 sps:$4 sm:$0xff]  }
 0x87b   :  { %10890 = vmatprep.subr.bf16.mxu0 %v17731_v29  ;;  %15385 = vmatpush3.bf16.msra.mxu1 %v17823_v30  ;;  %v17764_v29 = vld [vmem:[%s23242_s5 + $0xacc] ss:$16 sps:$4 sm:$0xff]  }
 0x87c   :  { %15386 = vmatprep.subr.bf16.mxu1 %v17827_v61 }
 0x87e   :  { %10891 = vmatpush1.bf16.msra.mxu0 %v17729_v48 }
 0x87f   :  { %10892 = vmatprep.subr.bf16.mxu0 %v17734_v43  ;;  %15387 = vmatpush3.bf16.msra.mxu1 %v17828_v33 }
 0x880   :  { %15388 = vmatprep.subr.bf16.mxu1 %v17832_v12 }
 0x882   :  { %10893 = vmatpush1.bf16.msra.mxu0 %v17732_v0  ;;  %v17762_v0 = vld [vmem:[%s23242_s5 + $0xac8] ss:$16 sps:$4 sm:$0xff]  }
 0x883   :  { %10894 = vmatprep.subr.bf16.mxu0 %v17737_v60  ;;  %15389 = vmatpush3.bf16.msra.mxu1 %v17833_v45  ;;  %v17767_v60 = vld [vmem:[%s23242_s5 + $0xaec] ss:$16 sps:$4 sm:$0xff]   ;;  %v17768_v45 = vld [vmem:[%s23242_s5 + $0xb08] ss:$16 sps:$4 sm:$0xff]  }
 0x884   :  { %v9401_v32 = vpop.f32.mrb[228].mxu0  ;;  %15390 = vmatprep.subr.bf16.mxu1 %v17837_v50  ;;  %v17771_v50 = vld [vmem:[%s23242_s5 + $0xb28] ss:$16 sps:$4 sm:$0xff]  }
 0x885   :  { %v22799_v22 = vadd.f32 %v9401_v32, %v22644_v31  ;;  %v9403_v13 = vpop.f32.mrb[229].mxu0  ;;  %v17842_v31 = vld [vmem:[%s23244_s7 + $0x78] sm:$0xff]  }
 0x886   :  { %v22805_v23 = vadd.f32 %v9403_v13, %v22647_v46  ;;  %v9405_v15 = vpop.f32.mrb[230].mxu0  ;;  %10895 = vmatpush1.bf16.msra.mxu0 %v17735_v40  ;;  %v17843_v46 = vld [vmem:[%s23244_s7 + $0x38] sm:$0xff]  }
 0x887   :  { %v9406_v25 = vpop.f32.mrb[231].mxu0  ;;  %10896 = vmatprep.subr.bf16.mxu0 %v17740_v58  ;;  %15391 = vmatpush3.bf16.msra.mxu1 %v17838_v38  ;;  %v17773_v40 = vld [vmem:[%s23242_s5 + $0xb2c] ss:$16 sps:$4 sm:$0xff]   ;;  %v17774_v32 = vld [vmem:[%s23242_s5 + $0xb48] ss:$16 sps:$4 sm:$0xff]  }
 0x888   :  { %15392 = vmatprep.subr.bf16.mxu1 %v17842_v31  ;;  %v17776_v58 = vld [vmem:[%s23242_s5 + $0xb4c] ss:$16 sps:$4 sm:$0xff]   ;;  %v17777_v13 = vld [vmem:[%s23242_s5 + $0xb68] ss:$16 sps:$4 sm:$0xff]  }
 0x889   :  { %v17782_v38 = vld [vmem:[%s23242_s5 + $0xb8c] ss:$16 sps:$4 sm:$0xff]   ;;  %v17780_v15 = vld [vmem:[%s23242_s5 + $0xb88] ss:$16 sps:$4 sm:$0xff]  }
 0x88a   :  { %10897 = vmatpush1.bf16.msra.mxu0 %v17738_v27  ;;  %v17785_v27 = vld [vmem:[%s23242_s5 + $0xbac] ss:$16 sps:$4 sm:$0xff]   ;;  %v17783_v31 = vld [vmem:[%s23242_s5 + $0xba8] ss:$16 sps:$4 sm:$0xff]  }
 0x88b   :  { %10898 = vmatprep.subr.bf16.mxu0 %v17743_v5  ;;  %15393 = vmatpush3.bf16.msra.mxu1 %v17843_v46  ;;  %v17788_v25 = vld [vmem:[%s23242_s5 + $0xbcc] ss:$16 sps:$4 sm:$0xff]  }
 0x88e   :  { %10899 = vmatpush1.bf16.msra.mxu0 %v17741_v21 }
 0x88f   :  { %11187 = vmatprep.subr.bf16.mxu0 %v17746_v37 }
 0x891   :  { %10917 = vmatmul.mubr.bf16.vlgmr.msra.gmra.mrb[0].mxu0 %v21665_v9  ;;  %v17755_v9 = vld [vmem:[%s23242_s5 + $0xa6c] ss:$16 sps:$4 sm:$0xff]  }
 0x892   :  { %11188 = vmatpush1.bf16.msra.mxu0 %v17744_v17  ;;  %11219 = vmatprep.mubr.bf16.mxu0 %v18774_v20 }
 0x893   :  { %11189 = vmatprep.subr.bf16.mxu0 %v17749_v2  ;;  %v17786_v2 = vld [vmem:[%s23242_s5 + $0xbc8] ss:$16 sps:$4 sm:$0xff]  }
 0x896   :  { %11190 = vmatpush1.bf16.msra.mxu0 %v17747_v36 }
 0x897   :  { %11191 = vmatprep.subr.bf16.mxu0 %v17752_v10  ;;  %v17791_v10 = vld [vmem:[%s23242_s5 + $0xbec] ss:$16 sps:$4 sm:$0xff]  }
 0x89a   :  { %11192 = vmatpush1.bf16.msra.mxu0 %v17750_v62  ;;  %v17792_v62 = vld [vmem:[%s23242_s5 + $0xc08] ss:$16 sps:$4 sm:$0xff]  }
 0x89b   :  { %11193 = vmatprep.subr.bf16.mxu0 %v17755_v9  ;;  %v17797_v9 = vld [vmem:[%s23242_s5 + $0xc2c] ss:$16 sps:$4 sm:$0xff]  }
 0x89e   :  { %11194 = vmatpush1.bf16.msra.mxu0 %v17753_v54  ;;  %v17795_v54 = vld [vmem:[%s23242_s5 + $0xc28] ss:$16 sps:$4 sm:$0xff]  }
 0x89f   :  { %11195 = vmatprep.subr.bf16.mxu0 %v17758_v11  ;;  %v17800_v11 = vld [vmem:[%s23242_s5 + $0xc4c] ss:$16 sps:$4 sm:$0xff]  }
 0x8a2   :  { %11196 = vmatpush1.bf16.msra.mxu0 %v17756_v19  ;;  %v17798_v19 = vld [vmem:[%s23242_s5 + $0xc48] ss:$16 sps:$4 sm:$0xff]  }
 0x8a3   :  { %11197 = vmatprep.subr.bf16.mxu0 %v17761_v52  ;;  %v17801_v52 = vld [vmem:[%s23242_s5 + $0xc68] ss:$16 sps:$4 sm:$0xff]  }
 0x8a4   :  { %v9663_v30 = vpop.f32.mrb[232].mxu0 }
 0x8a5   :  { %v22864_v48 = vadd.f32 %v9663_v30, %v22710_v55  ;;  %v9665_v61 = vpop.f32.mrb[233].mxu0  ;;  %v17765_v55 = vld [vmem:[%s23242_s5 + $0xae8] ss:$16 sps:$4 sm:$0xff]   ;;  %v17811_v30 = vld [vmem:[%s23242_s5 + $0xcac] ss:$16 sps:$4 sm:$0xff]  }
 0x8a6   :  { %v22867_v43 = vadd.f32 %v9665_v61, %v22713_v59  ;;  %v9667_v33 = vpop.f32.mrb[234].mxu0  ;;  %11198 = vmatpush1.bf16.msra.mxu0 %v17759_v7  ;;  %v17770_v59 = vld [vmem:[%s23242_s5 + $0xb0c] ss:$16 sps:$4 sm:$0xff]   ;;  %v17809_v61 = vld [vmem:[%s23242_s5 + $0xca8] ss:$16 sps:$4 sm:$0xff]  }
 0x8a7   :  { %v9668_v12 = vpop.f32.mrb[235].mxu0  ;;  %11199 = vmatprep.subr.bf16.mxu0 %v17764_v29  ;;  %v17806_v7 = vld [vmem:[%s23242_s5 + $0xc8c] ss:$16 sps:$4 sm:$0xff]   ;;  %v17804_v29 = vld [vmem:[%s23242_s5 + $0xc88] ss:$16 sps:$4 sm:$0xff]  }
 0x8a8   :  { %v17816_v33 = vld [vmem:[%s23242_s5 + $0xccc] ss:$16 sps:$4 sm:$0xff]  }
 0x8aa   :  { %11200 = vmatpush1.bf16.msra.mxu0 %v17762_v0 }
 0x8ab   :  { %11201 = vmatprep.subr.bf16.mxu0 %v17767_v60 }
 0x8ae   :  { %11202 = vmatpush1.bf16.msra.mxu0 %v17765_v55 }
 0x8af   :  { %11490 = vmatprep.subr.bf16.mxu0 %v17770_v59 }
 0x8b1   :  { %11220 = vmatmul.mubr.bf16.vlgmr.msra.gmra.mrb[4].mxu0 %v21770_v47  ;;  %v17779_v47 = vld [vmem:[%s23242_s5 + $0xb6c] ss:$16 sps:$4 sm:$0xff]  }
 0x8b2   :  { %11491 = vmatpush1.bf16.msra.mxu0 %v17768_v45  ;;  %11522 = vmatprep.mubr.bf16.mxu0 %v18774_v20  ;;  %v17814_v45 = vld [vmem:[%s23242_s5 + $0xcc8] ss:$16 sps:$4 sm:$0xff]  }
 0x8b3   :  { %11492 = vmatprep.subr.bf16.mxu0 %v17773_v40 }
 0x8b6   :  { %11493 = vmatpush1.bf16.msra.mxu0 %v17771_v50 }
 0x8b7   :  { %11494 = vmatprep.subr.bf16.mxu0 %v17776_v58  ;;  %v17821_v58 = vld [vmem:[%s23242_s5 + $0xcec] ss:$16 sps:$4 sm:$0xff]  }
 0x8ba   :  { %11495 = vmatpush1.bf16.msra.mxu0 %v17774_v32 }
 0x8bb   :  { %11496 = vmatprep.subr.bf16.mxu0 %v17779_v47  ;;  %v12751_v47 = vlaneseq }
 0x8be   :  { %11497 = vmatpush1.bf16.msra.mxu0 %v17777_v13  ;;  %v17819_v13 = vld [vmem:[%s23242_s5 + $0xce8] ss:$16 sps:$4 sm:$0xff]  }
 0x8bf   :  { %11498 = vmatprep.subr.bf16.mxu0 %v17782_v38  ;;  %v17826_v38 = vld [vmem:[%s23242_s5 + $0xd0c] ss:$16 sps:$4 sm:$0xff]  }
 0x8c2   :  { %11499 = vmatpush1.bf16.msra.mxu0 %v17780_v15 }
 0x8c3   :  { %11500 = vmatprep.subr.bf16.mxu0 %v17785_v27  ;;  %v17824_v27 = vld [vmem:[%s23242_s5 + $0xd08] ss:$16 sps:$4 sm:$0xff]  }
 0x8c4   :  { %v9704_v5 = vpop.f32.mrb[236].mxu0 }
 0x8c5   :  { %v22920_v46 = vadd.f32 %v9704_v5, %v22799_v22  ;;  %v9706_v21 = vpop.f32.mrb[237].mxu0  ;;  %v17789_v22 = vld [vmem:[%s23242_s5 + $0xbe8] ss:$16 sps:$4 sm:$0xff]   ;;  %v23018_v5 = vld [vmem:[%s23243_s6] sm:$0xf] }
 0x8c6   :  { %v22923_v37 = vadd.f32 %v9706_v21, %v22805_v23  ;;  %v9708_v17 = vpop.f32.mrb[238].mxu0  ;;  %11501 = vmatpush1.bf16.msra.mxu0 %v17783_v31  ;;  %v17794_v23 = vld [vmem:[%s23242_s5 + $0xc0c] ss:$16 sps:$4 sm:$0xff]  }
 0x8c7   :  { %v9709_v36 = vpop.f32.mrb[239].mxu0  ;;  %11502 = vmatprep.subr.bf16.mxu0 %v17788_v25  ;;  %v17831_v31 = vld [vmem:[%s23242_s5 + $0xd2c] ss:$16 sps:$4 sm:$0xff]  }
 0x8ca   :  { %11503 = vmatpush1.bf16.msra.mxu0 %v17786_v2  ;;  %v17834_v2 = vld [vmem:[%s23242_s5 + $0xd48] ss:$16 sps:$4 sm:$0xff]  }
 0x8cb   :  { %11504 = vmatprep.subr.bf16.mxu0 %v17791_v10 }
 0x8ce   :  { %11505 = vmatpush1.bf16.msra.mxu0 %v17789_v22 }
 0x8cf   :  { %11795 = vmatprep.subr.bf16.mxu0 %v17794_v23  ;;  %v17839_v23 = vld [vmem:[%s23242_s5 + $0xd68] ss:$16 sps:$4 sm:$0xff]  }
 0x8d1   :  { %11523 = vmatmul.mubr.bf16.vlgmr.msra.gmra.mrb[8].mxu0 %v21874_v28  ;;  %v17803_v28 = vld [vmem:[%s23242_s5 + $0xc6c] ss:$16 sps:$4 sm:$0xff]  }
 0x8d2   :  { %11796 = vmatpush1.bf16.msra.mxu0 %v17792_v62  ;;  %11827 = vmatprep.mubr.bf16.mxu0 %v18774_v20 }
 0x8d3   :  { %11797 = vmatprep.subr.bf16.mxu0 %v17797_v9 }
 0x8d6   :  { %11798 = vmatpush1.bf16.msra.mxu0 %v17795_v54 }
 0x8d7   :  { %11799 = vmatprep.subr.bf16.mxu0 %v17800_v11 }
 0x8da   :  { %11800 = vmatpush1.bf16.msra.mxu0 %v17798_v19  ;;  %v17849_v19 = vld [vmem:[%s23242_s5 + $0xdac] ss:$16 sps:$4 sm:$0xff]  }
 0x8db   :  { %11801 = vmatprep.subr.bf16.mxu0 %v17803_v28  ;;  %v17847_v28 = vld [vmem:[%s23242_s5 + $0xda8] ss:$16 sps:$4 sm:$0xff]  }
 0x8de   :  { %11802 = vmatpush1.bf16.msra.mxu0 %v17801_v52  ;;  %v17852_v52 = vld [vmem:[%s23242_s5 + $0xdcc] ss:$16 sps:$4 sm:$0xff]  }
 0x8df   :  { %11803 = vmatprep.subr.bf16.mxu0 %v17806_v7 }
 0x8e2   :  { %11804 = vmatpush1.bf16.msra.mxu0 %v17804_v29 }
 0x8e3   :  { %11805 = vmatprep.subr.bf16.mxu0 %v17811_v30 }
 0x8e4   :  { %v9966_v0 = vpop.f32.mrb[240].mxu0 }
 0x8e5   :  { %v10014_v12 = vadd.f32 %v9966_v0, %v22864_v48  ;;  %v9968_v60 = vpop.f32.mrb[241].mxu0  ;;  %v17850_v0 = vld [vmem:[%s23242_s5 + $0xdc8] ss:$16 sps:$4 sm:$0xff]  }
 0x8e6   :  { %v10015_v55 = vadd.f32 %v9968_v60, %v22867_v43  ;;  %v9970_v59 = vpop.f32.mrb[242].mxu0  ;;  %11806 = vmatpush1.bf16.msra.mxu0 %v17809_v61  ;;  %v17855_v60 = vld [vmem:[%s23242_s5 + $0xdec] ss:$16 sps:$4 sm:$0xff]  }
 0x8e7   :  { %v10317_v40 = vadd.f32 %v22157_v26, %v10014_v12  ;;  %v9971_v50 = vpop.f32.mrb[243].mxu0  ;;  %11807 = vmatprep.subr.bf16.mxu0 %v17816_v33  ;;  %v17861_v59 = vld [vmem:[%s23242_s5 + $0xe2c] ss:$16 sps:$4 sm:$0xff]  }
 0x8e8   :  { %v10318_v32 = vadd.f32 %v22164_v44, %v10015_v55  ;;  %v17856_v55 = vld [vmem:[%s23242_s5 + $0xe08] ss:$16 sps:$4 sm:$0xff]  }
 0x8e9   :  { %v10622_v48 = vadd.f32 %v22268_v41, %v10317_v40  ;;  %v22997_v41 = vshrl.u32 %v12751_v47, 7  ;;  %v17864_v40 = vld [vmem:[%s23242_s5 + $0xe4c] ss:$16 sps:$4 sm:$0xff]   ;;  %v17862_v50 = vld [vmem:[%s23242_s5 + $0xe48] ss:$16 sps:$4 sm:$0xff]  }
 0x8ea   :  { %v10623_v43 = vadd.f32 %v22275_v35, %v10318_v32  ;;  %11808 = vmatpush1.bf16.msra.mxu0 %v17814_v45  ;;  %v17859_v45 = vld [vmem:[%s23242_s5 + $0xe28] ss:$16 sps:$4 sm:$0xff]   ;;  %v17870_v32 = vld [vmem:[%s23242_s5 + $0xe8c] ss:$16 sps:$4 sm:$0xff]  }
 0x8eb   :  { %v10925_v26 = vadd.f32 %v22339_v8, %v10622_v48  ;;  %11809 = vmatprep.subr.bf16.mxu0 %v17821_v58  ;;  %v17865_v58 = vld [vmem:[%s23242_s5 + $0xe68] ss:$16 sps:$4 sm:$0xff]  }
 0x8ec   :  { %v10926_v15 = vadd.f32 %v22344_v63, %v10623_v43  ;;  %v17868_v48 = vld [vmem:[%s23242_s5 + $0xe88] ss:$16 sps:$4 sm:$0xff]   ;;  %v17873_v43 = vld [vmem:[%s23242_s5 + $0xeac] ss:$16 sps:$4 sm:$0xff]  }
 0x8ed   :  { %v11228_v44 = vadd.f32 %v22398_v34, %v10925_v26  ;;  %v17876_v26 = vld [vmem:[%s23242_s5 + $0xecc] ss:$16 sps:$4 sm:$0xff]  }
 0x8ee   :  { %v11229_v35 = vadd.f32 %v22403_v18, %v10926_v15  ;;  %11810 = vmatpush1.bf16.msra.mxu0 %v17819_v13  ;;  %v12753_v18 = vsub.s32 0, %v22997_v41  ;;  %v17871_v13 = vld [vmem:[%s23242_s5 + $0xea8] ss:$16 sps:$4 sm:$0xff]  }
 0x8ef   :  { %v11531_v8 = vadd.f32 %v22458_v4, %v11228_v44  ;;  %12098 = vmatprep.subr.bf16.mxu0 %v17826_v38  ;;  %v17829_v4 = vld [vmem:[%s23242_s5 + $0xd28] ss:$16 sps:$4 sm:$0xff]  }
 0x8f0   :  { %v11532_v63 = vadd.f32 %v22463_v6, %v11229_v35  ;;  %v12757_v6 = vsub.s32 1, %v22997_v41  ;;  %v12754_v17 = vrot.slane %v23018_v5, %v12753_v18  ;;  %v17882_v18 = vld [vmem:[%s23242_s5 + $0xf0c] ss:$16 sps:$4 sm:$0xff]  }
 0x8f1   :  { %v11836_v34 = vadd.f32 %v22517_v16, %v11531_v8  ;;  %11828 = vmatmul.mubr.bf16.vlgmr.msra.gmra.mrb[12].mxu0 %v21979_v3  ;;  %v17836_v3 = vld [vmem:[%s23242_s5 + $0xd4c] ss:$16 sps:$4 sm:$0xff]   ;;  %v17874_v8 = vld [vmem:[%s23242_s5 + $0xec8] ss:$16 sps:$4 sm:$0xff]  }
 0x8f2   :  { %v11837_v25 = vadd.f32 %v22522_v39, %v11532_v63  ;;  %12099 = vmatpush1.bf16.msra.mxu0 %v17824_v27  ;;  %12130 = vmatprep.mubr.bf16.mxu0 %v18774_v20  ;;  %v12758_v10 = vrot.slane %v23018_v5, %v12757_v6  ;;  %v17879_v63 = vld [vmem:[%s23242_s5 + $0xeec] ss:$16 sps:$4 sm:$0xff]   ;;  %v17883_v6 = vld [vmem:[%s23242_s5 + $0xf28] ss:$16 sps:$4 sm:$0xff]  }
 0x8f3   :  { %12100 = vmatprep.subr.bf16.mxu0 %v17831_v31  ;;  %v12139_v16 = vadd.f32 %v22577_v56, %v11836_v34  ;;  %v17841_v56 = vld [vmem:[%s23242_s5 + $0xd6c] ss:$16 sps:$4 sm:$0xff]   ;;  %v17877_v34 = vld [vmem:[%s23242_s5 + $0xee8] ss:$16 sps:$4 sm:$0xff]  }
 0x8f4   :  { %v12140_v39 = vadd.f32 %v22582_v51, %v11837_v25  ;;  %v17880_v25 = vld [vmem:[%s23242_s5 + $0xf08] ss:$16 sps:$4 sm:$0xff]  }
 0x8f5   :  { %v12442_v21 = vadd.f32 %v22636_v14, %v12139_v16  ;;  %v17886_v16 = vld [vmem:[%s23242_s5 + $0xf48] ss:$16 sps:$4 sm:$0xff]  }
 0x8f6   :  { %12101 = vmatpush1.bf16.msra.mxu0 %v17829_v4  ;;  %v12443_v36 = vadd.f32 %v22641_v42, %v12140_v39  ;;  %v17846_v42 = vld [vmem:[%s23242_s5 + $0xd8c] ss:$16 sps:$4 sm:$0xff]  }
 0x8f7   :  { %12102 = vmatprep.subr.bf16.mxu0 %v17836_v3  ;;  %v12745_v51 = vadd.f32 %v22702_v49, %v12442_v21  ;;  %v17844_v49 = vld [vmem:[%s23242_s5 + $0xd88] ss:$16 sps:$4 sm:$0xff]   ;;  %v17885_v4 = vld [vmem:[%s23242_s5 + $0xf2c] ss:$16 sps:$4 sm:$0xff]  }
 0x8f8   :  { %v12746_v14 = vadd.f32 %v22707_v1, %v12443_v36  ;;  %v17888_v3 = vld [vmem:[%s23242_s5 + $0xf4c] ss:$16 sps:$4 sm:$0xff]   ;;  %v17892_v21 = vld [vmem:[%s23242_s5 + $0xf88] ss:$16 sps:$4 sm:$0xff]  }
 0x8f9   :  { %v12771_v22 = vadd.f32 %v12754_v17, %v12745_v51  ;;  %v17894_v39 = vld [vmem:[%s23242_s5 + $0xf8c] ss:$16 sps:$4 sm:$0xff]  }
 0x8fa   :  { %12103 = vmatpush1.bf16.msra.mxu0 %v17834_v2  ;;  %v12772_v62 = vadd.f32 %v12758_v10, %v12746_v14  ;;  %v17897_v17 = vld [vmem:[%s23242_s5 + $0xfac] ss:$16 sps:$4 sm:$0xff]   ;;  %v17895_v2 = vld [vmem:[%s23242_s5 + $0xfa8] ss:$16 sps:$4 sm:$0xff]  }
 0x8fb   :  { %12104 = vmatprep.subr.bf16.mxu0 %v17841_v56  ;;  %v12775_v9 = vmax.f32 %v12771_v22, 0.0  ;;  %v17900_v36 = vld [vmem:[%s23242_s5 + $0xfcc] ss:$16 sps:$4 sm:$0xff]  }
 0x8fc   :  { %v12776_v54 = vmax.f32 %v12772_v62, 0.0 }
 0x8fd   :  { %v12779_v1 = vpack.c.bf16 %v12775_v9, %v12775_v9  ;;  %v17901_v9 = vld [vmem:[%s23242_s5 + $0xfe8] ss:$16 sps:$4 sm:$0xff]  }
 0x8fe   :  { %12105 = vmatpush1.bf16.msra.mxu0 %v17839_v23  ;;  %v12780_v11 = vpack.c.bf16 %v12776_v54, %v12776_v54  ;;  %v17898_v23 = vld [vmem:[%s23242_s5 + $0xfc8] ss:$16 sps:$4 sm:$0xff]  }
 0x8ff   :  { %12106 = vmatprep.subr.bf16.mxu0 %v17846_v42  ;;  %v17903_v42 = vld [vmem:[%s23242_s5 + $0xfec] ss:$16 sps:$4 sm:$0xff]  }
 0x900   :  { %13078 = vmatprep.mubr.bf16.mxu1 %v12780_v11 }
 0x901   :  { %13079 = vmatmul.mubr.bf16.vlgmr.msra.gmra.mrb[52].mxu1 %v12779_v1 }
 0x902   :  { %12107 = vmatpush1.bf16.msra.mxu0 %v17844_v49 }
 0x903   :  { %12108 = vmatprep.subr.bf16.mxu0 %v17849_v19 }
 0x904   :  { %v10007_v7 = vpop.f32.mrb[244].mxu0 }
 0x905   :  { %v10016_v29 = vadd.f32 %v10007_v7, %v22920_v46  ;;  %v10009_v30 = vpop.f32.mrb[245].mxu0  ;;  %v17853_v46 = vld [vmem:[%s23242_s5 + $0xde8] ss:$16 sps:$4 sm:$0xff]  }
 0x906   :  { %v10017_v61 = vadd.f32 %v10009_v30, %v22923_v37  ;;  %v10011_v33 = vpop.f32.mrb[246].mxu0  ;;  %12109 = vmatpush1.bf16.msra.mxu0 %v17847_v28  ;;  %v17858_v37 = vld [vmem:[%s23242_s5 + $0xe0c] ss:$16 sps:$4 sm:$0xff]  }
 0x907   :  { %v10012_v12 = vpop.f32.mrb[247].mxu0  ;;  %12110 = vmatprep.subr.bf16.mxu0 %v17852_v52 }
 0x908   :  { %v17906_v12 = vld [vmem:[%s23244_s7 + $0xc8] sm:$0xff]  }
 0x90a   :  { %12111 = vmatpush1.bf16.msra.mxu0 %v17850_v0  ;;  %v17904_v0 = vld [vmem:[%s23244_s7 + $0xc0] sm:$0xff]  }
 0x90b   :  { %12112 = vmatprep.subr.bf16.mxu0 %v17855_v60  ;;  %v17907_v60 = vld [vmem:[%s23244_s7 + $0x88] sm:$0xff]  }
 0x90e   :  { %12113 = vmatpush1.bf16.msra.mxu0 %v17853_v46  ;;  %v17908_v46 = vld [vmem:[%s23244_s7 + $0xd0] sm:$0xff]  }
 0x90f   :  { %12401 = vmatprep.subr.bf16.mxu0 %v17858_v37  ;;  %v17909_v37 = vld [vmem:[%s23244_s7 + $0x90] sm:$0xff]  }
 0x911   :  { %12131 = vmatmul.mubr.bf16.vlgmr.msra.gmra.mrb[16].mxu0 %v22083_v53  ;;  %v17867_v53 = vld [vmem:[%s23242_s5 + $0xe6c] ss:$16 sps:$4 sm:$0xff]  }
 0x912   :  { %12402 = vmatpush1.bf16.msra.mxu0 %v17856_v55  ;;  %12433 = vmatprep.mubr.bf16.mxu0 %v18774_v20  ;;  %v17910_v55 = vld [vmem:[%s23244_s7 + $0xd8] sm:$0xff]  }
 0x913   :  { %12403 = vmatprep.subr.bf16.mxu0 %v17861_v59  ;;  %v17911_v59 = vld [vmem:[%s23244_s7 + $0x98] sm:$0xff]  }
 0x916   :  { %12404 = vmatpush1.bf16.msra.mxu0 %v17859_v45  ;;  %v17912_v45 = vld [vmem:[%s23244_s7 + $0xe0] sm:$0xff]  }
 0x917   :  { %12405 = vmatprep.subr.bf16.mxu0 %v17864_v40  ;;  %v17913_v40 = vld [vmem:[%s23244_s7 + $0xa0] sm:$0xff]  }
 0x91a   :  { %12406 = vmatpush1.bf16.msra.mxu0 %v17862_v50  ;;  %v17914_v50 = vld [vmem:[%s23244_s7 + $0xe8] sm:$0xff]  }
 0x91b   :  { %12407 = vmatprep.subr.bf16.mxu0 %v17867_v53 }
 0x91e   :  { %12408 = vmatpush1.bf16.msra.mxu0 %v17865_v58 }
 0x91f   :  { %12409 = vmatprep.subr.bf16.mxu0 %v17870_v32 }
 0x922   :  { %12410 = vmatpush1.bf16.msra.mxu0 %v17868_v48 }
 0x923   :  { %12411 = vmatprep.subr.bf16.mxu0 %v17873_v43 }
 0x924   :  { %v10310_v38 = vpop.f32.mrb[248].mxu0 }
 0x925   :  { %v10319_v15 = vadd.f32 %v10310_v38, %v10016_v29  ;;  %v10312_v44 = vpop.f32.mrb[249].mxu0  ;;  %v17916_v38 = vld [vmem:[%s23244_s7 + $0xf0] sm:$0xff]  }
 0x926   :  { %v10320_v35 = vadd.f32 %v10312_v44, %v10017_v61  ;;  %v10314_v27 = vpop.f32.mrb[250].mxu0  ;;  %12412 = vmatpush1.bf16.msra.mxu0 %v17871_v13  ;;  %v17918_v44 = vld [vmem:[%s23244_s7 + $0xf8] sm:$0xff]  }
 0x927   :  { %v10315_v31 = vpop.f32.mrb[251].mxu0  ;;  %12413 = vmatprep.subr.bf16.mxu0 %v17876_v26  ;;  %v17915_v26 = vld [vmem:[%s23244_s7 + $0xa8] sm:$0xff]  }
 0x92a   :  { %12414 = vmatpush1.bf16.msra.mxu0 %v17874_v8 }
 0x92b   :  { %12415 = vmatprep.subr.bf16.mxu0 %v17879_v63 }
 0x92e   :  { %12416 = vmatpush1.bf16.msra.mxu0 %v17877_v34 }
 0x92f   :  { %12704 = vmatprep.subr.bf16.mxu0 %v17882_v18 }
 0x931   :  { %12434 = vmatmul.mubr.bf16.vlgmr.msra.gmra.mrb[20].mxu0 %v22196_v24  ;;  %v17891_v24 = vld [vmem:[%s23242_s5 + $0xf6c] ss:$16 sps:$4 sm:$0xff]  }
 0x932   :  { %12705 = vmatpush1.bf16.msra.mxu0 %v17880_v25  ;;  %12736 = vmatprep.mubr.bf16.mxu0 %v18774_v20  ;;  %v17889_v20 = vld [vmem:[%s23242_s5 + $0xf68] ss:$16 sps:$4 sm:$0xff]  }
 0x933   :  { %12706 = vmatprep.subr.bf16.mxu0 %v17885_v4 }
 0x936   :  { %12707 = vmatpush1.bf16.msra.mxu0 %v17883_v6 }
 0x937   :  { %12708 = vmatprep.subr.bf16.mxu0 %v17888_v3 }
 0x93a   :  { %12709 = vmatpush1.bf16.msra.mxu0 %v17886_v16 }
 0x93b   :  { %12710 = vmatprep.subr.bf16.mxu0 %v17891_v24 }
 0x93e   :  { %12711 = vmatpush1.bf16.msra.mxu0 %v17889_v20 }
 0x93f   :  { %12712 = vmatprep.subr.bf16.mxu0 %v17894_v39 }
 0x942   :  { %12713 = vmatpush1.bf16.msra.mxu0 %v17892_v21 }
 0x943   :  { %12714 = vmatprep.subr.bf16.mxu0 %v17897_v17 }
 0x944   :  { %v10615_v10 = vpop.f32.mrb[252].mxu0 }
 0x945   :  { %v10624_v56 = vadd.f32 %v10615_v10, %v10319_v15  ;;  %v10617_v51 = vpop.f32.mrb[253].mxu0  ;;  %v17917_v15 = vld [vmem:[%s23244_s7 + $0xb0] sm:$0xff]  }
 0x946   :  { %v10625_v14 = vadd.f32 %v10617_v51, %v10320_v35  ;;  %v10619_v22 = vpop.f32.mrb[254].mxu0  ;;  %12715 = vmatpush1.bf16.msra.mxu0 %v17895_v2  ;;  %v17919_v35 = vld [vmem:[%s23244_s7 + $0xb8] sm:$0xff]  }
 0x947   :  { %v10620_v62 = vpop.f32.mrb[255].mxu0  ;;  %12716 = vmatprep.subr.bf16.mxu0 %v17900_v36 }
 0x948   :  { %v12765_v62 = vsub.s32 3, %v22997_v41 }
 0x94a   :  { %12717 = vmatpush1.bf16.msra.mxu0 %v17898_v23  ;;  %v12761_v23 = vsub.s32 2, %v22997_v41  ;;  %v14841_v41 = vld [vmem:[%s23245_s8] ss:$0 sm:$0xff]  ;;  %s18775_s8 = smov [#allocation4]  }
 0x94b   :  { %12718 = vmatprep.subr.bf16.mxu0 %v17903_v42  ;;  %s13151_s19 = sshll.u32 %s18775_s8, 4  ;;  %s13152_s19 = int_to_ptr.vmem [resolvable:$true] %s13151_s19 }
 0x94c   :  { %v12762_v42 = vrot.slane %v23018_v5, %v12761_v23  ;;  %s18750_s20 = scalar_lea.vmem %s13152_s19, 32  ;;  %p18755_p1 = scmp.lt.s32.totalorder %s13152_s19, %s13152_s19 }
 0x94d   :  { %p18751_p0 = scmp.ne.s32.totalorder %s13152_s19, %s18750_s20  ;;  %p18756_p2 = scmp.lt.s32.totalorder %s18750_s20, %s18750_s20 }
 0x94e   :  { %12719 = vmatpush1.bf16.msra.mxu0 %v17901_v9 }
 0x94f   :  { %15400 = vmatprep.subr.bf16.mxu0 %v17904_v0  ;;  %v13127_v0 = vand.u32 127, %v12751_v47  ;;  %p18757_p3 = por %p18756_p2, %p18755_p1 }
 0x951   :  { %12737 = vmatmul.mubr.bf16.vlgmr.msra.gmra.mrb[24].mxu0 %v22302_v57  ;;  %v17905_v57 = vld [vmem:[%s23244_s7 + $0x80] sm:$0xff]   ;;  %vm13128_vm1 = vcmp.lt.s32.totalorder %v13127_v0, 10  ;;  %p18758_p4 = pnand %p18757_p3, %p18751_p0 }
 0x952   :  { %15401 = vmatpush3.bf16.msra.mxu0 %v17905_v57 }
 0x953   :  { %15402 = vmatprep.subr.bf16.mxu0 %v17906_v12 }
 0x956   :  { %15403 = vmatpush3.bf16.msra.mxu0 %v17907_v60 }
 0x957   :  { %15404 = vmatprep.subr.bf16.mxu0 %v17908_v46 }
 0x95a   :  { %15405 = vmatpush3.bf16.msra.mxu0 %v17909_v37 }
 0x95b   :  { %15406 = vmatprep.subr.bf16.mxu0 %v17910_v55 }
 0x95e   :  { %15407 = vmatpush3.bf16.msra.mxu0 %v17911_v59 }
 0x95f   :  { %15408 = vmatprep.subr.bf16.mxu0 %v17912_v45 }
 0x962   :  { %15409 = vmatpush3.bf16.msra.mxu0 %v17913_v40 }
 0x963   :  { %15410 = vmatprep.subr.bf16.mxu0 %v17914_v50 }
 0x964   :  { %v10918_v54 = vpop.f32.mrb[0].mxu0 }
 0x965   :  { %v10927_v11 = vadd.f32 %v10918_v54, %v10624_v56  ;;  %v10920_v49 = vpop.f32.mrb[1].mxu0  ;;  %v12766_v54 = vrot.slane %v23018_v5, %v12765_v62 }
 0x966   :  { %v10928_v1 = vadd.f32 %v10920_v49, %v10625_v14  ;;  %v10922_v19 = vpop.f32.mrb[2].mxu0  ;;  %15411 = vmatpush3.bf16.msra.mxu0 %v17915_v26 }
 0x967   :  { %v10923_v28 = vpop.f32.mrb[3].mxu0  ;;  %15412 = vmatprep.subr.bf16.mxu0 %v17916_v38 }
 0x96a   :  { %15413 = vmatpush3.bf16.msra.mxu0 %v17917_v15 }
 0x96b   :  { %15414 = vmatprep.subr.bf16.mxu0 %v17918_v44 }
 0x96e   :  { %15415 = vmatpush3.bf16.msra.mxu0 %v17919_v35 }
 0x984   :  { %v11221_v52 = vpop.f32.mrb[4].mxu0 }
 0x985   :  { %v11230_v7 = vadd.f32 %v11221_v52, %v10927_v11  ;;  %v11223_v29 = vpop.f32.mrb[5].mxu0 }
 0x986   :  { %v11231_v30 = vadd.f32 %v11223_v29, %v10928_v1  ;;  %v11225_v61 = vpop.f32.mrb[6].mxu0 }
 0x987   :  { %v11226_v33 = vpop.f32.mrb[7].mxu0 }
 0x9a4   :  { %v11524_v53 = vpop.f32.mrb[8].mxu0 }
 0x9a5   :  { %v11533_v58 = vadd.f32 %v11524_v53, %v11230_v7  ;;  %v11526_v32 = vpop.f32.mrb[9].mxu0 }
 0x9a6   :  { %v11534_v48 = vadd.f32 %v11526_v32, %v11231_v30  ;;  %v11528_v43 = vpop.f32.mrb[10].mxu0 }
 0x9a7   :  { %v11529_v13 = vpop.f32.mrb[11].mxu0 }
 0x9c4   :  { %v11829_v27 = vpop.f32.mrb[12].mxu0 }
 0x9c5   :  { %v11838_v8 = vadd.f32 %v11829_v27, %v11533_v58  ;;  %v11831_v31 = vpop.f32.mrb[13].mxu0 }
 0x9c6   :  { %v11839_v63 = vadd.f32 %v11831_v31, %v11534_v48  ;;  %v11833_v34 = vpop.f32.mrb[14].mxu0 }
 0x9c7   :  { %v11834_v18 = vpop.f32.mrb[15].mxu0 }
 0x9d4   :  { %v15394_v25 = vpop.f32.mrb[52].mxu1 }
 0x9d5   :  { %v15395_v4 = vpop.f32.mrb[53].mxu1 }
 0x9d6   :  { %v15396_v6 = vadd.f32 %v15395_v4, %v15394_v25  ;;  %v15397_v3 = vpop.f32.mrb[54].mxu1 }
 0x9d7   :  { %v15398_v16 = vpop.f32.mrb[55].mxu1 }
 0x9d8   :  { %v13081_v12 = vadd.f32 %v15396_v6, %v14841_v41 }
 0x9e4   :  { %v12132_v24 = vpop.f32.mrb[16].mxu0 }
 0x9e5   :  { %v12141_v20 = vadd.f32 %v12132_v24, %v11838_v8  ;;  %v12134_v39 = vpop.f32.mrb[17].mxu0 }
 0x9e6   :  { %v12142_v21 = vadd.f32 %v12134_v39, %v11839_v63  ;;  %v12136_v17 = vpop.f32.mrb[18].mxu0 }
 0x9e7   :  { %v12137_v2 = vpop.f32.mrb[19].mxu0 }
 0xa04   :  { %v12435_v36 = vpop.f32.mrb[20].mxu0 }
 0xa05   :  { %v12444_v10 = vadd.f32 %v12435_v36, %v12141_v20  ;;  %v12437_v56 = vpop.f32.mrb[21].mxu0 }
 0xa06   :  { %v12445_v51 = vadd.f32 %v12437_v56, %v12142_v21  ;;  %v12439_v14 = vpop.f32.mrb[22].mxu0 }
 0xa07   :  { %v12440_v22 = vpop.f32.mrb[23].mxu0 }
 0xa24   :  { %v12738_v9 = vpop.f32.mrb[24].mxu0 }
 0xa25   :  { %v12747_v11 = vadd.f32 %v12738_v9, %v12444_v10  ;;  %v12740_v49 = vpop.f32.mrb[25].mxu0 }
 0xa26   :  { %v12748_v1 = vadd.f32 %v12740_v49, %v12445_v51  ;;  %v12742_v19 = vpop.f32.mrb[26].mxu0 }
 0xa27   :  { %v12773_v28 = vadd.f32 %v12762_v42, %v12747_v11  ;;  %v12743_v52 = vpop.f32.mrb[27].mxu0 }
 0xa28   :  { %v12774_v7 = vadd.f32 %v12766_v54, %v12748_v1 }
 0xa29   :  { %v12777_v29 = vmax.f32 %v12773_v28, 0.0 }
 0xa2a   :  { %v12778_v30 = vmax.f32 %v12774_v7, 0.0 }
 0xa2b   :  { %v12781_v33 = vpack.c.bf16 %v12777_v29, %v12777_v29 }
 0xa2c   :  { %v12782_v61 = vpack.c.bf16 %v12778_v30, %v12778_v30 }
 0xa2e   :  { %13118 = vmatprep.mubr.bf16.mxu0 %v12782_v61 }
 0xa2f   :  { %13119 = vmatmul.mubr.bf16.vlgmr.msra.gmra.mrb[28].mxu0 %v12781_v33 }
 0xb02   :  { %v15416_v5 = vpop.f32.mrb[28].mxu0 }
 0xb03   :  { %v15417_v57 = vpop.f32.mrb[29].mxu0 }
 0xb04   :  { %v15418_v60 = vadd.f32 %v15417_v57, %v15416_v5  ;;  %v15419_v46 = vpop.f32.mrb[30].mxu0 }
 0xb05   :  { %v15420_v37 = vpop.f32.mrb[31].mxu0 }
 0xb06   :  { %v13121_v55 = vadd.f32 %v15418_v60, %v13081_v12 }
 0xb08   :  { %v13129_v59 = vsel %vm13128_vm1, %v13121_v55, -1e+30 }
 0xb09   :  { %v13131_v45 = vsel %vm13130_vm2, %v13129_v59, -inf }
 0xb0a   :  { %13132 = vmax.xlane.f32.xlu0 %v13131_v45 }
 0xb97   :  { %v13133_v40 = vpop.xlane.xlu0 %13132 }
 0xb98   :  { %v13134_v50 = vsub.f32 %v13129_v59, %v13133_v40 }
 0xb9a   :  { %v13135_v53 = vmul.f32 1.442695, %v13134_v50 }
 0xb9c   :  { %18720 = vpow2.f32 %v13135_v53 }
 0xba6   :  { %v18721_v58 = vpop.eup %18720 }
 0xba7   :  { %v13137_v32 = vsel %vm13128_vm1, %v18721_v58, 0.0 }
 0xba8   :  { %v13138_v48 = vsel %vm13130_vm2, %v13137_v32, 0.0 }
 0xba9   :  { %13139 = vadd.xlane.f32.xlu0 %v13138_v48 }
 0xc36   :  { %v13140_v47 = vpop.xlane.xlu0 %13139 }
 0xc37   :  { %18722 = vlog2.f32 %v13140_v47 }
 0xc41   :  { %v18723_v43 = vpop.eup %18722 }
 0xc42   :  { %v13142_v13 = vmul.f32 0.6931472, %v18723_v43 }
 0xc44   :  { %v13143_v26 = vsub.f32 %v13134_v50, %v13142_v13 }
 0xc46   :  { %13144 = vst [vmem:[#allocation4] sm:$0x3] %v13143_v26 }
 0xc47   :  { %18761 = shalt.err (!%p18758_p4)
}
 0xc48   :  { %s18762_s23 = scalar_lea.hbm %s23246_s9, 32 }
 0xc49   :  { %p18763_p5 = scmp.ne.s32.totalorder %s23246_s9, %s18762_s23  ;;  %p18766_p6 = scmp.lt.u32.totalorder %s18762_s23, %s23246_s9 }
 0xc4b   :  { %p18768_p7 = pnand %p18766_p6, %p18763_p5 }
 0xc4d   :  { %18771 = shalt.err (!%p18768_p7)
}
 0xc4e   :  { %13154 = dma.vmem_to_hbm [thread:$0]  %s13152_s19, 32, %s23246_s9, [#allocation5]  }
 0xc4f   :  { %18772 = dma.done.wait [#allocation5], 32  }
 0xc50   :  { %18773 = vsyncadd [#allocation5], 4294967264 }
 0xc51   :  { %13158 = vsyncpa [#allocation5], 1 }

</bundles_post_ra>
